<compile_context>
chip_gen: v5e
topology: v5e:2x2
jax: 0.10.0
libtpu: 0.0.40
codegen_flags: <defaults>
</compile_context>

<pallas_src>
import functools

import jax
import jax.numpy as jnp
from jax.experimental import pallas as pl
from jax.experimental.pallas import tpu as pltpu

_EPS = 1e-5


# ----------------------------- Pallas kernel ------------------------------ #
def _make_conv3x3_kernel(n_inputs, H, W):
    """Fused 3x3 conv (padding=1) + folded-BN shift + ReLU, one image per step.

    Ref layout per grid step:
      x_refs[i]  : (1, H+2, W+2, Cin_i)  bf16, spatially zero-padded NHWC
      w_refs[i]  : (9, Cin_i, Cout)      bf16, BN scale folded, tap = kh*3+kw
      shift_ref  : (Cout, 1)             f32
      o_ref      : (1, Cout, H*W)        f32  (lane-dense: H*W on the lane axis)
    """
    HW = H * W

    def kernel(*refs):
        x_refs = refs[:n_inputs]
        w_refs = refs[n_inputs:2 * n_inputs]
        shift_ref = refs[2 * n_inputs]
        o_ref = refs[2 * n_inputs + 1]
        cout = o_ref.shape[1]

        acc = jnp.zeros((HW, cout), jnp.float32)
        # 9 taps (x n_inputs channel groups), fully reduced in-register; the
        # input is streamed exactly once from HBM (no im2col patch matrix).
        for t in range(9):
            kh, kw = t // 3, t % 3
            for x_ref, w_ref in zip(x_refs, w_refs):
                cin = x_ref.shape[3]
                xt = x_ref[0, kh:kh + H, kw:kw + W, :].reshape(HW, cin)
                acc = acc + jnp.dot(xt, w_ref[t],
                                    preferred_element_type=jnp.float32)

        # Fused (folded-BN) shift + ReLU in f32, written lane-dense as
        # (Cout, H*W) so the store is unmasked (H*W >= 128).
        y = jnp.maximum(acc.T + shift_ref[...], jnp.float32(0.0))
        o_ref[0, :, :] = y

    return kernel


def _conv3x3_bn_relu(x_list, w_list, shift):
    """3x3 conv (padding=1) + BN(eval, folded) + ReLU.

    x_list : list of (N, H, W, Cin_i) NHWC inputs (channel-concat fused here)
    w_list : list of (9, Cin_i, Cout) weights (BN scale already folded in)
    shift  : (Cout, 1) float32
    returns: (N, Cout, H*W) float32
    """
    N, H, W, _ = x_list[0].shape
    Cout = shift.shape[0]
    Hp, Wp = H + 2, W + 2

    # Pad once (~1.3x input bytes) and stream as bf16 (halves HBM bytes,
    # 2x MXU rate); weights also bf16.  Accumulation stays f32 in-kernel.
    xp_list = [jnp.pad(x.astype(jnp.bfloat16), ((0, 0), (1, 1), (1, 1), (0, 0)))
               for x in x_list]
    wb_list = [w.astype(jnp.bfloat16) for w in w_list]

    in_specs = (
        [pl.BlockSpec((1, Hp, Wp, x.shape[3]), lambda n: (n, 0, 0, 0))
         for x in xp_list]
        + [pl.BlockSpec((9, w.shape[1], Cout), lambda n: (0, 0, 0))
           for w in wb_list]
        + [pl.BlockSpec((Cout, 1), lambda n: (0, 0))]
    )

    out = pl.pallas_call(
        _make_conv3x3_kernel(len(x_list), H, W),
        out_shape=jax.ShapeDtypeStruct((N, Cout, H * W), jnp.float32),
        grid=(N,),
        in_specs=in_specs,
        out_specs=pl.BlockSpec((1, Cout, H * W), lambda n: (n, 0, 0)),
        compiler_params=pltpu.CompilerParams(
            dimension_semantics=("parallel",)),  # megacore sharding on v7x
    )(*xp_list, *wb_list, shift)

    return out  # (N, Cout, H*W)


# ------------------------------ JAX glue ops ------------------------------ #
def _upsample_bilinear_x2_align_corners_nhwc(x):
    """Matches nn.UpsamplingBilinear2d(scale_factor=2) (align_corners=True).

    x: (N, H, W, C) -> (N, 2H, 2W, C).  Kept as plain-JAX glue (a weighted
    gather); it is a small fraction of the bytes on this path.
    """
    N, H, W, C = x.shape
    Ho, Wo = 2 * H, 2 * W

    ys = jnp.arange(Ho, dtype=jnp.float32) * ((H - 1) / (Ho - 1))
    y0 = jnp.floor(ys).astype(jnp.int32)
    y1 = jnp.minimum(y0 + 1, H - 1)
    wy = ys - y0.astype(jnp.float32)

    xs = jnp.arange(Wo, dtype=jnp.float32) * ((W - 1) / (Wo - 1))
    x0 = jnp.floor(xs).astype(jnp.int32)
    x1i = jnp.minimum(x0 + 1, W - 1)
    wx = xs - x0.astype(jnp.float32)

    rows = (x[:, y0, :, :] * (1.0 - wy)[None, :, None, None]
            + x[:, y1, :, :] * wy[None, :, None, None])            # (N,Ho,W,C)
    out = (rows[:, :, x0, :] * (1.0 - wx)[None, None, :, None]
           + rows[:, :, x1i, :] * wx[None, None, :, None])         # (N,Ho,Wo,C)
    return out


def _fold_bn(w, b, gamma, beta, mean, var):
    """Torch (Cout,Cin,3,3) conv weight + bias + BN(eval) -> (9,Cin,Cout), (Cout,1)."""
    Cout, Cin = w.shape[0], w.shape[1]
    scale = gamma / jnp.sqrt(var + _EPS)                      # (Cout,)
    shift = (beta + (b - mean) * scale).reshape(Cout, 1).astype(jnp.float32)
    w9 = jnp.transpose(w, (2, 3, 1, 0)).reshape(9, Cin, Cout)  # tap = kh*3+kw
    w9 = (w9 * scale[None, None, :]).astype(jnp.float32)
    return w9, shift


# ------------------------------- Up module -------------------------------- #
def init_up_params(key, in_size, out_size):
    k = jax.random.split(key, 4)
    p = {}
    # conv1: Conv2d(in_size, out_size, 3, padding=1) + BN(out_size)
    p["w1"] = 0.1 * jax.random.normal(k[0], (out_size, in_size, 3, 3), jnp.float32)
    p["b1"] = 0.1 * jax.random.normal(k[1], (out_size,), jnp.float32)
    p["g1"] = jnp.ones((out_size,), jnp.float32)
    p["be1"] = jnp.zeros((out_size,), jnp.float32)
    p["m1"] = jnp.zeros((out_size,), jnp.float32)
    p["v1"] = jnp.ones((out_size,), jnp.float32)
    # conv2: Conv2d(out_size, out_size, 3, padding=1) + BN(out_size)
    p["w2"] = 0.1 * jax.random.normal(k[2], (out_size, out_size, 3, 3), jnp.float32)
    p["b2"] = 0.1 * jax.random.normal(k[3], (out_size,), jnp.float32)
    p["g2"] = jnp.ones((out_size,), jnp.float32)
    p["be2"] = jnp.zeros((out_size,), jnp.float32)
    p["m2"] = jnp.zeros((out_size,), jnp.float32)
    p["v2"] = jnp.ones((out_size,), jnp.float32)
    return p


@jax.jit
def up_forward(params, x1_nchw, x2_nchw):
    N, C1, H1, W1 = x1_nchw.shape
    C2 = x2_nchw.shape[1]
    H, W = 2 * H1, 2 * W1
    Cout = params["w1"].shape[0]

    # Small one-time layout conversions (channels-last for the conv kernels).
    x1_nhwc = jnp.transpose(x1_nchw, (0, 2, 3, 1))
    x2_nhwc = jnp.transpose(x2_nchw, (0, 2, 3, 1))

    # 1) bilinear x2 upsample of x1 (align_corners=True)
    x1_up = _upsample_bilinear_x2_align_corners_nhwc(x1_nhwc)      # (N,H,W,C1)

    # 2) + 3) concat([x2, x1_up], channel) + conv1 + BN + ReLU, with the concat
    #    fused into the kernel by splitting conv1's weights along Cin.
    w1, shift1 = _fold_bn(params["w1"], params["b1"], params["g1"],
                          params["be1"], params["m1"], params["v1"])
    w1a, w1b = w1[:, :C2, :], w1[:, C2:, :]        # x2-part, x1_up-part
    y1 = _conv3x3_bn_relu([x2_nhwc, x1_up], [w1a, w1b], shift1)    # (N,Cout,H*W)

    # conv2 + BN + ReLU.  Its input must be NHWC; one tiny transpose of the
    # (lane-dense) conv1 output.  (With real >=128 channel counts you would
    # keep NHWC outputs and skip this.)
    w2, shift2 = _fold_bn(params["w2"], params["b2"], params["g2"],
                          params["be2"], params["m2"], params["v2"])
    y1_nhwc = jnp.transpose(y1.reshape(N, Cout, H, W), (0, 2, 3, 1))
    y2 = _conv3x3_bn_relu([y1_nhwc], [w2], shift2)                 # (N,Cout,H*W)

    # Final output is NCHW -> pure reshape of the lane-dense kernel output.
    return y2.reshape(N, Cout, H, W)


# --------------------------------- main ------------------------------------ #
if __name__ == "__main__":
    key = jax.random.PRNGKey(0)
    k_x1, k_x2, k_p = jax.random.split(key, 3)

    # x1: low-res feature map, x2: skip connection at 2x resolution.
    N, C1, H, W = 2, 4, 8, 8
    C2 = 4
    in_size, out_size = C1 + C2, 4          # Up(inSize=8, outSize=4)

    x1 = jax.random.normal(k_x1, (N, C1, H, W), jnp.float32)
    x2 = jax.random.normal(k_x2, (N, C2, 2 * H, 2 * W), jnp.float32)

    params = init_up_params(k_p, in_size, out_size)

    out = up_forward(params, x1, x2)
    out = jax.block_until_ready(out)

    assert out.shape == (N, out_size, 2 * H, 2 * W)
    assert bool(jnp.all(jnp.isfinite(out)))
    print("KERNEL_OK")
</pallas_src>

<mosaic_0001>
module attributes {stable_mosaic.version = 11 : i64} {
  func.func @kernel(%arg0: i32, %arg1: memref<1x18x18x4xbf16, #tpu.memory_space<vmem>>, %arg2: memref<1x18x18x4xbf16, #tpu.memory_space<vmem>>, %arg3: memref<9x4x4xbf16, #tpu.memory_space<vmem>>, %arg4: memref<9x4x4xbf16, #tpu.memory_space<vmem>>, %arg5: memref<4x1xf32, #tpu.memory_space<vmem>>, %arg6: memref<1x4x256xf32, #tpu.memory_space<vmem>>) attributes {dimension_semantics = [#tpu.dimension_semantics<parallel>], iteration_bounds = array<i64: 2>, scalar_prefetch = 0 : i64, scratch_operands = 0 : i64, tpu.core_type = #tpu.core_type<tc>, window_params = [{transform_indices = @transform_0, window_bounds = array<i64: 1, 18, 18, 4>}, {transform_indices = @transform_1, window_bounds = array<i64: 1, 18, 18, 4>}, {pipeline_mode = #tpu.pipeline_mode<synchronous>, transform_indices = @transform_2, window_bounds = array<i64: 9, 4, 4>}, {pipeline_mode = #tpu.pipeline_mode<synchronous>, transform_indices = @transform_3, window_bounds = array<i64: 9, 4, 4>}, {pipeline_mode = #tpu.pipeline_mode<synchronous>, transform_indices = @transform_4, window_bounds = array<i64: 4, 1>}, {transform_indices = @transform_5, window_bounds = array<i64: 1, 4, 256>}]} {
    %cst = arith.constant 0.000000e+00 : f32
    %0 = vector.broadcast %cst : f32 to vector<256x4xf32>
    %c0 = arith.constant 0 : index
    %c0_0 = arith.constant 0 : index
    %c0_1 = arith.constant 0 : index
    %c0_2 = arith.constant 0 : index
    %1 = vector.load %arg1[%c0, %c0_0, %c0_1, %c0_2] : memref<1x18x18x4xbf16, #tpu.memory_space<vmem>>, vector<1x16x16x4xbf16>
    %2 = vector.shape_cast %1 : vector<1x16x16x4xbf16> to vector<16x16x4xbf16>
    %3 = vector.shape_cast %2 : vector<16x16x4xbf16> to vector<256x4xbf16>
    %c0_3 = arith.constant 0 : index
    %c0_4 = arith.constant 0 : index
    %c0_5 = arith.constant 0 : index
    %4 = vector.load %arg3[%c0_3, %c0_4, %c0_5] : memref<9x4x4xbf16, #tpu.memory_space<vmem>>, vector<1x4x4xbf16>
    %5 = vector.shape_cast %4 : vector<1x4x4xbf16> to vector<4x4xbf16>
    %cst_6 = arith.constant dense<0.000000e+00> : vector<256x4xf32>
    %6 = tpu.matmul %3, %5, %cst_6 {dimension_numbers = #tpu.dot_dimension_numbers<[1], [0], [0], [1], [0, 0, 1, 1], [], []>} : vector<256x4xbf16>, vector<4x4xbf16>, vector<256x4xf32> -> vector<256x4xf32>
    %7 = arith.addf %0, %6 : vector<256x4xf32>
    %c0_7 = arith.constant 0 : index
    %c0_8 = arith.constant 0 : index
    %c0_9 = arith.constant 0 : index
    %c0_10 = arith.constant 0 : index
    %8 = vector.load %arg2[%c0_7, %c0_8, %c0_9, %c0_10] : memref<1x18x18x4xbf16, #tpu.memory_space<vmem>>, vector<1x16x16x4xbf16>
    %9 = vector.shape_cast %8 : vector<1x16x16x4xbf16> to vector<16x16x4xbf16>
    %10 = vector.shape_cast %9 : vector<16x16x4xbf16> to vector<256x4xbf16>
    %c0_11 = arith.constant 0 : index
    %c0_12 = arith.constant 0 : index
    %c0_13 = arith.constant 0 : index
    %11 = vector.load %arg4[%c0_11, %c0_12, %c0_13] : memref<9x4x4xbf16, #tpu.memory_space<vmem>>, vector<1x4x4xbf16>
    %12 = vector.shape_cast %11 : vector<1x4x4xbf16> to vector<4x4xbf16>
    %cst_14 = arith.constant dense<0.000000e+00> : vector<256x4xf32>
    %13 = tpu.matmul %10, %12, %cst_14 {dimension_numbers = #tpu.dot_dimension_numbers<[1], [0], [0], [1], [0, 0, 1, 1], [], []>} : vector<256x4xbf16>, vector<4x4xbf16>, vector<256x4xf32> -> vector<256x4xf32>
    %14 = arith.addf %7, %13 : vector<256x4xf32>
    %c0_15 = arith.constant 0 : index
    %c0_16 = arith.constant 0 : index
    %c1 = arith.constant 1 : index
    %c0_17 = arith.constant 0 : index
    %15 = vector.load %arg1[%c0_15, %c0_16, %c1, %c0_17] : memref<1x18x18x4xbf16, #tpu.memory_space<vmem>>, vector<1x16x16x4xbf16>
    %16 = vector.shape_cast %15 : vector<1x16x16x4xbf16> to vector<16x16x4xbf16>
    %17 = vector.shape_cast %16 : vector<16x16x4xbf16> to vector<256x4xbf16>
    %c1_18 = arith.constant 1 : index
    %c0_19 = arith.constant 0 : index
    %c0_20 = arith.constant 0 : index
    %18 = vector.load %arg3[%c1_18, %c0_19, %c0_20] : memref<9x4x4xbf16, #tpu.memory_space<vmem>>, vector<1x4x4xbf16>
    %19 = vector.shape_cast %18 : vector<1x4x4xbf16> to vector<4x4xbf16>
    %cst_21 = arith.constant dense<0.000000e+00> : vector<256x4xf32>
    %20 = tpu.matmul %17, %19, %cst_21 {dimension_numbers = #tpu.dot_dimension_numbers<[1], [0], [0], [1], [0, 0, 1, 1], [], []>} : vector<256x4xbf16>, vector<4x4xbf16>, vector<256x4xf32> -> vector<256x4xf32>
    %21 = arith.addf %14, %20 : vector<256x4xf32>
    %c0_22 = arith.constant 0 : index
    %c0_23 = arith.constant 0 : index
    %c1_24 = arith.constant 1 : index
    %c0_25 = arith.constant 0 : index
    %22 = vector.load %arg2[%c0_22, %c0_23, %c1_24, %c0_25] : memref<1x18x18x4xbf16, #tpu.memory_space<vmem>>, vector<1x16x16x4xbf16>
    %23 = vector.shape_cast %22 : vector<1x16x16x4xbf16> to vector<16x16x4xbf16>
    %24 = vector.shape_cast %23 : vector<16x16x4xbf16> to vector<256x4xbf16>
    %c1_26 = arith.constant 1 : index
    %c0_27 = arith.constant 0 : index
    %c0_28 = arith.constant 0 : index
    %25 = vector.load %arg4[%c1_26, %c0_27, %c0_28] : memref<9x4x4xbf16, #tpu.memory_space<vmem>>, vector<1x4x4xbf16>
    %26 = vector.shape_cast %25 : vector<1x4x4xbf16> to vector<4x4xbf16>
    %cst_29 = arith.constant dense<0.000000e+00> : vector<256x4xf32>
    %27 = tpu.matmul %24, %26, %cst_29 {dimension_numbers = #tpu.dot_dimension_numbers<[1], [0], [0], [1], [0, 0, 1, 1], [], []>} : vector<256x4xbf16>, vector<4x4xbf16>, vector<256x4xf32> -> vector<256x4xf32>
    %28 = arith.addf %21, %27 : vector<256x4xf32>
    %c0_30 = arith.constant 0 : index
    %c0_31 = arith.constant 0 : index
    %c2 = arith.constant 2 : index
    %c0_32 = arith.constant 0 : index
    %29 = vector.load %arg1[%c0_30, %c0_31, %c2, %c0_32] : memref<1x18x18x4xbf16, #tpu.memory_space<vmem>>, vector<1x16x16x4xbf16>
    %30 = vector.shape_cast %29 : vector<1x16x16x4xbf16> to vector<16x16x4xbf16>
    %31 = vector.shape_cast %30 : vector<16x16x4xbf16> to vector<256x4xbf16>
    %c2_33 = arith.constant 2 : index
    %c0_34 = arith.constant 0 : index
    %c0_35 = arith.constant 0 : index
    %32 = vector.load %arg3[%c2_33, %c0_34, %c0_35] : memref<9x4x4xbf16, #tpu.memory_space<vmem>>, vector<1x4x4xbf16>
    %33 = vector.shape_cast %32 : vector<1x4x4xbf16> to vector<4x4xbf16>
    %cst_36 = arith.constant dense<0.000000e+00> : vector<256x4xf32>
    %34 = tpu.matmul %31, %33, %cst_36 {dimension_numbers = #tpu.dot_dimension_numbers<[1], [0], [0], [1], [0, 0, 1, 1], [], []>} : vector<256x4xbf16>, vector<4x4xbf16>, vector<256x4xf32> -> vector<256x4xf32>
    %35 = arith.addf %28, %34 : vector<256x4xf32>
    %c0_37 = arith.constant 0 : index
    %c0_38 = arith.constant 0 : index
    %c2_39 = arith.constant 2 : index
    %c0_40 = arith.constant 0 : index
    %36 = vector.load %arg2[%c0_37, %c0_38, %c2_39, %c0_40] : memref<1x18x18x4xbf16, #tpu.memory_space<vmem>>, vector<1x16x16x4xbf16>
    %37 = vector.shape_cast %36 : vector<1x16x16x4xbf16> to vector<16x16x4xbf16>
    %38 = vector.shape_cast %37 : vector<16x16x4xbf16> to vector<256x4xbf16>
    %c2_41 = arith.constant 2 : index
    %c0_42 = arith.constant 0 : index
    %c0_43 = arith.constant 0 : index
    %39 = vector.load %arg4[%c2_41, %c0_42, %c0_43] : memref<9x4x4xbf16, #tpu.memory_space<vmem>>, vector<1x4x4xbf16>
    %40 = vector.shape_cast %39 : vector<1x4x4xbf16> to vector<4x4xbf16>
    %cst_44 = arith.constant dense<0.000000e+00> : vector<256x4xf32>
    %41 = tpu.matmul %38, %40, %cst_44 {dimension_numbers = #tpu.dot_dimension_numbers<[1], [0], [0], [1], [0, 0, 1, 1], [], []>} : vector<256x4xbf16>, vector<4x4xbf16>, vector<256x4xf32> -> vector<256x4xf32>
    %42 = arith.addf %35, %41 : vector<256x4xf32>
    %c0_45 = arith.constant 0 : index
    %c1_46 = arith.constant 1 : index
    %c0_47 = arith.constant 0 : index
    %c0_48 = arith.constant 0 : index
    %43 = vector.load %arg1[%c0_45, %c1_46, %c0_47, %c0_48] : memref<1x18x18x4xbf16, #tpu.memory_space<vmem>>, vector<1x16x16x4xbf16>
    %44 = vector.shape_cast %43 : vector<1x16x16x4xbf16> to vector<16x16x4xbf16>
    %45 = vector.shape_cast %44 : vector<16x16x4xbf16> to vector<256x4xbf16>
    %c3 = arith.constant 3 : index
    %c0_49 = arith.constant 0 : index
    %c0_50 = arith.constant 0 : index
    %46 = vector.load %arg3[%c3, %c0_49, %c0_50] : memref<9x4x4xbf16, #tpu.memory_space<vmem>>, vector<1x4x4xbf16>
    %47 = vector.shape_cast %46 : vector<1x4x4xbf16> to vector<4x4xbf16>
    %cst_51 = arith.constant dense<0.000000e+00> : vector<256x4xf32>
    %48 = tpu.matmul %45, %47, %cst_51 {dimension_numbers = #tpu.dot_dimension_numbers<[1], [0], [0], [1], [0, 0, 1, 1], [], []>} : vector<256x4xbf16>, vector<4x4xbf16>, vector<256x4xf32> -> vector<256x4xf32>
    %49 = arith.addf %42, %48 : vector<256x4xf32>
    %c0_52 = arith.constant 0 : index
    %c1_53 = arith.constant 1 : index
    %c0_54 = arith.constant 0 : index
    %c0_55 = arith.constant 0 : index
    %50 = vector.load %arg2[%c0_52, %c1_53, %c0_54, %c0_55] : memref<1x18x18x4xbf16, #tpu.memory_space<vmem>>, vector<1x16x16x4xbf16>
    %51 = vector.shape_cast %50 : vector<1x16x16x4xbf16> to vector<16x16x4xbf16>
    %52 = vector.shape_cast %51 : vector<16x16x4xbf16> to vector<256x4xbf16>
    %c3_56 = arith.constant 3 : index
    %c0_57 = arith.constant 0 : index
    %c0_58 = arith.constant 0 : index
    %53 = vector.load %arg4[%c3_56, %c0_57, %c0_58] : memref<9x4x4xbf16, #tpu.memory_space<vmem>>, vector<1x4x4xbf16>
    %54 = vector.shape_cast %53 : vector<1x4x4xbf16> to vector<4x4xbf16>
    %cst_59 = arith.constant dense<0.000000e+00> : vector<256x4xf32>
    %55 = tpu.matmul %52, %54, %cst_59 {dimension_numbers = #tpu.dot_dimension_numbers<[1], [0], [0], [1], [0, 0, 1, 1], [], []>} : vector<256x4xbf16>, vector<4x4xbf16>, vector<256x4xf32> -> vector<256x4xf32>
    %56 = arith.addf %49, %55 : vector<256x4xf32>
    %c0_60 = arith.constant 0 : index
    %c1_61 = arith.constant 1 : index
    %c1_62 = arith.constant 1 : index
    %c0_63 = arith.constant 0 : index
    %57 = vector.load %arg1[%c0_60, %c1_61, %c1_62, %c0_63] : memref<1x18x18x4xbf16, #tpu.memory_space<vmem>>, vector<1x16x16x4xbf16>
    %58 = vector.shape_cast %57 : vector<1x16x16x4xbf16> to vector<16x16x4xbf16>
    %59 = vector.shape_cast %58 : vector<16x16x4xbf16> to vector<256x4xbf16>
    %c4 = arith.constant 4 : index
    %c0_64 = arith.constant 0 : index
    %c0_65 = arith.constant 0 : index
    %60 = vector.load %arg3[%c4, %c0_64, %c0_65] : memref<9x4x4xbf16, #tpu.memory_space<vmem>>, vector<1x4x4xbf16>
    %61 = vector.shape_cast %60 : vector<1x4x4xbf16> to vector<4x4xbf16>
    %cst_66 = arith.constant dense<0.000000e+00> : vector<256x4xf32>
    %62 = tpu.matmul %59, %61, %cst_66 {dimension_numbers = #tpu.dot_dimension_numbers<[1], [0], [0], [1], [0, 0, 1, 1], [], []>} : vector<256x4xbf16>, vector<4x4xbf16>, vector<256x4xf32> -> vector<256x4xf32>
    %63 = arith.addf %56, %62 : vector<256x4xf32>
    %c0_67 = arith.constant 0 : index
    %c1_68 = arith.constant 1 : index
    %c1_69 = arith.constant 1 : index
    %c0_70 = arith.constant 0 : index
    %64 = vector.load %arg2[%c0_67, %c1_68, %c1_69, %c0_70] : memref<1x18x18x4xbf16, #tpu.memory_space<vmem>>, vector<1x16x16x4xbf16>
    %65 = vector.shape_cast %64 : vector<1x16x16x4xbf16> to vector<16x16x4xbf16>
    %66 = vector.shape_cast %65 : vector<16x16x4xbf16> to vector<256x4xbf16>
    %c4_71 = arith.constant 4 : index
    %c0_72 = arith.constant 0 : index
    %c0_73 = arith.constant 0 : index
    %67 = vector.load %arg4[%c4_71, %c0_72, %c0_73] : memref<9x4x4xbf16, #tpu.memory_space<vmem>>, vector<1x4x4xbf16>
    %68 = vector.shape_cast %67 : vector<1x4x4xbf16> to vector<4x4xbf16>
    %cst_74 = arith.constant dense<0.000000e+00> : vector<256x4xf32>
    %69 = tpu.matmul %66, %68, %cst_74 {dimension_numbers = #tpu.dot_dimension_numbers<[1], [0], [0], [1], [0, 0, 1, 1], [], []>} : vector<256x4xbf16>, vector<4x4xbf16>, vector<256x4xf32> -> vector<256x4xf32>
    %70 = arith.addf %63, %69 : vector<256x4xf32>
    %c0_75 = arith.constant 0 : index
    %c1_76 = arith.constant 1 : index
    %c2_77 = arith.constant 2 : index
    %c0_78 = arith.constant 0 : index
    %71 = vector.load %arg1[%c0_75, %c1_76, %c2_77, %c0_78] : memref<1x18x18x4xbf16, #tpu.memory_space<vmem>>, vector<1x16x16x4xbf16>
    %72 = vector.shape_cast %71 : vector<1x16x16x4xbf16> to vector<16x16x4xbf16>
    %73 = vector.shape_cast %72 : vector<16x16x4xbf16> to vector<256x4xbf16>
    %c5 = arith.constant 5 : index
    %c0_79 = arith.constant 0 : index
    %c0_80 = arith.constant 0 : index
    %74 = vector.load %arg3[%c5, %c0_79, %c0_80] : memref<9x4x4xbf16, #tpu.memory_space<vmem>>, vector<1x4x4xbf16>
    %75 = vector.shape_cast %74 : vector<1x4x4xbf16> to vector<4x4xbf16>
    %cst_81 = arith.constant dense<0.000000e+00> : vector<256x4xf32>
    %76 = tpu.matmul %73, %75, %cst_81 {dimension_numbers = #tpu.dot_dimension_numbers<[1], [0], [0], [1], [0, 0, 1, 1], [], []>} : vector<256x4xbf16>, vector<4x4xbf16>, vector<256x4xf32> -> vector<256x4xf32>
    %77 = arith.addf %70, %76 : vector<256x4xf32>
    %c0_82 = arith.constant 0 : index
    %c1_83 = arith.constant 1 : index
    %c2_84 = arith.constant 2 : index
    %c0_85 = arith.constant 0 : index
    %78 = vector.load %arg2[%c0_82, %c1_83, %c2_84, %c0_85] : memref<1x18x18x4xbf16, #tpu.memory_space<vmem>>, vector<1x16x16x4xbf16>
    %79 = vector.shape_cast %78 : vector<1x16x16x4xbf16> to vector<16x16x4xbf16>
    %80 = vector.shape_cast %79 : vector<16x16x4xbf16> to vector<256x4xbf16>
    %c5_86 = arith.constant 5 : index
    %c0_87 = arith.constant 0 : index
    %c0_88 = arith.constant 0 : index
    %81 = vector.load %arg4[%c5_86, %c0_87, %c0_88] : memref<9x4x4xbf16, #tpu.memory_space<vmem>>, vector<1x4x4xbf16>
    %82 = vector.shape_cast %81 : vector<1x4x4xbf16> to vector<4x4xbf16>
    %cst_89 = arith.constant dense<0.000000e+00> : vector<256x4xf32>
    %83 = tpu.matmul %80, %82, %cst_89 {dimension_numbers = #tpu.dot_dimension_numbers<[1], [0], [0], [1], [0, 0, 1, 1], [], []>} : vector<256x4xbf16>, vector<4x4xbf16>, vector<256x4xf32> -> vector<256x4xf32>
    %84 = arith.addf %77, %83 : vector<256x4xf32>
    %c0_90 = arith.constant 0 : index
    %c2_91 = arith.constant 2 : index
    %c0_92 = arith.constant 0 : index
    %c0_93 = arith.constant 0 : index
    %85 = vector.load %arg1[%c0_90, %c2_91, %c0_92, %c0_93] : memref<1x18x18x4xbf16, #tpu.memory_space<vmem>>, vector<1x16x16x4xbf16>
    %86 = vector.shape_cast %85 : vector<1x16x16x4xbf16> to vector<16x16x4xbf16>
    %87 = vector.shape_cast %86 : vector<16x16x4xbf16> to vector<256x4xbf16>
    %c6 = arith.constant 6 : index
    %c0_94 = arith.constant 0 : index
    %c0_95 = arith.constant 0 : index
    %88 = vector.load %arg3[%c6, %c0_94, %c0_95] : memref<9x4x4xbf16, #tpu.memory_space<vmem>>, vector<1x4x4xbf16>
    %89 = vector.shape_cast %88 : vector<1x4x4xbf16> to vector<4x4xbf16>
    %cst_96 = arith.constant dense<0.000000e+00> : vector<256x4xf32>
    %90 = tpu.matmul %87, %89, %cst_96 {dimension_numbers = #tpu.dot_dimension_numbers<[1], [0], [0], [1], [0, 0, 1, 1], [], []>} : vector<256x4xbf16>, vector<4x4xbf16>, vector<256x4xf32> -> vector<256x4xf32>
    %91 = arith.addf %84, %90 : vector<256x4xf32>
    %c0_97 = arith.constant 0 : index
    %c2_98 = arith.constant 2 : index
    %c0_99 = arith.constant 0 : index
    %c0_100 = arith.constant 0 : index
    %92 = vector.load %arg2[%c0_97, %c2_98, %c0_99, %c0_100] : memref<1x18x18x4xbf16, #tpu.memory_space<vmem>>, vector<1x16x16x4xbf16>
    %93 = vector.shape_cast %92 : vector<1x16x16x4xbf16> to vector<16x16x4xbf16>
    %94 = vector.shape_cast %93 : vector<16x16x4xbf16> to vector<256x4xbf16>
    %c6_101 = arith.constant 6 : index
    %c0_102 = arith.constant 0 : index
    %c0_103 = arith.constant 0 : index
    %95 = vector.load %arg4[%c6_101, %c0_102, %c0_103] : memref<9x4x4xbf16, #tpu.memory_space<vmem>>, vector<1x4x4xbf16>
    %96 = vector.shape_cast %95 : vector<1x4x4xbf16> to vector<4x4xbf16>
    %cst_104 = arith.constant dense<0.000000e+00> : vector<256x4xf32>
    %97 = tpu.matmul %94, %96, %cst_104 {dimension_numbers = #tpu.dot_dimension_numbers<[1], [0], [0], [1], [0, 0, 1, 1], [], []>} : vector<256x4xbf16>, vector<4x4xbf16>, vector<256x4xf32> -> vector<256x4xf32>
    %98 = arith.addf %91, %97 : vector<256x4xf32>
    %c0_105 = arith.constant 0 : index
    %c2_106 = arith.constant 2 : index
    %c1_107 = arith.constant 1 : index
    %c0_108 = arith.constant 0 : index
    %99 = vector.load %arg1[%c0_105, %c2_106, %c1_107, %c0_108] : memref<1x18x18x4xbf16, #tpu.memory_space<vmem>>, vector<1x16x16x4xbf16>
    %100 = vector.shape_cast %99 : vector<1x16x16x4xbf16> to vector<16x16x4xbf16>
    %101 = vector.shape_cast %100 : vector<16x16x4xbf16> to vector<256x4xbf16>
    %c7 = arith.constant 7 : index
    %c0_109 = arith.constant 0 : index
    %c0_110 = arith.constant 0 : index
    %102 = vector.load %arg3[%c7, %c0_109, %c0_110] : memref<9x4x4xbf16, #tpu.memory_space<vmem>>, vector<1x4x4xbf16>
    %103 = vector.shape_cast %102 : vector<1x4x4xbf16> to vector<4x4xbf16>
    %cst_111 = arith.constant dense<0.000000e+00> : vector<256x4xf32>
    %104 = tpu.matmul %101, %103, %cst_111 {dimension_numbers = #tpu.dot_dimension_numbers<[1], [0], [0], [1], [0, 0, 1, 1], [], []>} : vector<256x4xbf16>, vector<4x4xbf16>, vector<256x4xf32> -> vector<256x4xf32>
    %105 = arith.addf %98, %104 : vector<256x4xf32>
    %c0_112 = arith.constant 0 : index
    %c2_113 = arith.constant 2 : index
    %c1_114 = arith.constant 1 : index
    %c0_115 = arith.constant 0 : index
    %106 = vector.load %arg2[%c0_112, %c2_113, %c1_114, %c0_115] : memref<1x18x18x4xbf16, #tpu.memory_space<vmem>>, vector<1x16x16x4xbf16>
    %107 = vector.shape_cast %106 : vector<1x16x16x4xbf16> to vector<16x16x4xbf16>
    %108 = vector.shape_cast %107 : vector<16x16x4xbf16> to vector<256x4xbf16>
    %c7_116 = arith.constant 7 : index
    %c0_117 = arith.constant 0 : index
    %c0_118 = arith.constant 0 : index
    %109 = vector.load %arg4[%c7_116, %c0_117, %c0_118] : memref<9x4x4xbf16, #tpu.memory_space<vmem>>, vector<1x4x4xbf16>
    %110 = vector.shape_cast %109 : vector<1x4x4xbf16> to vector<4x4xbf16>
    %cst_119 = arith.constant dense<0.000000e+00> : vector<256x4xf32>
    %111 = tpu.matmul %108, %110, %cst_119 {dimension_numbers = #tpu.dot_dimension_numbers<[1], [0], [0], [1], [0, 0, 1, 1], [], []>} : vector<256x4xbf16>, vector<4x4xbf16>, vector<256x4xf32> -> vector<256x4xf32>
    %112 = arith.addf %105, %111 : vector<256x4xf32>
    %c0_120 = arith.constant 0 : index
    %c2_121 = arith.constant 2 : index
    %c2_122 = arith.constant 2 : index
    %c0_123 = arith.constant 0 : index
    %113 = vector.load %arg1[%c0_120, %c2_121, %c2_122, %c0_123] : memref<1x18x18x4xbf16, #tpu.memory_space<vmem>>, vector<1x16x16x4xbf16>
    %114 = vector.shape_cast %113 : vector<1x16x16x4xbf16> to vector<16x16x4xbf16>
    %115 = vector.shape_cast %114 : vector<16x16x4xbf16> to vector<256x4xbf16>
    %c8 = arith.constant 8 : index
    %c0_124 = arith.constant 0 : index
    %c0_125 = arith.constant 0 : index
    %116 = vector.load %arg3[%c8, %c0_124, %c0_125] : memref<9x4x4xbf16, #tpu.memory_space<vmem>>, vector<1x4x4xbf16>
    %117 = vector.shape_cast %116 : vector<1x4x4xbf16> to vector<4x4xbf16>
    %cst_126 = arith.constant dense<0.000000e+00> : vector<256x4xf32>
    %118 = tpu.matmul %115, %117, %cst_126 {dimension_numbers = #tpu.dot_dimension_numbers<[1], [0], [0], [1], [0, 0, 1, 1], [], []>} : vector<256x4xbf16>, vector<4x4xbf16>, vector<256x4xf32> -> vector<256x4xf32>
    %119 = arith.addf %112, %118 : vector<256x4xf32>
    %c0_127 = arith.constant 0 : index
    %c2_128 = arith.constant 2 : index
    %c2_129 = arith.constant 2 : index
    %c0_130 = arith.constant 0 : index
    %120 = vector.load %arg2[%c0_127, %c2_128, %c2_129, %c0_130] : memref<1x18x18x4xbf16, #tpu.memory_space<vmem>>, vector<1x16x16x4xbf16>
    %121 = vector.shape_cast %120 : vector<1x16x16x4xbf16> to vector<16x16x4xbf16>
    %122 = vector.shape_cast %121 : vector<16x16x4xbf16> to vector<256x4xbf16>
    %c8_131 = arith.constant 8 : index
    %c0_132 = arith.constant 0 : index
    %c0_133 = arith.constant 0 : index
    %123 = vector.load %arg4[%c8_131, %c0_132, %c0_133] : memref<9x4x4xbf16, #tpu.memory_space<vmem>>, vector<1x4x4xbf16>
    %124 = vector.shape_cast %123 : vector<1x4x4xbf16> to vector<4x4xbf16>
    %cst_134 = arith.constant dense<0.000000e+00> : vector<256x4xf32>
    %125 = tpu.matmul %122, %124, %cst_134 {dimension_numbers = #tpu.dot_dimension_numbers<[1], [0], [0], [1], [0, 0, 1, 1], [], []>} : vector<256x4xbf16>, vector<4x4xbf16>, vector<256x4xf32> -> vector<256x4xf32>
    %126 = arith.addf %119, %125 : vector<256x4xf32>
    %127 = tpu.transpose %126, [1, 0] : vector<256x4xf32> -> vector<4x256xf32>
    %c0_135 = arith.constant 0 : index
    %c0_136 = arith.constant 0 : index
    %128 = vector.load %arg5[%c0_135, %c0_136] : memref<4x1xf32, #tpu.memory_space<vmem>>, vector<4x1xf32>
    %129 = vector.broadcast %128 : vector<4x1xf32> to vector<4x256xf32>
    %130 = arith.addf %127, %129 : vector<4x256xf32>
    %cst_137 = arith.constant 0.000000e+00 : f32
    %131 = vector.broadcast %cst_137 : f32 to vector<4x256xf32>
    %132 = arith.maximumf %130, %131 : vector<4x256xf32>
    %c0_138 = arith.constant 0 : index
    %c0_139 = arith.constant 0 : index
    %c0_140 = arith.constant 0 : index
    %133 = vector.load %arg6[%c0_138, %c0_139, %c0_140] : memref<1x4x256xf32, #tpu.memory_space<vmem>>, vector<1x4x256xf32>
    %134 = vector.shape_cast %133 : vector<1x4x256xf32> to vector<4x256xf32>
    %135 = vector.shape_cast %132 : vector<4x256xf32> to vector<1x4x256xf32>
    tpu.vector_store %arg6[%c0_138, %c0_139, %c0_140], %135 {strides = array<i32>} : memref<1x4x256xf32, #tpu.memory_space<vmem>>, vector<1x4x256xf32>,
    return
  }
  func.func @transform_0(%arg0: i32) -> (i32, i32, i32, i32) {
    %c0_i32 = arith.constant 0 : i32
    %c0_i32_0 = arith.constant 0 : i32
    %c0_i32_1 = arith.constant 0 : i32
    %c0_i32_2 = arith.constant 0 : i32
    return %arg0, %c0_i32, %c0_i32_0, %c0_i32_1 : i32, i32, i32, i32
  }
  func.func @transform_1(%arg0: i32) -> (i32, i32, i32, i32) {
    %c0_i32 = arith.constant 0 : i32
    %c0_i32_0 = arith.constant 0 : i32
    %c0_i32_1 = arith.constant 0 : i32
    %c0_i32_2 = arith.constant 0 : i32
    return %arg0, %c0_i32, %c0_i32_0, %c0_i32_1 : i32, i32, i32, i32
  }
  func.func @transform_2(%arg0: i32) -> (i32, i32, i32) {
    %c0_i32 = arith.constant 0 : i32
    %c0_i32_0 = arith.constant 0 : i32
    %c0_i32_1 = arith.constant 0 : i32
    %c0_i32_2 = arith.constant 0 : i32
    return %c0_i32, %c0_i32_0, %c0_i32_1 : i32, i32, i32
  }
  func.func @transform_3(%arg0: i32) -> (i32, i32, i32) {
    %c0_i32 = arith.constant 0 : i32
    %c0_i32_0 = arith.constant 0 : i32
    %c0_i32_1 = arith.constant 0 : i32
    %c0_i32_2 = arith.constant 0 : i32
    return %c0_i32, %c0_i32_0, %c0_i32_1 : i32, i32, i32
  }
  func.func @transform_4(%arg0: i32) -> (i32, i32) {
    %c0_i32 = arith.constant 0 : i32
    %c0_i32_0 = arith.constant 0 : i32
    %c0_i32_1 = arith.constant 0 : i32
    return %c0_i32, %c0_i32_0 : i32, i32
  }
  func.func @transform_5(%arg0: i32) -> (i32, i32, i32) {
    %c0_i32 = arith.constant 0 : i32
    %c0_i32_0 = arith.constant 0 : i32
    %c0_i32_1 = arith.constant 0 : i32
    return %arg0, %c0_i32, %c0_i32_0 : i32, i32, i32
  }
}

module attributes {stable_mosaic.version = 11 : i64} {
  func.func @kernel(%arg0: i32, %arg1: memref<1x18x18x4xbf16, #tpu.memory_space<vmem>>, %arg2: memref<9x4x4xbf16, #tpu.memory_space<vmem>>, %arg3: memref<4x1xf32, #tpu.memory_space<vmem>>, %arg4: memref<1x4x256xf32, #tpu.memory_space<vmem>>) attributes {dimension_semantics = [#tpu.dimension_semantics<parallel>], iteration_bounds = array<i64: 2>, scalar_prefetch = 0 : i64, scratch_operands = 0 : i64, tpu.core_type = #tpu.core_type<tc>, window_params = [{transform_indices = @transform_0, window_bounds = array<i64: 1, 18, 18, 4>}, {pipeline_mode = #tpu.pipeline_mode<synchronous>, transform_indices = @transform_1, window_bounds = array<i64: 9, 4, 4>}, {pipeline_mode = #tpu.pipeline_mode<synchronous>, transform_indices = @transform_2, window_bounds = array<i64: 4, 1>}, {transform_indices = @transform_3, window_bounds = array<i64: 1, 4, 256>}]} {
    %cst = arith.constant 0.000000e+00 : f32
    %0 = vector.broadcast %cst : f32 to vector<256x4xf32>
    %c0 = arith.constant 0 : index
    %c0_0 = arith.constant 0 : index
    %c0_1 = arith.constant 0 : index
    %c0_2 = arith.constant 0 : index
    %1 = vector.load %arg1[%c0, %c0_0, %c0_1, %c0_2] : memref<1x18x18x4xbf16, #tpu.memory_space<vmem>>, vector<1x16x16x4xbf16>
    %2 = vector.shape_cast %1 : vector<1x16x16x4xbf16> to vector<16x16x4xbf16>
    %3 = vector.shape_cast %2 : vector<16x16x4xbf16> to vector<256x4xbf16>
    %c0_3 = arith.constant 0 : index
    %c0_4 = arith.constant 0 : index
    %c0_5 = arith.constant 0 : index
    %4 = vector.load %arg2[%c0_3, %c0_4, %c0_5] : memref<9x4x4xbf16, #tpu.memory_space<vmem>>, vector<1x4x4xbf16>
    %5 = vector.shape_cast %4 : vector<1x4x4xbf16> to vector<4x4xbf16>
    %cst_6 = arith.constant dense<0.000000e+00> : vector<256x4xf32>
    %6 = tpu.matmul %3, %5, %cst_6 {dimension_numbers = #tpu.dot_dimension_numbers<[1], [0], [0], [1], [0, 0, 1, 1], [], []>} : vector<256x4xbf16>, vector<4x4xbf16>, vector<256x4xf32> -> vector<256x4xf32>
    %7 = arith.addf %0, %6 : vector<256x4xf32>
    %c0_7 = arith.constant 0 : index
    %c0_8 = arith.constant 0 : index
    %c1 = arith.constant 1 : index
    %c0_9 = arith.constant 0 : index
    %8 = vector.load %arg1[%c0_7, %c0_8, %c1, %c0_9] : memref<1x18x18x4xbf16, #tpu.memory_space<vmem>>, vector<1x16x16x4xbf16>
    %9 = vector.shape_cast %8 : vector<1x16x16x4xbf16> to vector<16x16x4xbf16>
    %10 = vector.shape_cast %9 : vector<16x16x4xbf16> to vector<256x4xbf16>
    %c1_10 = arith.constant 1 : index
    %c0_11 = arith.constant 0 : index
    %c0_12 = arith.constant 0 : index
    %11 = vector.load %arg2[%c1_10, %c0_11, %c0_12] : memref<9x4x4xbf16, #tpu.memory_space<vmem>>, vector<1x4x4xbf16>
    %12 = vector.shape_cast %11 : vector<1x4x4xbf16> to vector<4x4xbf16>
    %cst_13 = arith.constant dense<0.000000e+00> : vector<256x4xf32>
    %13 = tpu.matmul %10, %12, %cst_13 {dimension_numbers = #tpu.dot_dimension_numbers<[1], [0], [0], [1], [0, 0, 1, 1], [], []>} : vector<256x4xbf16>, vector<4x4xbf16>, vector<256x4xf32> -> vector<256x4xf32>
    %14 = arith.addf %7, %13 : vector<256x4xf32>
    %c0_14 = arith.constant 0 : index
    %c0_15 = arith.constant 0 : index
    %c2 = arith.constant 2 : index
    %c0_16 = arith.constant 0 : index
    %15 = vector.load %arg1[%c0_14, %c0_15, %c2, %c0_16] : memref<1x18x18x4xbf16, #tpu.memory_space<vmem>>, vector<1x16x16x4xbf16>
    %16 = vector.shape_cast %15 : vector<1x16x16x4xbf16> to vector<16x16x4xbf16>
    %17 = vector.shape_cast %16 : vector<16x16x4xbf16> to vector<256x4xbf16>
    %c2_17 = arith.constant 2 : index
    %c0_18 = arith.constant 0 : index
    %c0_19 = arith.constant 0 : index
    %18 = vector.load %arg2[%c2_17, %c0_18, %c0_19] : memref<9x4x4xbf16, #tpu.memory_space<vmem>>, vector<1x4x4xbf16>
    %19 = vector.shape_cast %18 : vector<1x4x4xbf16> to vector<4x4xbf16>
    %cst_20 = arith.constant dense<0.000000e+00> : vector<256x4xf32>
    %20 = tpu.matmul %17, %19, %cst_20 {dimension_numbers = #tpu.dot_dimension_numbers<[1], [0], [0], [1], [0, 0, 1, 1], [], []>} : vector<256x4xbf16>, vector<4x4xbf16>, vector<256x4xf32> -> vector<256x4xf32>
    %21 = arith.addf %14, %20 : vector<256x4xf32>
    %c0_21 = arith.constant 0 : index
    %c1_22 = arith.constant 1 : index
    %c0_23 = arith.constant 0 : index
    %c0_24 = arith.constant 0 : index
    %22 = vector.load %arg1[%c0_21, %c1_22, %c0_23, %c0_24] : memref<1x18x18x4xbf16, #tpu.memory_space<vmem>>, vector<1x16x16x4xbf16>
    %23 = vector.shape_cast %22 : vector<1x16x16x4xbf16> to vector<16x16x4xbf16>
    %24 = vector.shape_cast %23 : vector<16x16x4xbf16> to vector<256x4xbf16>
    %c3 = arith.constant 3 : index
    %c0_25 = arith.constant 0 : index
    %c0_26 = arith.constant 0 : index
    %25 = vector.load %arg2[%c3, %c0_25, %c0_26] : memref<9x4x4xbf16, #tpu.memory_space<vmem>>, vector<1x4x4xbf16>
    %26 = vector.shape_cast %25 : vector<1x4x4xbf16> to vector<4x4xbf16>
    %cst_27 = arith.constant dense<0.000000e+00> : vector<256x4xf32>
    %27 = tpu.matmul %24, %26, %cst_27 {dimension_numbers = #tpu.dot_dimension_numbers<[1], [0], [0], [1], [0, 0, 1, 1], [], []>} : vector<256x4xbf16>, vector<4x4xbf16>, vector<256x4xf32> -> vector<256x4xf32>
    %28 = arith.addf %21, %27 : vector<256x4xf32>
    %c0_28 = arith.constant 0 : index
    %c1_29 = arith.constant 1 : index
    %c1_30 = arith.constant 1 : index
    %c0_31 = arith.constant 0 : index
    %29 = vector.load %arg1[%c0_28, %c1_29, %c1_30, %c0_31] : memref<1x18x18x4xbf16, #tpu.memory_space<vmem>>, vector<1x16x16x4xbf16>
    %30 = vector.shape_cast %29 : vector<1x16x16x4xbf16> to vector<16x16x4xbf16>
    %31 = vector.shape_cast %30 : vector<16x16x4xbf16> to vector<256x4xbf16>
    %c4 = arith.constant 4 : index
    %c0_32 = arith.constant 0 : index
    %c0_33 = arith.constant 0 : index
    %32 = vector.load %arg2[%c4, %c0_32, %c0_33] : memref<9x4x4xbf16, #tpu.memory_space<vmem>>, vector<1x4x4xbf16>
    %33 = vector.shape_cast %32 : vector<1x4x4xbf16> to vector<4x4xbf16>
    %cst_34 = arith.constant dense<0.000000e+00> : vector<256x4xf32>
    %34 = tpu.matmul %31, %33, %cst_34 {dimension_numbers = #tpu.dot_dimension_numbers<[1], [0], [0], [1], [0, 0, 1, 1], [], []>} : vector<256x4xbf16>, vector<4x4xbf16>, vector<256x4xf32> -> vector<256x4xf32>
    %35 = arith.addf %28, %34 : vector<256x4xf32>
    %c0_35 = arith.constant 0 : index
    %c1_36 = arith.constant 1 : index
    %c2_37 = arith.constant 2 : index
    %c0_38 = arith.constant 0 : index
    %36 = vector.load %arg1[%c0_35, %c1_36, %c2_37, %c0_38] : memref<1x18x18x4xbf16, #tpu.memory_space<vmem>>, vector<1x16x16x4xbf16>
    %37 = vector.shape_cast %36 : vector<1x16x16x4xbf16> to vector<16x16x4xbf16>
    %38 = vector.shape_cast %37 : vector<16x16x4xbf16> to vector<256x4xbf16>
    %c5 = arith.constant 5 : index
    %c0_39 = arith.constant 0 : index
    %c0_40 = arith.constant 0 : index
    %39 = vector.load %arg2[%c5, %c0_39, %c0_40] : memref<9x4x4xbf16, #tpu.memory_space<vmem>>, vector<1x4x4xbf16>
    %40 = vector.shape_cast %39 : vector<1x4x4xbf16> to vector<4x4xbf16>
    %cst_41 = arith.constant dense<0.000000e+00> : vector<256x4xf32>
    %41 = tpu.matmul %38, %40, %cst_41 {dimension_numbers = #tpu.dot_dimension_numbers<[1], [0], [0], [1], [0, 0, 1, 1], [], []>} : vector<256x4xbf16>, vector<4x4xbf16>, vector<256x4xf32> -> vector<256x4xf32>
    %42 = arith.addf %35, %41 : vector<256x4xf32>
    %c0_42 = arith.constant 0 : index
    %c2_43 = arith.constant 2 : index
    %c0_44 = arith.constant 0 : index
    %c0_45 = arith.constant 0 : index
    %43 = vector.load %arg1[%c0_42, %c2_43, %c0_44, %c0_45] : memref<1x18x18x4xbf16, #tpu.memory_space<vmem>>, vector<1x16x16x4xbf16>
    %44 = vector.shape_cast %43 : vector<1x16x16x4xbf16> to vector<16x16x4xbf16>
    %45 = vector.shape_cast %44 : vector<16x16x4xbf16> to vector<256x4xbf16>
    %c6 = arith.constant 6 : index
    %c0_46 = arith.constant 0 : index
    %c0_47 = arith.constant 0 : index
    %46 = vector.load %arg2[%c6, %c0_46, %c0_47] : memref<9x4x4xbf16, #tpu.memory_space<vmem>>, vector<1x4x4xbf16>
    %47 = vector.shape_cast %46 : vector<1x4x4xbf16> to vector<4x4xbf16>
    %cst_48 = arith.constant dense<0.000000e+00> : vector<256x4xf32>
    %48 = tpu.matmul %45, %47, %cst_48 {dimension_numbers = #tpu.dot_dimension_numbers<[1], [0], [0], [1], [0, 0, 1, 1], [], []>} : vector<256x4xbf16>, vector<4x4xbf16>, vector<256x4xf32> -> vector<256x4xf32>
    %49 = arith.addf %42, %48 : vector<256x4xf32>
    %c0_49 = arith.constant 0 : index
    %c2_50 = arith.constant 2 : index
    %c1_51 = arith.constant 1 : index
    %c0_52 = arith.constant 0 : index
    %50 = vector.load %arg1[%c0_49, %c2_50, %c1_51, %c0_52] : memref<1x18x18x4xbf16, #tpu.memory_space<vmem>>, vector<1x16x16x4xbf16>
    %51 = vector.shape_cast %50 : vector<1x16x16x4xbf16> to vector<16x16x4xbf16>
    %52 = vector.shape_cast %51 : vector<16x16x4xbf16> to vector<256x4xbf16>
    %c7 = arith.constant 7 : index
    %c0_53 = arith.constant 0 : index
    %c0_54 = arith.constant 0 : index
    %53 = vector.load %arg2[%c7, %c0_53, %c0_54] : memref<9x4x4xbf16, #tpu.memory_space<vmem>>, vector<1x4x4xbf16>
    %54 = vector.shape_cast %53 : vector<1x4x4xbf16> to vector<4x4xbf16>
    %cst_55 = arith.constant dense<0.000000e+00> : vector<256x4xf32>
    %55 = tpu.matmul %52, %54, %cst_55 {dimension_numbers = #tpu.dot_dimension_numbers<[1], [0], [0], [1], [0, 0, 1, 1], [], []>} : vector<256x4xbf16>, vector<4x4xbf16>, vector<256x4xf32> -> vector<256x4xf32>
    %56 = arith.addf %49, %55 : vector<256x4xf32>
    %c0_56 = arith.constant 0 : index
    %c2_57 = arith.constant 2 : index
    %c2_58 = arith.constant 2 : index
    %c0_59 = arith.constant 0 : index
    %57 = vector.load %arg1[%c0_56, %c2_57, %c2_58, %c0_59] : memref<1x18x18x4xbf16, #tpu.memory_space<vmem>>, vector<1x16x16x4xbf16>
    %58 = vector.shape_cast %57 : vector<1x16x16x4xbf16> to vector<16x16x4xbf16>
    %59 = vector.shape_cast %58 : vector<16x16x4xbf16> to vector<256x4xbf16>
    %c8 = arith.constant 8 : index
    %c0_60 = arith.constant 0 : index
    %c0_61 = arith.constant 0 : index
    %60 = vector.load %arg2[%c8, %c0_60, %c0_61] : memref<9x4x4xbf16, #tpu.memory_space<vmem>>, vector<1x4x4xbf16>
    %61 = vector.shape_cast %60 : vector<1x4x4xbf16> to vector<4x4xbf16>
    %cst_62 = arith.constant dense<0.000000e+00> : vector<256x4xf32>
    %62 = tpu.matmul %59, %61, %cst_62 {dimension_numbers = #tpu.dot_dimension_numbers<[1], [0], [0], [1], [0, 0, 1, 1], [], []>} : vector<256x4xbf16>, vector<4x4xbf16>, vector<256x4xf32> -> vector<256x4xf32>
    %63 = arith.addf %56, %62 : vector<256x4xf32>
    %64 = tpu.transpose %63, [1, 0] : vector<256x4xf32> -> vector<4x256xf32>
    %c0_63 = arith.constant 0 : index
    %c0_64 = arith.constant 0 : index
    %65 = vector.load %arg3[%c0_63, %c0_64] : memref<4x1xf32, #tpu.memory_space<vmem>>, vector<4x1xf32>
    %66 = vector.broadcast %65 : vector<4x1xf32> to vector<4x256xf32>
    %67 = arith.addf %64, %66 : vector<4x256xf32>
    %cst_65 = arith.constant 0.000000e+00 : f32
    %68 = vector.broadcast %cst_65 : f32 to vector<4x256xf32>
    %69 = arith.maximumf %67, %68 : vector<4x256xf32>
    %c0_66 = arith.constant 0 : index
    %c0_67 = arith.constant 0 : index
    %c0_68 = arith.constant 0 : index
    %70 = vector.load %arg4[%c0_66, %c0_67, %c0_68] : memref<1x4x256xf32, #tpu.memory_space<vmem>>, vector<1x4x256xf32>
    %71 = vector.shape_cast %70 : vector<1x4x256xf32> to vector<4x256xf32>
    %72 = vector.shape_cast %69 : vector<4x256xf32> to vector<1x4x256xf32>
    tpu.vector_store %arg4[%c0_66, %c0_67, %c0_68], %72 {strides = array<i32>} : memref<1x4x256xf32, #tpu.memory_space<vmem>>, vector<1x4x256xf32>,
    return
  }
  func.func @transform_0(%arg0: i32) -> (i32, i32, i32, i32) {
    %c0_i32 = arith.constant 0 : i32
    %c0_i32_0 = arith.constant 0 : i32
    %c0_i32_1 = arith.constant 0 : i32
    %c0_i32_2 = arith.constant 0 : i32
    return %arg0, %c0_i32, %c0_i32_0, %c0_i32_1 : i32, i32, i32, i32
  }
  func.func @transform_1(%arg0: i32) -> (i32, i32, i32) {
    %c0_i32 = arith.constant 0 : i32
    %c0_i32_0 = arith.constant 0 : i32
    %c0_i32_1 = arith.constant 0 : i32
    %c0_i32_2 = arith.constant 0 : i32
    return %c0_i32, %c0_i32_0, %c0_i32_1 : i32, i32, i32
  }
  func.func @transform_2(%arg0: i32) -> (i32, i32) {
    %c0_i32 = arith.constant 0 : i32
    %c0_i32_0 = arith.constant 0 : i32
    %c0_i32_1 = arith.constant 0 : i32
    return %c0_i32, %c0_i32_0 : i32, i32
  }
  func.func @transform_3(%arg0: i32) -> (i32, i32, i32) {
    %c0_i32 = arith.constant 0 : i32
    %c0_i32_0 = arith.constant 0 : i32
    %c0_i32_1 = arith.constant 0 : i32
    return %arg0, %c0_i32, %c0_i32_0 : i32, i32, i32
  }
}

</mosaic_0001>

<bundles_post_ra>
// kernel: up_forward.3
= control target key start
LH: loop header
LB: loop body
LE: loop exit
PB: predicated region body
PF: predicated region fallthrough
CT: control target
= control target key end

     0   :  { %s4956_s12 = smov 0   ;;  %s6288_s0 = inlined_call_operand.vmem [shape: bf16[2,18,18,4], index: 0, kind: input, shape index: {}]   ;;  %s6289_s1 = inlined_call_operand.vmem [shape: bf16[9,4,4], index: 1, kind: input, shape index: {}]   ;;  %s6290_s2 = inlined_call_operand.vmem [shape: f32[4,1], index: 2, kind: input, shape index: {}]   ;;  %s6291_s3 = inlined_call_operand.vmem [shape: f32[2,4,256], index: 3, kind: output, shape index: {}]  }
   0x1 LB: > { %s4219_s13 = sadd.s32 4294967295, %s4933_s12   ;;  %p4223_p0 = scmp.ge.s32.totalorder %s4933_s12, 1  ;;  %s4933_s12 = sphi %s4956_s12, %s13_s12  }
   0x2   : > { %p137_p1 = scmp.lt.s32.totalorder %s4933_s12, 3 }
   0x4   : > { %p138_p2 = pnand %p4223_p0, %p137_p1 }
   0x6   : > { %141 = sbr.rel (%p138_p2) target bundleno = 806 (0x326), region = 32 }
   0xb   : > { %v4227_v0 = vld [vmem:[%s6289_s1 + $0x2] sm:$0x3]  ;;  %vm707_vm0 = vcmask 1041408   ;;  %p161_p3 = scmp.lt.s32.totalorder %s4219_s13, 1  ;;  %v4340_v2 = vld [vmem:[%s6289_s1 + $0x4] sm:$0x3] }
   0xc   : > { %v709_v1 = vsel %vm707_vm0, %v4227_v0, 0  ;;  %v1282_v3 = vsel %vm707_vm0, %v4340_v2, 0  ;;  %v4389_v4 = vld [vmem:[%s6289_s1 + $0x6] sm:$0x3]  ;;  %v204_v5 = vld [vmem:[%s6289_s1] sm:$0x3] }
   0xd   : > { %4862 = vmatpush.bf16.msra.mxu1 %v709_v1  ;;  %4863 = vmatpush.bf16.msra.mxu2 %v709_v1  ;;  %s6303_s13 = smov (!%p161_p3, %s4219_s13), 1  ;;  %v4518_v6 = vld [vmem:[%s6289_s1 + $0x8] sm:$0x3]  ;;  %v1569_v7 = vsel %vm707_vm0, %v4389_v4, 0  ;;  %v929_v8 = vsel %vm707_vm0, %v204_v5, 0  ;;  %vm658_vm4 = vcmask 31744  }
   0xe   : > { %4864 = vmatpush.bf16.msra.mxu3 %v709_v1  ;;  %718 = vmatpush.bf16.msra.mxu0 %v709_v1  ;;  %s4865_s24 = smul.u32 216, %s6303_s13  ;;  %v2223_v9 = vsel %vm707_vm0, %v4518_v6, 0  ;;  %vm221_vm1 = vsmask.f32 3328  ;;  %vm222_vm2 = vsmask.f32 7440 }
   0xf   : > { %vm5002_vm3 = vmor %vm221_vm1, %vm222_vm2  ;;  %vm1068_vm5 = vcmask 1042432   ;;  %vm1069_vm6 = vcmask 1046532   ;;  %s4813_s11 = sshll.u32 %s6303_s13, 3  ;;  %vm4160_vm8 = vcmask 1043456  }
  0x10   : > { %s4990_s27 = scalar_lea.vmem %s6288_s0, %s4865_s24  ;;  %vm5176_vm7 = vmor %vm1068_vm5, %vm1069_vm6  ;;  %s170_s16 = scalar_lea.vmem %s6291_s3, %s4813_s11 }
  0x11   : > { %1291 = vmatpush.bf16.msrb.mxu2 %v1282_v3  ;;  %938 = vmatpush.bf16.msrb.mxu1 %v929_v8  ;;  %v180_v10 = vld [vmem:[%s4990_s27 + $0x30] sm:$0xf]  ;;  %v181_v11 = vld [vmem:[%s4990_s27 + $0x34] sm:$0xf]  ;;  %v209_v12 = vld [vmem:[%s4990_s27 + $0x38] sm:$0x1] }
  0x12   : > { %1578 = vmatpush.bf16.msrb.mxu3 %v1569_v7  ;;  %2232 = vmatpush.bf16.msrb.mxu0 %v2223_v9  ;;  %v321_v13 = vshrl.u32 %v180_v10, 16  ;;  %v324_v14 = vshll.u32 %v180_v10, 16  ;;  %v330_v15 = vshll.u32 %v181_v11, 16  ;;  %v334_v16 = vshrl.u32 %v181_v11, 16  ;;  %v188_v17 = vld [vmem:[%s4990_s27 + $0x60] sm:$0xf] }
  0x13   : > { %v340_v18 = vshll.u32 %v209_v12, 16  ;;  %v189_v19 = vld [vmem:[%s4990_s27 + $0x64] sm:$0xf]  ;;  %v213_v20 = vld [vmem:[%s4990_s27 + $0x68] sm:$0x1]  ;;  %v417_v21 = vshrl.u32 %v188_v17, 16 }
  0x14   : > { %v323_v22 = vrot.slane %v321_v13, 4  ;;  %v326_v23 = vrot.slane %v324_v14, 5  ;;  %v332_v24 = vrot.slane %v330_v15, 5  ;;  %v336_v25 = vrot.slane %v334_v16, 4  ;;  %v196_v26 = vld [vmem:[%s4990_s27 + $0x90] sm:$0xf] }
  0x15   : > { %v342_v27 = vrot.slane %v340_v18, 5  ;;  %v419_v28 = vrot.slane %v417_v21, 4  ;;  %v420_v29 = vshll.u32 %v188_v17, 16  ;;  %v426_v30 = vshll.u32 %v189_v19, 16  ;;  %v197_v35 = vld [vmem:[%s4990_s27 + $0x94] sm:$0xf] }
  0x16   : > { %v327_v31 = vor.u32 %v326_v23, %v323_v22  ;;  %v337_v32 = vor.u32 %v336_v25, %v332_v24  ;;  %v430_v33 = vshrl.u32 %v189_v19, 16  ;;  %v436_v34 = vshll.u32 %v213_v20, 16  ;;  %v217_v45 = vld [vmem:[%s4990_s27 + $0x98] sm:$0x1]  ;;  %v172_v61 = vld [vmem:[%s4990_s27] sm:$0xf] }
  0x17   : > { %v422_v37 = vrot.slane %v420_v29, 5  ;;  %v428_v38 = vrot.slane %v426_v30, 5  ;;  %v513_v39 = vshrl.u32 %v196_v26, 16  ;;  %v516_v47 = vshll.u32 %v196_v26, 16  ;;  %v5015_v1 = vld [vmem:[%s4990_s27 + $0x4] sm:$0xf] }
  0x18   : > { %v328_v40 = vrot.slane %v327_v31, 4  ;;  %v338_v41 = vrot.slane %v337_v32, 4  ;;  %v432_v42 = vrot.slane %v430_v33, 4  ;;  %v438_v43 = vrot.slane %v436_v34, 5  ;;  %v5018_v2 = vld [vmem:[%s4990_s27 + $0x8] sm:$0x1] }
  0x19   : > { %v423_v44 = vor.u32 %v422_v37, %v419_v28  ;;  %v515_v46 = vrot.slane %v513_v39, 4  ;;  %v522_v48 = vshll.u32 %v197_v35, 16  ;;  %v526_v52 = vshrl.u32 %v197_v35, 16  ;;  %v182_v19 = vld [vmem:[%s4990_s27 + $0x3c] sm:$0xf] }
  0x1a   : > { %v333_v49 = vsel %vm5002_vm3, %v328_v40, %v332_v24  ;;  %v343_v50 = vsel %vm5002_vm3, %v338_v41, %v342_v27  ;;  %v433_v51 = vor.u32 %v432_v42, %v428_v38  ;;  %v518_v56 = vrot.slane %v516_v47, 5  ;;  %v5030_v20 = vld [vmem:[%s4990_s27 + $0x40] sm:$0xf]  ;;  %v5035_v25 = vld [vmem:[%s4990_s27 + $0x44] sm:$0x1] }
  0x1b   : > { %v618_v53 = vunpack.c.l.b16 %v333_v49  ;;  %v619_v54 = vunpack.c.l.b16 %v343_v50  ;;  %v424_v55 = vrot.slane %v423_v44, 4  ;;  %v524_v58 = vrot.slane %v522_v48, 5  ;;  %v190_v33 = vld [vmem:[%s4990_s27 + $0x6c] sm:$0xf]  ;;  %v214_v47 = vld [vmem:[%s4990_s27 + $0x74] sm:$0x1] }
  0x1c   : > { %v434_v57 = vrot.slane %v433_v51, 4  ;;  %v528_v59 = vrot.slane %v526_v52, 4  ;;  %v532_v60 = vshll.u32 %v217_v45, 16  ;;  %v519_v0 = vor.u32 %v518_v56, %v515_v46 }
  0x1d   : > { %v646_v62 = vpack.c.b16 %v619_v54, %v618_v53  ;;  %v429_v63 = vsel %vm5002_vm3, %v424_v55, %v428_v38  ;;  %v225_v9 = vshrl.u32 %v172_v61, 16  ;;  %v228_v10 = vshll.u32 %v172_v61, 16  ;;  %v198_v61 = vld [vmem:[%s4990_s27 + $0x9c] sm:$0xf] }
  0x1e   : > { %v439_v3 = vsel %vm5002_vm3, %v434_v57, %v438_v43  ;;  %v626_v4 = vunpack.c.l.b16 %v429_v63  ;;  %v529_v5 = vor.u32 %v528_v59, %v524_v58  ;;  %v534_v6 = vrot.slane %v532_v60, 5  ;;  %v191_v43 = vld [vmem:[%s4990_s27 + $0x70] sm:$0xf] }
  0x1f   : > { %4232 = vmatmul.msk.bf16.vlgmr.msra.gmra.mxu1 %vm658_vm4, %v646_v62  ;;  %v627_v7 = vunpack.c.l.b16 %v439_v3  ;;  %v520_v8 = vrot.slane %v519_v0, 4  ;;  %v234_v12 = vshll.u32 %v5015_v1, 16  ;;  %v238_v13 = vshrl.u32 %v5015_v1, 16  ;;  %v199_v3 = vld [vmem:[%s4990_s27 + $0xa0] sm:$0xf] }
  0x20   : > { %v530_v11 = vrot.slane %v529_v5, 4  ;;  %v244_v14 = vshll.u32 %v5018_v2, 16  ;;  %v227_v17 = vrot.slane %v225_v9, 4  ;;  %v230_v18 = vrot.slane %v228_v10, 5 }
  0x21   : > { %v650_v15 = vpack.c.b16 %v627_v7, %v626_v4  ;;  %v525_v16 = vsel %vm5002_vm3, %v520_v8, %v524_v58  ;;  %v236_v23 = vrot.slane %v234_v12, 5  ;;  %v240_v24 = vrot.slane %v238_v13, 4  ;;  %v218_v8 = vld [vmem:[%s4990_s27 + $0xa4] sm:$0x1] }
  0x22   : > { %v535_v21 = vsel %vm5002_vm3, %v530_v11, %v534_v6  ;;  %v634_v22 = vunpack.c.l.b16 %v525_v16  ;;  %v231_v27 = vor.u32 %v230_v18, %v227_v17  ;;  %v246_v28 = vrot.slane %v244_v14, 5 }
  0x23   : > { %4236 = vmatmul.msk.bf16.vlgmr.msra.gmra.mxu2 %vm658_vm4, %v650_v15  ;;  %v635_v26 = vunpack.c.l.b16 %v535_v21  ;;  %v241_v29 = vor.u32 %v240_v24, %v236_v23  ;;  %v345_v30 = vshrl.u32 %v182_v19, 16  ;;  %v348_v31 = vshll.u32 %v182_v19, 16 }
  0x24   : > { %v354_v32 = vshll.u32 %v5030_v20, 16  ;;  %v232_v35 = vrot.slane %v231_v27, 4  ;;  %v358_v37 = vshrl.u32 %v5030_v20, 16  ;;  %v364_v38 = vshll.u32 %v5035_v25, 16 }
  0x25   : > { %v654_v34 = vpack.c.b16 %v635_v26, %v634_v22  ;;  %v242_v39 = vrot.slane %v241_v29, 4  ;;  %v347_v40 = vrot.slane %v345_v30, 4  ;;  %v350_v41 = vrot.slane %v348_v31, 5  ;;  %v174_v22 = vld [vmem:[%s4990_s27 + $0xc] sm:$0xf] }
  0x26   : > { %v356_v42 = vrot.slane %v354_v32, 5  ;;  %v237_v44 = vsel %vm5002_vm3, %v232_v35, %v236_v23  ;;  %v360_v45 = vrot.slane %v358_v37, 4  ;;  %v366_v46 = vrot.slane %v364_v38, 5  ;;  %v5064_v32 = vld [vmem:[%s4990_s27 + $0x14] sm:$0x1] }
  0x27   : > { %4240 = vmatmul.msk.bf16.vlgmr.msra.gmra.mxu3 %vm658_vm4, %v654_v34  ;;  %v441_v48 = vshrl.u32 %v190_v33, 16  ;;  %v247_v49 = vsel %vm5002_vm3, %v242_v39, %v246_v28  ;;  %v610_v50 = vunpack.c.l.b16 %v237_v44  ;;  %v351_v51 = vor.u32 %v350_v41, %v347_v40  ;;  %v5061_v28 = vld [vmem:[%s4990_s27 + $0x10] sm:$0xf] }
  0x28   : > { %v444_v52 = vshll.u32 %v190_v33, 16  ;;  %v611_v53 = vunpack.c.l.b16 %v247_v49  ;;  %v361_v54 = vor.u32 %v360_v45, %v356_v42  ;;  %v450_v56 = vshll.u32 %v191_v43, 16 }
  0x29   : > { %v443_v55 = vrot.slane %v441_v48, 4  ;;  %v352_v57 = vrot.slane %v351_v51, 4  ;;  %v454_v59 = vshrl.u32 %v191_v43, 16  ;;  %v460_v60 = vshll.u32 %v214_v47, 16  ;;  %v5074_v47 = vld [vmem:[%s4990_s27 + $0x4c] sm:$0xf] }
  0x2a   : > { %v446_v58 = vrot.slane %v444_v52, 5  ;;  %v642_v62 = vpack.c.b16 %v611_v53, %v610_v50  ;;  %v362_v63 = vrot.slane %v361_v54, 4  ;;  %v452_v0 = vrot.slane %v450_v56, 5  ;;  %v5079_v56 = vld [vmem:[%s4990_s27 + $0x50] sm:$0x1] }
  0x2b   : > { %v357_v4 = vsel %vm5002_vm3, %v352_v57, %v356_v42  ;;  %v456_v6 = vrot.slane %v454_v59, 4  ;;  %v462_v7 = vrot.slane %v460_v60, 5  ;;  %v537_v11 = vshrl.u32 %v198_v61, 16  ;;  %v184_v42 = vld [vmem:[%s4990_s27 + $0x48] sm:$0xf] }
  0x2c   : > { %v447_v5 = vor.u32 %v446_v58, %v443_v55  ;;  %4228 = vmatmul.msk.bf16.vlgmr.msra.gmra.mxu0 %vm658_vm4, %v642_v62  ;;  %v367_v9 = vsel %vm5002_vm3, %v362_v63, %v366_v46  ;;  %v620_v10 = vunpack.c.l.b16 %v357_v4  ;;  %v540_v12 = vshll.u32 %v198_v61, 16 }
  0x2d   : > { %v621_v13 = vunpack.c.l.b16 %v367_v9  ;;  %v457_v15 = vor.u32 %v456_v6, %v452_v0  ;;  %v546_v16 = vshll.u32 %v199_v3, 16  ;;  %v539_v17 = vrot.slane %v537_v11, 4 }
  0x2e   : > { %v448_v14 = vrot.slane %v447_v5, 4  ;;  %v542_v18 = vrot.slane %v540_v12, 5  ;;  %v550_v19 = vshrl.u32 %v199_v3, 16  ;;  %v556_v21 = vshll.u32 %v218_v8, 16  ;;  %v192_v3 = vld [vmem:[%s4990_s27 + $0x78] sm:$0xf] }
  0x2f   : > { %v647_v23 = vpack.c.b16 %v621_v13, %v620_v10  ;;  %v458_v26 = vrot.slane %v457_v15, 4  ;;  %v548_v27 = vrot.slane %v546_v16, 5  ;;  %v249_v35 = vshrl.u32 %v174_v22, 16  ;;  %v193_v8 = vld [vmem:[%s4990_s27 + $0x7c] sm:$0xf] }
  0x30   : > { %v453_v24 = vsel %vm5002_vm3, %v448_v14, %v452_v0  ;;  %v543_v30 = vor.u32 %v542_v18, %v539_v17  ;;  %v552_v31 = vrot.slane %v550_v19, 4  ;;  %v558_v34 = vrot.slane %v556_v21, 5  ;;  %v215_v16 = vld [vmem:[%s4990_s27 + $0x80] sm:$0x1] }
  0x31   : > { %v628_v29 = vunpack.c.l.b16 %v453_v24  ;;  %4233 = vmatmul.msk.bf16.gmra.mxu1 %vm658_vm4, %v647_v23  ;;  %v463_v33 = vsel %vm5002_vm3, %v458_v26, %v462_v7  ;;  %v252_v37 = vshll.u32 %v174_v22, 16  ;;  %v258_v41 = vshll.u32 %v5061_v28, 16 }
  0x32   : > { %v629_v38 = vunpack.c.l.b16 %v463_v33  ;;  %v544_v39 = vrot.slane %v543_v30, 4  ;;  %v553_v40 = vor.u32 %v552_v31, %v548_v27  ;;  %v251_v43 = vrot.slane %v249_v35, 4 }
  0x33   : > { %v254_v44 = vrot.slane %v252_v37, 5  ;;  %v262_v45 = vshrl.u32 %v5061_v28, 16  ;;  %v268_v46 = vshll.u32 %v5064_v32, 16  ;;  %v260_v51 = vrot.slane %v258_v41, 5 }
  0x34   : > { %v651_v48 = vpack.c.b16 %v629_v38, %v628_v29  ;;  %v549_v49 = vsel %vm5002_vm3, %v544_v39, %v548_v27  ;;  %v554_v50 = vrot.slane %v553_v40, 4  ;;  %v369_v58 = vshrl.u32 %v184_v42, 16  ;;  %v201_v39 = vld [vmem:[%s4990_s27 + $0xac] sm:$0xf]  ;;  %v219_v40 = vld [vmem:[%s4990_s27 + $0xb0] sm:$0x1] }
  0x35   : > { %v636_v52 = vunpack.c.l.b16 %v549_v49  ;;  %v255_v53 = vor.u32 %v254_v44, %v251_v43  ;;  %v264_v54 = vrot.slane %v262_v45, 4  ;;  %v270_v55 = vrot.slane %v268_v46, 5 }
  0x36   : > { %4237 = vmatmul.msk.bf16.gmra.mxu2 %vm658_vm4, %v651_v48  ;;  %v559_v57 = vsel %vm5002_vm3, %v554_v50, %v558_v34  ;;  %v372_v59 = vshll.u32 %v184_v42, 16  ;;  %v378_v60 = vshll.u32 %v5074_v47, 16  ;;  %v382_v0 = vshrl.u32 %v5074_v47, 16  ;;  %v200_v34 = vld [vmem:[%s4990_s27 + $0xa8] sm:$0xf] }
  0x37   : > { %v637_v61 = vunpack.c.l.b16 %v559_v57  ;;  %v256_v62 = vrot.slane %v255_v53, 4  ;;  %v265_v63 = vor.u32 %v264_v54, %v260_v51  ;;  %v371_v4 = vrot.slane %v369_v58, 4 }
  0x38   : > { %v374_v5 = vrot.slane %v372_v59, 5  ;;  %v380_v6 = vrot.slane %v378_v60, 5  ;;  %v388_v7 = vshll.u32 %v5079_v56, 16  ;;  %v384_v12 = vrot.slane %v382_v0, 4  ;;  %v176_v59 = vld [vmem:[%s4990_s27 + $0x18] sm:$0xf] }
  0x39   : > { %v655_v9 = vpack.c.b16 %v637_v61, %v636_v52  ;;  %v261_v10 = vsel %vm5002_vm3, %v256_v62, %v260_v51  ;;  %v266_v11 = vrot.slane %v265_v63, 4  ;;  %v465_v17 = vshrl.u32 %v192_v3, 16  ;;  %v5107_v63 = vld [vmem:[%s4990_s27 + $0x1c] sm:$0xf]  ;;  %v5110_v0 = vld [vmem:[%s4990_s27 + $0x20] sm:$0x1] }
  0x3a   : > { %v612_v13 = vunpack.c.l.b16 %v261_v10  ;;  %v375_v14 = vor.u32 %v374_v5, %v371_v4  ;;  %v390_v15 = vrot.slane %v388_v7, 5  ;;  %v385_v19 = vor.u32 %v384_v12, %v380_v6 }
  0x3b   : > { %4241 = vmatmul.msk.bf16.gmra.mxu3 %vm658_vm4, %v655_v9  ;;  %v271_v18 = vsel %vm5002_vm3, %v266_v11, %v270_v55  ;;  %v468_v21 = vshll.u32 %v192_v3, 16  ;;  %v474_v22 = vshll.u32 %v193_v8, 16  ;;  %v467_v26 = vrot.slane %v465_v17, 4 }
  0x3c   : > { %v613_v23 = vunpack.c.l.b16 %v271_v18  ;;  %v376_v24 = vrot.slane %v375_v14, 4  ;;  %v478_v27 = vshrl.u32 %v193_v8, 16  ;;  %v386_v29 = vrot.slane %v385_v19, 4 }
  0x3d   : > { %v470_v30 = vrot.slane %v468_v21, 5  ;;  %v476_v31 = vrot.slane %v474_v22, 5  ;;  %v484_v33 = vshll.u32 %v215_v16, 16  ;;  %v561_v48 = vshrl.u32 %v200_v34, 16  ;;  %v5120_v21 = vld [vmem:[%s4990_s27 + $0x58] sm:$0xf] }
  0x3e   : > { %v643_v35 = vpack.c.b16 %v613_v23, %v612_v13  ;;  %v381_v37 = vsel %vm5002_vm3, %v376_v24, %v380_v6  ;;  %v480_v38 = vrot.slane %v478_v27, 4  ;;  %v391_v41 = vsel %vm5002_vm3, %v386_v29, %v390_v15  ;;  %v186_v15 = vld [vmem:[%s4990_s27 + $0x54] sm:$0xf]  ;;  %v5125_v27 = vld [vmem:[%s4990_s27 + $0x5c] sm:$0x1] }
  0x3f   : > { %v622_v42 = vunpack.c.l.b16 %v381_v37  ;;  %v471_v43 = vor.u32 %v470_v30, %v467_v26  ;;  %v486_v44 = vrot.slane %v484_v33, 5  ;;  %v623_v45 = vunpack.c.l.b16 %v391_v41 }
  0x40   : > { %4229 = vmatmul.msk.bf16.gmra.mxu0 %vm658_vm4, %v643_v35  ;;  %v481_v46 = vor.u32 %v480_v38, %v476_v31  ;;  %v564_v49 = vshll.u32 %v200_v34, 16  ;;  %v570_v51 = vshll.u32 %v201_v39, 16  ;;  %v574_v52 = vshrl.u32 %v201_v39, 16  ;;  %v194_v39 = vld [vmem:[%s4990_s27 + $0x84] sm:$0xf] }
  0x41   : > { %v472_v50 = vrot.slane %v471_v43, 4  ;;  %v580_v53 = vshll.u32 %v219_v40, 16  ;;  %v648_v54 = vpack.c.b16 %v623_v45, %v622_v42  ;;  %v563_v57 = vrot.slane %v561_v48, 4 }
  0x42   : > { %v482_v55 = vrot.slane %v481_v46, 4  ;;  %v566_v58 = vrot.slane %v564_v49, 5  ;;  %v572_v61 = vrot.slane %v570_v51, 5  ;;  %v576_v62 = vrot.slane %v574_v52, 4  ;;  %v195_v49 = vld [vmem:[%s4990_s27 + $0x88] sm:$0xf] }
  0x43   : > { %v477_v60 = vsel %vm5002_vm3, %v472_v50, %v476_v31  ;;  %4234 = vmatmul.msk.bf16.gmra.mxu1 %vm658_vm4, %v648_v54  ;;  %v582_v6 = vrot.slane %v580_v53, 5  ;;  %v273_v9 = vshrl.u32 %v176_v59, 16  ;;  %v276_v10 = vshll.u32 %v176_v59, 16  ;;  %v216_v53 = vld [vmem:[%s4990_s27 + $0x8c] sm:$0x1] }
  0x44   : > { %v487_v3 = vsel %vm5002_vm3, %v482_v55, %v486_v44  ;;  %v630_v4 = vunpack.c.l.b16 %v477_v60  ;;  %v567_v5 = vor.u32 %v566_v58, %v563_v57  ;;  %v577_v8 = vor.u32 %v576_v62, %v572_v61 }
  0x45   : > { %v631_v7 = vunpack.c.l.b16 %v487_v3  ;;  %v282_v12 = vshll.u32 %v5107_v63, 16  ;;  %v286_v13 = vshrl.u32 %v5107_v63, 16  ;;  %v292_v14 = vshll.u32 %v5110_v0, 16 }
  0x46   : > { %v568_v11 = vrot.slane %v567_v5, 4  ;;  %v578_v17 = vrot.slane %v577_v8, 4  ;;  %v275_v18 = vrot.slane %v273_v9, 4  ;;  %v278_v19 = vrot.slane %v276_v10, 5  ;;  %v202_v8 = vld [vmem:[%s4990_s27 + $0xb4] sm:$0xf] }
  0x47   : > { %v652_v16 = vpack.c.b16 %v631_v7, %v630_v4  ;;  %v284_v23 = vrot.slane %v282_v12, 5  ;;  %v288_v24 = vrot.slane %v286_v13, 4  ;;  %v294_v26 = vrot.slane %v292_v14, 5  ;;  %v203_v12 = vld [vmem:[%s4990_s27 + $0xb8] sm:$0xf] }
  0x48   : > { %v573_v22 = vsel %vm5002_vm3, %v568_v11, %v572_v61  ;;  %v583_v29 = vsel %vm5002_vm3, %v578_v17, %v582_v6  ;;  %v279_v31 = vor.u32 %v278_v19, %v275_v18  ;;  %v393_v33 = vshrl.u32 %v186_v15, 16  ;;  %v220_v17 = vld [vmem:[%s4990_s27 + $0xbc] sm:$0x1] }
  0x49   : > { %4238 = vmatmul.msk.bf16.gmra.mxu2 %vm658_vm4, %v652_v16  ;;  %v638_v30 = vunpack.c.l.b16 %v573_v22  ;;  %v639_v34 = vunpack.c.l.b16 %v583_v29  ;;  %v289_v35 = vor.u32 %v288_v24, %v284_v23  ;;  %v396_v37 = vshll.u32 %v186_v15, 16 }
  0x4a   : > { %v402_v38 = vshll.u32 %v5120_v21, 16  ;;  %v280_v40 = vrot.slane %v279_v31, 4  ;;  %v395_v41 = vrot.slane %v393_v33, 4  ;;  %v406_v42 = vshrl.u32 %v5120_v21, 16 }
  0x4b   : > { %v412_v43 = vshll.u32 %v5125_v27, 16  ;;  %v656_v44 = vpack.c.b16 %v639_v34, %v638_v30  ;;  %v290_v45 = vrot.slane %v289_v35, 4  ;;  %v398_v46 = vrot.slane %v396_v37, 5  ;;  %v178_v37 = vld [vmem:[%s4990_s27 + $0x24] sm:$0xf] }
  0x4c   : > { %v404_v48 = vrot.slane %v402_v38, 5  ;;  %v285_v50 = vsel %vm5002_vm3, %v280_v40, %v284_v23  ;;  %v408_v51 = vrot.slane %v406_v42, 4  ;;  %v489_v54 = vshrl.u32 %v194_v39, 16  ;;  %v5153_v42 = vld [vmem:[%s4990_s27 + $0x28] sm:$0xf] }
  0x4d   : > { %v414_v52 = vrot.slane %v412_v43, 5  ;;  %4242 = vmatmul.msk.bf16.gmra.mxu3 %vm658_vm4, %v656_v44  ;;  %v295_v55 = vsel %vm5002_vm3, %v290_v45, %v294_v26  ;;  %v614_v57 = vunpack.c.l.b16 %v285_v50  ;;  %v399_v58 = vor.u32 %v398_v46, %v395_v41 }
  0x4e   : > { %v492_v59 = vshll.u32 %v194_v39, 16  ;;  %v615_v60 = vunpack.c.l.b16 %v295_v55  ;;  %v409_v61 = vor.u32 %v408_v51, %v404_v48  ;;  %v491_v62 = vrot.slane %v489_v54, 4 }
  0x4f   : > { %v498_v3 = vshll.u32 %v195_v49, 16  ;;  %v400_v4 = vrot.slane %v399_v58, 4  ;;  %v502_v6 = vshrl.u32 %v195_v49, 16  ;;  %v508_v7 = vshll.u32 %v216_v53, 16 }
  0x50   : > { %v494_v5 = vrot.slane %v492_v59, 5  ;;  %v644_v9 = vpack.c.b16 %v615_v60, %v614_v57  ;;  %v410_v10 = vrot.slane %v409_v61, 4  ;;  %v585_v22 = vshrl.u32 %v202_v8, 16  ;;  %v1020_v61 = vld [vmem:[%s4990_s27] sm:$0xe] }
  0x51   : > { %v500_v11 = vrot.slane %v498_v3, 5  ;;  %v405_v13 = vsel %vm5002_vm3, %v400_v4, %v404_v48  ;;  %v504_v15 = vrot.slane %v502_v6, 4  ;;  %v510_v16 = vrot.slane %v508_v7, 5  ;;  %v5157_v48 = vld [vmem:[%s4990_s27 + $0x2c] sm:$0x1] }
  0x52   : > { %v495_v14 = vor.u32 %v494_v5, %v491_v62  ;;  %4230 = vmatmul.msk.bf16.gmra.mxu0 %vm658_vm4, %v644_v9  ;;  %v415_v18 = vsel %vm5002_vm3, %v410_v10, %v414_v52  ;;  %v624_v19 = vunpack.c.l.b16 %v405_v13  ;;  %v588_v23 = vshll.u32 %v202_v8, 16  ;;  %v4470_v6 = vld [vmem:[%s4990_s27 + $0xc] sm:$0xf] }
  0x53   : > { %v625_v24 = vunpack.c.l.b16 %v415_v18  ;;  %v505_v29 = vor.u32 %v504_v15, %v500_v11  ;;  %v594_v30 = vshll.u32 %v203_v12, 16  ;;  %v587_v31 = vrot.slane %v585_v22, 4 }
  0x54   : > { %v496_v26 = vrot.slane %v495_v14, 4  ;;  %v590_v33 = vrot.slane %v588_v23, 5  ;;  %v598_v34 = vshrl.u32 %v203_v12, 16  ;;  %v604_v35 = vshll.u32 %v220_v17, 16  ;;  %v4471_v12 = vld [vmem:[%s4990_s27 + $0x10] sm:$0xf] }
  0x55   : > { %v649_v38 = vpack.c.b16 %v625_v24, %v624_v19  ;;  %v506_v40 = vrot.slane %v505_v29, 4  ;;  %v596_v41 = vrot.slane %v594_v30, 5  ;;  %v1076_v43 = vrot.slane %v5018_v2, 5 }
  0x56   : > { %v501_v39 = vsel %vm5002_vm3, %v496_v26, %v500_v11  ;;  %v591_v45 = vor.u32 %v590_v33, %v587_v31  ;;  %v600_v46 = vrot.slane %v598_v34, 4  ;;  %v606_v50 = vrot.slane %v604_v35, 5  ;;  %v4616_v11 = vld [vmem:[%s6289_s1 + $0xc] sm:$0x3] }
  0x57   : > { %v632_v44 = vunpack.c.l.b16 %v501_v39  ;;  %4235 = vmatmul.msk.bf16.gmra.mxu1 %vm658_vm4, %v649_v38  ;;  %v511_v49 = vsel %vm5002_vm3, %v506_v40, %v510_v16  ;;  %v297_v51 = vshrl.u32 %v178_v37, 16  ;;  %v300_v52 = vshll.u32 %v178_v37, 16  ;;  %v4472_v38 = vld [vmem:[%s4990_s27 + $0x14] sm:$0x1] }
  0x58   : > { %v633_v53 = vunpack.c.l.b16 %v511_v49  ;;  %v592_v54 = vrot.slane %v591_v45, 4  ;;  %v601_v55 = vor.u32 %v600_v46, %v596_v41  ;;  %v306_v2 = vshll.u32 %v5153_v42, 16  ;;  %v4745_v45 = vld [vmem:[%s6289_s1 + $0xe] sm:$0x3] }
  0x59   : > { %v299_v57 = vrot.slane %v297_v51, 4  ;;  %v302_v58 = vrot.slane %v300_v52, 5  ;;  %v310_v59 = vshrl.u32 %v5153_v42, 16  ;;  %v316_v60 = vshll.u32 %v5157_v48, 16  ;;  %v4814_v51 = vld [vmem:[%s4990_s27] sm:$0xff] }
  0x5a   : > { %v653_v62 = vpack.c.b16 %v633_v53, %v632_v44  ;;  %v597_v3 = vsel %vm5002_vm3, %v592_v54, %v596_v41  ;;  %v602_v4 = vrot.slane %v601_v55, 4  ;;  %v308_v5 = vrot.slane %v306_v2, 5  ;;  %v4794_v2 = vld [vmem:[%s6289_s1 + $0x10] sm:$0x3] }
  0x5b   : > { %v640_v7 = vunpack.c.l.b16 %v597_v3  ;;  %v303_v8 = vor.u32 %v302_v58, %v299_v57  ;;  %v312_v9 = vrot.slane %v310_v59, 4  ;;  %v318_v10 = vrot.slane %v316_v60, 5 }
  0x5c   : > { %4239 = vmatmul.msk.bf16.gmra.mxu2 %vm658_vm4, %v653_v62  ;;  %v607_v13 = vsel %vm5002_vm3, %v602_v4, %v606_v50  ;;  %v4324_v14 = vrot.slane %v1020_v61, 9  ;;  %v1073_v19 = vrot.slane %v5015_v1, 5  ;;  %v2908_v22 = vsel %vm707_vm0, %v4616_v11, 0  ;;  %v4567_v50 = vld [vmem:[%s6289_s1 + $0xa] sm:$0x3] }
  0x5d   : > { %v641_v15 = vunpack.c.l.b16 %v607_v13  ;;  %v304_v16 = vrot.slane %v303_v8, 4  ;;  %v313_v17 = vor.u32 %v312_v9, %v308_v5  ;;  %v1741_v23 = vshrl.u32 %v4470_v6, 16  ;;  %2917 = vmatpush.bf16.msra.mxu2 %v2908_v22  ;;  %v1021_v8 = vld [vmem:[%s4990_s27 + $0xc] sm:$0xe] }
  0x5e   : > { %v1744_v24 = vshll.u32 %v4470_v6, 16  ;;  %v1750_v26 = vshll.u32 %v4471_v12, 16  ;;  %v1074_v33 = vsel %vm5176_vm7, %v4324_v14, %v1073_v19  ;;  %v1075_v35 = vrot.slane %v1073_v19, 4  ;;  %v4474_v6 = vld [vmem:[%s4990_s27 + $0x1c] sm:$0xf] }
  0x5f   : > { %v657_v29 = vpack.c.b16 %v641_v15, %v640_v7  ;;  %v309_v30 = vsel %vm5002_vm3, %v304_v16, %v308_v5  ;;  %v314_v31 = vrot.slane %v313_v17, 4  ;;  %v1185_v37 = vunpack.c.l.b16 %v1074_v33  ;;  %v4473_v5 = vld [vmem:[%s4990_s27 + $0x18] sm:$0xf]  ;;  %v4830_v15 = vld [vmem:[%s4990_s27 + $0xc] sm:$0xff] }
  0x60   : > { %v616_v34 = vunpack.c.l.b16 %v309_v30  ;;  %v1743_v1 = vrot.slane %v1741_v23, 4  ;;  %v1746_v40 = vrot.slane %v1744_v24, 5  ;;  %v1752_v41 = vrot.slane %v1750_v26, 5  ;;  %v4475_v30 = vld [vmem:[%s4990_s27 + $0x20] sm:$0x1] }
  0x61   : > { %4243 = vmatmul.msk.bf16.gmra.mxu3 %vm658_vm4, %v657_v29  ;;  %v319_v39 = vsel %vm5002_vm3, %v314_v31, %v318_v10  ;;  %v1754_v44 = vshrl.u32 %v4471_v12, 16  ;;  %v1077_v49 = vsel %vm5176_vm7, %v1075_v35, %v1076_v43  ;;  %v1760_v55 = vshll.u32 %v4472_v38, 16  ;;  %v4815_v35 = vld [vmem:[%s4990_s27 + $0xc] sm:$0xff] }
  0x62   : > { %v617_v46 = vunpack.c.l.b16 %v319_v39  ;;  %v1186_v52 = vunpack.c.l.b16 %v1077_v49  ;;  %v1747_v53 = vor.u32 %v1746_v40, %v1743_v1  ;;  %v3562_v58 = vsel %vm707_vm0, %v4745_v45, 0 }
  0x63   : > { %v1756_v54 = vrot.slane %v1754_v44, 4  ;;  %3571 = vmatpush.bf16.msra.mxu3 %v3562_v58  ;;  %v2621_v60 = vsel %vm707_vm0, %v4567_v50, 0  ;;  %v3960_v61 = vsel %vm707_vm0, %v4794_v2, 0  ;;  %v1762_v4 = vrot.slane %v1760_v55, 5  ;;  %v1022_v50 = vld [vmem:[%s4990_s27 + $0x18] sm:$0xe] }
  0x64   : > { %v645_v57 = vpack.c.b16 %v617_v46, %v616_v34  ;;  %v1217_v43 = vpack.c.b16 %v1186_v52, %v1185_v37  ;;  %2630 = vmatpush.bf16.msra.mxu1 %v2621_v60  ;;  %v1748_v62 = vrot.slane %v1747_v53, 4  ;;  %3969 = vmatpush.bf16.msra.mxu0 %v3960_v61  ;;  %v1080_v7 = vrot.slane %v5061_v28, 5  ;;  %v4477_v46 = vld [vmem:[%s4990_s27 + $0x28] sm:$0xf] }
  0x65   : > { %v1757_v59 = vor.u32 %v1756_v54, %v1752_v41  ;;  %v1765_v9 = vshrl.u32 %v4473_v5, 16  ;;  %v1768_v10 = vshll.u32 %v4473_v5, 16  ;;  %v1774_v13 = vshll.u32 %v4474_v6, 16 }
  0x66   : > { %4231 = vmatmul.msk.bf16.gmra.mxu0 %vm658_vm4, %v645_v57  ;;  %v1753_v11 = vsel %vm5002_vm3, %v1748_v62, %v1752_v41  ;;  %v1778_v14 = vshrl.u32 %v4474_v6, 16  ;;  %v4325_v16 = vrot.slane %v1021_v8, 9  ;;  %v1082_v17 = vrot.slane %v1080_v7, 4  ;;  %v4476_v41 = vld [vmem:[%s4990_s27 + $0x24] sm:$0xf] }
  0x67   : > { %4308 = vmatmul.msk.bf16.vlgmr.msrb.gmra.mxu1 %vm658_vm4, %v4814_v51  ;;  %v1758_v3 = vrot.slane %v1757_v59, 4  ;;  %v1083_v28 = vrot.slane %v5064_v32, 5  ;;  %v2126_v19 = vunpack.c.l.b16 %v1753_v11  ;;  %v1767_v23 = vrot.slane %v1765_v9, 4  ;;  %v4478_v6 = vld [vmem:[%s4990_s27 + $0x2c] sm:$0x1] }
  0x68   : > { %v1770_v24 = vrot.slane %v1768_v10, 5  ;;  %v1776_v26 = vrot.slane %v1774_v13, 5  ;;  %v1780_v29 = vrot.slane %v1778_v14, 4  ;;  %v1081_v31 = vsel %vm5176_vm7, %v4325_v16, %v1080_v7 }
  0x69   : > { %v1763_v12 = vsel %vm5002_vm3, %v1758_v3, %v1762_v4  ;;  %v1084_v33 = vsel %vm5176_vm7, %v1082_v17, %v1083_v28  ;;  %v1784_v38 = vshll.u32 %v4475_v30, 16  ;;  %v1187_v1 = vunpack.c.l.b16 %v1081_v31 }
  0x6a   : > { %v2127_v22 = vunpack.c.l.b16 %v1763_v12  ;;  %v1771_v32 = vor.u32 %v1770_v24, %v1767_v23  ;;  %v1781_v37 = vor.u32 %v1780_v29, %v1776_v26  ;;  %v1188_v39 = vunpack.c.l.b16 %v1084_v33  ;;  %v4816_v12 = vld [vmem:[%s4990_s27 + $0x18] sm:$0xff]  ;;  %v1023_v29 = vld [vmem:[%s4990_s27 + $0x24] sm:$0xe] }
  0x6b   : > { %v1786_v45 = vrot.slane %v1784_v38, 5  ;;  %v1087_v51 = vrot.slane %v5107_v63, 5  ;;  %v1789_v52 = vshrl.u32 %v4476_v41, 16  ;;  %v1792_v54 = vshll.u32 %v4476_v41, 16 }
  0x6c   : > { %4341 = vmatmul.msk.bf16.vlgmr.msrb.gmra.mxu2 %vm658_vm4, %v1217_v43  ;;  %v2158_v34 = vpack.c.b16 %v2127_v22, %v2126_v19  ;;  %v1772_v40 = vrot.slane %v1771_v32, 4  ;;  %v1782_v44 = vrot.slane %v1781_v37, 4  ;;  %v1218_v49 = vpack.c.b16 %v1188_v39, %v1187_v1  ;;  %v4831_v43 = vld [vmem:[%s4990_s27 + $0x18] sm:$0xff]  ;;  %v4479_v19 = vld [vmem:[%s4990_s27 + $0x30] sm:$0xf]  ;;  %v4832_v32 = vld [vmem:[%s4990_s27 + $0x24] sm:$0xff] }
  0x6d   : > { %v1798_v55 = vshll.u32 %v4477_v46, 16  ;;  %v1802_v2 = vshrl.u32 %v4477_v46, 16  ;;  %v4326_v58 = vrot.slane %v1022_v50, 9  ;;  %v1089_v60 = vrot.slane %v1087_v51, 4  ;;  %v4480_v22 = vld [vmem:[%s4990_s27 + $0x34] sm:$0xf] }
  0x6e   : > { %v1777_v53 = vsel %vm5002_vm3, %v1772_v40, %v1776_v26  ;;  %v1787_v57 = vsel %vm5002_vm3, %v1782_v44, %v1786_v45  ;;  %v1090_v63 = vrot.slane %v5110_v0, 5  ;;  %v1791_v61 = vrot.slane %v1789_v52, 4  ;;  %v4481_v45 = vld [vmem:[%s4990_s27 + $0x38] sm:$0x1] }
  0x6f   : > { %v2128_v59 = vunpack.c.l.b16 %v1777_v53  ;;  %v2129_v62 = vunpack.c.l.b16 %v1787_v57  ;;  %v1794_v3 = vrot.slane %v1792_v54, 5  ;;  %v1800_v4 = vrot.slane %v1798_v55, 5  ;;  %v4483_v57 = vld [vmem:[%s4990_s27 + $0x40] sm:$0xf] }
  0x70   : > { %v1804_v5 = vrot.slane %v1802_v2, 4  ;;  %v1088_v7 = vsel %vm5176_vm7, %v4326_v58, %v1087_v51  ;;  %v1091_v8 = vsel %vm5176_vm7, %v1089_v60, %v1090_v63  ;;  %v1808_v0 = vshll.u32 %v4478_v6, 16  ;;  %v4482_v2 = vld [vmem:[%s4990_s27 + $0x3c] sm:$0xf]  ;;  %v4877_v63 = vld [vmem:[%s4990_s27 + $0x34] sm:$0xf] }
  0x71   : > { %4454 = vmatmul.msk.bf16.vlgmr.msrb.gmra.mxu3 %vm658_vm4, %v4830_v15  ;;  %v2159_v9 = vpack.c.b16 %v2129_v62, %v2128_v59  ;;  %v1795_v10 = vor.u32 %v1794_v3, %v1791_v61  ;;  %v1189_v13 = vunpack.c.l.b16 %v1088_v7  ;;  %v1190_v14 = vunpack.c.l.b16 %v1091_v8  ;;  %v1024_v62 = vld [vmem:[%s4990_s27 + $0x30] sm:$0xe] }
  0x72   : > { %v1805_v11 = vor.u32 %v1804_v5, %v1800_v4  ;;  %v1810_v17 = vrot.slane %v1808_v0, 5  ;;  %v1094_v23 = vrot.slane %v5153_v42, 5  ;;  %v1813_v30 = vshrl.u32 %v4479_v19, 16  ;;  %v4878_v0 = vld [vmem:[%s4990_s27 + $0x38] sm:$0x1] }
  0x73   : > { %v1796_v15 = vrot.slane %v1795_v10, 4  ;;  %v1219_v28 = vpack.c.b16 %v1190_v14, %v1189_v13  ;;  %v1816_v31 = vshll.u32 %v4479_v19, 16  ;;  %v1822_v33 = vshll.u32 %v4480_v22, 16  ;;  %v4833_v13 = vld [vmem:[%s4990_s27 + $0x30] sm:$0xff] }
  0x74   : > { %v1806_v16 = vrot.slane %v1805_v11, 4  ;;  %v1096_v37 = vrot.slane %v1094_v23, 4  ;;  %v1097_v42 = vrot.slane %v5157_v48, 5  ;;  %v1815_v39 = vrot.slane %v1813_v30, 4  ;;  %v4817_v48 = vld [vmem:[%s4990_s27 + $0x24] sm:$0xff] }
  0x75   : > { %v1801_v24 = vsel %vm5002_vm3, %v1796_v15, %v1800_v4  ;;  %v1818_v40 = vrot.slane %v1816_v31, 5  ;;  %v1824_v41 = vrot.slane %v1822_v33, 5  ;;  %v1832_v53 = vshll.u32 %v4481_v45, 16  ;;  %v4818_v33 = vld [vmem:[%s4990_s27 + $0x30] sm:$0xff] }
  0x76   : > { %4519 = vmatmul.msk.bf16.vlgmr.msrb.gmra.mxu0 %vm658_vm4, %v2158_v34  ;;  %v1811_v26 = vsel %vm5002_vm3, %v1806_v16, %v1810_v17  ;;  %v1826_v34 = vshrl.u32 %v4480_v22, 16  ;;  %v2130_v38 = vunpack.c.l.b16 %v1801_v24  ;;  %v1101_v61 = vrot.slane %v4877_v63, 5  ;;  %v4484_v22 = vld [vmem:[%s4990_s27 + $0x44] sm:$0x1] }
  0x77   : > { %4309 = vmatmul.msk.bf16.gmra.mxu1 %vm658_vm4, %v4815_v35  ;;  %v4327_v35 = vrot.slane %v1023_v29, 9  ;;  %v2131_v1 = vunpack.c.l.b16 %v1811_v26  ;;  %v1819_v51 = vor.u32 %v1818_v40, %v1815_v39  ;;  %v1834_v59 = vrot.slane %v1832_v53, 5  ;;  %v4485_v39 = vld [vmem:[%s4990_s27 + $0x48] sm:$0xf]  ;;  %v4486_v40 = vld [vmem:[%s4990_s27 + $0x4c] sm:$0xf] }
  0x78   : > { %v1828_v44 = vrot.slane %v1826_v34, 4  ;;  %v1837_v3 = vshrl.u32 %v4482_v2, 16  ;;  %v1840_v4 = vshll.u32 %v4482_v2, 16  ;;  %v1846_v5 = vshll.u32 %v4483_v57, 16  ;;  %v4834_v2 = vld [vmem:[%s4990_s27 + $0x3c] sm:$0xff] }
  0x79   : > { %v1095_v46 = vsel %vm5176_vm7, %v4327_v35, %v1094_v23  ;;  %v2160_v50 = vpack.c.b16 %v2131_v1, %v2130_v38  ;;  %v1820_v58 = vrot.slane %v1819_v51, 4  ;;  %v1850_v6 = vshrl.u32 %v4483_v57, 16 }
  0x7a   : > { %v1829_v52 = vor.u32 %v1828_v44, %v1824_v41  ;;  %v1191_v54 = vunpack.c.l.b16 %v1095_v46  ;;  %v4328_v10 = vrot.slane %v1024_v62, 9  ;;  %v1103_v11 = vrot.slane %v1101_v61, 4 }
  0x7b   : > { %v1825_v8 = vsel %vm5002_vm3, %v1820_v58, %v1824_v41  ;;  %v1839_v14 = vrot.slane %v1837_v3, 4  ;;  %v1842_v15 = vrot.slane %v1840_v4, 5  ;;  %v1848_v16 = vrot.slane %v1846_v5, 5  ;;  %v4487_v4 = vld [vmem:[%s4990_s27 + $0x50] sm:$0x1] }
  0x7c   : > { %4342 = vmatmul.msk.bf16.gmra.mxu2 %vm658_vm4, %v1218_v49  ;;  %v1098_v49 = vsel %vm5176_vm7, %v1096_v37, %v1097_v42  ;;  %v1852_v17 = vrot.slane %v1850_v6, 4  ;;  %v1102_v23 = vsel %vm5176_vm7, %v4328_v10, %v1101_v61  ;;  %v1856_v30 = vshll.u32 %v4484_v22, 16 }
  0x7d   : > { %v1192_v55 = vunpack.c.l.b16 %v1098_v49  ;;  %v1843_v26 = vor.u32 %v1842_v15, %v1839_v14  ;;  %v1861_v51 = vshrl.u32 %v4485_v39, 16  ;;  %v1870_v53 = vshll.u32 %v4486_v40, 16 }
  0x7e   : > { %v1853_v29 = vor.u32 %v1852_v17, %v1848_v16  ;;  %v1858_v1 = vrot.slane %v1856_v30, 5 }
  0x7f   : > { %v1220_v60 = vpack.c.b16 %v1192_v55, %v1191_v54  ;;  %v1844_v42 = vrot.slane %v1843_v26, 4  ;;  %v1874_v54 = vshrl.u32 %v4486_v40, 16  ;;  %v1872_v62 = vrot.slane %v1870_v53, 5 }
  0x80   : > { %v1854_v38 = vrot.slane %v1853_v29, 4  ;;  %v1115_v26 = vrot.slane %v5074_v47, 5 }
  0x81   : > { %4455 = vmatmul.msk.bf16.gmra.mxu3 %vm658_vm4, %v4831_v43  ;;  %v1830_v43 = vrot.slane %v1829_v52, 4  ;;  %v1849_v45 = vsel %vm5002_vm3, %v1844_v42, %v1848_v16  ;;  %v1864_v52 = vshll.u32 %v4485_v39, 16  ;;  %v1876_v3 = vrot.slane %v1874_v54, 4  ;;  %v4490_v54 = vld [vmem:[%s4990_s27 + $0x5c] sm:$0x1] }
  0x82   : > { %v1859_v46 = vsel %vm5002_vm3, %v1854_v38, %v1858_v1  ;;  %v2134_v55 = vunpack.c.l.b16 %v1849_v45  ;;  %v4835_v1 = vld [vmem:[%s4990_s27 + $0x48] sm:$0xff]  ;;  %v1117_v40 = vrot.slane %v1115_v26, 4 }
  0x83   : > { %v2135_v57 = vunpack.c.l.b16 %v1859_v46  ;;  %v1866_v61 = vrot.slane %v1864_v52, 5  ;;  %v1877_v10 = vor.u32 %v1876_v3, %v1872_v62 }
  0x85   : > { %v1878_v16 = vrot.slane %v1877_v10, 4 }
  0x86   : > { %4520 = vmatmul.msk.bf16.gmra.mxu0 %vm658_vm4, %v2159_v9  ;;  %v1835_v9 = vsel %vm5002_vm3, %v1830_v43, %v1834_v59 }
  0x87   : > { %4310 = vmatmul.msk.bf16.gmra.mxu1 %vm658_vm4, %v4816_v12  ;;  %v1104_v12 = vrot.slane %v4878_v0, 5  ;;  %v2133_v19 = vunpack.c.l.b16 %v1835_v9 }
  0x89   : > { %v1105_v24 = vsel %vm5176_vm7, %v1103_v11, %v1104_v12  ;;  %v1880_v11 = vshll.u32 %v4487_v4, 16  ;;  %v4819_v12 = vld [vmem:[%s4990_s27 + $0x3c] sm:$0xff] }
  0x8a   : > { %v1194_v35 = vunpack.c.l.b16 %v1105_v24  ;;  %v4489_v24 = vld [vmem:[%s4990_s27 + $0x58] sm:$0xf]  ;;  %v4491_v4 = vld [vmem:[%s4990_s27 + $0x60] sm:$0xf] }
  0x8b   : > { %v1882_v17 = vrot.slane %v1880_v11, 5  ;;  %v1898_v42 = vshrl.u32 %v4489_v24, 16 }
  0x8c   : > { %4343 = vmatmul.msk.bf16.gmra.mxu2 %vm658_vm4, %v1219_v28  ;;  %v2132_v28 = vunpack.c.l.b16 %v1825_v8  ;;  %v2162_v8 = vpack.c.b16 %v2135_v57, %v2134_v55 }
  0x8d   : > { %v1883_v30 = vsel %vm5002_vm3, %v1878_v16, %v1882_v17  ;;  %v1900_v52 = vrot.slane %v1898_v42, 4 }
  0x8e   : > { %v2161_v31 = vpack.c.b16 %v2133_v19, %v2132_v28  ;;  %v2137_v46 = vunpack.c.l.b16 %v1883_v30 }
  0x91   : > { %4456 = vmatmul.msk.bf16.gmra.mxu3 %vm658_vm4, %v4832_v32  ;;  %v1193_v32 = vunpack.c.l.b16 %v1102_v23  ;;  %v4488_v23 = vld [vmem:[%s4990_s27 + $0x54] sm:$0xf] }
  0x93   : > { %v1221_v44 = vpack.c.b16 %v1194_v35, %v1193_v32  ;;  %v1888_v32 = vshll.u32 %v4488_v23, 16  ;;  %v1894_v35 = vshll.u32 %v4489_v24, 16 }
  0x96   : > { %4521 = vmatmul.msk.bf16.gmra.mxu0 %vm658_vm4, %v2160_v50  ;;  %v1108_v50 = vrot.slane %v5030_v20, 5  ;;  %v1863_v20 = vrot.slane %v1861_v51, 4  ;;  %v1896_v51 = vrot.slane %v1894_v35, 5  ;;  %v1125_v35 = vrot.slane %v5125_v27, 5 }
  0x97   : > { %4311 = vmatmul.msk.bf16.gmra.mxu1 %vm658_vm4, %v4817_v48  ;;  %v1025_v48 = vld [vmem:[%s4990_s27 + $0x3c] sm:$0xe] }
  0x98   : > { %v4329_v43 = vrot.slane %v1025_v48, 9  ;;  %v1110_v59 = vrot.slane %v1108_v50, 4  ;;  %v1890_v48 = vrot.slane %v1888_v32, 5 }
  0x9a   : > { %v1109_v5 = vsel %vm5176_vm7, %v4329_v43, %v1108_v50  ;;  %v4820_v43 = vld [vmem:[%s4990_s27 + $0x48] sm:$0xff] }
  0x9c   : > { %v5271_v7 = vpop.f32.mrf.mxu1  ;;  %4344 = vmatmul.msk.bf16.gmra.mxu2 %vm658_vm4, %v1220_v60  ;;  %v1111_v60 = vrot.slane %v5035_v25, 5  ;;  %v1867_v25 = vor.u32 %v1866_v61, %v1863_v20  ;;  %v1904_v20 = vshll.u32 %v4490_v54, 16  ;;  %v4821_v54 = vld [vmem:[%s4990_s27 + $0x54] sm:$0xff] }
  0x9e   : > { %v1112_v6 = vsel %vm5176_vm7, %v1110_v59, %v1111_v60  ;;  %v1868_v15 = vrot.slane %v1867_v25, 4  ;;  %v1901_v60 = vor.u32 %v1900_v52, %v1896_v51  ;;  %v1906_v10 = vrot.slane %v1904_v20, 5 }
  0x9f   : > { %v1196_v14 = vunpack.c.l.b16 %v1112_v6 }
  0xa0   : > { %v1873_v29 = vsel %vm5002_vm3, %v1868_v15, %v1872_v62  ;;  %v1902_v25 = vrot.slane %v1901_v60, 4  ;;  %v1122_v15 = vrot.slane %v5120_v21, 5 }
  0xa1   : > { %4457 = vmatmul.msk.bf16.gmra.mxu3 %vm658_vm4, %v4833_v13  ;;  %v1195_v13 = vunpack.c.l.b16 %v1109_v5  ;;  %v2136_v45 = vunpack.c.l.b16 %v1873_v29  ;;  %v4492_v5 = vld [vmem:[%s4990_s27 + $0x64] sm:$0xf] }
  0xa2   : > { %v1922_v16 = vshrl.u32 %v4492_v5, 16  ;;  %v1907_v24 = vsel %vm5002_vm3, %v1902_v25, %v1906_v10  ;;  %v1124_v32 = vrot.slane %v1122_v15, 4  ;;  %v4879_v10 = vld [vmem:[%s4990_s27 + $0x64] sm:$0xf] }
  0xa3   : > { %v1222_v19 = vpack.c.b16 %v1196_v14, %v1195_v13  ;;  %v2163_v57 = vpack.c.b16 %v2137_v46, %v2136_v45  ;;  %v1912_v13 = vshll.u32 %v4491_v4, 16  ;;  %v1918_v14 = vshll.u32 %v4492_v5, 16 }
  0xa4   : > { %v5287_v34 = vpop.f32.mrf.mxu1  ;;  %v1924_v42 = vrot.slane %v1922_v16, 4 }
  0xa5   : > { %v1914_v30 = vrot.slane %v1912_v13, 5  ;;  %v1028_v13 = vld [vmem:[%s4990_s27 + $0x60] sm:$0xe] }
  0xa6   : > { %v5289_v37 = vpop.f32.mrf.mxu2  ;;  %4522 = vmatmul.msk.bf16.gmra.mxu0 %vm658_vm4, %v2161_v31  ;;  %v1026_v31 = vld [vmem:[%s4990_s27 + $0x48] sm:$0xe] }
  0xa7   : > { %4312 = vmatmul.msk.bf16.gmra.mxu1 %vm658_vm4, %v4818_v33  ;;  %v1885_v33 = vshrl.u32 %v4488_v23, 16  ;;  %v4330_v47 = vrot.slane %v1026_v31, 9  ;;  %v1920_v31 = vrot.slane %v1918_v14, 5 }
  0xa9   : > { %v5295_v41 = vpop.f32.mrf.mxu0  ;;  %v1887_v50 = vrot.slane %v1885_v33, 4  ;;  %v4836_v33 = vld [vmem:[%s4990_s27 + $0x54] sm:$0xff]  ;;  %v1925_v27 = vor.u32 %v1924_v42, %v1920_v31 }
  0xaa   : > { %v5301_v49 = vpop.f32.mrf.mxu3 }
  0xab   : > { %v1891_v59 = vor.u32 %v1890_v48, %v1887_v50  ;;  %v1126_v48 = vsel %vm5176_vm7, %v1124_v32, %v1125_v35  ;;  %v1926_v60 = vrot.slane %v1925_v27, 4 }
  0xac   : > { %4345 = vmatmul.msk.bf16.gmra.mxu2 %vm658_vm4, %v1221_v44  ;;  %v1118_v44 = vrot.slane %v5079_v56, 5 }
  0xae   : > { %v5307_v58 = vpop.f32.mrf.mxu1  ;;  %v5310_v63 = vpop.f32.mrf.mxu2  ;;  %v1119_v56 = vsel %vm5176_vm7, %v1117_v40, %v1118_v44  ;;  %v4493_v40 = vld [vmem:[%s4990_s27 + $0x68] sm:$0x1] }
  0xaf   : > { %v1198_v62 = vunpack.c.l.b16 %v1119_v56 }
  0xb1   : > { %4458 = vmatmul.msk.bf16.gmra.mxu3 %vm658_vm4, %v4834_v2  ;;  %v5318_v9 = vpop.f32.mrf.mxu0  ;;  %v1116_v2 = vsel %vm5176_vm7, %v4330_v47, %v1115_v26  ;;  %v2139_v47 = vunpack.c.l.b16 %v1907_v24 }
  0xb2   : > { %v5320_v0 = vpop.f32.mrf.mxu3  ;;  %v1197_v61 = vunpack.c.l.b16 %v1116_v2 }
  0xb4   : > { %v1223_v11 = vpack.c.b16 %v1198_v62, %v1197_v61  ;;  %v4494_v61 = vld [vmem:[%s4990_s27 + $0x6c] sm:$0xf]  ;;  %v4495_v62 = vld [vmem:[%s4990_s27 + $0x70] sm:$0xf] }
  0xb5   : > { %v1933_v14 = vshrl.u32 %v4494_v61, 16  ;;  %v1942_v16 = vshll.u32 %v4495_v62, 16 }
  0xb6   : > { %4523 = vmatmul.msk.bf16.gmra.mxu0 %vm658_vm4, %v2162_v8  ;;  %v5324_v28 = vpop.f32.mrf.mxu1  ;;  %v1892_v8 = vrot.slane %v1891_v59, 4 }
  0xb7   : > { %4313 = vmatmul.msk.bf16.gmra.mxu1 %vm658_vm4, %v4819_v12  ;;  %v1909_v12 = vshrl.u32 %v4491_v4, 16  ;;  %v1935_v35 = vrot.slane %v1933_v14, 4  ;;  %v4498_v14 = vld [vmem:[%s4990_s27 + $0x7c] sm:$0xf] }
  0xb8   : > { %v1897_v23 = vsel %vm5002_vm3, %v1892_v8, %v1896_v51  ;;  %v1928_v51 = vshll.u32 %v4493_v40, 16 }
  0xb9   : > { %v5327_v22 = vpop.f32.mrf.mxu2  ;;  %v1911_v29 = vrot.slane %v1909_v12, 4 }
  0xba   : > { %v1930_v20 = vrot.slane %v1928_v51, 5 }
  0xbb   : > { %v1915_v46 = vor.u32 %v1914_v30, %v1911_v29  ;;  %v4837_v30 = vld [vmem:[%s4990_s27 + $0x60] sm:$0xff] }
  0xbc   : > { %4346 = vmatmul.msk.bf16.gmra.mxu2 %vm658_vm4, %v1222_v19  ;;  %v1027_v19 = vld [vmem:[%s4990_s27 + $0x54] sm:$0xe]  ;;  %v1931_v25 = vsel %vm5002_vm3, %v1926_v60, %v1930_v20 }
  0xbd   : > { %v5337_v38 = vpop.f32.mrf.mxu0  ;;  %v4331_v21 = vrot.slane %v1027_v19, 9  ;;  %v1916_v59 = vrot.slane %v1915_v46, 4  ;;  %v1946_v19 = vshrl.u32 %v4495_v62, 16  ;;  %v4496_v46 = vld [vmem:[%s4990_s27 + $0x74] sm:$0x1] }
  0xbe   : > { %v5341_v39 = vpop.f32.mrf.mxu3 }
  0xbf   : > { %v1123_v50 = vsel %vm5176_vm7, %v4331_v21, %v1122_v15  ;;  %v1921_v8 = vsel %vm5002_vm3, %v1916_v59, %v1920_v31  ;;  %v1936_v15 = vshll.u32 %v4494_v61, 16  ;;  %v4332_v21 = vrot.slane %v1028_v13, 9  ;;  %v4497_v13 = vld [vmem:[%s4990_s27 + $0x78] sm:$0xf] }
  0xc0   : > { %v5344_v53 = vpop.f32.mrf.mxu1  ;;  %v1199_v56 = vunpack.c.l.b16 %v1123_v50  ;;  %v2140_v31 = vunpack.c.l.b16 %v1921_v8 }
  0xc1   : > { %4459 = vmatmul.msk.bf16.gmra.mxu3 %vm658_vm4, %v4835_v1  ;;  %v5348_v55 = vpop.f32.mrf.mxu2  ;;  %v2138_v1 = vunpack.c.l.b16 %v1897_v23  ;;  %v4880_v23 = vld [vmem:[%s4990_s27 + $0x68] sm:$0x1]  ;;  %v1938_v42 = vrot.slane %v1936_v15, 5  ;;  %v4881_v15 = vld [vmem:[%s4990_s27 + $0x70] sm:$0xf] }
  0xc2   : > { %v1132_v24 = vrot.slane %v4880_v23, 5  ;;  %v1029_v23 = vld [vmem:[%s4990_s27 + $0x6c] sm:$0xe] }
  0xc3   : > { %v2164_v52 = vpack.c.b16 %v2139_v47, %v2138_v1  ;;  %v1944_v1 = vrot.slane %v1942_v16, 5  ;;  %v1948_v47 = vrot.slane %v1946_v19, 4  ;;  %v1939_v51 = vor.u32 %v1938_v42, %v1935_v35  ;;  %v4882_v42 = vld [vmem:[%s4990_s27 + $0x74] sm:$0x1] }
  0xc4   : > { %v1136_v16 = vrot.slane %v4881_v15, 5 }
  0xc5   : > { %v5355_v3 = vpop.f32.mrf.mxu0 }
  0xc6   : > { %4524 = vmatmul.msk.bf16.gmra.mxu0 %vm658_vm4, %v2163_v57  ;;  %v5360_v6 = vpop.f32.mrf.mxu3  ;;  %v1200_v57 = vunpack.c.l.b16 %v1126_v48 }
  0xc7   : > { %4314 = vmatmul.msk.bf16.gmra.mxu1 %vm658_vm4, %v4820_v43 }
  0xc8   : > { %v5364_v17 = vpop.f32.mrf.mxu1  ;;  %v1224_v4 = vpack.c.b16 %v1200_v57, %v1199_v56  ;;  %v4822_v57 = vld [vmem:[%s4990_s27 + $0x60] sm:$0xff] }
  0xcc   : > { %v5371_v26 = vpop.f32.mrf.mxu2  ;;  %4347 = vmatmul.msk.bf16.gmra.mxu2 %vm658_vm4, %v1223_v11  ;;  %v1129_v11 = vrot.slane %v4879_v10, 5 }
  0xce   : > { %v1131_v32 = vrot.slane %v1129_v11, 4  ;;  %v1130_v50 = vsel %vm5176_vm7, %v4332_v21, %v1129_v11  ;;  %v1970_v21 = vshrl.u32 %v4498_v14, 16 }
  0xcf   : > { %v5377_v44 = vpop.f32.mrf.mxu0  ;;  %v1201_v20 = vunpack.c.l.b16 %v1130_v50  ;;  %v4333_v50 = vrot.slane %v1029_v23, 9 }
  0xd0   : > { %v5379_v45 = vpop.f32.mrf.mxu3  ;;  %v1133_v48 = vsel %vm5176_vm7, %v1131_v32, %v1132_v24 }
  0xd1   : > { %4460 = vmatmul.msk.bf16.gmra.mxu3 %vm658_vm4, %v4836_v33  ;;  %v2141_v33 = vunpack.c.l.b16 %v1931_v25  ;;  %v1202_v61 = vunpack.c.l.b16 %v1133_v48  ;;  %v1138_v48 = vrot.slane %v1136_v16, 4 }
  0xd3   : > { %v2165_v27 = vpack.c.b16 %v2141_v33, %v2140_v31  ;;  %v1225_v11 = vpack.c.b16 %v1202_v61, %v1201_v20  ;;  %v1960_v31 = vshll.u32 %v4497_v13, 16  ;;  %v1966_v33 = vshll.u32 %v4498_v14, 16 }
  0xd4   : > { %v5387_v2 = vpop.f32.mrf.mxu1  ;;  %v5389_v43 = vpop.f32.mrf.mxu2  ;;  %v1972_v20 = vrot.slane %v1970_v21, 4 }
  0xd6   : > { %4525 = vmatmul.msk.bf16.gmra.mxu0 %vm658_vm4, %v2164_v52  ;;  %v1949_v52 = vor.u32 %v1948_v47, %v1944_v1  ;;  %v1139_v47 = vrot.slane %v4882_v42, 5 }
  0xd7   : > { %4315 = vmatmul.msk.bf16.gmra.mxu1 %vm658_vm4, %v4821_v54  ;;  %v5395_v5 = vpop.f32.mrf.mxu0  ;;  %v1952_v54 = vshll.u32 %v4496_v46, 16  ;;  %v4838_v46 = vld [vmem:[%s4990_s27 + $0x6c] sm:$0xff] }
  0xd8   : > { %v5402_v12 = vpop.f32.mrf.mxu3  ;;  %v1950_v8 = vrot.slane %v1949_v52, 4 }
  0xd9   : > { %v1954_v25 = vrot.slane %v1952_v54, 5 }
  0xdc   : > { %4348 = vmatmul.msk.bf16.gmra.mxu2 %vm658_vm4, %v1224_v4  ;;  %v5407_v29 = vpop.f32.mrf.mxu1  ;;  %v1940_v4 = vrot.slane %v1939_v51, 4 }
  0xde   : > { %v1945_v19 = vsel %vm5002_vm3, %v1940_v4, %v1944_v1  ;;  %v4499_v4 = vld [vmem:[%s4990_s27 + $0x80] sm:$0x1] }
  0xdf   : > { %v5410_v40 = vpop.f32.mrf.mxu2 }
  0xe1   : > { %4461 = vmatmul.msk.bf16.gmra.mxu3 %vm658_vm4, %v4837_v30  ;;  %v1957_v30 = vshrl.u32 %v4497_v13, 16  ;;  %v4823_v13 = vld [vmem:[%s4990_s27 + $0x6c] sm:$0xff] }
  0xe3   : > { %v5418_v56 = vpop.f32.mrf.mxu0  ;;  %v1959_v54 = vrot.slane %v1957_v30, 4 }
  0xe4   : > { %v5421_v59 = vpop.f32.mrf.mxu3  ;;  %v940_v60 = vpop.f32.mrf.mxu1 }
  0xe5   : > { %v941_v62 = vadd.f32 %v940_v60, %v5295_v41  ;;  %v1955_v41 = vsel %vm5002_vm3, %v1950_v8, %v1954_v25  ;;  %v1968_v60 = vrot.slane %v1966_v33, 5  ;;  %v1137_v8 = vsel %vm5176_vm7, %v4333_v50, %v1136_v16 }
  0xe6   : > { %4526 = vmatmul.msk.bf16.gmra.mxu0 %vm658_vm4, %v2165_v27  ;;  %v2142_v27 = vunpack.c.l.b16 %v1945_v19  ;;  %v2143_v51 = vunpack.c.l.b16 %v1955_v41  ;;  %v1976_v19 = vshll.u32 %v4499_v4, 16 }
  0xe7   : > { %v5425_v10 = vpop.f32.mrf.mxu2  ;;  %4316 = vmatmul.msk.bf16.gmra.mxu1 %vm658_vm4, %v4822_v57  ;;  %v1962_v57 = vrot.slane %v1960_v31, 5  ;;  %v1973_v15 = vor.u32 %v1972_v20, %v1968_v60 }
  0xe8   : > { %v2166_v25 = vpack.c.b16 %v2143_v51, %v2142_v27  ;;  %v1978_v42 = vrot.slane %v1976_v19, 5  ;;  %v4501_v27 = vld [vmem:[%s4990_s27 + $0x88] sm:$0xf]  ;;  %v4883_v51 = vld [vmem:[%s4990_s27 + $0x7c] sm:$0xf] }
  0xe9   : > { %v1963_v14 = vor.u32 %v1962_v57, %v1959_v54  ;;  %v1030_v54 = vld [vmem:[%s4990_s27 + $0x78] sm:$0xe] }
  0xeb   : > { %v5436_v24 = vpop.f32.mrf.mxu0  ;;  %v1964_v21 = vrot.slane %v1963_v14, 4 }
  0xec   : > { %v5438_v32 = vpop.f32.mrf.mxu3  ;;  %4349 = vmatmul.msk.bf16.gmra.mxu2 %vm658_vm4, %v1225_v11  ;;  %v942_v35 = vpop.f32.mrf.mxu1 }
  0xed   : > { %v943_v1 = vadd.f32 %v942_v35, %v5318_v9  ;;  %v1140_v9 = vsel %vm5176_vm7, %v1138_v48, %v1139_v47  ;;  %v1974_v35 = vrot.slane %v1973_v15, 4  ;;  %v4500_v47 = vld [vmem:[%s4990_s27 + $0x84] sm:$0xf]  ;;  %v4839_v15 = vld [vmem:[%s4990_s27 + $0x78] sm:$0xff] }
  0xee   : > { %v1204_v30 = vunpack.c.l.b16 %v1140_v9  ;;  %v1984_v57 = vshll.u32 %v4500_v47, 16  ;;  %v1994_v9 = vshrl.u32 %v4501_v27, 16 }
  0xef   : > { %v1293_v52 = vpop.f32.mrf.mxu2  ;;  %v1979_v4 = vsel %vm5002_vm3, %v1974_v35, %v1978_v42 }
  0xf0   : > { %v1373_v61 = vadd.f32 %v1293_v52, %v941_v62  ;;  %v1203_v62 = vunpack.c.l.b16 %v1137_v8  ;;  %v1143_v52 = vrot.slane %v4883_v51, 5  ;;  %v1990_v8 = vshll.u32 %v4501_v27, 16 }
  0xf1   : > { %4462 = vmatmul.msk.bf16.gmra.mxu3 %vm658_vm4, %v4838_v46  ;;  %v1996_v35 = vrot.slane %v1994_v9, 4 }
  0xf2   : > { %v1226_v48 = vpack.c.b16 %v1204_v30, %v1203_v62 }
  0xf3   : > { %v2234_v11 = vpop.f32.mrf.mxu0 }
  0xf4   : > { %v1580_v41 = vpop.f32.mrf.mxu3  ;;  %v945_v23 = vpop.f32.mrf.mxu1 }
  0xf5   : > { %v1660_v31 = vadd.f32 %v1580_v41, %v1373_v61  ;;  %v946_v16 = vadd.f32 %v945_v23, %v5337_v38  ;;  %v1981_v38 = vshrl.u32 %v4500_v47, 16  ;;  %v1969_v61 = vsel %vm5002_vm3, %v1964_v21, %v1968_v60 }
  0xf6   : > { %4527 = vmatmul.msk.bf16.gmra.mxu0 %vm658_vm4, %v2166_v25  ;;  %v4884_v25 = vld [vmem:[%s4990_s27 + $0x80] sm:$0x1]  ;;  %v4334_v41 = vrot.slane %v1030_v54, 9  ;;  %v1145_v23 = vrot.slane %v1143_v52, 4  ;;  %v2144_v62 = vunpack.c.l.b16 %v1969_v61  ;;  %v2145_v60 = vunpack.c.l.b16 %v1979_v4 }
  0xf7   : > { %v1295_v33 = vpop.f32.mrf.mxu2  ;;  %4317 = vmatmul.msk.bf16.gmra.mxu1 %vm658_vm4, %v4823_v13  ;;  %v5455_v46 = vadd.f32 %v2234_v11, %v1660_v31  ;;  %v1146_v11 = vrot.slane %v4884_v25, 5  ;;  %v1983_v30 = vrot.slane %v1981_v38, 4  ;;  %v1986_v31 = vrot.slane %v1984_v57, 5  ;;  %v4824_v38 = vld [vmem:[%s4990_s27 + $0x78] sm:$0xff] }
  0xf8   : > { %v1374_v50 = vadd.f32 %v1295_v33, %v943_v1  ;;  %v1992_v21 = vrot.slane %v1990_v8, 5  ;;  %v2167_v27 = vpack.c.b16 %v2145_v60, %v2144_v62  ;;  %v4504_v62 = vld [vmem:[%s4990_s27 + $0x94] sm:$0xf]  ;;  %v4885_v60 = vld [vmem:[%s4990_s27 + $0x88] sm:$0xf] }
  0xf9   : > { %v1987_v51 = vor.u32 %v1986_v31, %v1983_v30  ;;  %v1150_v30 = vrot.slane %v4885_v60, 5  ;;  %v1031_v31 = vld [vmem:[%s4990_s27 + $0x84] sm:$0xe] }
  0xfa   : > { %v1997_v57 = vor.u32 %v1996_v35, %v1992_v21 }
  0xfb   : > { %v2236_v20 = vpop.f32.mrf.mxu0  ;;  %v1988_v25 = vrot.slane %v1987_v51, 4 }
  0xfc   : > { %v1582_v1 = vpop.f32.mrf.mxu3  ;;  %4350 = vmatmul.msk.bf16.gmra.mxu2 %vm658_vm4, %v1226_v48  ;;  %v947_v13 = vpop.f32.mrf.mxu1  ;;  %v4502_v48 = vld [vmem:[%s4990_s27 + $0x8c] sm:$0x1] }
  0xfd   : > { %v1661_v14 = vadd.f32 %v1582_v1, %v1374_v50  ;;  %v948_v19 = vadd.f32 %v947_v13, %v5355_v3  ;;  %v1144_v50 = vsel %vm5176_vm7, %v4334_v41, %v1143_v52  ;;  %v1147_v3 = vsel %vm5176_vm7, %v1145_v23, %v1146_v11 }
  0xfe   : > { %v2000_v61 = vshll.u32 %v4502_v48, 16  ;;  %v1206_v8 = vunpack.c.l.b16 %v1147_v3  ;;  %v1998_v1 = vrot.slane %v1997_v57, 4  ;;  %v2018_v3 = vshrl.u32 %v4504_v62, 16  ;;  %v4840_v57 = vld [vmem:[%s4990_s27 + $0x84] sm:$0xff] }
  0xff   : > { %v1298_v33 = vpop.f32.mrf.mxu2  ;;  %v5468_v42 = vadd.f32 %v2236_v20, %v1661_v14  ;;  %v4503_v14 = vld [vmem:[%s4990_s27 + $0x90] sm:$0xf] }
 0x100   : > { %v1375_v47 = vadd.f32 %v1298_v33, %v946_v16  ;;  %v1205_v16 = vunpack.c.l.b16 %v1144_v50  ;;  %v2002_v13 = vrot.slane %v2000_v61, 5  ;;  %v2005_v33 = vshrl.u32 %v4503_v14, 16 }
 0x101   : > { %4463 = vmatmul.msk.bf16.gmra.mxu3 %vm658_vm4, %v4839_v15  ;;  %v2008_v48 = vshll.u32 %v4503_v14, 16  ;;  %v2014_v50 = vshll.u32 %v4504_v62, 16  ;;  %v4335_v61 = vrot.slane %v1031_v31, 9 }
 0x102   : > { %v1227_v23 = vpack.c.b16 %v1206_v8, %v1205_v16  ;;  %v2007_v8 = vrot.slane %v2005_v33, 4 }
 0x103   : > { %v2239_v54 = vpop.f32.mrf.mxu0 }
 0x104   : > { %v1585_v4 = vpop.f32.mrf.mxu3  ;;  %v950_v20 = vpop.f32.mrf.mxu1 }
 0x105   : > { %v1662_v9 = vadd.f32 %v1585_v4, %v1375_v47  ;;  %v951_v52 = vadd.f32 %v950_v20, %v5377_v44  ;;  %v1993_v44 = vsel %vm5002_vm3, %v1988_v25, %v1992_v21  ;;  %v2003_v47 = vsel %vm5002_vm3, %v1998_v1, %v2002_v13 }
 0x106   : > { %4528 = vmatmul.msk.bf16.gmra.mxu0 %vm658_vm4, %v2167_v27  ;;  %v4886_v27 = vld [vmem:[%s4990_s27 + $0x8c] sm:$0x1]  ;;  %v1152_v4 = vrot.slane %v1150_v30, 4  ;;  %v2146_v20 = vunpack.c.l.b16 %v1993_v44  ;;  %v2147_v16 = vunpack.c.l.b16 %v2003_v47  ;;  %v2010_v25 = vrot.slane %v2008_v48, 5  ;;  %v4825_v44 = vld [vmem:[%s4990_s27 + $0x84] sm:$0xff] }
 0x107   : > { %v1300_v11 = vpop.f32.mrf.mxu2  ;;  %4318 = vmatmul.msk.bf16.gmra.mxu1 %vm658_vm4, %v4824_v38  ;;  %v5481_v15 = vadd.f32 %v2239_v54, %v1662_v9  ;;  %v1153_v51 = vrot.slane %v4886_v27, 5  ;;  %v2020_v1 = vrot.slane %v2018_v3, 4 }
 0x108   : > { %v1376_v41 = vadd.f32 %v1300_v11, %v948_v19  ;;  %v2016_v11 = vrot.slane %v2014_v50, 5  ;;  %v2168_v62 = vpack.c.b16 %v2147_v16, %v2146_v20  ;;  %v2011_v31 = vor.u32 %v2010_v25, %v2007_v8  ;;  %v4507_v20 = vld [vmem:[%s4990_s27 + $0xa0] sm:$0xf]  ;;  %v1032_v25 = vld [vmem:[%s4990_s27 + $0x90] sm:$0xe] }
 0x10a   : > { %v2021_v33 = vor.u32 %v2020_v1, %v2016_v11 }
 0x10b   : > { %v2241_v35 = vpop.f32.mrf.mxu0 }
 0x10c   : > { %v1587_v19 = vpop.f32.mrf.mxu3  ;;  %4351 = vmatmul.msk.bf16.gmra.mxu2 %vm658_vm4, %v1227_v23  ;;  %v952_v54 = vpop.f32.mrf.mxu1  ;;  %v4505_v23 = vld [vmem:[%s4990_s27 + $0x98] sm:$0x1] }
 0x10d   : > { %v1663_v38 = vadd.f32 %v1587_v19, %v1376_v41  ;;  %v953_v21 = vadd.f32 %v952_v54, %v5395_v5  ;;  %v1151_v5 = vsel %vm5176_vm7, %v4335_v61, %v1150_v30  ;;  %v1154_v41 = vsel %vm5176_vm7, %v1152_v4, %v1153_v51  ;;  %v4506_v30 = vld [vmem:[%s4990_s27 + $0x9c] sm:$0xf] }
 0x10e   : > { %v2024_v47 = vshll.u32 %v4505_v23, 16  ;;  %v1208_v50 = vunpack.c.l.b16 %v1154_v41  ;;  %v2012_v19 = vrot.slane %v2011_v31, 4  ;;  %v2022_v54 = vrot.slane %v2021_v33, 4 }
 0x10f   : > { %v1303_v9 = vpop.f32.mrf.mxu2  ;;  %v5494_v13 = vadd.f32 %v2241_v35, %v1663_v38  ;;  %v2029_v16 = vshrl.u32 %v4506_v30, 16  ;;  %v2032_v8 = vshll.u32 %v4506_v30, 16  ;;  %v2042_v41 = vshrl.u32 %v4507_v20, 16 }
 0x110   : > { %v1377_v14 = vadd.f32 %v1303_v9, %v951_v52  ;;  %v1207_v52 = vunpack.c.l.b16 %v1151_v5  ;;  %v2026_v38 = vrot.slane %v2024_v47, 5  ;;  %v4887_v9 = vld [vmem:[%s4990_s27 + $0x94] sm:$0xf]  ;;  %v2038_v5 = vshll.u32 %v4507_v20, 16 }
 0x111   : > { %4464 = vmatmul.msk.bf16.gmra.mxu3 %vm658_vm4, %v4840_v57  ;;  %v2031_v31 = vrot.slane %v2029_v16, 4  ;;  %v2034_v33 = vrot.slane %v2032_v8, 5 }
 0x112   : > { %v1228_v4 = vpack.c.b16 %v1208_v50, %v1207_v52  ;;  %v2027_v23 = vsel %vm5002_vm3, %v2022_v54, %v2026_v38  ;;  %v4336_v52 = vrot.slane %v1032_v25, 9 }
 0x113   : > { %v2244_v60 = vpop.f32.mrf.mxu0  ;;  %v2035_v20 = vor.u32 %v2034_v33, %v2031_v31  ;;  %v4510_v31 = vld [vmem:[%s4990_s27 + $0xac] sm:$0xf] }
 0x114   : > { %v1590_v48 = vpop.f32.mrf.mxu3  ;;  %v955_v35 = vpop.f32.mrf.mxu1 }
 0x115   : > { %v1664_v3 = vadd.f32 %v1590_v48, %v1377_v14  ;;  %v956_v27 = vadd.f32 %v955_v35, %v5418_v56  ;;  %v1157_v56 = vrot.slane %v4887_v9, 5  ;;  %v2017_v14 = vsel %vm5002_vm3, %v2012_v19, %v2016_v11  ;;  %v4841_v48 = vld [vmem:[%s4990_s27 + $0x90] sm:$0xff] }
 0x116   : > { %4529 = vmatmul.msk.bf16.gmra.mxu0 %vm658_vm4, %v2168_v62  ;;  %v4888_v62 = vld [vmem:[%s4990_s27 + $0x98] sm:$0x1]  ;;  %v2148_v50 = vunpack.c.l.b16 %v2017_v14  ;;  %v2044_v19 = vrot.slane %v2042_v41, 4  ;;  %v4826_v9 = vld [vmem:[%s4990_s27 + $0x90] sm:$0xff] }
 0x117   : > { %v1305_v51 = vpop.f32.mrf.mxu2  ;;  %4319 = vmatmul.msk.bf16.gmra.mxu1 %vm658_vm4, %v4825_v44  ;;  %v5507_v57 = vadd.f32 %v2244_v60, %v1664_v3  ;;  %v1160_v60 = vrot.slane %v4888_v62, 5  ;;  %v1159_v11 = vrot.slane %v1157_v56, 4  ;;  %v2149_v3 = vunpack.c.l.b16 %v2027_v23 }
 0x118   : > { %v1378_v61 = vadd.f32 %v1305_v51, %v953_v21  ;;  %v2040_v51 = vrot.slane %v2038_v5, 5  ;;  %v2036_v62 = vrot.slane %v2035_v20, 4  ;;  %v4890_v20 = vld [vmem:[%s4990_s27 + $0xa4] sm:$0x1] }
 0x119   : > { %v2169_v16 = vpack.c.b16 %v2149_v3, %v2148_v50  ;;  %v4889_v50 = vld [vmem:[%s4990_s27 + $0xa0] sm:$0xf] }
 0x11a   : > { %v2045_v25 = vor.u32 %v2044_v19, %v2040_v51  ;;  %v1164_v3 = vrot.slane %v4889_v50, 5  ;;  %v1033_v19 = vld [vmem:[%s4990_s27 + $0x9c] sm:$0xe] }
 0x11b   : > { %v2246_v1 = vpop.f32.mrf.mxu0 }
 0x11c   : > { %v1592_v21 = vpop.f32.mrf.mxu3  ;;  %4352 = vmatmul.msk.bf16.gmra.mxu2 %vm658_vm4, %v1228_v4  ;;  %v957_v44 = vpop.f32.mrf.mxu1  ;;  %v4508_v4 = vld [vmem:[%s4990_s27 + $0xa4] sm:$0x1] }
 0x11d   : > { %v1665_v47 = vadd.f32 %v1592_v21, %v1378_v61  ;;  %v958_v35 = vadd.f32 %v957_v44, %v5436_v24  ;;  %v1158_v61 = vsel %vm5176_vm7, %v4336_v52, %v1157_v56  ;;  %v1161_v24 = vsel %vm5176_vm7, %v1159_v11, %v1160_v60  ;;  %v4509_v21 = vld [vmem:[%s4990_s27 + $0xa8] sm:$0xf] }
 0x11e   : > { %v2048_v14 = vshll.u32 %v4508_v4, 16  ;;  %v1210_v5 = vunpack.c.l.b16 %v1161_v24  ;;  %v2046_v60 = vrot.slane %v2045_v25, 4  ;;  %v2053_v52 = vshrl.u32 %v4509_v21, 16 }
 0x11f   : > { %v1308_v30 = vpop.f32.mrf.mxu2  ;;  %v5520_v54 = vadd.f32 %v2246_v1, %v1665_v47  ;;  %v2041_v11 = vsel %vm5002_vm3, %v2036_v62, %v2040_v51  ;;  %v2066_v4 = vshrl.u32 %v4510_v31, 16 }
 0x120   : > { %v1379_v38 = vadd.f32 %v1308_v30, %v956_v27  ;;  %v1209_v27 = vunpack.c.l.b16 %v1158_v61  ;;  %v2050_v44 = vrot.slane %v2048_v14, 5  ;;  %v2056_v30 = vshll.u32 %v4509_v21, 16  ;;  %v4842_v14 = vld [vmem:[%s4990_s27 + $0x9c] sm:$0xff] }
 0x121   : > { %4465 = vmatmul.msk.bf16.gmra.mxu3 %vm658_vm4, %v4841_v48  ;;  %v2055_v51 = vrot.slane %v2053_v52, 4 }
 0x122   : > { %v1229_v48 = vpack.c.b16 %v1210_v5, %v1209_v27  ;;  %v2051_v24 = vsel %vm5002_vm3, %v2046_v60, %v2050_v44  ;;  %v1166_v27 = vrot.slane %v1164_v3, 4  ;;  %v2058_v5 = vrot.slane %v2056_v30, 5  ;;  %v4511_v44 = vld [vmem:[%s4990_s27 + $0xb0] sm:$0x1] }
 0x123   : > { %v2249_v8 = vpop.f32.mrf.mxu0  ;;  %v2151_v62 = vunpack.c.l.b16 %v2051_v24 }
 0x124   : > { %v1595_v1 = vpop.f32.mrf.mxu3  ;;  %v960_v23 = vpop.f32.mrf.mxu1  ;;  %v2059_v52 = vor.u32 %v2058_v5, %v2055_v51 }
 0x125   : > { %v1666_v41 = vadd.f32 %v1595_v1, %v1379_v38  ;;  %v2062_v38 = vshll.u32 %v4510_v31, 16  ;;  %v4337_v1 = vrot.slane %v1033_v19, 9  ;;  %v4827_v19 = vld [vmem:[%s4990_s27 + $0x9c] sm:$0xff] }
 0x126   : > { %4530 = vmatmul.msk.bf16.gmra.mxu0 %vm658_vm4, %v2169_v16  ;;  %v1167_v16 = vrot.slane %v4890_v20, 5 }
 0x127   : > { %v1310_v56 = vpop.f32.mrf.mxu2  ;;  %4320 = vmatmul.msk.bf16.gmra.mxu1 %vm658_vm4, %v4826_v9  ;;  %v5533_v33 = vadd.f32 %v2249_v8, %v1666_v41  ;;  %v2150_v8 = vunpack.c.l.b16 %v2041_v11  ;;  %v961_v41 = vadd.f32 %v960_v23, %v5271_v7  ;;  %v2064_v21 = vrot.slane %v2062_v38, 5 }
 0x128   : > { %v1380_v47 = vadd.f32 %v1310_v56, %v958_v35  ;;  %v2068_v56 = vrot.slane %v2066_v4, 4  ;;  %v2072_v11 = vshll.u32 %v4511_v44, 16 }
 0x129   : > { %v2170_v7 = vpack.c.b16 %v2151_v62, %v2150_v8  ;;  %v4512_v8 = vld [vmem:[%s4990_s27 + $0xb4] sm:$0xf] }
 0x12a   : > { %v2069_v23 = vor.u32 %v2068_v56, %v2064_v21  ;;  %v2074_v51 = vrot.slane %v2072_v11, 5  ;;  %v2080_v44 = vshll.u32 %v4512_v8, 16 }
 0x12b   : > { %v2251_v61 = vpop.f32.mrf.mxu0 }
 0x12c   : > { %v1597_v35 = vpop.f32.mrf.mxu3  ;;  %4353 = vmatmul.msk.bf16.gmra.mxu2 %vm658_vm4, %v1229_v48  ;;  %v962_v9 = vpop.f32.mrf.mxu1  ;;  %v1168_v48 = vsel %vm5176_vm7, %v1166_v27, %v1167_v16  ;;  %v2070_v16 = vrot.slane %v2069_v23, 4 }
 0x12d   : > { %v1667_v25 = vadd.f32 %v1597_v35, %v1380_v47  ;;  %v1165_v47 = vsel %vm5176_vm7, %v4337_v1, %v1164_v3  ;;  %v1212_v24 = vunpack.c.l.b16 %v1168_v48  ;;  %v2060_v35 = vrot.slane %v2059_v52, 4  ;;  %v4892_v52 = vld [vmem:[%s4990_s27 + $0xb0] sm:$0x1] }
 0x12e   : > { %v963_v3 = vadd.f32 %v962_v9, %v5287_v34  ;;  %v2077_v34 = vshrl.u32 %v4512_v8, 16  ;;  %v2075_v9 = vsel %vm5002_vm3, %v2070_v16, %v2074_v51 }
 0x12f   : > { %v1313_v60 = vpop.f32.mrf.mxu2  ;;  %v5546_v31 = vadd.f32 %v2251_v61, %v1667_v25  ;;  %v1211_v61 = vunpack.c.l.b16 %v1165_v47  ;;  %v2065_v56 = vsel %vm5002_vm3, %v2060_v35, %v2064_v21 }
 0x130   : > { %v1381_v50 = vadd.f32 %v1313_v60, %v961_v41  ;;  %v4891_v41 = vld [vmem:[%s4990_s27 + $0xac] sm:$0xf]  ;;  %v1034_v60 = vld [vmem:[%s4990_s27 + $0xa8] sm:$0xe] }
 0x131   : > { %4466 = vmatmul.msk.bf16.gmra.mxu3 %vm658_vm4, %v4842_v14  ;;  %v4513_v14 = vld [vmem:[%s4990_s27 + $0xb8] sm:$0xf]  ;;  %v1230_v5 = vpack.c.b16 %v1212_v24, %v1211_v61  ;;  %v1171_v62 = vrot.slane %v4891_v41, 5  ;;  %v2152_v61 = vunpack.c.l.b16 %v2065_v56  ;;  %v2153_v24 = vunpack.c.l.b16 %v2075_v9  ;;  %v4514_v41 = vld [vmem:[%s4990_s27 + $0xbc] sm:$0x1] }
 0x132   : > { %v2090_v47 = vshrl.u32 %v4513_v14, 16 }
 0x133   : > { %v2254_v30 = vpop.f32.mrf.mxu0 }
 0x134   : > { %v1600_v38 = vpop.f32.mrf.mxu3  ;;  %v965_v4 = vpop.f32.mrf.mxu1  ;;  %v2092_v51 = vrot.slane %v2090_v47, 4 }
 0x135   : > { %v1668_v20 = vadd.f32 %v1600_v38, %v1381_v50  ;;  %v2086_v50 = vshll.u32 %v4513_v14, 16  ;;  %v4843_v38 = vld [vmem:[%s4990_s27 + $0xa8] sm:$0xff]  ;;  %v966_v35 = vadd.f32 %v965_v4, %v5307_v58  ;;  %v2171_v58 = vpack.c.b16 %v2153_v24, %v2152_v61 }
 0x136   : > { %4531 = vmatmul.msk.bf16.gmra.mxu0 %vm658_vm4, %v2170_v7  ;;  %v1174_v7 = vrot.slane %v4892_v52, 5 }
 0x137   : > { %v1315_v25 = vpop.f32.mrf.mxu2  ;;  %4321 = vmatmul.msk.bf16.gmra.mxu1 %vm658_vm4, %v4827_v19  ;;  %v5559_v1 = vadd.f32 %v2254_v30, %v1668_v20  ;;  %v4338_v30 = vrot.slane %v1034_v60, 9  ;;  %v1173_v19 = vrot.slane %v1171_v62, 4  ;;  %v2079_v20 = vrot.slane %v2077_v34, 4  ;;  %v4828_v34 = vld [vmem:[%s4990_s27 + $0xa8] sm:$0xff] }
 0x138   : > { %v1382_v27 = vadd.f32 %v1315_v25, %v963_v3  ;;  %v2082_v3 = vrot.slane %v2080_v44, 5  ;;  %v5571_v16 = vrot.slane %v2086_v50, 5  ;;  %v2096_v50 = vshll.u32 %v4514_v41, 16 }
 0x13a   : > { %v2083_v4 = vor.u32 %v2082_v3, %v2079_v20  ;;  %v2093_v56 = vor.u32 %v2092_v51, %v5571_v16  ;;  %v2098_v20 = vrot.slane %v2096_v50, 5 }
 0x13b   : > { %v2256_v48 = vpop.f32.mrf.mxu0 }
 0x13c   : > { %v1602_v23 = vpop.f32.mrf.mxu3  ;;  %4354 = vmatmul.msk.bf16.gmra.mxu2 %vm658_vm4, %v1230_v5  ;;  %v967_v11 = vpop.f32.mrf.mxu1  ;;  %v1172_v5 = vsel %vm5176_vm7, %v4338_v30, %v1171_v62  ;;  %v4515_v62 = vld [vmem:[%s4990_s27 + $0xc0] sm:$0xf]  ;;  %v4893_v30 = vld [vmem:[%s4990_s27 + $0x10] sm:$0xf] }
 0x13d   : > { %v1669_v21 = vadd.f32 %v1602_v23, %v1382_v27  ;;  %v1175_v27 = vsel %vm5176_vm7, %v1173_v19, %v1174_v7  ;;  %v1213_v9 = vunpack.c.l.b16 %v1172_v5  ;;  %v4516_v23 = vld [vmem:[%s4990_s27 + $0xc4] sm:$0xf]  ;;  %v2412_v7 = vrot.slane %v4893_v30, 5 }
 0x13e   : > { %v1214_v44 = vunpack.c.l.b16 %v1175_v27  ;;  %v968_v19 = vadd.f32 %v967_v11, %v5324_v28  ;;  %v2104_v3 = vshll.u32 %v4515_v62, 16  ;;  %v4894_v27 = vld [vmem:[%s4990_s27 + $0xb8] sm:$0xf]  ;;  %v1035_v11 = vld [vmem:[%s4990_s27 + $0xb4] sm:$0xe] }
 0x13f   : > { %v1318_v8 = vpop.f32.mrf.mxu2  ;;  %v5573_v25 = vadd.f32 %v2256_v48, %v1669_v21  ;;  %v2084_v21 = vrot.slane %v2083_v4, 4  ;;  %v1178_v41 = vrot.slane %v4894_v27, 5  ;;  %v2414_v4 = vrot.slane %v2412_v7, 4  ;;  %v4844_v27 = vld [vmem:[%s4990_s27 + $0xb4] sm:$0xff] }
 0x140   : > { %v1383_v14 = vadd.f32 %v1318_v8, %v966_v35  ;;  %v1231_v24 = vpack.c.b16 %v1214_v44, %v1213_v9  ;;  %v2101_v35 = vshrl.u32 %v4515_v62, 16  ;;  %v2110_v8 = vshll.u32 %v4516_v23, 16 }
 0x141   : > { %4467 = vmatmul.msk.bf16.gmra.mxu3 %vm658_vm4, %v4843_v38  ;;  %v2094_v38 = vrot.slane %v2093_v56, 4  ;;  %v4896_v56 = vld [vmem:[%s4990_s27 + $0x14] sm:$0x1]  ;;  %v2089_v9 = vsel %vm5002_vm3, %v2084_v21, %v5571_v16 }
 0x142   : > { %v2103_v62 = vrot.slane %v2101_v35, 4  ;;  %v2154_v21 = vunpack.c.l.b16 %v2089_v9 }
 0x143   : > { %v2259_v60 = vpop.f32.mrf.mxu0  ;;  %v2099_v44 = vsel %vm5002_vm3, %v2094_v38, %v2098_v20 }
 0x144   : > { %v1605_v47 = vpop.f32.mrf.mxu3  ;;  %v970_v48 = vpop.f32.mrf.mxu1  ;;  %v2155_v38 = vunpack.c.l.b16 %v2099_v44 }
 0x145   : > { %v1670_v52 = vadd.f32 %v1605_v47, %v1383_v14  ;;  %v2114_v14 = vshrl.u32 %v4516_v23, 16  ;;  %v2415_v47 = vrot.slane %v4896_v56, 5  ;;  %v5601_v23 = vrot.slane %v2110_v8, 5 }
 0x146   : > { %4532 = vmatmul.msk.bf16.gmra.mxu0 %vm658_vm4, %v2171_v58  ;;  %v4895_v58 = vld [vmem:[%s4990_s27 + $0xbc] sm:$0x1]  ;;  %v1180_v56 = vrot.slane %v1178_v41, 4  ;;  %v971_v16 = vadd.f32 %v970_v48, %v5344_v53 }
 0x147   : > { %v1320_v61 = vpop.f32.mrf.mxu2  ;;  %4322 = vmatmul.msk.bf16.gmra.mxu1 %vm658_vm4, %v4828_v34  ;;  %v5589_v5 = vadd.f32 %v2259_v60, %v1670_v52  ;;  %v1181_v28 = vrot.slane %v4895_v58, 5  ;;  %v2106_v52 = vrot.slane %v2104_v3, 5  ;;  %v2116_v30 = vrot.slane %v2114_v14, 4 }
 0x148   : > { %v1384_v51 = vadd.f32 %v1320_v61, %v968_v19  ;;  %v4535_v19 = vld [vmem:[%s4990_s27 + $0xc] sm:$0xe]  ;;  %v4339_v58 = vrot.slane %v1035_v11, 9  ;;  %v2416_v3 = vsel %vm5176_vm7, %v2414_v4, %v2415_v47  ;;  %v4697_v4 = vld [vmem:[%s4990_s27 + $0x18] sm:$0xf] }
 0x149   : > { %6296 = vst [vmem:[#allocation2_spill] sm:$0xff] %v5589_v5  ;;  %v4551_v5 = vrot.slane %v4535_v19, 9  ;;  %v2107_v8 = vor.u32 %v2106_v52, %v2103_v62  ;;  %v2525_v11 = vunpack.c.l.b16 %v2416_v3  ;;  %v1182_v48 = vsel %vm5176_vm7, %v1180_v56, %v1181_v28  ;;  %v4829_v62 = vld [vmem:[%s4990_s27 + $0xb4] sm:$0xff]  ;;  %v5624_v52 = vld [vmem:[%s4990_s27 + $0x1c] sm:$0xf] }
 0x14a   : > { %v1179_v53 = vsel %vm5176_vm7, %v4339_v58, %v1178_v41  ;;  %v2117_v9 = vor.u32 %v2116_v30, %v5601_v23  ;;  %v1216_v41 = vunpack.c.l.b16 %v1182_v48  ;;  %v3080_v56 = vshrl.u32 %v4697_v4, 16 }
 0x14b   : > { %v2261_v34 = vpop.f32.mrf.mxu0  ;;  %v2413_v35 = vsel %vm5176_vm7, %v4551_v5, %v2412_v7  ;;  %v2172_v7 = vpack.c.b16 %v2155_v38, %v2154_v21  ;;  %v2108_v58 = vrot.slane %v2107_v8, 4  ;;  %v3083_v30 = vshll.u32 %v4697_v4, 16 }
 0x14c   : > { %v1607_v60 = vpop.f32.mrf.mxu3  ;;  %4355 = vmatmul.msk.bf16.gmra.mxu2 %vm658_vm4, %v1231_v24  ;;  %v972_v50 = vpop.f32.mrf.mxu1  ;;  %v4517_v24 = vld [vmem:[%s4990_s27 + $0xc8] sm:$0x1]  ;;  %v2524_v14 = vunpack.c.l.b16 %v2413_v35  ;;  %v2118_v28 = vrot.slane %v2117_v9, 4  ;;  %v3093_v38 = vshrl.u32 %v5624_v52, 16  ;;  %v3082_v8 = vrot.slane %v3080_v56, 4 }
 0x14d   : > { %v1671_v61 = vadd.f32 %v1607_v60, %v1384_v51  ;;  %v2120_v5 = vshll.u32 %v4517_v24, 16  ;;  %v973_v21 = vadd.f32 %v972_v50, %v5364_v17  ;;  %v2113_v17 = vsel %vm5002_vm3, %v2108_v58, %v5601_v23  ;;  %v4699_v9 = vld [vmem:[%s4990_s27 + $0x20] sm:$0x1]  ;;  %v4700_v56 = vld [vmem:[%s4990_s27 + $0x24] sm:$0xf] }
 0x14e   : > { %v5617_v44 = vpack.c.b16 %v2525_v11, %v2524_v14  ;;  %v3085_v14 = vrot.slane %v3083_v30, 5  ;;  %v3099_v58 = vshll.u32 %v4699_v9, 16  ;;  %v5644_v30 = vld [vmem:[%s4990_s27 + $0x28] sm:$0xf] }
 0x14f   : > { %v1323_v20 = vpop.f32.mrf.mxu2  ;;  %v5620_v47 = vadd.f32 %v2261_v34, %v1671_v61  ;;  %v2122_v34 = vrot.slane %v2120_v5, 5  ;;  %v3089_v61 = vshll.u32 %v5624_v52, 16 }
 0x150   : > { %v1385_v51 = vadd.f32 %v1323_v20, %v971_v16  ;;  %v1215_v16 = vunpack.c.l.b16 %v1179_v53  ;;  %v3095_v53 = vrot.slane %v3093_v38, 4  ;;  %v3101_v38 = vrot.slane %v3099_v58, 5 }
 0x151   : > { %4468 = vmatmul.msk.bf16.gmra.mxu3 %vm658_vm4, %v4844_v27  ;;  %v2123_v50 = vsel %vm5002_vm3, %v2118_v28, %v2122_v34  ;;  %v3091_v11 = vrot.slane %v3089_v61, 5 }
 0x152   : > { %v1232_v3 = vpack.c.b16 %v1216_v41, %v1215_v16  ;;  %v3086_v16 = vor.u32 %v3085_v14, %v3082_v8  ;;  %v3107_v8 = vshll.u32 %v4700_v56, 16  ;;  %v3113_v14 = vshll.u32 %v5644_v30, 16 }
 0x153   : > { %v2264_v60 = vpop.f32.mrf.mxu0  ;;  %v3096_v41 = vor.u32 %v3095_v53, %v3091_v11 }
 0x154   : > { %v1610_v19 = vpop.f32.mrf.mxu3  ;;  %v975_v27 = vpop.f32.mrf.mxu1  ;;  %v3087_v34 = vrot.slane %v3086_v16, 4 }
 0x155   : > { %v1672_v20 = vadd.f32 %v1610_v19, %v1385_v51  ;;  %v2157_v19 = vunpack.c.l.b16 %v2123_v50  ;;  %v976_v23 = vadd.f32 %v975_v27, %v5387_v2  ;;  %v3097_v61 = vrot.slane %v3096_v41, 4 }
 0x156   : > { %4533 = vmatmul.msk.bf16.gmra.mxu0 %vm658_vm4, %v2172_v7 }
 0x157   : > { %v1325_v24 = vpop.f32.mrf.mxu2  ;;  %4323 = vmatmul.msk.bf16.gmra.mxu1 %vm658_vm4, %v4829_v62  ;;  %v5631_v51 = vadd.f32 %v2264_v60, %v1672_v20  ;;  %v4845_v60 = vld [vmem:[%s4990_s27 + $0xc0] sm:$0xff]  ;;  %v2156_v62 = vunpack.c.l.b16 %v2113_v17  ;;  %v3117_v17 = vshrl.u32 %v5644_v30, 16  ;;  %v3102_v41 = vsel %vm5002_vm3, %v3097_v61, %v3101_v38  ;;  %v5670_v38 = vld [vmem:[%s4990_s27 + $0x2c] sm:$0x1] }
 0x158   : > { %v1386_v35 = vadd.f32 %v1325_v24, %v973_v21  ;;  %v4762_v24 = vld [vmem:[%s4990_s27 + $0x18] sm:$0xe]  ;;  %v3466_v61 = vunpack.c.l.b16 %v3102_v41 }
 0x159   : > { %v2173_v21 = vpack.c.b16 %v2157_v19, %v2156_v62  ;;  %v4898_v62 = vld [vmem:[%s4990_s27 + $0x20] sm:$0x1] }
 0x15a   : > { %v2422_v19 = vrot.slane %v4898_v62, 5 }
 0x15b   : > { %v2266_v48 = vpop.f32.mrf.mxu0 }
 0x15c   : > { %v1612_v7 = vpop.f32.mrf.mxu3  ;;  %4356 = vmatmul.msk.bf16.gmra.mxu2 %vm658_vm4, %v1232_v3  ;;  %v977_v5 = vpop.f32.mrf.mxu1  ;;  %v3104_v3 = vshrl.u32 %v4700_v56, 16 }
 0x15d   : > { %v1673_v4 = vadd.f32 %v1612_v7, %v1386_v35  ;;  %v3751_v35 = vrot.slane %v5624_v52, 5  ;;  %v4897_v7 = vld [vmem:[%s4990_s27 + $0x1c] sm:$0xf]  ;;  %v3092_v52 = vsel %vm5002_vm3, %v3087_v34, %v3091_v11  ;;  %v3119_v11 = vrot.slane %v3117_v17, 4 }
 0x15f   : > { %v1328_v20 = vpop.f32.mrf.mxu2  ;;  %v5649_v2 = vadd.f32 %v2266_v48, %v1673_v4  ;;  %v4778_v48 = vrot.slane %v4762_v24, 9  ;;  %v4536_v4 = vld [vmem:[%s4990_s27 + $0x18] sm:$0xe]  ;;  %v3753_v58 = vrot.slane %v3751_v35, 4 }
 0x160   : > { %v1387_v28 = vadd.f32 %v1328_v20, %v976_v23  ;;  %v978_v23 = vadd.f32 %v977_v5, %v5407_v29  ;;  %v3754_v20 = vrot.slane %v4699_v9, 5  ;;  %v4846_v24 = vld [vmem:[%s4990_s27 + $0x18] sm:$0xff]  ;;  %v3465_v5 = vunpack.c.l.b16 %v3092_v52 }
 0x161   : > { %4469 = vmatmul.msk.bf16.gmra.mxu3 %vm658_vm4, %v4845_v60  ;;  %6297 = vst [vmem:[#allocation3_spill] sm:$0xff] %v5649_v2  ;;  %v2419_v60 = vrot.slane %v4897_v7, 5  ;;  %v5664_v7 = vrot.slane %v3113_v14, 5  ;;  %v3752_v2 = vsel %vm5176_vm7, %v4778_v48, %v3751_v35  ;;  %v3123_v35 = vshll.u32 %v5670_v38, 16 }
 0x162   : > { %v3497_v48 = vpack.c.b16 %v3466_v61, %v3465_v5  ;;  %v4899_v5 = vld [vmem:[%s4990_s27 + $0x28] sm:$0xf] }
 0x163   : > { %v2269_v27 = vpop.f32.mrf.mxu0  ;;  %v2421_v62 = vrot.slane %v2419_v60, 4  ;;  %v2426_v61 = vrot.slane %v4899_v5, 5 }
 0x164   : > { %v1615_v50 = vpop.f32.mrf.mxu3  ;;  %v980_v53 = vpop.f32.mrf.mxu1 }
 0x165   : > { %v1674_v16 = vadd.f32 %v1615_v50, %v1387_v28  ;;  %v3106_v28 = vrot.slane %v3104_v3, 4  ;;  %v3109_v50 = vrot.slane %v3107_v8, 5  ;;  %v2423_v17 = vsel %vm5176_vm7, %v2421_v62, %v2422_v19  ;;  %v5689_v62 = vld [vmem:[%s4990_s27 + $0x34] sm:$0xf] }
 0x166   : > { %4534 = vmatmul.msk.bf16.gmra.mxu0 %vm658_vm4, %v2173_v21  ;;  %v4552_v21 = vrot.slane %v4536_v4, 9  ;;  %v981_v4 = vadd.f32 %v980_v53, %v5289_v37 }
 0x167   : > { %v1330_v56 = vpop.f32.mrf.mxu2  ;;  %4568 = vmatmul.msk.bf16.vlgmr.msra.gmra.mxu1 %vm658_vm4, %v5617_v44  ;;  %v5667_v29 = vadd.f32 %v2269_v27, %v1674_v16  ;;  %v3755_v44 = vsel %vm5176_vm7, %v3753_v58, %v3754_v20  ;;  %v3110_v3 = vor.u32 %v3109_v50, %v3106_v28  ;;  %v3120_v16 = vor.u32 %v3119_v11, %v5664_v7  ;;  %v4763_v11 = vld [vmem:[%s4990_s27 + $0x24] sm:$0xe] }
 0x168   : > { %v1388_v34 = vadd.f32 %v1330_v56, %v978_v23  ;;  %v2420_v27 = vsel %vm5176_vm7, %v4552_v21, %v2419_v60  ;;  %v3863_v23 = vunpack.c.l.b16 %v3752_v2  ;;  %v3864_v41 = vunpack.c.l.b16 %v3755_v44 }
 0x169   : > { %v2526_v20 = vunpack.c.l.b16 %v2420_v27  ;;  %v2527_v60 = vunpack.c.l.b16 %v2423_v17  ;;  %v3111_v28 = vrot.slane %v3110_v3, 4  ;;  %v3121_v19 = vrot.slane %v3120_v16, 4 }
 0x16a   : > { %v3125_v50 = vrot.slane %v3123_v35, 5  ;;  %v3758_v21 = vrot.slane %v5644_v30, 5  ;;  %v4779_v17 = vrot.slane %v4763_v11, 9  ;;  %v4537_v30 = vld [vmem:[%s4990_s27 + $0x24] sm:$0xe] }
 0x16b   : > { %v2271_v9 = vpop.f32.mrf.mxu0  ;;  %v2557_v53 = vpack.c.b16 %v2527_v60, %v2526_v20 }
 0x16c   : > { %v1617_v8 = vpop.f32.mrf.mxu3  ;;  %4681 = vmatmul.msk.bf16.vlgmr.msra.gmra.mxu2 %vm658_vm4, %v4846_v24  ;;  %v982_v14 = vpop.f32.mrf.mxu1  ;;  %v4703_v24 = vld [vmem:[%s4990_s27 + $0x30] sm:$0xf]  ;;  %v3126_v27 = vsel %vm5002_vm3, %v3121_v19, %v3125_v50  ;;  %v4847_v50 = vld [vmem:[%s4990_s27 + $0x24] sm:$0xff] }
 0x16d   : > { %v1675_v52 = vadd.f32 %v1617_v8, %v1388_v34  ;;  %v3895_v34 = vpack.c.b16 %v3864_v41, %v3863_v23  ;;  %v3116_v8 = vsel %vm5002_vm3, %v3111_v28, %v5664_v7  ;;  %v3128_v16 = vshrl.u32 %v4703_v24, 16  ;;  %v4900_v41 = vld [vmem:[%s4990_s27 + $0x2c] sm:$0x1] }
 0x16e   : > { %v3760_v23 = vrot.slane %v3758_v21, 4  ;;  %v3761_v7 = vrot.slane %v5670_v38, 5  ;;  %v3467_v60 = vunpack.c.l.b16 %v3116_v8  ;;  %v2428_v28 = vrot.slane %v2426_v61, 4 }
 0x16f   : > { %v1333_v58 = vpop.f32.mrf.mxu2  ;;  %v5691_v37 = vadd.f32 %v2271_v9, %v1675_v52  ;;  %v3131_v9 = vshll.u32 %v4703_v24, 16  ;;  %v3137_v52 = vshll.u32 %v5689_v62, 16  ;;  %v3468_v11 = vunpack.c.l.b16 %v3126_v27 }
 0x170   : > { %v1389_v56 = vadd.f32 %v1333_v58, %v981_v4  ;;  %v983_v4 = vadd.f32 %v982_v14, %v5310_v63  ;;  %v2429_v58 = vrot.slane %v4900_v41, 5  ;;  %v3759_v24 = vsel %vm5176_vm7, %v4779_v17, %v3758_v21 }
 0x171   : > { %4746 = vmatmul.msk.bf16.vlgmr.msra.gmra.mxu3 %vm658_vm4, %v3497_v48  ;;  %v3141_v48 = vshrl.u32 %v5689_v62, 16  ;;  %v3130_v63 = vrot.slane %v3128_v16, 4  ;;  %v3133_v14 = vrot.slane %v3131_v9, 5  ;;  %v5712_v38 = vrot.slane %v3137_v52, 5 }
 0x172   : > { %v2430_v27 = vsel %vm5176_vm7, %v2428_v28, %v2429_v58  ;;  %v3865_v17 = vunpack.c.l.b16 %v3759_v24  ;;  %v4764_v24 = vld [vmem:[%s4990_s27 + $0x30] sm:$0xe] }
 0x173   : > { %v2274_v2 = vpop.f32.mrf.mxu0  ;;  %v3143_v5 = vrot.slane %v3141_v48, 4  ;;  %v3134_v52 = vor.u32 %v3133_v14, %v3130_v63 }
 0x174   : > { %v1620_v44 = vpop.f32.mrf.mxu3  ;;  %v985_v3 = vpop.f32.mrf.mxu1 }
 0x175   : > { %v1676_v35 = vadd.f32 %v1620_v44, %v1389_v56  ;;  %v4553_v56 = vrot.slane %v4537_v30, 9  ;;  %v5721_v30 = vld [vmem:[%s4990_s27 + $0x38] sm:$0x1]  ;;  %v3144_v48 = vor.u32 %v3143_v5, %v5712_v38  ;;  %v3135_v28 = vrot.slane %v3134_v52, 4 }
 0x176   : > { %4795 = vmatmul.msk.bf16.vlgmr.msra.gmra.mxu0 %vm658_vm4, %v3895_v34 }
 0x177   : > { %v1335_v20 = vpop.f32.mrf.mxu2  ;;  %4569 = vmatmul.msk.bf16.gmra.mxu1 %vm658_vm4, %v2557_v53  ;;  %v5710_v34 = vadd.f32 %v2274_v2, %v1676_v35  ;;  %v3762_v53 = vsel %vm5176_vm7, %v3760_v23, %v3761_v7  ;;  %v2427_v8 = vsel %vm5176_vm7, %v4553_v56, %v2426_v61  ;;  %v3498_v2 = vpack.c.b16 %v3468_v11, %v3467_v60  ;;  %v5729_v56 = vld [vmem:[%s4990_s27 + $0x40] sm:$0xf] }
 0x178   : > { %v1390_v19 = vadd.f32 %v1335_v20, %v983_v4  ;;  %v3866_v9 = vunpack.c.l.b16 %v3762_v53  ;;  %v986_v61 = vadd.f32 %v985_v3, %v5327_v22  ;;  %v2528_v4 = vunpack.c.l.b16 %v2427_v8  ;;  %v4706_v20 = vld [vmem:[%s4990_s27 + $0x3c] sm:$0xf] }
 0x179   : > { %v2529_v23 = vunpack.c.l.b16 %v2430_v27  ;;  %v3147_v7 = vshll.u32 %v5721_v30, 16  ;;  %v3765_v22 = vrot.slane %v5689_v62, 5  ;;  %v3152_v14 = vshrl.u32 %v4706_v20, 16 }
 0x17a   : > { %v3896_v60 = vpack.c.b16 %v3866_v9, %v3865_v17  ;;  %v3155_v5 = vshll.u32 %v4706_v20, 16  ;;  %v3161_v53 = vshll.u32 %v5729_v56, 16  ;;  %v3165_v8 = vshrl.u32 %v5729_v56, 16  ;;  %v4902_v9 = vld [vmem:[%s4990_s27 + $0x38] sm:$0x1] }
 0x17b   : > { %v2276_v44 = vpop.f32.mrf.mxu0  ;;  %v3149_v11 = vrot.slane %v3147_v7, 5  ;;  %v2436_v52 = vrot.slane %v4902_v9, 5  ;;  %v3768_v62 = vrot.slane %v5721_v30, 5  ;;  %v3767_v7 = vrot.slane %v3765_v22, 4  ;;  %v5756_v9 = vld [vmem:[%s4990_s27 + $0x44] sm:$0x1] }
 0x17c   : > { %v1622_v21 = vpop.f32.mrf.mxu3  ;;  %4682 = vmatmul.msk.bf16.gmra.mxu2 %vm658_vm4, %v4847_v50  ;;  %v987_v16 = vpop.f32.mrf.mxu1  ;;  %v2558_v50 = vpack.c.b16 %v2529_v23, %v2528_v4  ;;  %v3140_v4 = vsel %vm5002_vm3, %v3135_v28, %v5712_v38  ;;  %v3157_v20 = vrot.slane %v3155_v5, 5  ;;  %v5750_v30 = vrot.slane %v3161_v53, 5 }
 0x17d   : > { %v1677_v35 = vadd.f32 %v1622_v21, %v1390_v19  ;;  %v3145_v19 = vrot.slane %v3144_v48, 4  ;;  %v3469_v38 = vunpack.c.l.b16 %v3140_v4 }
 0x17f   : > { %v1338_v41 = vpop.f32.mrf.mxu2  ;;  %v5734_v3 = vadd.f32 %v2276_v44, %v1677_v35  ;;  %v4538_v44 = vld [vmem:[%s4990_s27 + $0x30] sm:$0xe]  ;;  %v988_v35 = vadd.f32 %v987_v16, %v5348_v55  ;;  %v3150_v23 = vsel %vm5002_vm3, %v3145_v19, %v3149_v11 }
 0x180   : > { %v1391_v58 = vadd.f32 %v1338_v41, %v986_v61  ;;  %v4780_v61 = vrot.slane %v4764_v24, 9  ;;  %v3167_v24 = vrot.slane %v3165_v8, 4  ;;  %v4554_v55 = vrot.slane %v4538_v44, 9 }
 0x181   : > { %4747 = vmatmul.msk.bf16.gmra.mxu3 %vm658_vm4, %v3498_v2  ;;  %v4901_v2 = vld [vmem:[%s4990_s27 + $0x34] sm:$0xf]  ;;  %v3470_v28 = vunpack.c.l.b16 %v3150_v23 }
 0x182   : > { %v2433_v17 = vrot.slane %v4901_v2, 5  ;;  %v3766_v11 = vsel %vm5176_vm7, %v4780_v61, %v3765_v22  ;;  %v3171_v22 = vshll.u32 %v5756_v9, 16 }
 0x183   : > { %v2279_v63 = vpop.f32.mrf.mxu0  ;;  %v3499_v44 = vpack.c.b16 %v3470_v28, %v3469_v38  ;;  %v4903_v28 = vld [vmem:[%s4990_s27 + $0x40] sm:$0xf] }
 0x184   : > { %v1625_v27 = vpop.f32.mrf.mxu3  ;;  %v990_v21 = vpop.f32.mrf.mxu1  ;;  %v2435_v16 = vrot.slane %v2433_v17, 4 }
 0x185   : > { %v1678_v48 = vadd.f32 %v1625_v27, %v1391_v58  ;;  %v3154_v58 = vrot.slane %v3152_v14, 4  ;;  %v4848_v27 = vld [vmem:[%s4990_s27 + $0x30] sm:$0xff] }
 0x186   : > { %4796 = vmatmul.msk.bf16.gmra.mxu0 %vm658_vm4, %v3896_v60  ;;  %v2437_v8 = vsel %vm5176_vm7, %v2435_v16, %v2436_v52  ;;  %v5775_v16 = vld [vmem:[%s4990_s27 + $0x4c] sm:$0xf] }
 0x187   : > { %v1340_v41 = vpop.f32.mrf.mxu2  ;;  %4570 = vmatmul.msk.bf16.gmra.mxu1 %vm658_vm4, %v2558_v50  ;;  %v5753_v2 = vadd.f32 %v2279_v63, %v1678_v48  ;;  %v3769_v50 = vsel %vm5176_vm7, %v3767_v7, %v3768_v62  ;;  %v3158_v14 = vor.u32 %v3157_v20, %v3154_v58  ;;  %v2434_v63 = vsel %vm5176_vm7, %v4554_v55, %v2433_v17 }
 0x188   : > { %v1392_v60 = vadd.f32 %v1340_v41, %v988_v35  ;;  %v3168_v48 = vor.u32 %v3167_v24, %v5750_v30  ;;  %v991_v62 = vadd.f32 %v990_v21, %v5371_v26  ;;  %v3867_v35 = vunpack.c.l.b16 %v3766_v11  ;;  %v4765_v24 = vld [vmem:[%s4990_s27 + $0x3c] sm:$0xe] }
 0x189   : > { %v3868_v4 = vunpack.c.l.b16 %v3769_v50  ;;  %v2530_v7 = vunpack.c.l.b16 %v2434_v63  ;;  %v2531_v17 = vunpack.c.l.b16 %v2437_v8  ;;  %v3159_v58 = vrot.slane %v3158_v14, 4 }
 0x18a   : > { %v3169_v52 = vrot.slane %v3168_v48, 4  ;;  %v3173_v20 = vrot.slane %v3171_v22, 5  ;;  %v3772_v55 = vrot.slane %v5729_v56, 5  ;;  %v2440_v11 = vrot.slane %v4903_v28, 5  ;;  %v4539_v56 = vld [vmem:[%s4990_s27 + $0x3c] sm:$0xe] }
 0x18b   : > { %v2281_v19 = vpop.f32.mrf.mxu0  ;;  %v2559_v38 = vpack.c.b16 %v2531_v17, %v2530_v7  ;;  %v4781_v8 = vrot.slane %v4765_v24, 9 }
 0x18c   : > { %v1627_v5 = vpop.f32.mrf.mxu3  ;;  %4683 = vmatmul.msk.bf16.gmra.mxu2 %vm658_vm4, %v4848_v27  ;;  %v992_v53 = vpop.f32.mrf.mxu1  ;;  %v4709_v27 = vld [vmem:[%s4990_s27 + $0x48] sm:$0xf]  ;;  %v3174_v63 = vsel %vm5002_vm3, %v3169_v52, %v3173_v20  ;;  %v4849_v20 = vld [vmem:[%s4990_s27 + $0x3c] sm:$0xff] }
 0x18d   : > { %v1679_v61 = vadd.f32 %v1627_v5, %v1392_v60  ;;  %v3897_v60 = vpack.c.b16 %v3868_v4, %v3867_v35  ;;  %v3164_v5 = vsel %vm5002_vm3, %v3159_v58, %v5750_v30  ;;  %v3176_v48 = vshrl.u32 %v4709_v27, 16  ;;  %v4904_v4 = vld [vmem:[%s4990_s27 + $0x44] sm:$0x1] }
 0x18e   : > { %v3774_v35 = vrot.slane %v3772_v55, 4  ;;  %v3775_v30 = vrot.slane %v5756_v9, 5  ;;  %v3471_v17 = vunpack.c.l.b16 %v3164_v5  ;;  %v2442_v58 = vrot.slane %v2440_v11, 4 }
 0x18f   : > { %v1343_v23 = vpop.f32.mrf.mxu2  ;;  %v5777_v26 = vadd.f32 %v2281_v19, %v1679_v61  ;;  %v3179_v19 = vshll.u32 %v4709_v27, 16  ;;  %v3185_v61 = vshll.u32 %v5775_v16, 16  ;;  %v3472_v24 = vunpack.c.l.b16 %v3174_v63 }
 0x190   : > { %v1393_v41 = vadd.f32 %v1343_v23, %v991_v62  ;;  %v993_v62 = vadd.f32 %v992_v53, %v5389_v43  ;;  %v2443_v23 = vrot.slane %v4904_v4, 5  ;;  %v3773_v27 = vsel %vm5176_vm7, %v4781_v8, %v3772_v55 }
 0x191   : > { %4748 = vmatmul.msk.bf16.gmra.mxu3 %vm658_vm4, %v3499_v44  ;;  %v3189_v44 = vshrl.u32 %v5775_v16, 16  ;;  %v3178_v43 = vrot.slane %v3176_v48, 4  ;;  %v3181_v53 = vrot.slane %v3179_v19, 5  ;;  %v5798_v9 = vrot.slane %v3185_v61, 5 }
 0x192   : > { %v2444_v63 = vsel %vm5176_vm7, %v2442_v58, %v2443_v23  ;;  %v3869_v8 = vunpack.c.l.b16 %v3773_v27  ;;  %v4766_v27 = vld [vmem:[%s4990_s27 + $0x48] sm:$0xe] }
 0x193   : > { %v2284_v21 = vpop.f32.mrf.mxu0  ;;  %v3191_v28 = vrot.slane %v3189_v44, 4  ;;  %v3182_v61 = vor.u32 %v3181_v53, %v3178_v43 }
 0x194   : > { %v1630_v50 = vpop.f32.mrf.mxu3  ;;  %v995_v14 = vpop.f32.mrf.mxu1 }
 0x195   : > { %v1680_v22 = vadd.f32 %v1630_v50, %v1393_v41  ;;  %v4555_v41 = vrot.slane %v4539_v56, 9  ;;  %v5807_v56 = vld [vmem:[%s4990_s27 + $0x50] sm:$0x1]  ;;  %v3192_v44 = vor.u32 %v3191_v28, %v5798_v9  ;;  %v3183_v58 = vrot.slane %v3182_v61, 4 }
 0x196   : > { %4797 = vmatmul.msk.bf16.gmra.mxu0 %vm658_vm4, %v3897_v60 }
 0x197   : > { %v1345_v7 = vpop.f32.mrf.mxu2  ;;  %4571 = vmatmul.msk.bf16.gmra.mxu1 %vm658_vm4, %v2559_v38  ;;  %v5796_v60 = vadd.f32 %v2284_v21, %v1680_v22  ;;  %v3776_v38 = vsel %vm5176_vm7, %v3774_v35, %v3775_v30  ;;  %v2441_v5 = vsel %vm5176_vm7, %v4555_v41, %v2440_v11  ;;  %v3500_v21 = vpack.c.b16 %v3472_v24, %v3471_v17  ;;  %v5815_v41 = vld [vmem:[%s4990_s27 + $0x58] sm:$0xf] }
 0x198   : > { %v1394_v52 = vadd.f32 %v1345_v7, %v993_v62  ;;  %v3870_v19 = vunpack.c.l.b16 %v3776_v38  ;;  %v996_v11 = vadd.f32 %v995_v14, %v5410_v40  ;;  %v2532_v62 = vunpack.c.l.b16 %v2441_v5  ;;  %v4712_v7 = vld [vmem:[%s4990_s27 + $0x54] sm:$0xf] }
 0x199   : > { %v2533_v35 = vunpack.c.l.b16 %v2444_v63  ;;  %v3195_v30 = vshll.u32 %v5807_v56, 16  ;;  %v3779_v40 = vrot.slane %v5775_v16, 5  ;;  %v3200_v53 = vshrl.u32 %v4712_v7, 16 }
 0x19a   : > { %v3898_v17 = vpack.c.b16 %v3870_v19, %v3869_v8  ;;  %v3203_v28 = vshll.u32 %v4712_v7, 16  ;;  %v3209_v38 = vshll.u32 %v5815_v41, 16  ;;  %v3213_v5 = vshrl.u32 %v5815_v41, 16  ;;  %v4906_v19 = vld [vmem:[%s4990_s27 + $0x50] sm:$0x1] }
 0x19b   : > { %v2286_v50 = vpop.f32.mrf.mxu0  ;;  %v3197_v24 = vrot.slane %v3195_v30, 5  ;;  %v2450_v61 = vrot.slane %v4906_v19, 5  ;;  %v3782_v16 = vrot.slane %v5807_v56, 5  ;;  %v3781_v30 = vrot.slane %v3779_v40, 4  ;;  %v5842_v19 = vld [vmem:[%s4990_s27 + $0x5c] sm:$0x1] }
 0x19c   : > { %v1632_v55 = vpop.f32.mrf.mxu3  ;;  %4684 = vmatmul.msk.bf16.gmra.mxu2 %vm658_vm4, %v4849_v20  ;;  %v997_v48 = vpop.f32.mrf.mxu1  ;;  %v2560_v20 = vpack.c.b16 %v2533_v35, %v2532_v62  ;;  %v3188_v62 = vsel %vm5002_vm3, %v3183_v58, %v5798_v9  ;;  %v3205_v7 = vrot.slane %v3203_v28, 5  ;;  %v5836_v56 = vrot.slane %v3209_v38, 5 }
 0x19d   : > { %v1681_v22 = vadd.f32 %v1632_v55, %v1394_v52  ;;  %v3193_v52 = vrot.slane %v3192_v44, 4  ;;  %v3473_v9 = vunpack.c.l.b16 %v3188_v62 }
 0x19f   : > { %v1348_v4 = vpop.f32.mrf.mxu2  ;;  %v5820_v14 = vadd.f32 %v2286_v50, %v1681_v22  ;;  %v4540_v50 = vld [vmem:[%s4990_s27 + $0x48] sm:$0xe]  ;;  %v998_v22 = vadd.f32 %v997_v48, %v5425_v10  ;;  %v3198_v35 = vsel %vm5002_vm3, %v3193_v52, %v3197_v24 }
 0x1a0   : > { %v1395_v23 = vadd.f32 %v1348_v4, %v996_v11  ;;  %v4782_v11 = vrot.slane %v4766_v27, 9  ;;  %v3215_v27 = vrot.slane %v3213_v5, 4  ;;  %v4556_v10 = vrot.slane %v4540_v50, 9 }
 0x1a1   : > { %4749 = vmatmul.msk.bf16.gmra.mxu3 %vm658_vm4, %v3500_v21  ;;  %v4905_v21 = vld [vmem:[%s4990_s27 + $0x4c] sm:$0xf]  ;;  %v3474_v58 = vunpack.c.l.b16 %v3198_v35 }
 0x1a2   : > { %v2447_v8 = vrot.slane %v4905_v21, 5  ;;  %v3780_v24 = vsel %vm5176_vm7, %v4782_v11, %v3779_v40  ;;  %v3219_v40 = vshll.u32 %v5842_v19, 16 }
 0x1a3   : > { %v2289_v43 = vpop.f32.mrf.mxu0  ;;  %v3501_v50 = vpack.c.b16 %v3474_v58, %v3473_v9  ;;  %v4907_v58 = vld [vmem:[%s4990_s27 + $0x58] sm:$0xf] }
 0x1a4   : > { %v1635_v63 = vpop.f32.mrf.mxu3  ;;  %v1000_v55 = vpop.f32.mrf.mxu1  ;;  %v2449_v48 = vrot.slane %v2447_v8, 4 }
 0x1a5   : > { %v1682_v44 = vadd.f32 %v1635_v63, %v1395_v23  ;;  %v3202_v23 = vrot.slane %v3200_v53, 4  ;;  %v4850_v63 = vld [vmem:[%s4990_s27 + $0x48] sm:$0xff] }
 0x1a6   : > { %4798 = vmatmul.msk.bf16.gmra.mxu0 %vm658_vm4, %v3898_v17  ;;  %v2451_v5 = vsel %vm5176_vm7, %v2449_v48, %v2450_v61  ;;  %v5861_v48 = vld [vmem:[%s4990_s27 + $0x64] sm:$0xf] }
 0x1a7   : > { %v1350_v4 = vpop.f32.mrf.mxu2  ;;  %4572 = vmatmul.msk.bf16.gmra.mxu1 %vm658_vm4, %v2560_v20  ;;  %v5839_v21 = vadd.f32 %v2289_v43, %v1682_v44  ;;  %v3783_v20 = vsel %vm5176_vm7, %v3781_v30, %v3782_v16  ;;  %v3206_v53 = vor.u32 %v3205_v7, %v3202_v23  ;;  %v2448_v43 = vsel %vm5176_vm7, %v4556_v10, %v2447_v8 }
 0x1a8   : > { %v1396_v17 = vadd.f32 %v1350_v4, %v998_v22  ;;  %v3216_v44 = vor.u32 %v3215_v27, %v5836_v56  ;;  %v1001_v16 = vadd.f32 %v1000_v55, %v5301_v49  ;;  %v3871_v22 = vunpack.c.l.b16 %v3780_v24  ;;  %v4767_v27 = vld [vmem:[%s4990_s27 + $0x54] sm:$0xe] }
 0x1a9   : > { %v3872_v62 = vunpack.c.l.b16 %v3783_v20  ;;  %v2534_v30 = vunpack.c.l.b16 %v2448_v43  ;;  %v2535_v8 = vunpack.c.l.b16 %v2451_v5  ;;  %v3207_v23 = vrot.slane %v3206_v53, 4 }
 0x1aa   : > { %v3217_v61 = vrot.slane %v3216_v44, 4  ;;  %v3221_v7 = vrot.slane %v3219_v40, 5  ;;  %v3786_v10 = vrot.slane %v5815_v41, 5  ;;  %v2454_v24 = vrot.slane %v4907_v58, 5  ;;  %v4541_v41 = vld [vmem:[%s4990_s27 + $0x54] sm:$0xe] }
 0x1ab   : > { %v2291_v52 = vpop.f32.mrf.mxu0  ;;  %v2561_v9 = vpack.c.b16 %v2535_v8, %v2534_v30  ;;  %v4783_v5 = vrot.slane %v4767_v27, 9 }
 0x1ac   : > { %v1637_v28 = vpop.f32.mrf.mxu3  ;;  %4685 = vmatmul.msk.bf16.gmra.mxu2 %vm658_vm4, %v4850_v63  ;;  %v1002_v38 = vpop.f32.mrf.mxu1  ;;  %v4715_v63 = vld [vmem:[%s4990_s27 + $0x60] sm:$0xf]  ;;  %v3222_v43 = vsel %vm5002_vm3, %v3217_v61, %v3221_v7  ;;  %v4851_v7 = vld [vmem:[%s4990_s27 + $0x54] sm:$0xff] }
 0x1ad   : > { %v1683_v11 = vadd.f32 %v1637_v28, %v1396_v17  ;;  %v3899_v17 = vpack.c.b16 %v3872_v62, %v3871_v22  ;;  %v3212_v28 = vsel %vm5002_vm3, %v3207_v23, %v5836_v56  ;;  %v3224_v44 = vshrl.u32 %v4715_v63, 16  ;;  %v4908_v62 = vld [vmem:[%s4990_s27 + $0x5c] sm:$0x1] }
 0x1ae   : > { %v3788_v22 = vrot.slane %v3786_v10, 4  ;;  %v3789_v56 = vrot.slane %v5842_v19, 5  ;;  %v3475_v8 = vunpack.c.l.b16 %v3212_v28  ;;  %v2456_v23 = vrot.slane %v2454_v24, 4 }
 0x1af   : > { %v1353_v35 = vpop.f32.mrf.mxu2  ;;  %v5863_v49 = vadd.f32 %v2291_v52, %v1683_v11  ;;  %v3227_v52 = vshll.u32 %v4715_v63, 16  ;;  %v3233_v11 = vshll.u32 %v5861_v48, 16  ;;  %v3476_v27 = vunpack.c.l.b16 %v3222_v43 }
 0x1b0   : > { %v1397_v4 = vadd.f32 %v1353_v35, %v1001_v16  ;;  %v1003_v16 = vadd.f32 %v1002_v38, %v5320_v0  ;;  %v2457_v35 = vrot.slane %v4908_v62, 5  ;;  %v3787_v63 = vsel %vm5176_vm7, %v4783_v5, %v3786_v10 }
 0x1b1   : > { %4750 = vmatmul.msk.bf16.gmra.mxu3 %vm658_vm4, %v3501_v50  ;;  %v3237_v50 = vshrl.u32 %v5861_v48, 16  ;;  %v3226_v0 = vrot.slane %v3224_v44, 4  ;;  %v3229_v38 = vrot.slane %v3227_v52, 5  ;;  %v5884_v19 = vrot.slane %v3233_v11, 5 }
 0x1b2   : > { %v2458_v43 = vsel %vm5176_vm7, %v2456_v23, %v2457_v35  ;;  %v3873_v5 = vunpack.c.l.b16 %v3787_v63  ;;  %v4768_v63 = vld [vmem:[%s4990_s27 + $0x60] sm:$0xe] }
 0x1b3   : > { %v2294_v55 = vpop.f32.mrf.mxu0  ;;  %v3239_v58 = vrot.slane %v3237_v50, 4  ;;  %v3230_v11 = vor.u32 %v3229_v38, %v3226_v0 }
 0x1b4   : > { %v1640_v20 = vpop.f32.mrf.mxu3  ;;  %v1005_v53 = vpop.f32.mrf.mxu1 }
 0x1b5   : > { %v1684_v40 = vadd.f32 %v1640_v20, %v1397_v4  ;;  %v4557_v4 = vrot.slane %v4541_v41, 9  ;;  %v5893_v41 = vld [vmem:[%s4990_s27 + $0x68] sm:$0x1]  ;;  %v3240_v50 = vor.u32 %v3239_v58, %v5884_v19  ;;  %v3231_v23 = vrot.slane %v3230_v11, 4 }
 0x1b6   : > { %4799 = vmatmul.msk.bf16.gmra.mxu0 %vm658_vm4, %v3899_v17 }
 0x1b7   : > { %v1355_v30 = vpop.f32.mrf.mxu2  ;;  %4573 = vmatmul.msk.bf16.gmra.mxu1 %vm658_vm4, %v2561_v9  ;;  %v5882_v17 = vadd.f32 %v2294_v55, %v1684_v40  ;;  %v3790_v9 = vsel %vm5176_vm7, %v3788_v22, %v3789_v56  ;;  %v2455_v28 = vsel %vm5176_vm7, %v4557_v4, %v2454_v24  ;;  %v3502_v55 = vpack.c.b16 %v3476_v27, %v3475_v8  ;;  %v5901_v4 = vld [vmem:[%s4990_s27 + $0x70] sm:$0xf] }
 0x1b8   : > { %v1398_v61 = vadd.f32 %v1355_v30, %v1003_v16  ;;  %v3874_v52 = vunpack.c.l.b16 %v3790_v9  ;;  %v1006_v24 = vadd.f32 %v1005_v53, %v5341_v39  ;;  %v2536_v16 = vunpack.c.l.b16 %v2455_v28  ;;  %v4718_v30 = vld [vmem:[%s4990_s27 + $0x6c] sm:$0xf] }
 0x1b9   : > { %v2537_v22 = vunpack.c.l.b16 %v2458_v43  ;;  %v3243_v56 = vshll.u32 %v5893_v41, 16  ;;  %v3793_v39 = vrot.slane %v5861_v48, 5  ;;  %v3248_v38 = vshrl.u32 %v4718_v30, 16 }
 0x1ba   : > { %v3900_v8 = vpack.c.b16 %v3874_v52, %v3873_v5  ;;  %v3251_v58 = vshll.u32 %v4718_v30, 16  ;;  %v3257_v9 = vshll.u32 %v5901_v4, 16  ;;  %v3261_v28 = vshrl.u32 %v5901_v4, 16  ;;  %v4910_v52 = vld [vmem:[%s4990_s27 + $0x68] sm:$0x1] }
 0x1bb   : > { %v2296_v20 = vpop.f32.mrf.mxu0  ;;  %v3245_v27 = vrot.slane %v3243_v56, 5  ;;  %v2464_v11 = vrot.slane %v4910_v52, 5  ;;  %v3796_v48 = vrot.slane %v5893_v41, 5  ;;  %v3795_v56 = vrot.slane %v3793_v39, 4 }
 0x1bc   : > { %v1642_v10 = vpop.f32.mrf.mxu3  ;;  %4686 = vmatmul.msk.bf16.gmra.mxu2 %vm658_vm4, %v4851_v7  ;;  %v1007_v44 = vpop.f32.mrf.mxu1  ;;  %v2562_v7 = vpack.c.b16 %v2537_v22, %v2536_v16  ;;  %v3236_v16 = vsel %vm5002_vm3, %v3231_v23, %v5884_v19  ;;  %v3253_v30 = vrot.slane %v3251_v58, 5  ;;  %v3259_v41 = vrot.slane %v3257_v9, 5  ;;  %v5926_v23 = vld [vmem:[%s4990_s27 + $0x74] sm:$0x1] }
 0x1bd   : > { %v1685_v40 = vadd.f32 %v1642_v10, %v1398_v61  ;;  %v3241_v61 = vrot.slane %v3240_v50, 4  ;;  %v3477_v52 = vunpack.c.l.b16 %v3236_v16 }
 0x1bf   : > { %v1358_v62 = vpop.f32.mrf.mxu2  ;;  %v5906_v53 = vadd.f32 %v2296_v20, %v1685_v40  ;;  %v4542_v20 = vld [vmem:[%s4990_s27 + $0x60] sm:$0xe]  ;;  %v1008_v40 = vadd.f32 %v1007_v44, %v5360_v6  ;;  %v3246_v22 = vsel %vm5002_vm3, %v3241_v61, %v3245_v27 }
 0x1c0   : > { %v1399_v35 = vadd.f32 %v1358_v62, %v1006_v24  ;;  %v4784_v24 = vrot.slane %v4768_v63, 9  ;;  %v3263_v63 = vrot.slane %v3261_v28, 4  ;;  %v3478_v19 = vunpack.c.l.b16 %v3246_v22 }
 0x1c1   : > { %4751 = vmatmul.msk.bf16.gmra.mxu3 %vm658_vm4, %v3502_v55  ;;  %6298 = vst [vmem:[#allocation4_spill] sm:$0xff] %v5906_v53  ;;  %v4909_v55 = vld [vmem:[%s4990_s27 + $0x64] sm:$0xf] }
 0x1c2   : > { %v2461_v5 = vrot.slane %v4909_v55, 5  ;;  %v4558_v55 = vrot.slane %v4542_v20, 9  ;;  %v3794_v61 = vsel %vm5176_vm7, %v4784_v24, %v3793_v39  ;;  %v3264_v28 = vor.u32 %v3263_v63, %v3259_v41 }
 0x1c3   : > { %v2299_v0 = vpop.f32.mrf.mxu0  ;;  %v3503_v24 = vpack.c.b16 %v3478_v19, %v3477_v52  ;;  %v3875_v20 = vunpack.c.l.b16 %v3794_v61 }
 0x1c4   : > { %v1645_v43 = vpop.f32.mrf.mxu3  ;;  %v1010_v10 = vpop.f32.mrf.mxu1  ;;  %v2463_v6 = vrot.slane %v2461_v5, 4 }
 0x1c5   : > { %v1686_v50 = vadd.f32 %v1645_v43, %v1399_v35  ;;  %v3250_v35 = vrot.slane %v3248_v38, 4 }
 0x1c6   : > { %4800 = vmatmul.msk.bf16.gmra.mxu0 %vm658_vm4, %v3900_v8  ;;  %v4852_v8 = vld [vmem:[%s4990_s27 + $0x60] sm:$0xff]  ;;  %v2465_v9 = vsel %vm5176_vm7, %v2463_v6, %v2464_v11  ;;  %v3800_v6 = vrot.slane %v5901_v4, 5 }
 0x1c7   : > { %v1360_v62 = vpop.f32.mrf.mxu2  ;;  %4574 = vmatmul.msk.bf16.gmra.mxu1 %vm658_vm4, %v2562_v7  ;;  %v5923_v44 = vadd.f32 %v2299_v0, %v1686_v50  ;;  %v3797_v7 = vsel %vm5176_vm7, %v3795_v56, %v3796_v48  ;;  %v3254_v27 = vor.u32 %v3253_v30, %v3250_v35  ;;  %v2462_v0 = vsel %vm5176_vm7, %v4558_v55, %v2461_v5  ;;  %v4721_v30 = vld [vmem:[%s4990_s27 + $0x78] sm:$0xf]  ;;  %v4769_v55 = vld [vmem:[%s4990_s27 + $0x6c] sm:$0xe] }
 0x1c8   : > { %v1400_v43 = vadd.f32 %v1360_v62, %v1008_v40  ;;  %v3267_v50 = vshll.u32 %v5926_v23, 16  ;;  %v1011_v48 = vadd.f32 %v1010_v10, %v5379_v45  ;;  %v3876_v40 = vunpack.c.l.b16 %v3797_v7 }
 0x1c9   : > { %v2538_v22 = vunpack.c.l.b16 %v2462_v0  ;;  %v2539_v56 = vunpack.c.l.b16 %v2465_v9  ;;  %v3255_v5 = vrot.slane %v3254_v27, 4  ;;  %v3265_v35 = vrot.slane %v3264_v28, 4  ;;  %v4543_v27 = vld [vmem:[%s4990_s27 + $0x6c] sm:$0xe] }
 0x1ca   : > { %v3269_v11 = vrot.slane %v3267_v50, 5  ;;  %v3901_v63 = vpack.c.b16 %v3876_v40, %v3875_v20  ;;  %v3272_v9 = vshrl.u32 %v4721_v30, 16  ;;  %v3275_v28 = vshll.u32 %v4721_v30, 16 }
 0x1cb   : > { %v2301_v53 = vpop.f32.mrf.mxu0  ;;  %v2563_v10 = vpack.c.b16 %v2539_v56, %v2538_v22  ;;  %v3260_v61 = vsel %vm5002_vm3, %v3255_v5, %v3259_v41  ;;  %v4785_v41 = vrot.slane %v4769_v55, 9  ;;  %v4559_v22 = vrot.slane %v4543_v27, 9  ;;  %v5967_v55 = vld [vmem:[%s4990_s27 + $0x80] sm:$0x1] }
 0x1cc   : > { %v1647_v38 = vpop.f32.mrf.mxu3  ;;  %4687 = vmatmul.msk.bf16.gmra.mxu2 %vm658_vm4, %v4852_v8  ;;  %v1012_v58 = vpop.f32.mrf.mxu1  ;;  %v3270_v7 = vsel %vm5002_vm3, %v3265_v35, %v3269_v11  ;;  %v3479_v20 = vunpack.c.l.b16 %v3260_v61  ;;  %v4912_v35 = vld [vmem:[%s4990_s27 + $0x74] sm:$0x1] }
 0x1cd   : > { %v1687_v39 = vadd.f32 %v1647_v38, %v1400_v43  ;;  %v5942_v43 = vld [vmem:[%s4990_s27 + $0x7c] sm:$0xf]  ;;  %v4911_v38 = vld [vmem:[%s4990_s27 + $0x70] sm:$0xf]  ;;  %v3480_v40 = vunpack.c.l.b16 %v3270_v7  ;;  %v2471_v11 = vrot.slane %v4912_v35, 5 }
 0x1ce   : > { %v2468_v0 = vrot.slane %v4911_v38, 5  ;;  %v3281_v50 = vshll.u32 %v5942_v43, 16  ;;  %v3285_v4 = vshrl.u32 %v5942_v43, 16  ;;  %v3807_v35 = vrot.slane %v5942_v43, 5 }
 0x1cf   : > { %v1363_v16 = vpop.f32.mrf.mxu2  ;;  %v5944_v8 = vadd.f32 %v2301_v53, %v1687_v39  ;;  %v1013_v39 = vadd.f32 %v1012_v58, %v5402_v12  ;;  %v3277_v12 = vrot.slane %v3275_v28, 5 }
 0x1d0   : > { %v1401_v62 = vadd.f32 %v1363_v16, %v1011_v48  ;;  %v3802_v16 = vrot.slane %v3800_v6, 4  ;;  %v2470_v5 = vrot.slane %v2468_v0, 4  ;;  %v5964_v58 = vrot.slane %v3281_v50, 5 }
 0x1d1   : > { %4752 = vmatmul.msk.bf16.gmra.mxu3 %vm658_vm4, %v3503_v24  ;;  %v3803_v24 = vrot.slane %v5926_v23, 5  ;;  %v3287_v23 = vrot.slane %v3285_v4, 4  ;;  %v2469_v38 = vsel %vm5176_vm7, %v4559_v22, %v2468_v0  ;;  %v3291_v50 = vshll.u32 %v5967_v55, 16  ;;  %v4724_v0 = vld [vmem:[%s4990_s27 + $0x84] sm:$0xf] }
 0x1d3   : > { %v2304_v45 = vpop.f32.mrf.mxu0  ;;  %v3804_v61 = vsel %vm5176_vm7, %v3802_v16, %v3803_v24 }
 0x1d4   : > { %v1650_v52 = vpop.f32.mrf.mxu3  ;;  %v1015_v19 = vpop.f32.mrf.mxu1 }
 0x1d5   : > { %v1688_v53 = vadd.f32 %v1650_v52, %v1401_v62  ;;  %v4853_v62 = vld [vmem:[%s4990_s27 + $0x6c] sm:$0xff]  ;;  %v1016_v4 = vadd.f32 %v1015_v19, %v5421_v59 }
 0x1d6   : > { %4801 = vmatmul.msk.bf16.gmra.mxu0 %vm658_vm4, %v3901_v63  ;;  %v3274_v63 = vrot.slane %v3272_v9, 4  ;;  %v2472_v9 = vsel %vm5176_vm7, %v2470_v5, %v2471_v11 }
 0x1d7   : > { %v1365_v48 = vpop.f32.mrf.mxu2  ;;  %4575 = vmatmul.msk.bf16.gmra.mxu1 %vm658_vm4, %v2563_v10  ;;  %v5962_v30 = vadd.f32 %v2304_v45, %v1688_v53  ;;  %v3801_v10 = vsel %vm5176_vm7, %v4785_v41, %v3800_v6  ;;  %v3504_v45 = vpack.c.b16 %v3480_v40, %v3479_v20  ;;  %v3288_v6 = vor.u32 %v3287_v23, %v5964_v58 }
 0x1d8   : > { %v1402_v56 = vadd.f32 %v1365_v48, %v1013_v39  ;;  %v3278_v28 = vor.u32 %v3277_v12, %v3274_v63  ;;  %v3877_v39 = vunpack.c.l.b16 %v3801_v10  ;;  %v3878_v41 = vunpack.c.l.b16 %v3804_v61  ;;  %v5988_v63 = vld [vmem:[%s4990_s27 + $0x88] sm:$0xf] }
 0x1d9   : > { %v2540_v48 = vunpack.c.l.b16 %v2469_v38  ;;  %v2541_v20 = vunpack.c.l.b16 %v2472_v9  ;;  %v3289_v22 = vrot.slane %v3288_v6, 4  ;;  %v3296_v12 = vshrl.u32 %v4724_v0, 16  ;;  %v4913_v38 = vld [vmem:[%s4990_s27 + $0x7c] sm:$0xf] }
 0x1da   : > { %v3279_v16 = vrot.slane %v3278_v28, 4  ;;  %v3902_v5 = vpack.c.b16 %v3878_v41, %v3877_v39  ;;  %v3299_v23 = vshll.u32 %v4724_v0, 16  ;;  %v2475_v9 = vrot.slane %v4913_v38, 5 }
 0x1db   : > { %v2306_v52 = vpop.f32.mrf.mxu0  ;;  %v2564_v11 = vpack.c.b16 %v2541_v20, %v2540_v48  ;;  %v3309_v39 = vshrl.u32 %v5988_v63, 16 }
 0x1dc   : > { %v1652_v7 = vpop.f32.mrf.mxu3  ;;  %4688 = vmatmul.msk.bf16.gmra.mxu2 %vm658_vm4, %v4853_v62  ;;  %v1017_v27 = vpop.f32.mrf.mxu1  ;;  %v4770_v62 = vld [vmem:[%s4990_s27 + $0x78] sm:$0xe]  ;;  %v3284_v43 = vsel %vm5002_vm3, %v3279_v16, %v5964_v58  ;;  %v3298_v58 = vrot.slane %v3296_v12, 4  ;;  %v3301_v48 = vrot.slane %v3299_v23, 5  ;;  %v2477_v0 = vrot.slane %v2475_v9, 4 }
 0x1dd   : > { %v1689_v53 = vadd.f32 %v1652_v7, %v1402_v56  ;;  %v3293_v56 = vrot.slane %v3291_v50, 5  ;;  %v4786_v7 = vrot.slane %v4770_v62, 9  ;;  %v1018_v6 = vadd.f32 %v1017_v27, %v5438_v32  ;;  %v6012_v12 = vld [vmem:[%s4990_s27 + $0x8c] sm:$0x1] }
 0x1de   : > { %v3809_v50 = vrot.slane %v3807_v35, 4  ;;  %v3481_v32 = vunpack.c.l.b16 %v3284_v43 }
 0x1df   : > { %v1368_v24 = vpop.f32.mrf.mxu2  ;;  %v5985_v59 = vadd.f32 %v2306_v52, %v1689_v53  ;;  %v3294_v52 = vsel %vm5002_vm3, %v3289_v22, %v3293_v56  ;;  %v3810_v53 = vrot.slane %v5967_v55, 5  ;;  %v4914_v55 = vld [vmem:[%s4990_s27 + $0x80] sm:$0x1]  ;;  %v3808_v56 = vsel %vm5176_vm7, %v4786_v7, %v3807_v35 }
 0x1e0   : > { %v1403_v40 = vadd.f32 %v1368_v24, %v1016_v4  ;;  %v3305_v4 = vshll.u32 %v5988_v63, 16  ;;  %v2478_v16 = vrot.slane %v4914_v55, 5  ;;  %v3482_v27 = vunpack.c.l.b16 %v3294_v52  ;;  %v4727_v55 = vld [vmem:[%s4990_s27 + $0x90] sm:$0xf] }
 0x1e1   : > { %4753 = vmatmul.msk.bf16.gmra.mxu3 %vm658_vm4, %v3504_v45  ;;  %v4544_v45 = vld [vmem:[%s4990_s27 + $0x78] sm:$0xe]  ;;  %v3811_v62 = vsel %vm5176_vm7, %v3809_v50, %v3810_v53  ;;  %v3302_v35 = vor.u32 %v3301_v48, %v3298_v58  ;;  %v3879_v43 = vunpack.c.l.b16 %v3808_v56  ;;  %v4771_v48 = vld [vmem:[%s4990_s27 + $0x84] sm:$0xe] }
 0x1e2   : > { %v4560_v24 = vrot.slane %v4544_v45, 9  ;;  %v2479_v38 = vsel %vm5176_vm7, %v2477_v0, %v2478_v16  ;;  %v3880_v52 = vunpack.c.l.b16 %v3811_v62  ;;  %v3814_v0 = vrot.slane %v5988_v63, 5  ;;  %v4545_v63 = vld [vmem:[%s4990_s27 + $0x84] sm:$0xe] }
 0x1e3   : > { %v2309_v19 = vpop.f32.mrf.mxu0 }
 0x1e4   : > { %v1655_v10 = vpop.f32.mrf.mxu3  ;;  %v2632_v61 = vpop.f32.mrf.mxu1 }
 0x1e5   : > { %v1690_v28 = vadd.f32 %v1655_v10, %v1403_v40  ;;  %v4854_v40 = vld [vmem:[%s4990_s27 + $0x78] sm:$0xff]  ;;  %v2712_v50 = vadd.f32 %v2632_v61, %v5455_v46 }
 0x1e6   : > { %4802 = vmatmul.msk.bf16.gmra.mxu0 %vm658_vm4, %v3902_v5  ;;  %v3307_v5 = vrot.slane %v3305_v4, 5 }
 0x1e7   : > { %v1370_v41 = vpop.f32.mrf.mxu2  ;;  %4576 = vmatmul.msk.bf16.gmra.mxu1 %vm658_vm4, %v2564_v11  ;;  %v6005_v22 = vadd.f32 %v2309_v19, %v1690_v28  ;;  %v3311_v11 = vrot.slane %v3309_v39, 4  ;;  %v2476_v19 = vsel %vm5176_vm7, %v4560_v24, %v2475_v9  ;;  %v3505_v28 = vpack.c.b16 %v3482_v27, %v3481_v32  ;;  %v6028_v32 = vld [vmem:[%s4990_s27 + $0x94] sm:$0xf] }
 0x1e8   : > { %v1404_v20 = vadd.f32 %v1370_v41, %v1018_v6  ;;  %v3315_v6 = vshll.u32 %v6012_v12, 16  ;;  %v2542_v39 = vunpack.c.l.b16 %v2476_v19  ;;  %v2543_v41 = vunpack.c.l.b16 %v2479_v38 }
 0x1e9   : > { %v3312_v53 = vor.u32 %v3311_v11, %v3307_v5  ;;  %v3303_v9 = vrot.slane %v3302_v35, 4  ;;  %v3903_v24 = vpack.c.b16 %v3880_v52, %v3879_v43  ;;  %v4787_v11 = vrot.slane %v4771_v48, 9 }
 0x1ea   : > { %v2565_v61 = vpack.c.b16 %v2543_v41, %v2542_v39  ;;  %v3817_v35 = vrot.slane %v6012_v12, 5  ;;  %v3816_v43 = vrot.slane %v3814_v0, 4  ;;  %v3329_v52 = vshll.u32 %v6028_v32, 16 }
 0x1eb   : > { %v2311_v10 = vpop.f32.mrf.mxu0  ;;  %v3308_v62 = vsel %vm5002_vm3, %v3303_v9, %v3307_v5  ;;  %v3333_v5 = vshrl.u32 %v6028_v32, 16  ;;  %v3815_v39 = vsel %vm5176_vm7, %v4787_v11, %v3814_v0  ;;  %v4561_v41 = vrot.slane %v4545_v63, 9 }
 0x1ec   : > { %v1657_v23 = vpop.f32.mrf.mxu3  ;;  %4689 = vmatmul.msk.bf16.gmra.mxu2 %vm658_vm4, %v4854_v40  ;;  %v2634_v45 = vpop.f32.mrf.mxu1  ;;  %v3317_v40 = vrot.slane %v3315_v6, 5  ;;  %v3483_v12 = vunpack.c.l.b16 %v3308_v62  ;;  %v3881_v0 = vunpack.c.l.b16 %v3815_v39 }
 0x1ed   : > { %v1691_v7 = vadd.f32 %v1657_v23, %v1404_v20  ;;  %v3313_v20 = vrot.slane %v3312_v53, 4  ;;  %v4915_v23 = vld [vmem:[%s4990_s27 + $0x88] sm:$0xf]  ;;  %v2713_v53 = vadd.f32 %v2634_v45, %v5468_v42  ;;  %v3818_v42 = vsel %vm5176_vm7, %v3816_v43, %v3817_v35 }
 0x1ee   : > { %v2482_v19 = vrot.slane %v4915_v23, 5  ;;  %v6048_v45 = vrot.slane %v3329_v52, 5 }
 0x1ef   : > { %v2919_v4 = vpop.f32.mrf.mxu2  ;;  %v6025_v16 = vadd.f32 %v2311_v10, %v1691_v7  ;;  %v3323_v10 = vshll.u32 %v4727_v55, 16  ;;  %v3318_v7 = vsel %vm5002_vm3, %v3313_v20, %v3317_v40 }
 0x1f0   : > { %v2999_v58 = vadd.f32 %v2919_v4, %v2712_v50  ;;  %v4855_v4 = vld [vmem:[%s4990_s27 + $0x84] sm:$0xff]  ;;  %v2484_v9 = vrot.slane %v2482_v19, 4  ;;  %v3484_v20 = vunpack.c.l.b16 %v3318_v7  ;;  %v2483_v23 = vsel %vm5176_vm7, %v4561_v41, %v2482_v19  ;;  %v6063_v19 = vld [vmem:[%s4990_s27 + $0xa0] sm:$0xf] }
 0x1f1   : > { %4754 = vmatmul.msk.bf16.gmra.mxu3 %vm658_vm4, %v3505_v28  ;;  %v3320_v28 = vshrl.u32 %v4727_v55, 16  ;;  %v3325_v55 = vrot.slane %v3323_v10, 5 }
 0x1f2   : > { %v3506_v63 = vpack.c.b16 %v3484_v20, %v3483_v12 }
 0x1f3   : > { %v3971_v46 = vpop.f32.mrf.mxu0  ;;  %v3322_v40 = vrot.slane %v3320_v28, 4  ;;  %v3882_v28 = vunpack.c.l.b16 %v3818_v42 }
 0x1f4   : > { %v3573_v27 = vpop.f32.mrf.mxu3  ;;  %v2637_v56 = vpop.f32.mrf.mxu1 }
 0x1f5   : > { %v3653_v38 = vadd.f32 %v3573_v27, %v2999_v58  ;;  %v6051_v27 = vld [vmem:[%s4990_s27 + $0x98] sm:$0x1]  ;;  %v3326_v10 = vor.u32 %v3325_v55, %v3322_v40  ;;  %v2714_v52 = vadd.f32 %v2637_v56, %v5481_v15  ;;  %v3904_v12 = vpack.c.b16 %v3882_v28, %v3881_v0 }
 0x1f6   : > { %4803 = vmatmul.msk.bf16.gmra.mxu0 %vm658_vm4, %v3903_v24  ;;  %v4916_v24 = vld [vmem:[%s4990_s27 + $0x8c] sm:$0x1]  ;;  %v3339_v43 = vshll.u32 %v6051_v27, 16  ;;  %v3821_v40 = vrot.slane %v6028_v32, 5  ;;  %v3353_v55 = vshll.u32 %v6063_v19, 16  ;;  %v3357_v0 = vshrl.u32 %v6063_v19, 16 }
 0x1f7   : > { %v4051_v6 = vadd.f32 %v3971_v46, %v3653_v38  ;;  %v2921_v50 = vpop.f32.mrf.mxu2  ;;  %4577 = vmatmul.msk.bf16.gmra.mxu1 %vm658_vm4, %v2565_v61  ;;  %v2485_v58 = vrot.slane %v4916_v24, 5  ;;  %v3335_v46 = vrot.slane %v3333_v5, 4  ;;  %v3327_v41 = vrot.slane %v3326_v10, 4 }
 0x1f8   : > { %v3000_v48 = vadd.f32 %v2921_v50, %v2713_v53  ;;  %v3341_v24 = vrot.slane %v3339_v43, 5 }
 0x1f9   : > { %4083 = vxpose.xlu0.b32.start [1/16] (narrow) %v4051_v6, 8  ;;  %v2486_v38 = vsel %vm5176_vm7, %v2484_v9, %v2485_v58  ;;  %v3336_v7 = vor.u32 %v3335_v46, %v6048_v45  ;;  %v2544_v6 = vunpack.c.l.b16 %v2483_v23  ;;  %v4772_v58 = vld [vmem:[%s4990_s27 + $0x90] sm:$0xe]  ;;  %v3332_v32 = vsel %vm5002_vm3, %v3327_v41, %v6048_v45 }
 0x1fa   : > { %v2545_v50 = vunpack.c.l.b16 %v2486_v38  ;;  %v4788_v38 = vrot.slane %v4772_v58, 9  ;;  %v3359_v45 = vrot.slane %v3357_v0, 4  ;;  %v4732_v58 = vld [vmem:[%s4990_s27 + $0xa4] sm:$0x1] }
 0x1fb   : > { %v3973_v61 = vpop.f32.mrf.mxu0  ;;  %v3337_v9 = vrot.slane %v3336_v7, 4  ;;  %v3363_v0 = vshll.u32 %v4732_v58, 16 }
 0x1fc   : > { %v3575_v62 = vpop.f32.mrf.mxu3  ;;  %4690 = vmatmul.msk.bf16.gmra.mxu2 %vm658_vm4, %v4855_v4  ;;  %v2639_v11 = vpop.f32.mrf.mxu1  ;;  %v4730_v4 = vld [vmem:[%s4990_s27 + $0x9c] sm:$0xf]  ;;  %v2566_v20 = vpack.c.b16 %v2545_v50, %v2544_v6  ;;  %v4856_v6 = vld [vmem:[%s4990_s27 + $0x90] sm:$0xff] }
 0x1fd   : > { %v3654_v35 = vadd.f32 %v3575_v62, %v3000_v48  ;;  %v3344_v48 = vshrl.u32 %v4730_v4, 16  ;;  %v3347_v15 = vshll.u32 %v4730_v4, 16  ;;  %v3342_v28 = vsel %vm5002_vm3, %v3337_v9, %v3341_v24 }
 0x1fe   : > { %v2715_v43 = vadd.f32 %v2639_v11, %v5494_v13  ;;  %v3485_v9 = vunpack.c.l.b16 %v3332_v32  ;;  %v3486_v24 = vunpack.c.l.b16 %v3342_v28  ;;  %v3822_v11 = vsel %vm5176_vm7, %v4788_v38, %v3821_v40 }
 0x1ff   : > { %v4052_v5 = vadd.f32 %v3973_v61, %v3654_v35  ;;  %v2924_v53 = vpop.f32.mrf.mxu2  ;;  %v4917_v61 = vld [vmem:[%s4990_s27 + $0x94] sm:$0xf]  ;;  %v3824_v35 = vrot.slane %v6051_v27, 5  ;;  %v3346_v10 = vrot.slane %v3344_v48, 4  ;;  %v3349_v7 = vrot.slane %v3347_v15, 5 }
 0x200   : > { %v3001_v39 = vadd.f32 %v2924_v53, %v2714_v52  ;;  %v2489_v62 = vrot.slane %v4917_v61, 5  ;;  %v3823_v27 = vrot.slane %v3821_v40, 4  ;;  %v3355_v53 = vrot.slane %v3353_v55, 5 }
 0x201   : > { %4755 = vmatmul.msk.bf16.gmra.mxu3 %vm658_vm4, %v3506_v63  ;;  %4084 = vxpose.xlu0.b32.cont [2/16] (narrow) %v4052_v5, 8  ;;  %v4546_v63 = vld [vmem:[%s4990_s27 + $0x90] sm:$0xe]  ;;  %v3350_v48 = vor.u32 %v3349_v7, %v3346_v10  ;;  %v3883_v40 = vunpack.c.l.b16 %v3822_v11 }
 0x202   : > { %v4562_v50 = vrot.slane %v4546_v63, 9  ;;  %v2491_v4 = vrot.slane %v2489_v62, 4  ;;  %v3825_v15 = vsel %vm5176_vm7, %v3823_v27, %v3824_v35  ;;  %v3360_v61 = vor.u32 %v3359_v45, %v3355_v53 }
 0x203   : > { %v3976_v56 = vpop.f32.mrf.mxu0  ;;  %v3507_v63 = vpack.c.b16 %v3486_v24, %v3485_v9  ;;  %v3884_v38 = vunpack.c.l.b16 %v3825_v15  ;;  %v3351_v32 = vrot.slane %v3350_v48, 4  ;;  %v3828_v35 = vrot.slane %v6063_v19, 5 }
 0x204   : > { %v3578_v42 = vpop.f32.mrf.mxu3  ;;  %v2642_v46 = vpop.f32.mrf.mxu1  ;;  %v2490_v55 = vsel %vm5176_vm7, %v4562_v50, %v2489_v62  ;;  %v3365_v27 = vrot.slane %v3363_v0, 5  ;;  %v4733_v50 = vld [vmem:[%s4990_s27 + $0xa8] sm:$0xf] }
 0x205   : > { %v3655_v23 = vadd.f32 %v3578_v42, %v3001_v39  ;;  %v2716_v28 = vadd.f32 %v2642_v46, %v5507_v57  ;;  %v3356_v46 = vsel %vm5002_vm3, %v3351_v32, %v3355_v53  ;;  %v3830_v45 = vrot.slane %v3828_v35, 4 }
 0x206   : > { %4804 = vmatmul.msk.bf16.gmra.mxu0 %vm658_vm4, %v3904_v12  ;;  %v4918_v12 = vld [vmem:[%s4990_s27 + $0x98] sm:$0x1]  ;;  %v3368_v15 = vshrl.u32 %v4733_v50, 16  ;;  %v3487_v53 = vunpack.c.l.b16 %v3356_v46 }
 0x207   : > { %v4053_v52 = vadd.f32 %v3976_v56, %v3655_v23  ;;  %v2926_v5 = vpop.f32.mrf.mxu2  ;;  %4578 = vmatmul.msk.bf16.gmra.mxu1 %vm658_vm4, %v2566_v20  ;;  %v2492_v39 = vrot.slane %v4918_v12, 5 }
 0x208   : > { %v3002_v41 = vadd.f32 %v2926_v5, %v2715_v43  ;;  %v2546_v43 = vunpack.c.l.b16 %v2490_v55  ;;  %v3361_v5 = vrot.slane %v3360_v61, 4  ;;  %v4547_v55 = vld [vmem:[%s4990_s27 + $0x9c] sm:$0xe] }
 0x209   : > { %4085 = vxpose.xlu0.b32.cont [3/16] (narrow) %v4053_v52, 8  ;;  %v2493_v42 = vsel %vm5176_vm7, %v2491_v4, %v2492_v39  ;;  %v4773_v52 = vld [vmem:[%s4990_s27 + $0x9c] sm:$0xe]  ;;  %v3905_v4 = vpack.c.b16 %v3884_v38, %v3883_v40  ;;  %v6099_v39 = vld [vmem:[%s4990_s27 + $0xac] sm:$0xf] }
 0x20a   : > { %v2547_v62 = vunpack.c.l.b16 %v2493_v42  ;;  %v4789_v12 = vrot.slane %v4773_v52, 9  ;;  %v3366_v48 = vsel %vm5002_vm3, %v3361_v5, %v3365_v27  ;;  %v3371_v42 = vshll.u32 %v4733_v50, 16 }
 0x20b   : > { %v3978_v13 = vpop.f32.mrf.mxu0  ;;  %v3377_v61 = vshll.u32 %v6099_v39, 16  ;;  %v3381_v0 = vshrl.u32 %v6099_v39, 16  ;;  %v3488_v38 = vunpack.c.l.b16 %v3366_v48  ;;  %v3370_v52 = vrot.slane %v3368_v15, 4 }
 0x20c   : > { %v3580_v56 = vpop.f32.mrf.mxu3  ;;  %4691 = vmatmul.msk.bf16.gmra.mxu2 %vm658_vm4, %v4856_v6  ;;  %v2644_v20 = vpop.f32.mrf.mxu1  ;;  %v2567_v57 = vpack.c.b16 %v2547_v62, %v2546_v43  ;;  %v4920_v43 = vld [vmem:[%s4990_s27 + $0xa4] sm:$0x1] }
 0x20d   : > { %v3656_v23 = vadd.f32 %v3580_v56, %v3002_v41  ;;  %v3831_v41 = vrot.slane %v4732_v58, 5  ;;  %v3829_v58 = vsel %vm5176_vm7, %v4789_v12, %v3828_v35  ;;  %v2499_v62 = vrot.slane %v4920_v43, 5 }
 0x20e   : > { %v3373_v35 = vrot.slane %v3371_v42, 5  ;;  %v6118_v27 = vrot.slane %v3377_v61, 5  ;;  %v3885_v50 = vunpack.c.l.b16 %v3829_v58  ;;  %v3508_v12 = vpack.c.b16 %v3488_v38, %v3487_v53  ;;  %v6133_v53 = vld [vmem:[%s4990_s27 + $0xb8] sm:$0xf]  ;;  %v4774_v38 = vld [vmem:[%s4990_s27 + $0xa8] sm:$0xe] }
 0x20f   : > { %v4054_v10 = vadd.f32 %v3978_v13, %v3656_v23  ;;  %v2929_v7 = vpop.f32.mrf.mxu2  ;;  %v4919_v13 = vld [vmem:[%s4990_s27 + $0xa0] sm:$0xf]  ;;  %v2717_v23 = vadd.f32 %v2644_v20, %v5520_v54  ;;  %v3832_v32 = vsel %vm5176_vm7, %v3830_v45, %v3831_v41  ;;  %v3383_v54 = vrot.slane %v3381_v0, 4  ;;  %v6121_v20 = vld [vmem:[%s4990_s27 + $0xb0] sm:$0x1] }
 0x210   : > { %v3003_v6 = vadd.f32 %v2929_v7, %v2716_v28  ;;  %v2496_v11 = vrot.slane %v4919_v13, 5  ;;  %v4857_v28 = vld [vmem:[%s4990_s27 + $0x9c] sm:$0xff]  ;;  %v3387_v13 = vshll.u32 %v6121_v20, 16  ;;  %v4736_v0 = vld [vmem:[%s4990_s27 + $0xb4] sm:$0xf]  ;;  %v3835_v43 = vrot.slane %v6099_v39, 5 }
 0x211   : > { %4756 = vmatmul.msk.bf16.gmra.mxu3 %vm658_vm4, %v3507_v63  ;;  %4086 = vxpose.xlu0.b32.cont [4/16] (narrow) %v4054_v10, 8  ;;  %v4563_v10 = vrot.slane %v4547_v55, 9  ;;  %v3384_v48 = vor.u32 %v3383_v54, %v6118_v27 }
 0x212   : > { %v2498_v7 = vrot.slane %v2496_v11, 4 }
 0x213   : > { %v3981_v19 = vpop.f32.mrf.mxu0  ;;  %v2497_v46 = vsel %vm5176_vm7, %v4563_v10, %v2496_v11 }
 0x214   : > { %v3583_v9 = vpop.f32.mrf.mxu3  ;;  %v2647_v24 = vpop.f32.mrf.mxu1  ;;  %v2500_v45 = vsel %vm5176_vm7, %v2498_v7, %v2499_v62  ;;  %v2548_v42 = vunpack.c.l.b16 %v2497_v46 }
 0x215   : > { %v3657_v56 = vadd.f32 %v3583_v9, %v3003_v6  ;;  %v3374_v9 = vor.u32 %v3373_v35, %v3370_v52  ;;  %v2718_v15 = vadd.f32 %v2647_v24, %v5533_v33  ;;  %v2549_v61 = vunpack.c.l.b16 %v2500_v45 }
 0x216   : > { %4805 = vmatmul.msk.bf16.gmra.mxu0 %vm658_vm4, %v3905_v4  ;;  %v3395_v33 = vshll.u32 %v4736_v0, 16  ;;  %v3401_v24 = vshll.u32 %v6133_v53, 16 }
 0x217   : > { %v4055_v63 = vadd.f32 %v3981_v19, %v3657_v56  ;;  %v2931_v40 = vpop.f32.mrf.mxu2  ;;  %4579 = vmatmul.msk.bf16.gmra.mxu1 %vm658_vm4, %v2567_v57  ;;  %v3886_v19 = vunpack.c.l.b16 %v3832_v32  ;;  %v3392_v32 = vshrl.u32 %v4736_v0, 16  ;;  %v2568_v7 = vpack.c.b16 %v2549_v61, %v2548_v42  ;;  %v4922_v61 = vld [vmem:[%s4990_s27 + $0xb0] sm:$0x1] }
 0x218   : > { %v3004_v5 = vadd.f32 %v2931_v40, %v2717_v23  ;;  %v3375_v23 = vrot.slane %v3374_v9, 4  ;;  %v3389_v40 = vrot.slane %v3387_v13, 5  ;;  %v6148_v46 = vrot.slane %v3401_v24, 5 }
 0x219   : > { %4087 = vxpose.xlu0.b32.cont [5/16] (narrow) %v4055_v63, 8  ;;  %v3906_v11 = vpack.c.b16 %v3886_v19, %v3885_v50  ;;  %v3385_v63 = vrot.slane %v3384_v48, 4  ;;  %v3394_v39 = vrot.slane %v3392_v32, 4  ;;  %v3397_v19 = vrot.slane %v3395_v33, 5 }
 0x21a   : > { %v3838_v13 = vrot.slane %v6121_v20, 5  ;;  %v2506_v0 = vrot.slane %v4922_v61, 5  ;;  %v4923_v61 = vld [vmem:[%s4990_s27 + $0xb8] sm:$0xf] }
 0x21b   : > { %v3983_v6 = vpop.f32.mrf.mxu0  ;;  %v3390_v50 = vsel %vm5002_vm3, %v3385_v63, %v3389_v40 }
 0x21c   : > { %v3585_v4 = vpop.f32.mrf.mxu3  ;;  %4692 = vmatmul.msk.bf16.gmra.mxu2 %vm658_vm4, %v4857_v28  ;;  %v2649_v57 = vpop.f32.mrf.mxu1  ;;  %v3405_v28 = vshrl.u32 %v6133_v53, 16 }
 0x21d   : > { %v3658_v41 = vadd.f32 %v3585_v4, %v3004_v5  ;;  %v4921_v5 = vld [vmem:[%s4990_s27 + $0xac] sm:$0xf]  ;;  %v4790_v4 = vrot.slane %v4774_v38, 9 }
 0x21e   : > { %v2503_v35 = vrot.slane %v4921_v5, 5  ;;  %v3407_v45 = vrot.slane %v3405_v28, 4 }
 0x21f   : > { %v4056_v56 = vadd.f32 %v3983_v6, %v3658_v41  ;;  %v2934_v55 = vpop.f32.mrf.mxu2  ;;  %v3380_v6 = vsel %vm5002_vm3, %v3375_v23, %v6118_v27  ;;  %v2719_v41 = vadd.f32 %v2649_v57, %v5546_v31  ;;  %v3837_v27 = vrot.slane %v3835_v43, 4 }
 0x220   : > { %v3005_v58 = vadd.f32 %v2934_v55, %v2718_v15  ;;  %v6154_v15 = vld [vmem:[%s4990_s27 + $0xbc] sm:$0x1]  ;;  %v2505_v42 = vrot.slane %v2503_v35, 4  ;;  %v3490_v23 = vunpack.c.l.b16 %v3390_v50  ;;  %v3836_v31 = vsel %vm5176_vm7, %v4790_v4, %v3835_v43 }
 0x221   : > { %4757 = vmatmul.msk.bf16.gmra.mxu3 %vm658_vm4, %v3508_v12  ;;  %4088 = vxpose.xlu0.b32.cont [6/16] (narrow) %v4056_v56, 8  ;;  %v4548_v12 = vld [vmem:[%s4990_s27 + $0xa8] sm:$0xe]  ;;  %v3398_v57 = vor.u32 %v3397_v19, %v3394_v39  ;;  %v3408_v63 = vor.u32 %v3407_v45, %v6148_v46  ;;  %v3411_v40 = vshll.u32 %v6154_v15, 16  ;;  %v3839_v38 = vsel %vm5176_vm7, %v3837_v27, %v3838_v13  ;;  %v4739_v45 = vld [vmem:[%s4990_s27 + $0xc0] sm:$0xf] }
 0x222   : > { %v4858_v56 = vld [vmem:[%s4990_s27 + $0xa8] sm:$0xff]  ;;  %v4564_v55 = vrot.slane %v4548_v12, 9  ;;  %v2507_v28 = vsel %vm5176_vm7, %v2505_v42, %v2506_v0  ;;  %v3887_v43 = vunpack.c.l.b16 %v3836_v31  ;;  %v4775_v13 = vld [vmem:[%s4990_s27 + $0xb4] sm:$0xe]  ;;  %v2510_v0 = vrot.slane %v4923_v61, 5  ;;  %v6299_v61 = vld [vmem:[#allocation2_spill] sm:$0xff] }
 0x223   : > { %v3986_v10 = vpop.f32.mrf.mxu0  ;;  %v3399_v5 = vrot.slane %v3398_v57, 4  ;;  %v3419_v31 = vshll.u32 %v4739_v45, 16 }
 0x224   : > { %v3588_v62 = vpop.f32.mrf.mxu3  ;;  %v2652_v52 = vpop.f32.mrf.mxu1  ;;  %v2504_v24 = vsel %vm5176_vm7, %v4564_v55, %v2503_v35  ;;  %v2551_v35 = vunpack.c.l.b16 %v2507_v28  ;;  %v3845_v28 = vrot.slane %v6154_v15, 5 }
 0x225   : > { %v3659_v54 = vadd.f32 %v3588_v62, %v3005_v58  ;;  %v3489_v58 = vunpack.c.l.b16 %v3380_v6  ;;  %v3888_v62 = vunpack.c.l.b16 %v3839_v38  ;;  %v3413_v6 = vrot.slane %v3411_v40, 5 }
 0x226   : > { %4806 = vmatmul.msk.bf16.gmra.mxu0 %vm658_vm4, %v3906_v11  ;;  %v2720_v50 = vadd.f32 %v2652_v52, %v5559_v1  ;;  %v2550_v39 = vunpack.c.l.b16 %v2504_v24  ;;  %v3404_v1 = vsel %vm5002_vm3, %v3399_v5, %v6148_v46 }
 0x227   : > { %v4057_v9 = vadd.f32 %v3986_v10, %v3659_v54  ;;  %v2936_v48 = vpop.f32.mrf.mxu2  ;;  %4580 = vmatmul.msk.bf16.gmra.mxu1 %vm658_vm4, %v2568_v7  ;;  %v3509_v7 = vpack.c.b16 %v3490_v23, %v3489_v58  ;;  %v3409_v54 = vrot.slane %v3408_v63, 4  ;;  %v4549_v23 = vld [vmem:[%s4990_s27 + $0xb4] sm:$0xe]  ;;  %v3491_v63 = vunpack.c.l.b16 %v3404_v1 }
 0x228   : > { %v3006_v11 = vadd.f32 %v2936_v48, %v2719_v41  ;;  %v3907_v41 = vpack.c.b16 %v3888_v62, %v3887_v43  ;;  %v2569_v27 = vpack.c.b16 %v2551_v35, %v2550_v39  ;;  %v2512_v43 = vrot.slane %v2510_v0, 4  ;;  %v4924_v62 = vld [vmem:[%s4990_s27 + $0xbc] sm:$0x1] }
 0x229   : > { %4089 = vxpose.xlu0.b32.cont [7/16] (narrow) %v4057_v9, 8  ;;  %v6173_v9 = vld [vmem:[%s4990_s27 + $0xc4] sm:$0xf]  ;;  %v3414_v52 = vsel %vm5002_vm3, %v3409_v54, %v3413_v6  ;;  %v2513_v5 = vrot.slane %v4924_v62, 5 }
 0x22a   : > { %v3425_v57 = vshll.u32 %v6173_v9, 16  ;;  %v3429_v46 = vshrl.u32 %v6173_v9, 16  ;;  %v3492_v40 = vunpack.c.l.b16 %v3414_v52 }
 0x22b   : > { %v3988_v20 = vpop.f32.mrf.mxu0 }
 0x22c   : > { %v3590_v32 = vpop.f32.mrf.mxu3  ;;  %4693 = vmatmul.msk.bf16.gmra.mxu2 %vm658_vm4, %v4858_v56  ;;  %v2654_v33 = vpop.f32.mrf.mxu1  ;;  %v3842_v56 = vrot.slane %v6133_v53, 5 }
 0x22d   : > { %v3660_v10 = vadd.f32 %v3590_v32, %v3006_v11  ;;  %v3416_v11 = vshrl.u32 %v4739_v45, 16  ;;  %v2721_v53 = vadd.f32 %v2654_v33, %v5573_v25  ;;  %v3431_v25 = vrot.slane %v3429_v46, 4  ;;  %v6195_v33 = vld [vmem:[%s4990_s27 + $0xc8] sm:$0x1] }
 0x22e   : > { %v3844_v24 = vrot.slane %v3842_v56, 4 }
 0x22f   : > { %v4058_v4 = vadd.f32 %v3988_v20, %v3660_v10  ;;  %v2939_v12 = vpop.f32.mrf.mxu2  ;;  %v4791_v20 = vrot.slane %v4775_v13, 9  ;;  %v4859_v10 = vld [vmem:[%s4990_s27 + $0xb4] sm:$0xff]  ;;  %v3418_v54 = vrot.slane %v3416_v11, 4  ;;  %v3435_v13 = vshll.u32 %v6195_v33, 16 }
 0x230   : > { %v3007_v19 = vadd.f32 %v2939_v12, %v2720_v50  ;;  %v3421_v50 = vrot.slane %v3419_v31, 5  ;;  %v3846_v15 = vsel %vm5176_vm7, %v3844_v24, %v3845_v28  ;;  %v4742_v24 = vld [vmem:[%s4990_s27 + $0xcc] sm:$0xf]  ;;  %v6214_v28 = vld [vmem:[%s4990_s27 + $0xd0] sm:$0xf] }
 0x231   : > { %4758 = vmatmul.msk.bf16.gmra.mxu3 %vm658_vm4, %v3509_v7  ;;  %4090 = vxpose.xlu0.b32.cont [8/16] (narrow) %v4058_v4, 8  ;;  %v4565_v7 = vrot.slane %v4549_v23, 9  ;;  %v6192_v4 = vrot.slane %v3425_v57, 5  ;;  %v3843_v39 = vsel %vm5176_vm7, %v4791_v20, %v3842_v56 }
 0x232   : > { %v3422_v1 = vor.u32 %v3421_v50, %v3418_v54  ;;  %v3889_v56 = vunpack.c.l.b16 %v3843_v39  ;;  %v3449_v39 = vshll.u32 %v6214_v28, 16 }
 0x233   : > { %v3991_v48 = vpop.f32.mrf.mxu0  ;;  %v3432_v52 = vor.u32 %v3431_v25, %v6192_v4  ;;  %v4550_v25 = vld [vmem:[%s4990_s27 + $0xc0] sm:$0xe] }
 0x234   : > { %v3593_v55 = vpop.f32.mrf.mxu3  ;;  %v2657_v42 = vpop.f32.mrf.mxu1  ;;  %v3423_v46 = vrot.slane %v3422_v1, 4  ;;  %v4566_v1 = vrot.slane %v4550_v25, 9 }
 0x235   : > { %v3661_v58 = vadd.f32 %v3593_v55, %v3007_v19  ;;  %v3510_v19 = vpack.c.b16 %v3492_v40, %v3491_v63  ;;  %v3890_v55 = vunpack.c.l.b16 %v3846_v15  ;;  %v2722_v11 = vadd.f32 %v2657_v42, %v6299_v61 }
 0x236   : > { %4807 = vmatmul.msk.bf16.gmra.mxu0 %vm658_vm4, %v3907_v41  ;;  %v2511_v41 = vsel %vm5176_vm7, %v4565_v7, %v2510_v0  ;;  %v3433_v63 = vrot.slane %v3432_v52, 4  ;;  %v3437_v40 = vrot.slane %v3435_v13, 5  ;;  %v3849_v42 = vrot.slane %v6173_v9, 5  ;;  %v4926_v13 = vld [vmem:[%s4990_s27 + $0xc8] sm:$0x1] }
 0x237   : > { %v4059_v38 = vadd.f32 %v3991_v48, %v3661_v58  ;;  %v2941_v32 = vpop.f32.mrf.mxu2  ;;  %4581 = vmatmul.msk.bf16.gmra.mxu1 %vm658_vm4, %v2569_v27  ;;  %v2514_v48 = vsel %vm5176_vm7, %v2512_v43, %v2513_v5  ;;  %v2552_v31 = vunpack.c.l.b16 %v2511_v41  ;;  %v3908_v20 = vpack.c.b16 %v3890_v55, %v3889_v56  ;;  %v4925_v43 = vld [vmem:[%s4990_s27 + $0xc4] sm:$0xf] }
 0x238   : > { %v3008_v6 = vadd.f32 %v2941_v32, %v2721_v53  ;;  %v2553_v0 = vunpack.c.l.b16 %v2514_v48  ;;  %v4776_v53 = vld [vmem:[%s4990_s27 + $0xc0] sm:$0xe]  ;;  %v2517_v62 = vrot.slane %v4925_v43, 5  ;;  %v3428_v54 = vsel %vm5002_vm3, %v3423_v46, %v6192_v4 }
 0x239   : > { %4091 = vxpose.xlu0.b32.cont [9/16] (narrow) %v4059_v38, 8  ;;  %v4792_v50 = vrot.slane %v4776_v53, 9  ;;  %v3440_v9 = vshrl.u32 %v4742_v24, 16  ;;  %v3453_v15 = vshrl.u32 %v6214_v28, 16  ;;  %v3851_v4 = vrot.slane %v3849_v42, 4 }
 0x23a   : > { %v2570_v32 = vpack.c.b16 %v2553_v0, %v2552_v31  ;;  %v3852_v48 = vrot.slane %v6195_v33, 5  ;;  %v2519_v52 = vrot.slane %v2517_v62, 4  ;;  %v2520_v56 = vrot.slane %v4926_v13, 5  ;;  %v6300_v13 = vld [vmem:[#allocation3_spill] sm:$0xff] }
 0x23b   : > { %v3993_v12 = vpop.f32.mrf.mxu0  ;;  %v3493_v61 = vunpack.c.l.b16 %v3428_v54  ;;  %v3455_v31 = vrot.slane %v3453_v15, 4 }
 0x23c   : > { %v3595_v35 = vpop.f32.mrf.mxu3  ;;  %4694 = vmatmul.msk.bf16.gmra.mxu2 %vm658_vm4, %v4859_v10  ;;  %v2659_v45 = vpop.f32.mrf.mxu1  ;;  %v3853_v33 = vsel %vm5176_vm7, %v3851_v4, %v3852_v48  ;;  %v3856_v4 = vrot.slane %v6214_v28, 5 }
 0x23d   : > { %v3662_v27 = vadd.f32 %v3595_v35, %v3008_v6  ;;  %v3438_v6 = vsel %vm5002_vm3, %v3433_v63, %v3437_v40  ;;  %v2723_v35 = vadd.f32 %v2659_v45, %v5620_v47  ;;  %v3850_v47 = vsel %vm5176_vm7, %v4792_v50, %v3849_v42 }
 0x23e   : > { %v3442_v45 = vrot.slane %v3440_v9, 4  ;;  %v2518_v40 = vsel %vm5176_vm7, %v4566_v1, %v2517_v62  ;;  %v3892_v42 = vunpack.c.l.b16 %v3853_v33 }
 0x23f   : > { %v4060_v58 = vadd.f32 %v3993_v12, %v3662_v27  ;;  %v2944_v23 = vpop.f32.mrf.mxu2  ;;  %v3443_v12 = vshll.u32 %v4742_v24, 16  ;;  %v4860_v27 = vld [vmem:[%s4990_s27 + $0xc0] sm:$0xff]  ;;  %v2554_v50 = vunpack.c.l.b16 %v2518_v40 }
 0x240   : > { %v3009_v57 = vadd.f32 %v2944_v23, %v2722_v11  ;;  %v3494_v11 = vunpack.c.l.b16 %v3438_v6  ;;  %v3451_v23 = vrot.slane %v3449_v39, 5 }
 0x241   : > { %4759 = vmatmul.msk.bf16.gmra.mxu3 %vm658_vm4, %v3510_v19  ;;  %4092 = vxpose.xlu0.b32.cont [10/16] (narrow) %v4060_v58, 8  ;;  %v3445_v58 = vrot.slane %v3443_v12, 5 }
 0x243   : > { %v3996_v38 = vpop.f32.mrf.mxu0  ;;  %v3446_v24 = vor.u32 %v3445_v58, %v3442_v45 }
 0x244   : > { %v3598_v10 = vpop.f32.mrf.mxu3  ;;  %v2662_v7 = vpop.f32.mrf.mxu1 }
 0x245   : > { %v3663_v5 = vadd.f32 %v3598_v10, %v3009_v57  ;;  %v4744_v57 = vld [vmem:[%s4990_s27 + $0xd4] sm:$0x1]  ;;  %v3456_v10 = vor.u32 %v3455_v31, %v3451_v23  ;;  %v3447_v12 = vrot.slane %v3446_v24, 4 }
 0x246   : > { %4808 = vmatmul.msk.bf16.gmra.mxu0 %vm658_vm4, %v3908_v20  ;;  %v2521_v20 = vsel %vm5176_vm7, %v2519_v52, %v2520_v56  ;;  %v3459_v43 = vshll.u32 %v4744_v57, 16  ;;  %v3859_v28 = vrot.slane %v4744_v57, 5 }
 0x247   : > { %v4061_v19 = vadd.f32 %v3996_v38, %v3663_v5  ;;  %v2946_v41 = vpop.f32.mrf.mxu2  ;;  %4582 = vmatmul.msk.bf16.gmra.mxu1 %vm658_vm4, %v2570_v32  ;;  %v3511_v38 = vpack.c.b16 %v3494_v11, %v3493_v61  ;;  %v3891_v32 = vunpack.c.l.b16 %v3850_v47  ;;  %v2724_v5 = vadd.f32 %v2662_v7, %v5631_v51  ;;  %v4861_v47 = vld [vmem:[%s4990_s27 + $0xcc] sm:$0xff] }
 0x248   : > { %v3010_v55 = vadd.f32 %v2946_v41, %v2723_v35  ;;  %v2555_v25 = vunpack.c.l.b16 %v2521_v20  ;;  %v3457_v39 = vrot.slane %v3456_v10, 4  ;;  %v3461_v15 = vrot.slane %v3459_v43, 5  ;;  %v4777_v41 = vld [vmem:[%s4990_s27 + $0xcc] sm:$0xe] }
 0x249   : > { %4093 = vxpose.xlu0.b32.cont [11/16] (narrow) %v4061_v19, 8  ;;  %v3909_v9 = vpack.c.b16 %v3892_v42, %v3891_v32  ;;  %v4793_v52 = vrot.slane %v4777_v41, 9  ;;  %v3858_v11 = vrot.slane %v3856_v4, 4 }
 0x24a   : > { %v2571_v19 = vpack.c.b16 %v2555_v25, %v2554_v50  ;;  %v3462_v1 = vsel %vm5002_vm3, %v3457_v39, %v3461_v15 }
 0x24b   : > { %v3998_v0 = vpop.f32.mrf.mxu0  ;;  %v3496_v31 = vunpack.c.l.b16 %v3462_v1  ;;  %v3860_v36 = vsel %vm5176_vm7, %v3858_v11, %v3859_v28 }
 0x24c   : > { %v3600_v46 = vpop.f32.mrf.mxu3  ;;  %4695 = vmatmul.msk.bf16.gmra.mxu2 %vm658_vm4, %v4860_v27  ;;  %v2664_v63 = vpop.f32.mrf.mxu1  ;;  %v3452_v27 = vsel %vm5002_vm3, %v3447_v12, %v3451_v23  ;;  %v3857_v23 = vsel %vm5176_vm7, %v4793_v52, %v3856_v4  ;;  %v3894_v57 = vunpack.c.l.b16 %v3860_v36 }
 0x24d   : > { %v3664_v53 = vadd.f32 %v3600_v46, %v3010_v55  ;;  %v2725_v56 = vadd.f32 %v2664_v63, %v6300_v13  ;;  %v3495_v58 = vunpack.c.l.b16 %v3452_v27  ;;  %v3893_v20 = vunpack.c.l.b16 %v3857_v23 }
 0x24f   : > { %v4062_v54 = vadd.f32 %v3998_v0, %v3664_v53  ;;  %v2949_v6 = vpop.f32.mrf.mxu2  ;;  %v3512_v40 = vpack.c.b16 %v3496_v31, %v3495_v58  ;;  %v3910_v24 = vpack.c.b16 %v3894_v57, %v3893_v20 }
 0x250   : > { %v3011_v62 = vadd.f32 %v2949_v6, %v2724_v5 }
 0x251   : > { %4760 = vmatmul.msk.bf16.gmra.mxu3 %vm658_vm4, %v3511_v38  ;;  %4094 = vxpose.xlu0.b32.cont [12/16] (narrow) %v4062_v54, 8 }
 0x253   : > { %v4001_v35 = vpop.f32.mrf.mxu0 }
 0x254   : > { %v3603_v48 = vpop.f32.mrf.mxu3  ;;  %v2667_v51 = vpop.f32.mrf.mxu1 }
 0x255   : > { %v3665_v7 = vadd.f32 %v3603_v48, %v3011_v62  ;;  %v2726_v53 = vadd.f32 %v2667_v51, %v5667_v29 }
 0x256   : > { %4809 = vmatmul.msk.bf16.gmra.mxu0 %vm658_vm4, %v3909_v9 }
 0x257   : > { %v4063_v55 = vadd.f32 %v4001_v35, %v3665_v7  ;;  %v2951_v61 = vpop.f32.mrf.mxu2  ;;  %4583 = vmatmul.msk.bf16.gmra.mxu1 %vm658_vm4, %v2571_v19 }
 0x258   : > { %v3012_v45 = vadd.f32 %v2951_v61, %v2725_v56 }
 0x259   : > { %4095 = vxpose.xlu0.b32.cont [13/16] (narrow) %v4063_v55, 8 }
 0x25b   : > { %v4003_v0 = vpop.f32.mrf.mxu0 }
 0x25c   : > { %v3605_v33 = vpop.f32.mrf.mxu3  ;;  %4696 = vmatmul.msk.bf16.gmra.mxu2 %vm658_vm4, %v4861_v47  ;;  %v2669_v46 = vpop.f32.mrf.mxu1 }
 0x25d   : > { %v3666_v63 = vadd.f32 %v3605_v33, %v3012_v45  ;;  %v2727_v54 = vadd.f32 %v2669_v46, %v5691_v37 }
 0x25f   : > { %v4064_v38 = vadd.f32 %v4003_v0, %v3666_v63  ;;  %v2954_v32 = vpop.f32.mrf.mxu2 }
 0x260   : > { %v3013_v42 = vadd.f32 %v2954_v32, %v2726_v53 }
 0x261   : > { %4761 = vmatmul.msk.bf16.gmra.mxu3 %vm658_vm4, %v3512_v40  ;;  %4096 = vxpose.xlu0.b32.cont [14/16] (narrow) %v4064_v38, 8 }
 0x263   : > { %v4006_v10 = vpop.f32.mrf.mxu0 }
 0x264   : > { %v3608_v18 = vpop.f32.mrf.mxu3  ;;  %v2672_v43 = vpop.f32.mrf.mxu1 }
 0x265   : > { %v3667_v5 = vadd.f32 %v3608_v18, %v3013_v42  ;;  %v2728_v39 = vadd.f32 %v2672_v43, %v5710_v34 }
 0x266   : > { %4810 = vmatmul.msk.bf16.gmra.mxu0 %vm658_vm4, %v3910_v24 }
 0x267   : > { %v4065_v6 = vadd.f32 %v4006_v10, %v3667_v5  ;;  %v2956_v50 = vpop.f32.mrf.mxu2 }
 0x268   : > { %v3014_v25 = vadd.f32 %v2956_v50, %v2727_v54 }
 0x269   : > { %4097 = vxpose.xlu0.b32.cont [15/16] (narrow) %v4065_v6, 8 }
 0x26b   : > { %v4008_v29 = vpop.f32.mrf.mxu0 }
 0x26c   : > { %v3610_v62 = vpop.f32.mrf.mxu3  ;;  %v2674_v9 = vpop.f32.mrf.mxu1 }
 0x26d   : > { %v3668_v12 = vadd.f32 %v3610_v62, %v3014_v25  ;;  %v2729_v37 = vadd.f32 %v2674_v9, %v5734_v3 }
 0x26f   : > { %v4066_v15 = vadd.f32 %v4008_v29, %v3668_v12  ;;  %v2959_v35 = vpop.f32.mrf.mxu2 }
 0x270   : > { %v3015_v19 = vadd.f32 %v2959_v35, %v2728_v39  ;;  %v4147_v35 = vld [vmem:[%s6290_s2] sm:$0xf] }
 0x271   : > { %4098 = vxpose.xlu0.b32.end [16/16] (narrow) %v4066_v15, 8  ;;  %v4935_v15 = vmov 0  }
 0x272   : > { %4875 = vset.pattern.permute.xlu2 %v4935_v15 }
 0x273   : > { %v4011_v41 = vpop.f32.mrf.mxu0  ;;  %4150 = vperm.xlu2 %4875, %v4147_v35  }
 0x274   : > { %v3613_v4 = vpop.f32.mrf.mxu3  ;;  %v2677_v48 = vpop.f32.mrf.mxu1 }
 0x275   : > { %v3669_v51 = vadd.f32 %v3613_v4, %v3015_v19  ;;  %v2730_v34 = vadd.f32 %v2677_v48, %v5753_v2 }
 0x277   : > { %v4067_v7 = vadd.f32 %v4011_v41, %v3669_v51  ;;  %v2961_v27 = vpop.f32.mrf.mxu2 }
 0x278   : > { %v3016_v1 = vadd.f32 %v2961_v27, %v2729_v37 }
 0x279   : > { %4115 = vxpose.xlu1.b32.start [1/16] (narrow) %v4067_v7, 8 }
 0x27b   : > { %v4013_v52 = vpop.f32.mrf.mxu0 }
 0x27c   : > { %v3615_v13 = vpop.f32.mrf.mxu3  ;;  %v2679_v56 = vpop.f32.mrf.mxu1 }
 0x27d   : > { %v3670_v55 = vadd.f32 %v3615_v13, %v3016_v1  ;;  %v2731_v3 = vadd.f32 %v2679_v56, %v5777_v26 }
 0x27f   : > { %v4068_v61 = vadd.f32 %v4013_v52, %v3670_v55  ;;  %v2964_v11 = vpop.f32.mrf.mxu2 }
 0x280   : > { %v3017_v28 = vadd.f32 %v2964_v11, %v2730_v34  ;;  %v6301_v11 = vld [vmem:[#allocation4_spill] sm:$0xff] }
 0x281   : > { %4116 = vxpose.xlu1.b32.cont [2/16] (narrow) %v4068_v61, 8 }
 0x283   : > { %v4016_v47 = vpop.f32.mrf.mxu0 }
 0x284   : > { %v3618_v45 = vpop.f32.mrf.mxu3  ;;  %v2682_v58 = vpop.f32.mrf.mxu1 }
 0x285   : > { %v3671_v31 = vadd.f32 %v3618_v45, %v3017_v28  ;;  %v2732_v2 = vadd.f32 %v2682_v58, %v5796_v60 }
 0x287   : > { %v4069_v0 = vadd.f32 %v4016_v47, %v3671_v31  ;;  %v2966_v23 = vpop.f32.mrf.mxu2 }
 0x288   : > { %v3018_v36 = vadd.f32 %v2966_v23, %v2731_v3 }
 0x289   : > { %4117 = vxpose.xlu1.b32.cont [3/16] (narrow) %v4069_v0, 8 }
 0x28b   : > { %v4018_v33 = vpop.f32.mrf.mxu0 }
 0x28c   : > { %v3620_v46 = vpop.f32.mrf.mxu3  ;;  %v2684_v63 = vpop.f32.mrf.mxu1 }
 0x28d   : > { %v3672_v40 = vadd.f32 %v3620_v46, %v3018_v36  ;;  %v2733_v26 = vadd.f32 %v2684_v63, %v5820_v14 }
 0x28f   : > { %v4070_v20 = vadd.f32 %v4018_v33, %v3672_v40  ;;  %v2969_v57 = vpop.f32.mrf.mxu2 }
 0x290   : > { %v3019_v53 = vadd.f32 %v2969_v57, %v2732_v2 }
 0x291   : > { %4118 = vxpose.xlu1.b32.cont [4/16] (narrow) %v4070_v20, 8 }
 0x293   : > { %v4021_v38 = vpop.f32.mrf.mxu0 }
 0x294   : > { %v3623_v32 = vpop.f32.mrf.mxu3  ;;  %v2687_v42 = vpop.f32.mrf.mxu1 }
 0x295   : > { %v3673_v24 = vadd.f32 %v3623_v32, %v3019_v53  ;;  %v2734_v60 = vadd.f32 %v2687_v42, %v5839_v21 }
 0x297   : > { %v4071_v10 = vadd.f32 %v4021_v38, %v3673_v24  ;;  %v2971_v18 = vpop.f32.mrf.mxu2 }
 0x298   : > { %v3020_v43 = vadd.f32 %v2971_v18, %v2733_v26 }
 0x299   : > { %4119 = vxpose.xlu1.b32.cont [5/16] (narrow) %v4071_v10, 8 }
 0x29b   : > { %v4023_v5 = vpop.f32.mrf.mxu0 }
 0x29c   : > { %v3625_v54 = vpop.f32.mrf.mxu3  ;;  %v2689_v6 = vpop.f32.mrf.mxu1 }
 0x29d   : > { %v3674_v50 = vadd.f32 %v3625_v54, %v3020_v43  ;;  %v2735_v19 = vadd.f32 %v2689_v6, %v5863_v49 }
 0x29f   : > { %v4072_v25 = vadd.f32 %v4023_v5, %v3674_v50  ;;  %v2974_v29 = vpop.f32.mrf.mxu2 }
 0x2a0   : > { %v3021_v62 = vadd.f32 %v2974_v29, %v2734_v60 }
 0x2a1   : > { %4120 = vxpose.xlu1.b32.cont [6/16] (narrow) %v4072_v25, 8 }
 0x2a3   : > { %v4026_v9 = vpop.f32.mrf.mxu0 }
 0x2a4   : > { %v3628_v12 = vpop.f32.mrf.mxu3  ;;  %v2692_v39 = vpop.f32.mrf.mxu1 }
 0x2a5   : > { %v3675_v14 = vadd.f32 %v3628_v12, %v3021_v62  ;;  %v2736_v27 = vadd.f32 %v2692_v39, %v5882_v17 }
 0x2a7   : > { %v4073_v41 = vadd.f32 %v4026_v9, %v3675_v14  ;;  %v2976_v4 = vpop.f32.mrf.mxu2 }
 0x2a8   : > { %v3022_v21 = vadd.f32 %v2976_v4, %v2735_v19 }
 0x2a9   : > { %4121 = vxpose.xlu1.b32.cont [7/16] (narrow) %v4073_v41, 8 }
 0x2ab   : > { %v4028_v48 = vpop.f32.mrf.mxu0 }
 0x2ac   : > { %v3630_v51 = vpop.f32.mrf.mxu3  ;;  %v2694_v37 = vpop.f32.mrf.mxu1 }
 0x2ad   : > { %v3676_v7 = vadd.f32 %v3630_v51, %v3022_v21  ;;  %v2737_v49 = vadd.f32 %v2694_v37, %v6301_v11 }
 0x2af   : > { %v4074_v1 = vadd.f32 %v4028_v48, %v3676_v7  ;;  %v2979_v52 = vpop.f32.mrf.mxu2 }
 0x2b0   : > { %v3023_v13 = vadd.f32 %v2979_v52, %v2736_v27  ;;  %v4099_v52 = vpop.trf.xlu0 }
 0x2b1   : > { %4122 = vxpose.xlu1.b32.cont [8/16] (narrow) %v4074_v1, 8 }
 0x2b3   : > { %v4031_v56 = vpop.f32.mrf.mxu0 }
 0x2b4   : > { %v3633_v55 = vpop.f32.mrf.mxu3  ;;  %v2697_v34 = vpop.f32.mrf.mxu1 }
 0x2b5   : > { %v3677_v61 = vadd.f32 %v3633_v55, %v3023_v13  ;;  %v2738_v17 = vadd.f32 %v2697_v34, %v5923_v44 }
 0x2b7   : > { %v4075_v28 = vadd.f32 %v4031_v56, %v3677_v61  ;;  %v2981_v47 = vpop.f32.mrf.mxu2 }
 0x2b8   : > { %v3024_v45 = vadd.f32 %v2981_v47, %v2737_v49 }
 0x2b9   : > { %4123 = vxpose.xlu1.b32.cont [9/16] (narrow) %v4075_v28, 8 }
 0x2bb   : > { %v4033_v58 = vpop.f32.mrf.mxu0 }
 0x2bc   : > { %v3635_v31 = vpop.f32.mrf.mxu3  ;;  %v2699_v3 = vpop.f32.mrf.mxu1 }
 0x2bd   : > { %v3678_v0 = vadd.f32 %v3635_v31, %v3024_v45  ;;  %v2739_v20 = vadd.f32 %v2699_v3, %v5944_v8 }
 0x2bf   : > { %v4076_v23 = vadd.f32 %v4033_v58, %v3678_v0  ;;  %v2984_v36 = vpop.f32.mrf.mxu2 }
 0x2c0   : > { %v3025_v33 = vadd.f32 %v2984_v36, %v2738_v17 }
 0x2c1   : > { %4124 = vxpose.xlu1.b32.cont [10/16] (narrow) %v4076_v23, 8 }
 0x2c3   : > { %v4036_v46 = vpop.f32.mrf.mxu0 }
 0x2c4   : > { %v3638_v63 = vpop.f32.mrf.mxu3  ;;  %v2702_v2 = vpop.f32.mrf.mxu1 }
 0x2c5   : > { %v3679_v40 = vadd.f32 %v3638_v63, %v3025_v33  ;;  %v2740_v26 = vadd.f32 %v2702_v2, %v5962_v30 }
 0x2c7   : > { %v4077_v57 = vadd.f32 %v4036_v46, %v3679_v40  ;;  %v2986_v53 = vpop.f32.mrf.mxu2 }
 0x2c8   : > { %v3026_v38 = vadd.f32 %v2986_v53, %v2739_v20 }
 0x2c9   : > { %4125 = vxpose.xlu1.b32.cont [11/16] (narrow) %v4077_v57, 8 }
 0x2cb   : > { %v4038_v32 = vpop.f32.mrf.mxu0 }
 0x2cc   : > { %v3640_v42 = vpop.f32.mrf.mxu3  ;;  %v2704_v18 = vpop.f32.mrf.mxu1 }
 0x2cd   : > { %v3680_v24 = vadd.f32 %v3640_v42, %v3026_v38  ;;  %v2741_v50 = vadd.f32 %v2704_v18, %v5985_v59 }
 0x2cf   : > { %v4078_v44 = vadd.f32 %v4038_v32, %v3680_v24  ;;  %v2989_v10 = vpop.f32.mrf.mxu2 }
 0x2d0   : > { %v3027_v43 = vadd.f32 %v2989_v10, %v2740_v26 }
 0x2d1   : > { %4126 = vxpose.xlu1.b32.cont [12/16] (narrow) %v4078_v44, 8 }
 0x2d3   : > { %v4041_v5 = vpop.f32.mrf.mxu0 }
 0x2d4   : > { %v3643_v54 = vpop.f32.mrf.mxu3  ;;  %v2707_v29 = vpop.f32.mrf.mxu1 }
 0x2d5   : > { %v3681_v6 = vadd.f32 %v3643_v54, %v3027_v43  ;;  %v2742_v30 = vadd.f32 %v2707_v29, %v6005_v22  ;;  %v4151_v22 = vpop.permute.xlu2 %4150 }
 0x2d6   : > { %v4153_v55 = vadd.f32 %v4151_v22, %v4099_v52 }
 0x2d7   : > { %v4079_v8 = vadd.f32 %v4041_v5, %v3681_v6  ;;  %v2991_v60 = vpop.f32.mrf.mxu2 }
 0x2d8   : > { %4876 = vset.pattern.permute.xlu0 %v4935_v15  ;;  %v3028_v25 = vadd.f32 %v2991_v60, %v2741_v50 }
 0x2d9   : > { %4127 = vxpose.xlu1.b32.cont [13/16] (narrow) %v4079_v8, 8 }
 0x2db   : > { %v4043_v62 = vpop.f32.mrf.mxu0 }
 0x2dc   : > { %v3645_v9 = vpop.f32.mrf.mxu3  ;;  %v2709_v19 = vpop.f32.mrf.mxu1 }
 0x2dd   : > { %v3682_v12 = vadd.f32 %v3645_v9, %v3028_v25  ;;  %v2743_v59 = vadd.f32 %v2709_v19, %v6025_v16  ;;  %v4155_v16 = vmax.f32 %v4153_v55, 0.0 }
 0x2df   : > { %v4080_v39 = vadd.f32 %v4043_v62, %v3682_v12  ;;  %v2994_v14 = vpop.f32.mrf.mxu2 }
 0x2e0   : > { %v3029_v35 = vadd.f32 %v2994_v14, %v2742_v30 }
 0x2e1   : > { %4128 = vxpose.xlu1.b32.cont [14/16] (narrow) %v4080_v39, 8 }
 0x2e3   : > { %v4046_v41 = vpop.f32.mrf.mxu0 }
 0x2e4   : > { %v3648_v4 = vpop.f32.mrf.mxu3 }
 0x2e5   : > { %v3683_v21 = vadd.f32 %v3648_v4, %v3029_v35 }
 0x2e7   : > { %v4081_v15 = vadd.f32 %v4046_v41, %v3683_v21  ;;  %v2996_v48 = vpop.f32.mrf.mxu2 }
 0x2e8   : > { %v3030_v51 = vadd.f32 %v2996_v48, %v2743_v59 }
 0x2e9   : > { %4129 = vxpose.xlu1.b32.cont [15/16] (narrow) %v4081_v15, 8 }
 0x2eb   : > { %v4048_v27 = vpop.f32.mrf.mxu0 }
 0x2ec   : > { %v3650_v37 = vpop.f32.mrf.mxu3 }
 0x2ed   : > { %v3684_v7 = vadd.f32 %v3650_v37, %v3030_v51 }
 0x2ef   : > { %v4082_v1 = vadd.f32 %v4048_v27, %v3684_v7 }
 0x2f1   : > { %4130 = vxpose.xlu1.b32.end [16/16] (narrow) %v4082_v1, 8 }
 0x31d   : > { %v4131_v13 = vpop.trf.xlu1 }
 0x31e   : > { %v4154_v56 = vadd.f32 %v4151_v22, %v4131_v13 }
 0x320   : > { %v4156_v34 = vmax.f32 %v4154_v56, 0.0 }
 0x322   : > { %v4159_v61 = vrot.slane %v4156_v34, 4 }
 0x324   : > { %v4161_v11 = vsel %vm4160_vm8, %v4155_v16, %v4159_v61 }
 0x325   : > { %4163 = vst [vmem:[%s170_s16] sm:$0xff] %v4161_v11 }
 0x326 PF: > { %s13_s12 = sadd.s32 1, %s4933_s12  }
 0x327   : > { %p10_p4 = scmp.ge.s32.totalorder %s13_s12, 4  }
 0x329   :  { %12 = sbr.rel (!%p10_p4) target bundleno = 1 (0x1), region = 72 }

// kernel: up_forward.2
= control target key start
LH: loop header
LB: loop body
LE: loop exit
PB: predicated region body
PF: predicated region fallthrough
CT: control target
= control target key end

     0   :  { %s9761_s18 = smov 0   ;;  %s13092_s0 = inlined_call_operand.vmem [shape: bf16[2,18,18,4], index: 0, kind: input, shape index: {}]   ;;  %s13093_s1 = inlined_call_operand.vmem [shape: bf16[2,18,18,4], index: 1, kind: input, shape index: {}]   ;;  %s13094_s2 = inlined_call_operand.vmem [shape: bf16[9,4,4], index: 2, kind: input, shape index: {}]   ;;  %s13095_s3 = inlined_call_operand.vmem [shape: bf16[9,4,4], index: 3, kind: input, shape index: {}]   ;;  %s13096_s4 = inlined_call_operand.vmem [shape: f32[4,1], index: 4, kind: input, shape index: {}]   ;;  %s13097_s5 = inlined_call_operand.vmem [shape: f32[2,4,256], index: 5, kind: output, shape index: {}]  }
   0x1 LB: > { %s8368_s19 = sadd.s32 4294967295, %s9728_s18   ;;  %p8372_p0 = scmp.ge.s32.totalorder %s9728_s18, 1  ;;  %s9728_s18 = sphi %s9761_s18, %s15_s18  }
   0x2   : > { %p197_p1 = scmp.lt.s32.totalorder %s9728_s18, 3 }
   0x4   : > { %p198_p2 = pnand %p8372_p0, %p197_p1 }
   0x6   : > { %201 = sbr.rel (%p198_p2) target bundleno = 1356 (0x54c), region = 40 }
   0xb   : > { %v311_v0 = vld [vmem:[%s13095_s3] sm:$0x3]  ;;  %vm441_vm0 = vcmask 1041408   ;;  %p230_p3 = scmp.lt.s32.totalorder %s8368_s19, 1  ;;  %v8537_v4 = vld [vmem:[%s13094_s2 + $0x2] sm:$0x3] }
   0xc   : > { %v278_v1 = vld [vmem:[%s13094_s2] sm:$0x3]  ;;  %v443_v2 = vsel %vm441_vm0, %v311_v0, 0  ;;  %v1288_v5 = vsel %vm441_vm0, %v8537_v4, 0  ;;  %v8554_v6 = vld [vmem:[%s13095_s3 + $0x2] sm:$0x3] }
   0xd   : > { %v663_v3 = vsel %vm441_vm0, %v278_v1, 0  ;;  %9644 = vmatpush.bf16.msra.mxu2 %v443_v2  ;;  %s13163_s19 = smov (!%p230_p3, %s8368_s19), 1  ;;  %v8587_v7 = vld [vmem:[%s13094_s2 + $0x4] sm:$0x3]  ;;  %452 = vmatpush.bf16.msra.mxu0 %v443_v2  ;;  %v1942_v8 = vsel %vm441_vm0, %v8554_v6, 0  ;;  %vm392_vm1 = vcmask 31744  }
   0xe   : > { %9645 = vmatpush.bf16.msra.mxu3 %v663_v3  ;;  %672 = vmatpush.bf16.msra.mxu1 %v663_v3  ;;  %v2343_v9 = vsel %vm441_vm0, %v8587_v7, 0  ;;  %v8620_v10 = vld [vmem:[%s13095_s3 + $0x4] sm:$0x3]  ;;  %s9646_s7 = smul.u32 216, %s13163_s19  ;;  %v8669_v52 = vld [vmem:[%s13094_s2 + $0x6] sm:$0x3] }
   0xf   : > { %v2741_v11 = vsel %vm441_vm0, %v8620_v10, 0  ;;  %v3028_v55 = vsel %vm441_vm0, %v8669_v52, 0  ;;  %v8782_v56 = vld [vmem:[%s13095_s3 + $0x6] sm:$0x3]  ;;  %v8911_v7 = vld [vmem:[%s13094_s2 + $0x8] sm:$0x3] }
  0x10   : > { %s9799_s10 = scalar_lea.vmem %s13093_s1, %s9646_s7  ;;  %s9804_s13 = scalar_lea.vmem %s13092_s0, %s9646_s7  ;;  %v3315_v59 = vsel %vm441_vm0, %v8782_v56, 0  ;;  %vm802_vm2 = vsmask.f32 3328  ;;  %vm803_vm3 = vsmask.f32 7440  ;;  %vm2129_vm4 = vcmask 1042432  }
  0x11   : > { %1297 = vmatpush.bf16.msrb.mxu2 %v1288_v5  ;;  %2352 = vmatpush.bf16.msrb.mxu0 %v2343_v9  ;;  %v9572_v12 = vld [vmem:[%s9799_s10 + $0x60] sm:$0xff]  ;;  %v9573_v16 = vld [vmem:[%s9799_s10 + $0x6c] sm:$0xff]  ;;  %v9574_v20 = vld [vmem:[%s9799_s10 + $0x78] sm:$0xff]  ;;  %v3969_v9 = vsel %vm441_vm0, %v8911_v7, 0  ;;  %vm2130_vm5 = vcmask 1046532   ;;  %s9547_s17 = sshll.u32 %s13163_s19, 3 }
  0x12   : > { %1951 = vmatpush.bf16.msrb.mxu3 %v1942_v8  ;;  %2750 = vmatpush.bf16.msrb.mxu1 %v2741_v11  ;;  %v9556_v13 = vld [vmem:[%s9804_s13 + $0x60] sm:$0xff]  ;;  %v9557_v17 = vld [vmem:[%s9804_s13 + $0x6c] sm:$0xff]  ;;  %v9558_v21 = vld [vmem:[%s9804_s13 + $0x78] sm:$0xff]  ;;  %vm8297_vm8 = vcmask 1043456   ;;  %s244_s22 = scalar_lea.vmem %s13097_s5, %s9547_s17 }
  0x13   : > { %v9564_v14 = vld [vmem:[%s9799_s10] sm:$0xff]  ;;  %8449 = vmatmul.msk.bf16.vlgmr.msra.gmra.mxu2 %vm392_vm1, %v9572_v12  ;;  %8529 = vmatmul.msk.bf16.vlgmr.msra.gmra.mxu3 %vm392_vm1, %v9556_v13  ;;  %v9565_v18 = vld [vmem:[%s9799_s10 + $0xc] sm:$0xff]  ;;  %v9566_v22 = vld [vmem:[%s9799_s10 + $0x18] sm:$0xff] }
  0x14   : > { %v9548_v15 = vld [vmem:[%s9804_s13] sm:$0xff]  ;;  %8441 = vmatmul.msk.bf16.vlgmr.msra.gmra.mxu0 %vm392_vm1, %v9564_v14  ;;  %v9549_v19 = vld [vmem:[%s9804_s13 + $0xc] sm:$0xff]  ;;  %v9550_v23 = vld [vmem:[%s9804_s13 + $0x18] sm:$0xff] }
  0x15   : > { %8521 = vmatmul.msk.bf16.vlgmr.msra.gmra.mxu1 %vm392_vm1, %v9548_v15  ;;  %v9575_v24 = vld [vmem:[%s9799_s10 + $0x84] sm:$0xff]  ;;  %v9576_v28 = vld [vmem:[%s9799_s10 + $0x90] sm:$0xff]  ;;  %v9577_v32 = vld [vmem:[%s9799_s10 + $0x9c] sm:$0xff]  ;;  %3037 = vmatpush.bf16.msra.mxu2 %v3028_v55 }
  0x16   : > { %v9559_v25 = vld [vmem:[%s9804_s13 + $0x84] sm:$0xff]  ;;  %v9560_v29 = vld [vmem:[%s9804_s13 + $0x90] sm:$0xff]  ;;  %v9561_v33 = vld [vmem:[%s9804_s13 + $0x9c] sm:$0xff]  ;;  %3324 = vmatpush.bf16.msra.mxu3 %v3315_v59  ;;  %3978 = vmatpush.bf16.msra.mxu0 %v3969_v9 }
  0x17   : > { %v9567_v26 = vld [vmem:[%s9799_s10 + $0x24] sm:$0xff]  ;;  %v9568_v30 = vld [vmem:[%s9799_s10 + $0x30] sm:$0xff]  ;;  %v9569_v34 = vld [vmem:[%s9799_s10 + $0x3c] sm:$0xff] }
  0x18   : > { %v9551_v27 = vld [vmem:[%s9804_s13 + $0x24] sm:$0xff]  ;;  %v9552_v31 = vld [vmem:[%s9804_s13 + $0x30] sm:$0xff]  ;;  %v9553_v35 = vld [vmem:[%s9804_s13 + $0x3c] sm:$0xff] }
  0x19   : > { %v754_v36 = vld [vmem:[%s9804_s13] sm:$0xf]  ;;  %v9856_v37 = vld [vmem:[%s9804_s13 + $0x4] sm:$0xf]  ;;  %v9578_v38 = vld [vmem:[%s9799_s10 + $0xa8] sm:$0xff] }
  0x1a   : > { %v9562_v39 = vld [vmem:[%s9804_s13 + $0xa8] sm:$0xff]  ;;  %v1411_v40 = vld [vmem:[%s9799_s10] sm:$0xf]  ;;  %v806_v43 = vshrl.u32 %v754_v36, 16  ;;  %v809_v44 = vshll.u32 %v754_v36, 16  ;;  %v815_v46 = vshll.u32 %v9856_v37, 16  ;;  %vm9914_vm6 = vmor %vm802_vm2, %vm803_vm3 }
  0x1b   : > { %v9570_v41 = vld [vmem:[%s9799_s10 + $0x48] sm:$0xff]  ;;  %v9864_v45 = vld [vmem:[%s9799_s10 + $0x4] sm:$0xf]  ;;  %v819_v47 = vshrl.u32 %v9856_v37, 16  ;;  %v1460_v48 = vshrl.u32 %v1411_v40, 16  ;;  %v1463_v49 = vshll.u32 %v1411_v40, 16  ;;  %vm9920_vm7 = vmor %vm2129_vm4, %vm2130_vm5 }
  0x1c   : > { %v9554_v42 = vld [vmem:[%s9804_s13 + $0x48] sm:$0xff]  ;;  %v1469_v50 = vshll.u32 %v9864_v45, 16  ;;  %v1473_v51 = vshrl.u32 %v9864_v45, 16  ;;  %v808_v53 = vrot.slane %v806_v43, 4  ;;  %v811_v54 = vrot.slane %v809_v44, 5  ;;  %v9579_v12 = vld [vmem:[%s9799_s10 + $0xb4] sm:$0xff] }
  0x1d   : > { %v9881_v57 = vrot.slane %v815_v46, 5  ;;  %v821_v58 = vrot.slane %v819_v47, 4  ;;  %v9885_v60 = vld [vmem:[%s9804_s13 + $0x8] sm:$0x1]  ;;  %v1462_v61 = vrot.slane %v1460_v48, 4  ;;  %v1465_v62 = vrot.slane %v1463_v49, 5 }
  0x1e   : > { %v1413_v63 = vld [vmem:[%s9799_s10 + $0x8] sm:$0x1]  ;;  %v9888_v0 = vrot.slane %v1469_v50, 5  ;;  %v1475_v1 = vrot.slane %v1473_v51, 4  ;;  %v812_v2 = vor.u32 %v811_v54, %v808_v53  ;;  %v825_v4 = vshll.u32 %v9885_v60, 16  ;;  %v9563_v13 = vld [vmem:[%s9804_s13 + $0xb4] sm:$0xff] }
  0x1f   : > { %v822_v3 = vor.u32 %v821_v58, %v9881_v57  ;;  %v1466_v5 = vor.u32 %v1465_v62, %v1462_v61  ;;  %v1479_v6 = vshll.u32 %v1413_v63, 16  ;;  %v2065_v11 = vld [vmem:[%s9804_s13] sm:$0xe]  ;;  %v1414_v43 = vld [vmem:[%s9799_s10 + $0xc] sm:$0xf] }
  0x20   : > { %v1476_v8 = vor.u32 %v1475_v1, %v9888_v0  ;;  %v813_v10 = vrot.slane %v812_v2, 4  ;;  %v827_v15 = vrot.slane %v825_v4, 5  ;;  %v9946_v47 = vld [vmem:[%s9799_s10 + $0x10] sm:$0xf]  ;;  %v1484_v54 = vshrl.u32 %v1414_v43, 16 }
  0x21   : > { %v823_v14 = vrot.slane %v822_v3, 4  ;;  %v1487_v55 = vshll.u32 %v1414_v43, 16  ;;  %v1493_v58 = vshll.u32 %v9946_v47, 16  ;;  %v1497_v59 = vshrl.u32 %v9946_v47, 16  ;;  %v9958_v4 = vld [vmem:[%s9799_s10 + $0x14] sm:$0x1] }
  0x22   : > { %v818_v40 = vsel %vm9914_vm6, %v813_v10, %v9881_v57  ;;  %v759_v57 = vld [vmem:[%s9804_s13 + $0x14] sm:$0x1]  ;;  %v1486_v7 = vrot.slane %v1484_v54, 4 }
  0x23   : > { %8450 = vmatmul.msk.bf16.gmra.mxu2 %vm392_vm1, %v9573_v16  ;;  %8530 = vmatmul.msk.bf16.gmra.mxu3 %vm392_vm1, %v9557_v17  ;;  %v2134_v16 = vrot.slane %v9856_v37, 5  ;;  %v2466_v17 = vld [vmem:[%s9799_s10] sm:$0xe]  ;;  %v1191_v56 = vunpack.c.l.b16 %v818_v40  ;;  %v9961_v9 = vrot.slane %v1493_v58, 5  ;;  %v1499_v10 = vrot.slane %v1497_v59, 4 }
  0x24   : > { %8442 = vmatmul.msk.bf16.gmra.mxu0 %vm392_vm1, %v9565_v18  ;;  %v2532_v18 = vrot.slane %v9864_v45, 5 }
  0x25   : > { %8522 = vmatmul.msk.bf16.gmra.mxu1 %vm392_vm1, %v9549_v19  ;;  %v1467_v19 = vrot.slane %v1466_v5, 4 }
  0x33   : > { %8451 = vmatmul.msk.bf16.gmra.mxu2 %vm392_vm1, %v9574_v20  ;;  %8531 = vmatmul.msk.bf16.gmra.mxu3 %vm392_vm1, %v9558_v21  ;;  %v1481_v20 = vrot.slane %v1479_v6, 5  ;;  %v757_v21 = vld [vmem:[%s9804_s13 + $0xc] sm:$0xf]  ;;  %v849_v6 = vshll.u32 %v759_v57, 16 }
  0x34   : > { %8443 = vmatmul.msk.bf16.gmra.mxu0 %vm392_vm1, %v9566_v22  ;;  %v1477_v22 = vrot.slane %v1476_v8, 4  ;;  %v830_v36 = vshrl.u32 %v757_v21, 16  ;;  %v833_v37 = vshll.u32 %v757_v21, 16  ;;  %v1489_v8 = vrot.slane %v1487_v55, 5 }
  0x35   : > { %8523 = vmatmul.msk.bf16.gmra.mxu1 %vm392_vm1, %v9550_v23  ;;  %v8571_v23 = vrot.slane %v2065_v11, 9  ;;  %v851_v21 = vrot.slane %v849_v6, 5 }
  0x36   : > { %v1482_v44 = vsel %vm9914_vm6, %v1477_v22, %v1481_v20  ;;  %v832_v50 = vrot.slane %v830_v36, 4  ;;  %v835_v51 = vrot.slane %v833_v37, 5  ;;  %v1490_v22 = vor.u32 %v1489_v8, %v1486_v7 }
  0x37   : > { %v2135_v45 = vsel %vm9920_vm7, %v8571_v23, %v2134_v16  ;;  %v1846_v62 = vunpack.c.l.b16 %v1482_v44  ;;  %v9968_v23 = vld [vmem:[%s9804_s13 + $0x1c] sm:$0xf] }
  0x38   : > { %v836_v3 = vor.u32 %v835_v51, %v832_v50  ;;  %v9990_v50 = vld [vmem:[%s9799_s10 + $0x1c] sm:$0xf] }
  0x43   : > { %8452 = vmatmul.msk.bf16.gmra.mxu2 %vm392_vm1, %v9575_v24  ;;  %8532 = vmatmul.msk.bf16.gmra.mxu3 %vm392_vm1, %v9559_v25  ;;  %v8976_v24 = vld [vmem:[%s13095_s3 + $0x8] sm:$0x3]  ;;  %v9908_v25 = vld [vmem:[%s9804_s13 + $0x10] sm:$0xf] }
  0x44   : > { %8444 = vmatmul.msk.bf16.gmra.mxu0 %vm392_vm1, %v9567_v26  ;;  %v9571_v26 = vld [vmem:[%s9799_s10 + $0x54] sm:$0xff]  ;;  %v2141_v11 = vrot.slane %v9908_v25, 5 }
  0x45   : > { %8524 = vmatmul.msk.bf16.gmra.mxu1 %vm392_vm1, %v9551_v27  ;;  %v9555_v27 = vld [vmem:[%s9804_s13 + $0x54] sm:$0xff] }
  0x53   : > { %8453 = vmatmul.msk.bf16.gmra.mxu2 %vm392_vm1, %v9576_v28  ;;  %8533 = vmatmul.msk.bf16.gmra.mxu3 %vm392_vm1, %v9560_v29  ;;  %v2137_v29 = vrot.slane %v9885_v60, 5 }
  0x54   : > { %8445 = vmatmul.msk.bf16.gmra.mxu0 %vm392_vm1, %v9568_v30  ;;  %v8604_v30 = vrot.slane %v2466_v17, 9  ;;  %v837_v17 = vrot.slane %v836_v3, 4 }
  0x55   : > { %8525 = vmatmul.msk.bf16.gmra.mxu1 %vm392_vm1, %v9552_v31  ;;  %v2535_v31 = vrot.slane %v1413_v63, 5  ;;  %v2246_v63 = vunpack.c.l.b16 %v2135_v45  ;;  %v1491_v45 = vrot.slane %v1490_v22, 4 }
  0x56   : > { %v2533_v46 = vsel %vm9920_vm7, %v8604_v30, %v2532_v18 }
  0x57   : > { %v2644_v1 = vunpack.c.l.b16 %v2533_v46 }
  0x63   : > { %8454 = vmatmul.msk.bf16.gmra.mxu2 %vm392_vm1, %v9577_v32  ;;  %8534 = vmatmul.msk.bf16.gmra.mxu3 %vm392_vm1, %v9561_v33  ;;  %v4623_v32 = vsel %vm441_vm0, %v8976_v24, 0  ;;  %v1417_v24 = vld [vmem:[%s9799_s10 + $0x18] sm:$0xf] }
  0x64   : > { %8446 = vmatmul.msk.bf16.gmra.mxu0 %vm392_vm1, %v9569_v34  ;;  %v2136_v34 = vrot.slane %v2134_v16, 4  ;;  %4632 = vmatpush.bf16.msra.mxu1 %v4623_v32  ;;  %v2539_v32 = vrot.slane %v9946_v47, 5  ;;  %v1508_v40 = vshrl.u32 %v1417_v24, 16 }
  0x65   : > { %8526 = vmatmul.msk.bf16.gmra.mxu1 %vm392_vm1, %v9553_v35  ;;  %v2534_v35 = vrot.slane %v2532_v18, 4  ;;  %v760_v18 = vld [vmem:[%s9804_s13 + $0x18] sm:$0xf] }
  0x66   : > { %v2138_v48 = vsel %vm9920_vm7, %v2136_v34, %v2137_v29  ;;  %v2144_v29 = vrot.slane %v759_v57, 5  ;;  %v854_v34 = vshrl.u32 %v760_v18, 16  ;;  %v2541_v51 = vrot.slane %v2539_v32, 4 }
  0x67   : > { %v2536_v49 = vsel %vm9920_vm7, %v2534_v35, %v2535_v31  ;;  %v2467_v31 = vld [vmem:[%s9799_s10 + $0xc] sm:$0xe]  ;;  %v857_v35 = vshll.u32 %v760_v18, 16  ;;  %v1510_v57 = vrot.slane %v1508_v40, 4 }
  0x68   : > { %v2645_v2 = vunpack.c.l.b16 %v2536_v49  ;;  %v8605_v49 = vrot.slane %v2467_v31, 9 }
  0x69   : > { %v859_v54 = vrot.slane %v857_v35, 5  ;;  %v2148_v35 = vrot.slane %v9968_v23, 5 }
  0x6a   : > { %v2540_v7 = vsel %vm9920_vm7, %v8605_v49, %v2539_v32  ;;  %v2468_v49 = vld [vmem:[%s9799_s10 + $0x18] sm:$0xe] }
  0x73   : > { %8455 = vmatmul.msk.bf16.gmra.mxu2 %vm392_vm1, %v9578_v38  ;;  %8535 = vmatmul.msk.bf16.gmra.mxu3 %vm392_vm1, %v9562_v39  ;;  %v839_v38 = vshll.u32 %v9908_v25, 16  ;;  %v843_v39 = vshrl.u32 %v9908_v25, 16  ;;  %v2143_v25 = vrot.slane %v2141_v11, 4 }
  0x74   : > { %8447 = vmatmul.msk.bf16.gmra.mxu0 %vm392_vm1, %v9570_v41  ;;  %v828_v41 = vsel %vm9914_vm6, %v823_v14, %v827_v15 }
  0x75   : > { %8527 = vmatmul.msk.bf16.gmra.mxu1 %vm392_vm1, %v9554_v42  ;;  %v1472_v42 = vsel %vm9914_vm6, %v1467_v19, %v9888_v0  ;;  %v9952_v52 = vrot.slane %v839_v38, 5  ;;  %v845_v53 = vrot.slane %v843_v39, 4  ;;  %v1192_v60 = vunpack.c.l.b16 %v828_v41 }
  0x76   : > { %v1845_v61 = vunpack.c.l.b16 %v1472_v42  ;;  %v2247_v0 = vunpack.c.l.b16 %v2138_v48  ;;  %v2676_v19 = vpack.c.b16 %v2645_v2, %v2644_v1  ;;  %v863_v38 = vshll.u32 %v9968_v23, 16 }
  0x77   : > { %v846_v5 = vor.u32 %v845_v53, %v9952_v52  ;;  %v1223_v14 = vpack.c.b16 %v1192_v60, %v1191_v56  ;;  %v867_v39 = vshrl.u32 %v9968_v23, 16  ;;  %v1511_v41 = vshll.u32 %v1417_v24, 16  ;;  %v763_v24 = vld [vmem:[%s9804_s13 + $0x24] sm:$0xf] }
  0x78   : > { %v1877_v15 = vpack.c.b16 %v1846_v62, %v1845_v61  ;;  %v2278_v16 = vpack.c.b16 %v2247_v0, %v2246_v63  ;;  %v842_v43 = vsel %vm9914_vm6, %v837_v17, %v9952_v52  ;;  %v2145_v48 = vsel %vm9920_vm7, %v2143_v25, %v2144_v29  ;;  %v10003_v63 = vld [vmem:[%s9804_s13 + $0x20] sm:$0x1] }
  0x79   : > { %v847_v20 = vrot.slane %v846_v5, 4  ;;  %v2542_v52 = vrot.slane %v9958_v4, 5  ;;  %v856_v53 = vrot.slane %v854_v34, 4  ;;  %v9995_v55 = vrot.slane %v863_v38, 5 }
  0x7a   : > { %v869_v56 = vrot.slane %v867_v39, 4  ;;  %v1513_v58 = vrot.slane %v1511_v41, 5  ;;  %v9997_v61 = vunpack.c.l.b16 %v842_v43  ;;  %v1496_v62 = vsel %vm9914_vm6, %v1491_v45, %v9961_v9 }
  0x7b   : > { %v852_v44 = vsel %vm9914_vm6, %v847_v20, %v851_v21  ;;  %v1517_v0 = vshll.u32 %v9990_v50, 16  ;;  %v1521_v1 = vshrl.u32 %v9990_v50, 16  ;;  %v2249_v6 = vunpack.c.l.b16 %v2145_v48 }
  0x7c   : > { %v1194_v3 = vunpack.c.l.b16 %v852_v44  ;;  %v2543_v8 = vsel %vm9920_vm7, %v2541_v51, %v2542_v52  ;;  %v2646_v21 = vunpack.c.l.b16 %v2540_v7  ;;  %v878_v41 = vshrl.u32 %v763_v24, 16 }
  0x7d   : > { %v1523_v20 = vrot.slane %v1521_v1, 4  ;;  %v2647_v22 = vunpack.c.l.b16 %v2543_v8  ;;  %v881_v43 = vshll.u32 %v763_v24, 16 }
  0x7f   : > { %v2677_v45 = vpack.c.b16 %v2647_v22, %v2646_v21 }
  0x83   : > { %8456 = vmatmul.msk.bf16.gmra.mxu2 %vm392_vm1, %v9579_v12  ;;  %8536 = vmatmul.msk.bf16.gmra.mxu3 %vm392_vm1, %v9563_v13  ;;  %v1503_v12 = vshll.u32 %v9958_v4, 16  ;;  %v2066_v13 = vld [vmem:[%s9804_s13 + $0xc] sm:$0xe] }
  0x84   : > { %8448 = vmatmul.msk.bf16.gmra.mxu0 %vm392_vm1, %v9571_v26  ;;  %v1500_v26 = vor.u32 %v1499_v10, %v9961_v9  ;;  %v860_v9 = vor.u32 %v859_v54, %v856_v53 }
  0x85   : > { %8528 = vmatmul.msk.bf16.gmra.mxu1 %vm392_vm1, %v9555_v27  ;;  %v8572_v27 = vrot.slane %v2066_v13, 9  ;;  %v1505_v30 = vrot.slane %v1503_v12, 5  ;;  %v1847_v12 = vunpack.c.l.b16 %v1496_v62  ;;  %v870_v13 = vor.u32 %v869_v56, %v9995_v55 }
  0x86   : > { %v1501_v46 = vrot.slane %v1500_v26, 4  ;;  %v1224_v26 = vpack.c.b16 %v1194_v3, %v9997_v61  ;;  %v861_v25 = vrot.slane %v860_v9, 4  ;;  %v880_v61 = vrot.slane %v878_v41, 4 }
  0x87   : > { %v2142_v47 = vsel %vm9920_vm7, %v8572_v27, %v2141_v11  ;;  %v871_v31 = vrot.slane %v870_v13, 4  ;;  %v883_v62 = vrot.slane %v881_v43, 5  ;;  %v8606_v3 = vrot.slane %v2468_v49, 9 }
  0x88   : > { %v1506_v4 = vsel %vm9914_vm6, %v1501_v46, %v1505_v30  ;;  %v2248_v5 = vunpack.c.l.b16 %v2142_v47  ;;  %v2067_v30 = vld [vmem:[%s9804_s13 + $0x18] sm:$0xe]  ;;  %v2546_v47 = vrot.slane %v9990_v50, 5  ;;  %v866_v23 = vsel %vm9914_vm6, %v861_v25, %v9995_v55  ;;  %v1420_v55 = vld [vmem:[%s9799_s10 + $0x24] sm:$0xf] }
  0x89   : > { %v1848_v18 = vunpack.c.l.b16 %v1506_v4  ;;  %v8573_v46 = vrot.slane %v2067_v30, 9  ;;  %v1532_v7 = vshrl.u32 %v1420_v55, 16  ;;  %v1535_v8 = vshll.u32 %v1420_v55, 16 }
  0x8a   : > { %v2279_v27 = vpack.c.b16 %v2249_v6, %v2248_v5  ;;  %v2548_v4 = vrot.slane %v2546_v47, 4  ;;  %v10063_v9 = vunpack.c.l.b16 %v866_v23  ;;  %v2547_v24 = vsel %vm9920_vm7, %v8606_v3, %v2546_v47  ;;  %v10106_v3 = vld [vmem:[%s9804_s13 + $0x34] sm:$0xf] }
  0x8b   : > { %v1878_v39 = vpack.c.b16 %v1848_v18, %v1847_v12  ;;  %v2149_v1 = vsel %vm9920_vm7, %v8573_v46, %v2148_v35  ;;  %v1534_v30 = vrot.slane %v1532_v7, 4  ;;  %v2648_v41 = vunpack.c.l.b16 %v2547_v24 }
  0x8c   : > { %v2250_v22 = vunpack.c.l.b16 %v2149_v1 }
  0x91   : > { %v454_v36 = vpop.f32.mrf.mxu0 }
  0x92   : > { %v674_v37 = vpop.f32.mrf.mxu1 }
  0x93   : > { %v9976_v42 = vadd.f32 %v674_v37, %v454_v36  ;;  %8538 = vmatmul.msk.bf16.vlgmr.msrb.gmra.mxu2 %vm392_vm1, %v1223_v14  ;;  %8555 = vmatmul.msk.bf16.vlgmr.msrb.gmra.mxu3 %vm392_vm1, %v1877_v15  ;;  %v873_v14 = vshll.u32 %v10003_v63, 16  ;;  %v10018_v15 = vld [vmem:[%s9799_s10 + $0x20] sm:$0x1]  ;;  %v10030_v36 = vld [vmem:[%s9804_s13 + $0x28] sm:$0xf] }
  0x94   : > { %8588 = vmatmul.msk.bf16.vlgmr.msrb.gmra.mxu0 %vm392_vm1, %v2278_v16  ;;  %v1514_v16 = vor.u32 %v1513_v58, %v1510_v57  ;;  %v1527_v29 = vshll.u32 %v10018_v15, 16  ;;  %v887_v51 = vshll.u32 %v10030_v36, 16  ;;  %v891_v52 = vshrl.u32 %v10030_v36, 16 }
  0x95   : > { %8621 = vmatmul.msk.bf16.vlgmr.msrb.gmra.mxu1 %vm392_vm1, %v2676_v19  ;;  %v10022_v19 = vrot.slane %v1517_v0, 5  ;;  %v875_v32 = vrot.slane %v873_v14, 5  ;;  %v2150_v57 = vrot.slane %v2148_v35, 4  ;;  %v2151_v58 = vrot.slane %v10003_v63, 5  ;;  %v10052_v0 = vld [vmem:[%s9799_s10 + $0x28] sm:$0xf] }
  0x96   : > { %v494_v59 = vpop.f32.mrf.mxu2  ;;  %v714_v60 = vpop.f32.mrf.mxu3  ;;  %v1515_v34 = vrot.slane %v1514_v16, 4  ;;  %v1529_v48 = vrot.slane %v1527_v29, 5  ;;  %v2549_v63 = vrot.slane %v10018_v15, 5  ;;  %v10061_v5 = vrot.slane %v887_v51, 5  ;;  %v10085_v29 = vld [vmem:[%s9799_s10 + $0x2c] sm:$0x1] }
  0x97   : > { %v10007_v2 = vadd.f32 %v714_v60, %v494_v59  ;;  %v1524_v40 = vor.u32 %v1523_v20, %v10022_v19  ;;  %v876_v56 = vsel %vm9914_vm6, %v871_v31, %v875_v32  ;;  %v893_v6 = vrot.slane %v891_v52, 4  ;;  %v766_v51 = vld [vmem:[%s9804_s13 + $0x30] sm:$0xf] }
  0x98   : > { %v1520_v50 = vsel %vm9914_vm6, %v1515_v34, %v10022_v19  ;;  %v1541_v12 = vshll.u32 %v10052_v0, 16  ;;  %v1545_v13 = vshrl.u32 %v10052_v0, 16  ;;  %v2152_v19 = vsel %vm9920_vm7, %v2150_v57, %v2151_v58 }
  0x99   : > { %v456_v10 = vpop.f32.mrf.mxu0  ;;  %v1525_v60 = vrot.slane %v1524_v40, 4  ;;  %v1849_v18 = vunpack.c.l.b16 %v1520_v50  ;;  %v884_v20 = vor.u32 %v883_v62, %v880_v61  ;;  %v1537_v31 = vrot.slane %v1535_v8, 5  ;;  %v2469_v62 = vld [vmem:[%s9799_s10 + $0x24] sm:$0xe] }
  0x9a   : > { %v676_v11 = vpop.f32.mrf.mxu1  ;;  %v1551_v46 = vshll.u32 %v10085_v29, 16  ;;  %v2155_v49 = vrot.slane %v10030_v36, 5 }
  0x9b   : > { %v10020_v17 = vadd.f32 %v676_v11, %v456_v10  ;;  %v10065_v10 = vunpack.c.l.b16 %v876_v56  ;;  %v10068_v11 = vld [vmem:[%s9804_s13 + $0x2c] sm:$0x1]  ;;  %v1530_v16 = vsel %vm9914_vm6, %v1525_v60, %v1529_v48  ;;  %v1538_v48 = vor.u32 %v1537_v31, %v1534_v30 }
  0x9c   : > { %v897_v25 = vshll.u32 %v10068_v11, 16  ;;  %v1850_v35 = vunpack.c.l.b16 %v1530_v16  ;;  %v2553_v56 = vrot.slane %v10052_v0, 5  ;;  %v1553_v1 = vrot.slane %v1551_v46, 5 }
  0x9d   : > { %v1225_v52 = vpack.c.b16 %v10065_v10, %v10063_v9  ;;  %v2157_v8 = vrot.slane %v2155_v49, 4 }
  0x9e   : > { %v496_v37 = vpop.f32.mrf.mxu2  ;;  %v716_v38 = vpop.f32.mrf.mxu3  ;;  %v899_v23 = vrot.slane %v897_v25, 5  ;;  %v1879_v58 = vpack.c.b16 %v1850_v35, %v1849_v18  ;;  %v2556_v18 = vrot.slane %v10085_v29, 5 }
  0x9f   : > { %v10033_v44 = vadd.f32 %v716_v38, %v496_v37  ;;  %v2251_v37 = vunpack.c.l.b16 %v2152_v19  ;;  %v10087_v38 = vrot.slane %v1541_v12, 5  ;;  %v911_v19 = vshll.u32 %v10106_v3, 16 }
  0xa1   : > { %v459_v53 = vpop.f32.mrf.mxu0  ;;  %v2280_v55 = vpack.c.b16 %v2251_v37, %v2250_v22  ;;  %v10118_v22 = vld [vmem:[%s9799_s10 + $0x34] sm:$0xf] }
  0xa2   : > { %v679_v54 = vpop.f32.mrf.mxu1  ;;  %v1565_v35 = vshll.u32 %v10118_v22, 16  ;;  %v1569_v37 = vshrl.u32 %v10118_v22, 16 }
  0xa3   : > { %v10049_v59 = vadd.f32 %v679_v54, %v459_v53  ;;  %8539 = vmatmul.msk.bf16.gmra.mxu2 %vm392_vm1, %v1224_v26  ;;  %8556 = vmatmul.msk.bf16.gmra.mxu3 %vm392_vm1, %v1878_v39  ;;  %v2550_v26 = vsel %vm9920_vm7, %v2548_v4, %v2549_v63  ;;  %v1547_v39 = vrot.slane %v1545_v13, 4  ;;  %v2068_v54 = vld [vmem:[%s9804_s13 + $0x24] sm:$0xe]  ;;  %v902_v4 = vshrl.u32 %v766_v51, 16 }
  0xa4   : > { %8589 = vmatmul.msk.bf16.gmra.mxu0 %vm392_vm1, %v2279_v27  ;;  %v894_v27 = vor.u32 %v893_v6, %v10061_v5  ;;  %v2649_v43 = vunpack.c.l.b16 %v2550_v26  ;;  %v905_v63 = vshll.u32 %v766_v51, 16  ;;  %v1539_v6 = vrot.slane %v1538_v48, 4 }
  0xa5   : > { %8622 = vmatmul.msk.bf16.gmra.mxu1 %vm392_vm1, %v2677_v45  ;;  %v885_v45 = vrot.slane %v884_v20, 4  ;;  %v1548_v53 = vor.u32 %v1547_v39, %v10087_v38  ;;  %v8574_v7 = vrot.slane %v2068_v54, 9  ;;  %v8607_v13 = vrot.slane %v2469_v62, 9  ;;  %v10151_v54 = vld [vmem:[%s9799_s10 + $0x38] sm:$0x1] }
  0xa6   : > { %v499_v14 = vpop.f32.mrf.mxu2  ;;  %v719_v15 = vpop.f32.mrf.mxu3  ;;  %v895_v47 = vrot.slane %v894_v27, 4  ;;  %v2678_v60 = vpack.c.b16 %v2649_v43, %v2648_v41  ;;  %v915_v20 = vshrl.u32 %v10106_v3, 16  ;;  %v904_v26 = vrot.slane %v902_v4, 4 }
  0xa7   : > { %v10076_v21 = vadd.f32 %v719_v15, %v499_v14  ;;  %v890_v61 = vsel %vm9914_vm6, %v885_v45, %v10061_v5  ;;  %v1549_v12 = vrot.slane %v1548_v53, 4  ;;  %v2158_v5 = vrot.slane %v10068_v11, 5  ;;  %v1423_v15 = vld [vmem:[%s9799_s10 + $0x30] sm:$0xf] }
  0xa8   : > { %v900_v0 = vsel %vm9914_vm6, %v895_v47, %v899_v23  ;;  %v2555_v14 = vrot.slane %v2553_v56, 4  ;;  %v10122_v24 = vunpack.c.l.b16 %v890_v61  ;;  %v907_v27 = vrot.slane %v905_v63, 5 }
  0xa9   : > { %v461_v32 = vpop.f32.mrf.mxu0  ;;  %v10124_v11 = vunpack.c.l.b16 %v900_v0  ;;  %v1544_v25 = vsel %vm9914_vm6, %v1539_v6, %v10087_v38  ;;  %v2156_v29 = vsel %vm9920_vm7, %v8574_v7, %v2155_v49  ;;  %v1556_v30 = vshrl.u32 %v1423_v15, 16  ;;  %v10148_v49 = vld [vmem:[%s9804_s13 + $0x38] sm:$0x1]  ;;  %v769_v7 = vld [vmem:[%s9804_s13 + $0x3c] sm:$0xf] }
  0xaa   : > { %v681_v34 = vpop.f32.mrf.mxu1  ;;  %v1559_v31 = vshll.u32 %v1423_v15, 16  ;;  %v1554_v38 = vsel %vm9914_vm6, %v1549_v12, %v1553_v1  ;;  %v2557_v43 = vsel %vm9920_vm7, %v2555_v14, %v2556_v18  ;;  %v10143_v45 = vrot.slane %v911_v19, 5  ;;  %v2069_v12 = vld [vmem:[%s9804_s13 + $0x30] sm:$0xe] }
  0xab   : > { %v10089_v40 = vadd.f32 %v681_v34, %v461_v32  ;;  %v2159_v32 = vsel %vm9920_vm7, %v2157_v8, %v2158_v5  ;;  %v2554_v34 = vsel %vm9920_vm7, %v8607_v13, %v2553_v56  ;;  %v917_v46 = vrot.slane %v915_v20, 4  ;;  %v2470_v18 = vld [vmem:[%s9799_s10 + $0x30] sm:$0xe] }
  0xac   : > { %v1851_v23 = vunpack.c.l.b16 %v1544_v25  ;;  %v2252_v48 = vunpack.c.l.b16 %v2156_v29  ;;  %v908_v51 = vor.u32 %v907_v27, %v904_v26  ;;  %v2650_v53 = vunpack.c.l.b16 %v2554_v34  ;;  %v10169_v29 = vld [vmem:[%s9804_s13 + $0x40] sm:$0xf] }
  0xad   : > { %v1558_v56 = vrot.slane %v1556_v30, 4  ;;  %v10153_v61 = vrot.slane %v1565_v35, 5  ;;  %v1571_v62 = vrot.slane %v1569_v37, 4  ;;  %v918_v4 = vor.u32 %v917_v46, %v10143_v45 }
  0xae   : > { %v501_v50 = vpop.f32.mrf.mxu2  ;;  %v721_v57 = vpop.f32.mrf.mxu3  ;;  %v921_v63 = vshll.u32 %v10148_v49, 16  ;;  %v909_v0 = vrot.slane %v908_v51, 4  ;;  %v1575_v6 = vshll.u32 %v10151_v54, 16  ;;  %v1226_v8 = vpack.c.b16 %v10124_v11, %v10122_v24 }
  0xaf   : > { %v10103_v36 = vadd.f32 %v721_v57, %v501_v50  ;;  %v1561_v50 = vrot.slane %v1559_v31, 5  ;;  %v2162_v5 = vrot.slane %v10106_v3, 5  ;;  %v1572_v15 = vor.u32 %v1571_v62, %v10153_v61 }
  0xb0   : > { %v2560_v19 = vrot.slane %v10118_v22, 5  ;;  %v919_v27 = vrot.slane %v918_v4, 4  ;;  %v923_v25 = vrot.slane %v921_v63, 5  ;;  %v926_v30 = vshrl.u32 %v769_v7, 16 }
  0xb1   : > { %v464_v9 = vpop.f32.mrf.mxu0  ;;  %v929_v24 = vshll.u32 %v769_v7, 16  ;;  %v914_v3 = vsel %vm9914_vm6, %v909_v0, %v10143_v45  ;;  %v1577_v31 = vrot.slane %v1575_v6, 5  ;;  %v2164_v22 = vrot.slane %v2162_v5, 4 }
  0xb2   : > { %v684_v10 = vpop.f32.mrf.mxu1  ;;  %v2165_v35 = vrot.slane %v10148_v49, 5  ;;  %v8608_v37 = vrot.slane %v2470_v18, 9  ;;  %v2563_v46 = vrot.slane %v10151_v54, 5  ;;  %v928_v45 = vrot.slane %v926_v30, 4 }
  0xb3   : > { %v10112_v16 = vadd.f32 %v684_v10, %v464_v9  ;;  %8540 = vmatmul.msk.bf16.gmra.mxu2 %vm392_vm1, %v1225_v52  ;;  %8557 = vmatmul.msk.bf16.gmra.mxu3 %vm392_vm1, %v1879_v58  ;;  %v2253_v52 = vunpack.c.l.b16 %v2159_v32  ;;  %v1562_v10 = vor.u32 %v1561_v50, %v1558_v56  ;;  %v8575_v32 = vrot.slane %v2069_v12, 9  ;;  %v10184_v56 = vld [vmem:[%s9799_s10 + $0x40] sm:$0xf] }
  0xb4   : > { %8590 = vmatmul.msk.bf16.gmra.mxu0 %vm392_vm1, %v2280_v55  ;;  %v1852_v55 = vunpack.c.l.b16 %v1554_v38  ;;  %v1573_v38 = vrot.slane %v1572_v15, 4  ;;  %v924_v49 = vsel %vm9914_vm6, %v919_v27, %v923_v25  ;;  %v10190_v50 = vunpack.c.l.b16 %v914_v3  ;;  %v10214_v15 = vld [vmem:[%s9804_s13 + $0x44] sm:$0x1] }
  0xb5   : > { %8623 = vmatmul.msk.bf16.gmra.mxu1 %vm392_vm1, %v2678_v60  ;;  %v2651_v60 = vunpack.c.l.b16 %v2557_v43  ;;  %v2281_v9 = vpack.c.b16 %v2253_v52, %v2252_v48  ;;  %v1563_v34 = vrot.slane %v1562_v10, 4  ;;  %v2562_v43 = vrot.slane %v2560_v19, 4  ;;  %v1426_v48 = vld [vmem:[%s9799_s10 + $0x3c] sm:$0xf] }
  0xb6   : > { %v504_v39 = vpop.f32.mrf.mxu2  ;;  %v724_v41 = vpop.f32.mrf.mxu3  ;;  %v1880_v13 = vpack.c.b16 %v1852_v55, %v1851_v23  ;;  %v935_v23 = vshll.u32 %v10169_v29, 16  ;;  %v931_v52 = vrot.slane %v929_v24, 5  ;;  %v2163_v54 = vsel %vm9920_vm7, %v8575_v32, %v2162_v5 }
  0xb7   : > { %v10145_v47 = vadd.f32 %v724_v41, %v504_v39  ;;  %v2679_v14 = vpack.c.b16 %v2651_v60, %v2650_v53  ;;  %v939_v53 = vshrl.u32 %v10169_v29, 16  ;;  %v1580_v55 = vshrl.u32 %v1426_v48, 16 }
  0xb8   : > { %v1583_v60 = vshll.u32 %v1426_v48, 16  ;;  %v1578_v62 = vsel %vm9914_vm6, %v1573_v38, %v1577_v31  ;;  %v2561_v4 = vsel %vm9920_vm7, %v8608_v37, %v2560_v19  ;;  %v1589_v63 = vshll.u32 %v10184_v56, 16  ;;  %v1428_v37 = vld [vmem:[%s9799_s10 + $0x44] sm:$0x1] }
  0xb9   : > { %v466_v57 = vpop.f32.mrf.mxu0  ;;  %v1593_v0 = vshrl.u32 %v10184_v56, 16  ;;  %v941_v10 = vrot.slane %v939_v53, 4  ;;  %v1200_v5 = vunpack.c.l.b16 %v924_v49  ;;  %v2652_v19 = vunpack.c.l.b16 %v2561_v4  ;;  %v2471_v49 = vld [vmem:[%s9799_s10 + $0x3c] sm:$0xe] }
  0xba   : > { %v686_v58 = vpop.f32.mrf.mxu1  ;;  %v1854_v30 = vunpack.c.l.b16 %v1578_v62  ;;  %v10216_v3 = vrot.slane %v1589_v63, 5  ;;  %v1599_v53 = vshll.u32 %v1428_v37, 16  ;;  %v10234_v62 = vld [vmem:[%s9804_s13 + $0x4c] sm:$0xf] }
  0xbb   : > { %v10155_v1 = vadd.f32 %v686_v58, %v466_v57  ;;  %v1568_v57 = vsel %vm9914_vm6, %v1563_v34, %v10153_v61  ;;  %v2166_v58 = vsel %vm9920_vm7, %v2164_v22, %v2165_v35  ;;  %v2564_v61 = vsel %vm9920_vm7, %v2562_v43, %v2563_v46  ;;  %v2070_v43 = vld [vmem:[%s9804_s13 + $0x3c] sm:$0xe] }
  0xbc   : > { %v1853_v18 = vunpack.c.l.b16 %v1568_v57  ;;  %v2653_v24 = vunpack.c.l.b16 %v2564_v61  ;;  %v1595_v31 = vrot.slane %v1593_v0, 4  ;;  %v945_v35 = vshll.u32 %v10214_v15, 16 }
  0xbd   : > { %v2169_v46 = vrot.slane %v10169_v29, 5  ;;  %v8576_v4 = vrot.slane %v2070_v43, 9  ;;  %v2172_v61 = vrot.slane %v10214_v15, 5 }
  0xbe   : > { %v506_v20 = vpop.f32.mrf.mxu2  ;;  %v726_v26 = vpop.f32.mrf.mxu3  ;;  %v1881_v48 = vpack.c.b16 %v1854_v30, %v1853_v18 }
  0xbf   : > { %v10171_v11 = vadd.f32 %v726_v26, %v506_v20  ;;  %v1582_v20 = vrot.slane %v1580_v55, 4  ;;  %v1585_v26 = vrot.slane %v1583_v60, 5  ;;  %v947_v55 = vrot.slane %v945_v35, 5 }
  0xc0   : > { %v2567_v60 = vrot.slane %v10184_v56, 5  ;;  %v959_v56 = vshll.u32 %v10234_v62, 16 }
  0xc1   : > { %v469_v39 = vpop.f32.mrf.mxu0  ;;  %v1586_v38 = vor.u32 %v1585_v26, %v1582_v20  ;;  %v2570_v20 = vrot.slane %v1428_v37, 5  ;;  %v1429_v26 = vld [vmem:[%s9799_s10 + $0x48] sm:$0xf] }
  0xc2   : > { %v689_v41 = vpop.f32.mrf.mxu1  ;;  %v1604_v43 = vshrl.u32 %v1429_v26, 16 }
  0xc3   : > { %v10180_v51 = vadd.f32 %v689_v41, %v469_v39  ;;  %8541 = vmatmul.msk.bf16.gmra.mxu2 %vm392_vm1, %v1226_v8  ;;  %8558 = vmatmul.msk.bf16.gmra.mxu3 %vm392_vm1, %v1880_v13  ;;  %v932_v8 = vor.u32 %v931_v52, %v928_v45  ;;  %v2254_v13 = vunpack.c.l.b16 %v2163_v54  ;;  %v1227_v39 = vpack.c.b16 %v1200_v5, %v10190_v50 }
  0xc4   : > { %8591 = vmatmul.msk.bf16.gmra.mxu0 %vm392_vm1, %v2281_v9  ;;  %v10209_v9 = vrot.slane %v935_v23, 5  ;;  %v772_v23 = vld [vmem:[%s9804_s13 + $0x48] sm:$0xf]  ;;  %v2680_v45 = vpack.c.b16 %v2653_v24, %v2652_v19  ;;  %v1596_v52 = vor.u32 %v1595_v31, %v10216_v3  ;;  %v2569_v19 = vrot.slane %v2567_v60, 4  ;;  %v10251_v24 = vld [vmem:[%s9799_s10 + $0x4c] sm:$0xf] }
  0xc5   : > { %8624 = vmatmul.msk.bf16.gmra.mxu1 %vm392_vm1, %v2679_v14  ;;  %v2255_v14 = vunpack.c.l.b16 %v2166_v58  ;;  %v933_v34 = vrot.slane %v932_v8, 4  ;;  %v950_v63 = vshrl.u32 %v772_v23, 16  ;;  %v953_v0 = vshll.u32 %v772_v23, 16 }
  0xc6   : > { %v509_v6 = vpop.f32.mrf.mxu2  ;;  %v729_v7 = vpop.f32.mrf.mxu3  ;;  %v942_v22 = vor.u32 %v941_v10, %v10209_v9  ;;  %v8609_v8 = vrot.slane %v2471_v49, 9  ;;  %v1597_v5 = vrot.slane %v1596_v52, 4  ;;  %v1617_v52 = vshrl.u32 %v10251_v24, 16 }
  0xc7   : > { %v10211_v12 = vadd.f32 %v729_v7, %v509_v6  ;;  %v2282_v41 = vpack.c.b16 %v2255_v14, %v2254_v13  ;;  %v938_v58 = vsel %vm9914_vm6, %v933_v34, %v10209_v9  ;;  %v1587_v6 = vrot.slane %v1586_v38, 4 }
  0xc8   : > { %v943_v50 = vrot.slane %v942_v22, 4  ;;  %v2171_v7 = vrot.slane %v2169_v46, 4  ;;  %v1601_v13 = vrot.slane %v1599_v53, 5  ;;  %v963_v14 = vshrl.u32 %v10234_v62, 16 }
  0xc9   : > { %13102 = vst [vmem:[#allocation2_spill] sm:$0xff] %v10211_v12  ;;  %v471_v27 = vpop.f32.mrf.mxu0  ;;  %v955_v30 = vrot.slane %v953_v0, 5  ;;  %v10255_v31 = vunpack.c.l.b16 %v938_v58  ;;  %v1592_v34 = vsel %vm9914_vm6, %v1587_v6, %v10216_v3  ;;  %v2568_v35 = vsel %vm9920_vm7, %v8609_v8, %v2567_v60 }
  0xca   : > { %v691_v25 = vpop.f32.mrf.mxu1  ;;  %v948_v15 = vsel %vm9914_vm6, %v943_v50, %v947_v55  ;;  %v2173_v22 = vsel %vm9920_vm7, %v2171_v7, %v2172_v61  ;;  %v1602_v37 = vsel %vm9914_vm6, %v1597_v5, %v1601_v13  ;;  %v965_v38 = vrot.slane %v963_v14, 4  ;;  %v10280_v61 = vld [vmem:[%s9799_s10 + $0x50] sm:$0x1] }
  0xcb   : > { %v10218_v32 = vadd.f32 %v691_v25, %v471_v27  ;;  %v2170_v27 = vsel %vm9920_vm7, %v8576_v4, %v2169_v46  ;;  %v952_v25 = vrot.slane %v950_v63, 4  ;;  %v2571_v3 = vsel %vm9920_vm7, %v2569_v19, %v2570_v20 }
  0xcc   : > { %v1202_v49 = vunpack.c.l.b16 %v948_v15  ;;  %v1855_v58 = vunpack.c.l.b16 %v1592_v34  ;;  %v2257_v50 = vunpack.c.l.b16 %v2173_v22  ;;  %v2654_v55 = vunpack.c.l.b16 %v2568_v35  ;;  %v2071_v34 = vld [vmem:[%s9804_s13 + $0x48] sm:$0xe] }
  0xcd   : > { %v1856_v0 = vunpack.c.l.b16 %v1602_v37  ;;  %v2655_v6 = vunpack.c.l.b16 %v2571_v3  ;;  %v1606_v8 = vrot.slane %v1604_v43, 4  ;;  %v1619_v13 = vrot.slane %v1617_v52, 4 }
  0xce   : > { %v511_v54 = vpop.f32.mrf.mxu2  ;;  %v731_v57 = vpop.f32.mrf.mxu3  ;;  %v1228_v19 = vpack.c.b16 %v1202_v49, %v10255_v31  ;;  %v2176_v15 = vrot.slane %v10234_v62, 5  ;;  %v8577_v52 = vrot.slane %v2071_v34, 9 }
  0xcf   : > { %v10236_v29 = vadd.f32 %v731_v57, %v511_v54  ;;  %v2256_v54 = vunpack.c.l.b16 %v2170_v27  ;;  %v956_v57 = vor.u32 %v955_v30, %v952_v25  ;;  %v10290_v27 = vld [vmem:[%s9804_s13 + $0x58] sm:$0xf]  ;;  %v1623_v30 = vshll.u32 %v10280_v61, 16 }
  0xd0   : > { %v1882_v43 = vpack.c.b16 %v1856_v0, %v1855_v58  ;;  %v2178_v49 = vrot.slane %v2176_v15, 4  ;;  %v1432_v58 = vld [vmem:[%s9799_s10 + $0x54] sm:$0xf] }
  0xd1   : > { %13103 = vst [vmem:[#allocation3_spill] sm:$0xff] %v10236_v29  ;;  %v474_v10 = vpop.f32.mrf.mxu0  ;;  %v957_v14 = vrot.slane %v956_v57, 4  ;;  %v2283_v20 = vpack.c.b16 %v2257_v50, %v2256_v54  ;;  %v2574_v57 = vrot.slane %v10251_v24, 5 }
  0xd2   : > { %v694_v9 = vpop.f32.mrf.mxu1 }
  0xd3   : > { %v10241_v18 = vadd.f32 %v694_v9, %v474_v10  ;;  %8542 = vmatmul.msk.bf16.gmra.mxu2 %vm392_vm1, %v1227_v39  ;;  %8559 = vmatmul.msk.bf16.gmra.mxu3 %vm392_vm1, %v1881_v48  ;;  %v10267_v39 = vld [vmem:[%s9804_s13 + $0x50] sm:$0x1]  ;;  %v1607_v48 = vshll.u32 %v1429_v26, 16  ;;  %v2576_v34 = vrot.slane %v2574_v57, 4 }
  0xd4   : > { %8592 = vmatmul.msk.bf16.gmra.mxu0 %vm392_vm1, %v2282_v41  ;;  %v10269_v41 = vrot.slane %v959_v56, 5  ;;  %v969_v60 = vshll.u32 %v10267_v39, 16  ;;  %v775_v56 = vld [vmem:[%s9804_s13 + $0x54] sm:$0xf]  ;;  %v2179_v54 = vrot.slane %v10267_v39, 5 }
  0xd5   : > { %8625 = vmatmul.msk.bf16.gmra.mxu1 %vm392_vm1, %v2680_v45  ;;  %v1613_v45 = vshll.u32 %v10251_v24, 16  ;;  %v1609_v9 = vrot.slane %v1607_v48, 5  ;;  %v974_v22 = vshrl.u32 %v775_v56, 16  ;;  %v977_v35 = vshll.u32 %v775_v56, 16  ;;  %v10313_v39 = vld [vmem:[%s9799_s10 + $0x58] sm:$0xf] }
  0xd6   : > { %v514_v46 = vpop.f32.mrf.mxu2  ;;  %v734_v23 = vpop.f32.mrf.mxu3  ;;  %v966_v7 = vor.u32 %v965_v38, %v10269_v41  ;;  %v971_v26 = vrot.slane %v969_v60, 5  ;;  %v962_v62 = vsel %vm9914_vm6, %v957_v14, %v10269_v41  ;;  %v983_v48 = vshll.u32 %v10290_v27, 16  ;;  %v2472_v41 = vld [vmem:[%s9799_s10 + $0x48] sm:$0xe]  ;;  %v10318_v24 = vld [vmem:[%s9804_s13 + $0x5c] sm:$0x1] }
  0xd7   : > { %v10275_v53 = vadd.f32 %v734_v23, %v514_v46  ;;  %v10284_v5 = vrot.slane %v1613_v45, 5  ;;  %v2681_v46 = vpack.c.b16 %v2655_v6, %v2654_v55  ;;  %v1610_v23 = vor.u32 %v1609_v9, %v1606_v8 }
  0xd8   : > { %v967_v25 = vrot.slane %v966_v7, 4  ;;  %v987_v45 = vshrl.u32 %v10290_v27, 16  ;;  %v979_v0 = vrot.slane %v977_v35, 5  ;;  %v10310_v7 = vunpack.c.l.b16 %v962_v62 }
  0xd9   : > { %13104 = vst [vmem:[#allocation4_spill] sm:$0xff] %v10275_v53  ;;  %v476_v4 = vpop.f32.mrf.mxu0  ;;  %v1620_v31 = vor.u32 %v1619_v13, %v10284_v5  ;;  %v1611_v8 = vrot.slane %v1610_v23, 4  ;;  %v10320_v13 = vrot.slane %v983_v48, 5  ;;  %v1628_v14 = vshrl.u32 %v1432_v58, 16  ;;  %v10343_v48 = vld [vmem:[%s9799_s10 + $0x5c] sm:$0x1] }
  0xda   : > { %v696_v63 = vpop.f32.mrf.mxu1  ;;  %v972_v60 = vsel %vm9914_vm6, %v967_v25, %v971_v26  ;;  %v989_v56 = vrot.slane %v987_v45, 4  ;;  %v1631_v26 = vshll.u32 %v1432_v58, 16  ;;  %v2177_v25 = vsel %vm9920_vm7, %v8577_v52, %v2176_v15 }
  0xdb   : > { %v10282_v10 = vadd.f32 %v696_v63, %v476_v4  ;;  %v1625_v4 = vrot.slane %v1623_v30, 5  ;;  %v976_v63 = vrot.slane %v974_v22, 4  ;;  %v1621_v9 = vrot.slane %v1620_v31, 4 }
  0xdc   : > { %v8610_v30 = vrot.slane %v2472_v41, 9  ;;  %v2577_v22 = vrot.slane %v10280_v61, 5  ;;  %v10331_v23 = vunpack.c.l.b16 %v972_v60  ;;  %v1616_v15 = vsel %vm9914_vm6, %v1611_v8, %v10284_v5 }
  0xdd   : > { %v980_v35 = vor.u32 %v979_v0, %v976_v63  ;;  %v993_v31 = vshll.u32 %v10318_v24, 16  ;;  %v990_v61 = vor.u32 %v989_v56, %v10320_v13  ;;  %v1630_v45 = vrot.slane %v1628_v14, 4  ;;  %v778_v56 = vld [vmem:[%s9804_s13 + $0x60] sm:$0xf] }
  0xde   : > { %v516_v37 = vpop.f32.mrf.mxu2  ;;  %v736_v38 = vpop.f32.mrf.mxu3  ;;  %v1633_v52 = vrot.slane %v1631_v26, 5  ;;  %v2575_v58 = vsel %vm9920_vm7, %v8610_v30, %v2574_v57  ;;  %v1857_v0 = vunpack.c.l.b16 %v1616_v15  ;;  %v1229_v57 = vpack.c.b16 %v10331_v23, %v10310_v7 }
  0xdf   : > { %v10295_v3 = vadd.f32 %v736_v38, %v516_v37  ;;  %v1637_v37 = vshll.u32 %v10313_v39, 16  ;;  %v1641_v38 = vshrl.u32 %v10313_v39, 16  ;;  %v981_v60 = vrot.slane %v980_v35, 4  ;;  %v2072_v35 = vld [vmem:[%s9804_s13 + $0x54] sm:$0xe] }
  0xe0   : > { %v991_v14 = vrot.slane %v990_v61, 4  ;;  %v995_v26 = vrot.slane %v993_v31, 5  ;;  %v1001_v7 = vshll.u32 %v778_v56, 16 }
  0xe1   : > { %13105 = vst [vmem:[#allocation5_spill] sm:$0xff] %v10295_v3  ;;  %v479_v50 = vpop.f32.mrf.mxu0  ;;  %v1643_v41 = vrot.slane %v1641_v38, 4  ;;  %v986_v38 = vsel %vm9914_vm6, %v981_v60, %v10320_v13  ;;  %v1435_v60 = vld [vmem:[%s9799_s10 + $0x60] sm:$0xf]  ;;  %v1438_v3 = vld [vmem:[%s9799_s10 + $0x6c] sm:$0xf] }
  0xe2   : > { %v699_v55 = vpop.f32.mrf.mxu1 }
  0xe3   : > { %v10308_v6 = vadd.f32 %v699_v55, %v479_v50  ;;  %8543 = vmatmul.msk.bf16.gmra.mxu2 %vm392_vm1, %v1228_v19  ;;  %8560 = vmatmul.msk.bf16.gmra.mxu3 %vm392_vm1, %v1882_v43  ;;  %v2180_v19 = vsel %vm9920_vm7, %v2178_v49, %v2179_v54  ;;  %v2258_v49 = vunpack.c.l.b16 %v2177_v25  ;;  %v2578_v55 = vsel %vm9920_vm7, %v2576_v34, %v2577_v22 }
  0xe4   : > { %8593 = vmatmul.msk.bf16.gmra.mxu0 %vm392_vm1, %v2283_v20  ;;  %v2259_v54 = vunpack.c.l.b16 %v2180_v19  ;;  %v1634_v25 = vor.u32 %v1633_v52, %v1630_v45  ;;  %v10358_v19 = vld [vmem:[%s9804_s13 + $0x64] sm:$0xf]  ;;  %v2656_v34 = vunpack.c.l.b16 %v2575_v58  ;;  %v2657_v22 = vunpack.c.l.b16 %v2578_v55  ;;  %v2473_v55 = vld [vmem:[%s9799_s10 + $0x54] sm:$0xe] }
  0xe5   : > { %8626 = vmatmul.msk.bf16.gmra.mxu1 %vm392_vm1, %v2681_v46  ;;  %v1626_v46 = vsel %vm9914_vm6, %v1621_v9, %v1625_v4  ;;  %v10349_v4 = vrot.slane %v1637_v37, 5  ;;  %v1647_v9 = vshll.u32 %v10343_v48, 16  ;;  %v2183_v37 = vrot.slane %v10290_v27, 5 }
  0xe6   : > { %v519_v43 = vpop.f32.mrf.mxu2  ;;  %v739_v20 = vpop.f32.mrf.mxu3  ;;  %v1858_v8 = vunpack.c.l.b16 %v1626_v46  ;;  %v2284_v30 = vpack.c.b16 %v2259_v54, %v2258_v49  ;;  %v1007_v61 = vshll.u32 %v10358_v19, 16  ;;  %v1011_v45 = vshrl.u32 %v10358_v19, 16 }
  0xe7   : > { %v10339_v62 = vadd.f32 %v739_v20, %v519_v43  ;;  %v1644_v43 = vor.u32 %v1643_v41, %v10349_v4  ;;  %v998_v20 = vshrl.u32 %v778_v56, 16  ;;  %v1649_v31 = vrot.slane %v1647_v9, 5 }
  0xe8   : > { %v1883_v46 = vpack.c.b16 %v1858_v8, %v1857_v0  ;;  %v996_v27 = vsel %vm9914_vm6, %v991_v14, %v995_v26  ;;  %v1635_v13 = vrot.slane %v1634_v25, 4  ;;  %v8578_v49 = vrot.slane %v2072_v35, 9 }
  0xe9   : > { %13106 = vst [vmem:[#allocation6_spill] sm:$0xff] %v10339_v62  ;;  %v481_v5 = vpop.f32.mrf.mxu0  ;;  %v2682_v54 = vpack.c.b16 %v2657_v22, %v2656_v34  ;;  %v10372_v58 = vunpack.c.l.b16 %v986_v38  ;;  %v1645_v8 = vrot.slane %v1644_v43, 4  ;;  %v2581_v9 = vrot.slane %v10313_v39, 5  ;;  %v10395_v22 = vld [vmem:[%s9804_s13 + $0x68] sm:$0x1] }
  0xea   : > { %v701_v50 = vpop.f32.mrf.mxu1  ;;  %v1000_v56 = vrot.slane %v998_v20, 4  ;;  %v10383_v26 = vunpack.c.l.b16 %v996_v27  ;;  %v10385_v25 = vrot.slane %v1007_v61, 5  ;;  %v1013_v34 = vrot.slane %v1011_v45, 4 }
  0xeb   : > { %v10351_v63 = vadd.f32 %v701_v50, %v481_v5  ;;  %v2185_v5 = vrot.slane %v2183_v37, 4  ;;  %v2186_v50 = vrot.slane %v10318_v24, 5  ;;  %v1640_v24 = vsel %vm9914_vm6, %v1635_v13, %v10349_v4 }
  0xec   : > { %v2184_v39 = vsel %vm9920_vm7, %v8578_v49, %v2183_v37  ;;  %v1652_v35 = vshrl.u32 %v1435_v60, 16  ;;  %v1655_v38 = vshll.u32 %v1435_v60, 16  ;;  %v8611_v43 = vrot.slane %v2473_v55, 9 }
  0xed   : > { %v1650_v4 = vsel %vm9914_vm6, %v1645_v8, %v1649_v31  ;;  %v2583_v37 = vrot.slane %v2581_v9, 4  ;;  %v2260_v13 = vunpack.c.l.b16 %v2184_v39  ;;  %v1014_v49 = vor.u32 %v1013_v34, %v10385_v25 }
  0xee   : > { %v521_v23 = vpop.f32.mrf.mxu2  ;;  %v741_v15 = vpop.f32.mrf.mxu3  ;;  %v1654_v55 = vrot.slane %v1652_v35, 4  ;;  %v1657_v31 = vrot.slane %v1655_v38, 5  ;;  %v1860_v60 = vunpack.c.l.b16 %v1650_v4 }
  0xef   : > { %v10368_v52 = vadd.f32 %v741_v15, %v521_v23  ;;  %v1003_v23 = vrot.slane %v1001_v7, 5  ;;  %v10379_v15 = vld [vmem:[%s9799_s10 + $0x64] sm:$0xf]  ;;  %v1015_v35 = vrot.slane %v1014_v49, 4  ;;  %v2474_v49 = vld [vmem:[%s9799_s10 + $0x60] sm:$0xe] }
  0xf0   : > { %v1661_v20 = vshll.u32 %v10379_v15, 16  ;;  %v1665_v7 = vshrl.u32 %v10379_v15, 16  ;;  %v1658_v4 = vor.u32 %v1657_v31, %v1654_v55 }
  0xf1   : > { %13107 = vst [vmem:[#allocation7_spill] sm:$0xff] %v10368_v52  ;;  %v484_v41 = vpop.f32.mrf.mxu0  ;;  %v1004_v61 = vor.u32 %v1003_v23, %v1000_v56 }
  0xf2   : > { %v704_v0 = vpop.f32.mrf.mxu1 }
  0xf3   : > { %v10381_v14 = vadd.f32 %v704_v0, %v484_v41  ;;  %8544 = vmatmul.msk.bf16.gmra.mxu2 %vm392_vm1, %v1229_v57  ;;  %8561 = vmatmul.msk.bf16.gmra.mxu3 %vm392_vm1, %v1883_v46  ;;  %v2187_v57 = vsel %vm9920_vm7, %v2185_v5, %v2186_v50  ;;  %v2584_v46 = vrot.slane %v10343_v48, 5  ;;  %v2582_v48 = vsel %vm9920_vm7, %v8611_v43, %v2581_v9  ;;  %v781_v9 = vld [vmem:[%s9804_s13 + $0x6c] sm:$0xf] }
  0xf4   : > { %8594 = vmatmul.msk.bf16.gmra.mxu0 %vm392_vm1, %v2284_v30  ;;  %v10406_v30 = vunpack.c.l.b16 %v1640_v24  ;;  %v2261_v50 = vunpack.c.l.b16 %v2187_v57  ;;  %v10414_v41 = vrot.slane %v1661_v20, 5  ;;  %v1667_v0 = vrot.slane %v1665_v7, 4  ;;  %v1437_v24 = vld [vmem:[%s9799_s10 + $0x68] sm:$0x1] }
  0xf5   : > { %8627 = vmatmul.msk.bf16.gmra.mxu1 %vm392_vm1, %v2682_v54  ;;  %v1017_v54 = vshll.u32 %v10395_v22, 16  ;;  %v2585_v23 = vsel %vm9920_vm7, %v2583_v37, %v2584_v46  ;;  %v1005_v34 = vrot.slane %v1004_v61, 4  ;;  %v2190_v57 = vrot.slane %v10358_v19, 5 }
  0xf6   : > { %v524_v45 = vpop.f32.mrf.mxu2  ;;  %v744_v27 = vpop.f32.mrf.mxu3  ;;  %v1230_v43 = vpack.c.b16 %v10383_v26, %v10372_v58  ;;  %v2285_v20 = vpack.c.b16 %v2261_v50, %v2260_v13  ;;  %v2658_v7 = vunpack.c.l.b16 %v2582_v48  ;;  %v1884_v37 = vpack.c.b16 %v1860_v60, %v10406_v30 }
  0xf7   : > { %v10410_v5 = vadd.f32 %v744_v27, %v524_v45  ;;  %v1019_v38 = vrot.slane %v1017_v54, 5  ;;  %v2073_v45 = vld [vmem:[%s9804_s13 + $0x60] sm:$0xe]  ;;  %v2659_v46 = vunpack.c.l.b16 %v2585_v23  ;;  %v1668_v61 = vor.u32 %v1667_v0, %v10414_v41 }
  0xf8   : > { %v1671_v27 = vshll.u32 %v1437_v24, 16  ;;  %v1010_v19 = vsel %vm9914_vm6, %v1005_v34, %v10385_v25  ;;  %v2588_v54 = vrot.slane %v10379_v15, 5  ;;  %v1022_v58 = vshrl.u32 %v781_v9, 16 }
  0xf9   : > { %13108 = vst [vmem:[#allocation8_spill] sm:$0xff] %v10410_v5  ;;  %v486_v8 = vpop.f32.mrf.mxu0  ;;  %v1025_v26 = vshll.u32 %v781_v9, 16  ;;  %v1020_v30 = vsel %vm9914_vm6, %v1015_v35, %v1019_v38  ;;  %v8579_v55 = vrot.slane %v2073_v45, 9  ;;  %v2192_v31 = vrot.slane %v2190_v57, 4 }
  0xfa   : > { %v706_v56 = vpop.f32.mrf.mxu1  ;;  %v2193_v60 = vrot.slane %v10395_v22, 5  ;;  %v1659_v0 = vrot.slane %v1658_v4, 4  ;;  %v2683_v15 = vpack.c.b16 %v2659_v46, %v2658_v7  ;;  %v1669_v23 = vrot.slane %v1668_v61, 4  ;;  %v10453_v46 = vld [vmem:[%s9799_s10 + $0x70] sm:$0xf] }
  0xfb   : > { %v10419_v39 = vadd.f32 %v706_v56, %v486_v8  ;;  %v10429_v8 = vld [vmem:[%s9804_s13 + $0x70] sm:$0xf]  ;;  %v1673_v34 = vrot.slane %v1671_v27, 5  ;;  %v8612_v9 = vrot.slane %v2474_v49, 9  ;;  %v2590_v35 = vrot.slane %v2588_v54, 4 }
  0xfc   : > { %v1031_v25 = vshll.u32 %v10429_v8, 16  ;;  %v1035_v56 = vshrl.u32 %v10429_v8, 16  ;;  %v2591_v38 = vrot.slane %v1437_v24, 5  ;;  %v1024_v45 = vrot.slane %v1022_v58, 4 }
  0xfd   : > { %v1027_v62 = vrot.slane %v1025_v26, 5  ;;  %v10446_v4 = vunpack.c.l.b16 %v1010_v19  ;;  %v2191_v7 = vsel %vm9920_vm7, %v8579_v55, %v2190_v57  ;;  %v1664_v24 = vsel %vm9914_vm6, %v1659_v0, %v10414_v41 }
  0xfe   : > { %v526_v13 = vpop.f32.mrf.mxu2  ;;  %v746_v50 = vpop.f32.mrf.mxu3  ;;  %v1037_v61 = vrot.slane %v1035_v56, 4  ;;  %v1674_v57 = vsel %vm9914_vm6, %v1669_v23, %v1673_v34  ;;  %v1676_v41 = vshrl.u32 %v1438_v3, 16  ;;  %v1679_v27 = vshll.u32 %v1438_v3, 16  ;;  %v10482_v3 = vld [vmem:[%s9799_s10 + $0x74] sm:$0x1] }
  0xff   : > { %v10439_v48 = vadd.f32 %v746_v50, %v526_v13  ;;  %v10448_v13 = vunpack.c.l.b16 %v1020_v30  ;;  %v2592_v19 = vsel %vm9920_vm7, %v2590_v35, %v2591_v38  ;;  %v1028_v49 = vor.u32 %v1027_v62, %v1024_v45  ;;  %v784_v56 = vld [vmem:[%s9804_s13 + $0x78] sm:$0xf]  ;;  %v10490_v35 = vld [vmem:[%s9804_s13 + $0x7c] sm:$0xf] }
 0x100   : > { %v1689_v58 = vshrl.u32 %v10453_v46, 16  ;;  %v2262_v55 = vunpack.c.l.b16 %v2191_v7  ;;  %v2661_v23 = vunpack.c.l.b16 %v2592_v19  ;;  %v1678_v34 = vrot.slane %v1676_v41, 4 }
 0x101   : > { %13109 = vst [vmem:[#allocation9_spill] sm:$0xff] %v10439_v48  ;;  %v489_v5 = vpop.f32.mrf.mxu0  ;;  %v1029_v7 = vrot.slane %v1028_v49, 4  ;;  %v1049_v19 = vshll.u32 %v784_v56, 16  ;;  %v1055_v30 = vshll.u32 %v10490_v35, 16 }
 0x102   : > { %v709_v52 = vpop.f32.mrf.mxu1 }
 0x103   : > { %v10444_v22 = vadd.f32 %v709_v52, %v489_v5  ;;  %8545 = vmatmul.msk.bf16.gmra.mxu2 %vm392_vm1, %v1230_v43  ;;  %8562 = vmatmul.msk.bf16.gmra.mxu3 %vm392_vm1, %v1884_v37  ;;  %v2194_v52 = vsel %vm9920_vm7, %v2192_v31, %v2193_v60  ;;  %v10462_v5 = vrot.slane %v1031_v25, 5  ;;  %v2589_v43 = vsel %vm9920_vm7, %v8612_v9, %v2588_v54  ;;  %v10471_v37 = vld [vmem:[%s9804_s13 + $0x74] sm:$0x1] }
 0x104   : > { %8595 = vmatmul.msk.bf16.gmra.mxu0 %vm392_vm1, %v2285_v20  ;;  %v1685_v20 = vshll.u32 %v10453_v46, 16  ;;  %v10479_v54 = vunpack.c.l.b16 %v1664_v24  ;;  %v2263_v31 = vunpack.c.l.b16 %v2194_v52  ;;  %v2660_v62 = vunpack.c.l.b16 %v2589_v43  ;;  %v2074_v43 = vld [vmem:[%s9804_s13 + $0x6c] sm:$0xe] }
 0x105   : > { %8628 = vmatmul.msk.bf16.gmra.mxu1 %vm392_vm1, %v2683_v15  ;;  %v1038_v0 = vor.u32 %v1037_v61, %v10462_v5  ;;  %v1041_v25 = vshll.u32 %v10471_v37, 16  ;;  %v1862_v15 = vunpack.c.l.b16 %v1674_v57  ;;  %v1681_v9 = vrot.slane %v1679_v27, 5 }
 0x106   : > { %v529_v26 = vpop.f32.mrf.mxu2  ;;  %v749_v50 = vpop.f32.mrf.mxu3  ;;  %v10492_v24 = vrot.slane %v1685_v20, 5  ;;  %v1691_v52 = vrot.slane %v1689_v58, 4  ;;  %v1046_v57 = vshrl.u32 %v784_v56, 16  ;;  %v2286_v20 = vpack.c.b16 %v2263_v31, %v2262_v55  ;;  %v1441_v31 = vld [vmem:[%s9799_s10 + $0x78] sm:$0xf] }
 0x107   : > { %v10484_v60 = vadd.f32 %v749_v50, %v529_v26  ;;  %v1695_v26 = vshll.u32 %v10482_v3, 16  ;;  %v2197_v50 = vrot.slane %v10429_v8, 5  ;;  %v1039_v41 = vrot.slane %v1038_v0, 4  ;;  %v2475_v0 = vld [vmem:[%s9799_s10 + $0x6c] sm:$0xe] }
 0x108   : > { %v1043_v27 = vrot.slane %v1041_v25, 5  ;;  %v1885_v49 = vpack.c.b16 %v1862_v15, %v10479_v54  ;;  %v1682_v58 = vor.u32 %v1681_v9, %v1678_v34  ;;  %v8580_v48 = vrot.slane %v2074_v43, 9 }
 0x109   : > { %13110 = vst [vmem:[#allocation10_spill] sm:$0xff] %v10484_v60  ;;  %v491_v38 = vpop.f32.mrf.mxu0  ;;  %v1059_v60 = vshrl.u32 %v10490_v35, 16  ;;  %v2684_v53 = vpack.c.b16 %v2661_v23, %v2660_v62  ;;  %v1034_v8 = vsel %vm9914_vm6, %v1029_v7, %v10462_v5  ;;  %v1692_v56 = vor.u32 %v1691_v52, %v10492_v24  ;;  %v10514_v23 = vld [vmem:[%s9804_s13 + $0x80] sm:$0x1] }
 0x10a   : > { %v711_v45 = vpop.f32.mrf.mxu1  ;;  %v2595_v25 = vrot.slane %v10453_v46, 5  ;;  %v1697_v29 = vrot.slane %v1695_v26, 5  ;;  %v2199_v12 = vrot.slane %v2197_v50, 4  ;;  %v1048_v54 = vrot.slane %v1046_v57, 4  ;;  %v10524_v26 = vld [vmem:[%s9799_s10 + $0x7c] sm:$0xf] }
 0x10b   : > { %v10496_v61 = vadd.f32 %v711_v45, %v491_v38  ;;  %v1051_v55 = vrot.slane %v1049_v19, 5  ;;  %v1044_v62 = vsel %vm9914_vm6, %v1039_v41, %v1043_v27  ;;  %v10516_v5 = vrot.slane %v1055_v30, 5 }
 0x10c   : > { %v1061_v34 = vrot.slane %v1059_v60, 4  ;;  %v1683_v9 = vrot.slane %v1682_v58, 4  ;;  %v10520_v46 = vsel %vm9920_vm7, %v8580_v48, %v2197_v50  ;;  %v2200_v7 = vrot.slane %v10471_v37, 5 }
 0x10d   : > { %v8613_v52 = vrot.slane %v2475_v0, 9  ;;  %v1693_v19 = vrot.slane %v1692_v56, 4  ;;  %v2597_v41 = vrot.slane %v2595_v25, 4  ;;  %v2598_v27 = vrot.slane %v10482_v3, 5 }
 0x10e   : > { %v531_v38 = vpop.f32.mrf.mxu2  ;;  %v751_v45 = vpop.f32.mrf.mxu3  ;;  %v1700_v30 = vshrl.u32 %v1441_v31, 16  ;;  %v1065_v60 = vshll.u32 %v10514_v23, 16  ;;  %v1703_v58 = vshll.u32 %v1441_v31, 16  ;;  %v13112_v48 = vpack.c.b16 %v10448_v13, %v10446_v4 }
 0x10f   : > { %v10509_v15 = vadd.f32 %v751_v45, %v531_v38  ;;  %v1052_v38 = vor.u32 %v1051_v55, %v1048_v54  ;;  %v10535_v37 = vunpack.c.l.b16 %v1034_v8  ;;  %v1062_v50 = vor.u32 %v1061_v34, %v10516_v5  ;;  %v10557_v45 = vld [vmem:[%s9799_s10 + $0x80] sm:$0x1] }
 0x110   : > { %v1709_v56 = vshll.u32 %v10524_v26, 16  ;;  %v1713_v3 = vshrl.u32 %v10524_v26, 16  ;;  %v10542_v0 = vunpack.c.l.b16 %v1044_v62  ;;  %v1688_v4 = vsel %vm9914_vm6, %v1683_v9, %v10492_v24 }
 0x111   : > { %13111 = vst [vmem:[#allocation11_spill] sm:$0xff] %v10509_v15  ;;  %v2354_v43 = vpop.f32.mrf.mxu0  ;;  %v2201_v13 = vsel %vm9920_vm7, %v2199_v12, %v2200_v7  ;;  %v1698_v8 = vsel %vm9914_vm6, %v1693_v19, %v1697_v29  ;;  %v1702_v54 = vrot.slane %v1700_v30, 4  ;;  %v1053_v31 = vrot.slane %v1052_v38, 4 }
 0x112   : > { %v10526_v57 = vpop.f32.mrf.mxu1  ;;  %v1067_v62 = vrot.slane %v1065_v60, 5  ;;  %v1705_v12 = vrot.slane %v1703_v58, 5  ;;  %v2204_v34 = vrot.slane %v10490_v35, 5  ;;  %v10561_v29 = vrot.slane %v1709_v56, 5 }
 0x113   : > { %8546 = vmatmul.msk.bf16.gmra.mxu2 %vm392_vm1, %v13112_v48  ;;  %8563 = vmatmul.msk.bf16.gmra.mxu3 %vm392_vm1, %v1885_v49  ;;  %v2264_v49 = vunpack.c.l.b16 %v10520_v46  ;;  %v1063_v46 = vrot.slane %v1062_v50, 4  ;;  %v1715_v7 = vrot.slane %v1713_v3, 4  ;;  %v1864_v19 = vunpack.c.l.b16 %v1698_v8 }
 0x114   : > { %8596 = vmatmul.msk.bf16.gmra.mxu0 %vm392_vm1, %v2286_v20  ;;  %v2596_v20 = vsel %vm9920_vm7, %v8613_v52, %v2595_v25  ;;  %v2075_v25 = vld [vmem:[%s9804_s13 + $0x78] sm:$0xe]  ;;  %v1863_v52 = vunpack.c.l.b16 %v1688_v4  ;;  %v1232_v35 = vpack.c.b16 %v10542_v0, %v10535_v37  ;;  %v1058_v48 = vsel %vm9914_vm6, %v1053_v31, %v10516_v5  ;;  %v787_v4 = vld [vmem:[%s9804_s13 + $0x84] sm:$0xf] }
 0x115   : > { %8629 = vmatmul.msk.bf16.gmra.mxu1 %vm392_vm1, %v2684_v53  ;;  %v2599_v53 = vsel %vm9920_vm7, %v2597_v41, %v2598_v27  ;;  %v2265_v41 = vunpack.c.l.b16 %v2201_v13  ;;  %v1719_v27 = vshll.u32 %v10557_v45, 16  ;;  %v1706_v50 = vor.u32 %v1705_v12, %v1702_v54  ;;  %v2476_v0 = vld [vmem:[%s9799_s10 + $0x78] sm:$0xe]  ;;  %v10582_v12 = vld [vmem:[%s9804_s13 + $0x88] sm:$0xf] }
 0x116   : > { %v1299_v55 = vpop.f32.mrf.mxu2  ;;  %v1953_v24 = vpop.f32.mrf.mxu3  ;;  %v2663_v58 = vunpack.c.l.b16 %v2599_v53  ;;  %v8581_v56 = vrot.slane %v2075_v25, 9  ;;  %v2206_v3 = vrot.slane %v2204_v34, 4  ;;  %v1068_v8 = vsel %vm9914_vm6, %v1063_v46, %v1067_v62  ;;  %v1444_v25 = vld [vmem:[%s9799_s10 + $0x84] sm:$0xf] }
 0x117   : > { %v1379_v9 = vadd.f32 %v1299_v55, %v9976_v42  ;;  %v2662_v42 = vunpack.c.l.b16 %v2596_v20  ;;  %v1716_v55 = vor.u32 %v1715_v7, %v10561_v29  ;;  %v2207_v37 = vrot.slane %v10514_v23, 5 }
 0x118   : > { %v1886_v20 = vpack.c.b16 %v1864_v19, %v1863_v52  ;;  %v2287_v53 = vpack.c.b16 %v2265_v41, %v2264_v49  ;;  %v2602_v5 = vrot.slane %v10524_v26, 5  ;;  %v10579_v54 = vunpack.c.l.b16 %v1058_v48 }
 0x119   : > { %v2033_v30 = vadd.f32 %v1953_v24, %v1379_v9  ;;  %v2356_v38 = vpop.f32.mrf.mxu0  ;;  %v1721_v24 = vrot.slane %v1719_v27, 5  ;;  %v2685_v31 = vpack.c.b16 %v2663_v58, %v2662_v42  ;;  %v1073_v9 = vshll.u32 %v787_v4, 16 }
 0x11a   : > { %v10565_v60 = vpop.f32.mrf.mxu1  ;;  %v10585_v7 = vunpack.c.l.b16 %v1068_v8  ;;  %v1707_v23 = vrot.slane %v1706_v50, 4  ;;  %v2205_v49 = vsel %vm9920_vm7, %v8581_v56, %v2204_v34  ;;  %v8614_v52 = vrot.slane %v2476_v0, 9 }
 0x11b   : > { %v2434_v13 = vadd.f32 %v2354_v43, %v2033_v30  ;;  %v1070_v43 = vshrl.u32 %v787_v4, 16  ;;  %v1717_v19 = vrot.slane %v1716_v55, 4  ;;  %v2208_v41 = vsel %vm9920_vm7, %v2206_v3, %v2207_v37  ;;  %v10594_v30 = vld [vmem:[%s9799_s10 + $0x88] sm:$0xf] }
 0x11c   : > { %v2605_v27 = vrot.slane %v10557_v45, 5  ;;  %v2604_v42 = vrot.slane %v2602_v5, 4  ;;  %v1079_v58 = vshll.u32 %v10582_v12, 16  ;;  %v1083_v48 = vshrl.u32 %v10582_v12, 16 }
 0x11d   : > { %v1724_v50 = vshrl.u32 %v1444_v25, 16  ;;  %v1072_v56 = vrot.slane %v1070_v43, 4  ;;  %v1727_v55 = vshll.u32 %v1444_v25, 16  ;;  %v1712_v45 = vsel %vm9914_vm6, %v1707_v23, %v10561_v29 }
 0x11e   : > { %v1301_v62 = vpop.f32.mrf.mxu2  ;;  %v1955_v46 = vpop.f32.mrf.mxu3  ;;  %v2266_v3 = vunpack.c.l.b16 %v2205_v49  ;;  %v1733_v37 = vshll.u32 %v10594_v30, 16  ;;  %v1737_v0 = vshrl.u32 %v10594_v30, 16  ;;  %v1722_v43 = vsel %vm9914_vm6, %v1717_v19, %v1721_v24  ;;  %v10619_v49 = vld [vmem:[%s9799_s10 + $0x8c] sm:$0x1] }
 0x11f   : > { %v1380_v26 = vadd.f32 %v1301_v62, %v10020_v17  ;;  %v1075_v17 = vrot.slane %v1073_v9, 5  ;;  %v2267_v9 = vunpack.c.l.b16 %v2208_v41  ;;  %v2603_v25 = vsel %vm9920_vm7, %v8614_v52, %v2602_v5 }
 0x120   : > { %v2606_v29 = vsel %vm9920_vm7, %v2604_v42, %v2605_v27  ;;  %v1726_v23 = vrot.slane %v1724_v50, 4  ;;  %v1729_v24 = vrot.slane %v1727_v55, 5  ;;  %v10627_v52 = vunpack.c.l.b16 %v1712_v45 }
 0x121   : > { %v2034_v4 = vadd.f32 %v1955_v46, %v1380_v26  ;;  %v2359_v8 = vpop.f32.mrf.mxu0  ;;  %v10616_v46 = vld [vmem:[%s9804_s13 + $0x8c] sm:$0x1]  ;;  %v10622_v26 = vadd.f32 %v10526_v57, %v2434_v13  ;;  %v10629_v19 = vunpack.c.l.b16 %v1722_v43  ;;  %v10631_v41 = vrot.slane %v1733_v37, 5  ;;  %v790_v13 = vld [vmem:[%s9804_s13 + $0x90] sm:$0xf] }
 0x122   : > { %v10598_v34 = vpop.f32.mrf.mxu1  ;;  %v1739_v27 = vrot.slane %v1737_v0, 4  ;;  %v1089_v57 = vshll.u32 %v10616_v46, 16  ;;  %v2288_v45 = vpack.c.b16 %v2267_v9, %v2266_v3  ;;  %v10642_v0 = vld [vmem:[%s9804_s13 + $0x94] sm:$0xf] }
 0x123   : > { %v2435_v62 = vadd.f32 %v2356_v38, %v2034_v4  ;;  %8547 = vmatmul.msk.bf16.gmra.mxu2 %vm392_vm1, %v1232_v35  ;;  %8564 = vmatmul.msk.bf16.gmra.mxu3 %vm392_vm1, %v1886_v20  ;;  %v1081_v38 = vrot.slane %v1079_v58, 5  ;;  %v1085_v35 = vrot.slane %v1083_v48, 4  ;;  %v1076_v20 = vor.u32 %v1075_v17, %v1072_v56  ;;  %13113 = vst [vmem:[#allocation12_spill] sm:$0xff] %v10622_v26 }
 0x124   : > { %8597 = vmatmul.msk.bf16.gmra.mxu0 %vm392_vm1, %v2287_v53  ;;  %v2664_v58 = vunpack.c.l.b16 %v2603_v25  ;;  %v2665_v48 = vunpack.c.l.b16 %v2606_v29  ;;  %v1743_v4 = vshll.u32 %v10619_v49, 16  ;;  %v1740_v43 = vor.u32 %v1739_v27, %v10631_v41  ;;  %v2076_v25 = vld [vmem:[%s9804_s13 + $0x84] sm:$0xe] }
 0x125   : > { %8630 = vmatmul.msk.bf16.gmra.mxu1 %vm392_vm1, %v2685_v31  ;;  %v10625_v53 = vadd.f32 %v10565_v60, %v2435_v62  ;;  %v1233_v60 = vpack.c.b16 %v10585_v7, %v10579_v54  ;;  %v1086_v50 = vor.u32 %v1085_v35, %v1081_v38  ;;  %v1077_v37 = vrot.slane %v1076_v20, 4 }
 0x126   : > { %v1304_v5 = vpop.f32.mrf.mxu2  ;;  %v1958_v31 = vpop.f32.mrf.mxu3  ;;  %v1887_v62 = vpack.c.b16 %v10629_v19, %v10627_v52  ;;  %v2211_v54 = vrot.slane %v10582_v12, 5  ;;  %v1094_v7 = vshrl.u32 %v790_v13, 16  ;;  %v2686_v35 = vpack.c.b16 %v2665_v48, %v2664_v58 }
 0x127   : > { %13114 = vst [vmem:[#allocation13_spill] sm:$0xff] %v10625_v53  ;;  %v1381_v42 = vadd.f32 %v1304_v5, %v10049_v59  ;;  %v1730_v59 = vor.u32 %v1729_v24, %v1726_v23  ;;  %v1091_v5 = vrot.slane %v1089_v57, 5  ;;  %v1087_v3 = vrot.slane %v1086_v50, 4  ;;  %v1447_v24 = vld [vmem:[%s9799_s10 + $0x90] sm:$0xf] }
 0x128   : > { %v1745_v9 = vrot.slane %v1743_v4, 5  ;;  %v1103_v23 = vshll.u32 %v10642_v0, 16  ;;  %v1107_v20 = vshrl.u32 %v10642_v0, 16  ;;  %v1082_v52 = vsel %vm9914_vm6, %v1077_v37, %v1081_v38  ;;  %v2477_v57 = vld [vmem:[%s9799_s10 + $0x84] sm:$0xe] }
 0x129   : > { %v2035_v56 = vadd.f32 %v1958_v31, %v1381_v42  ;;  %v2361_v17 = vpop.f32.mrf.mxu0  ;;  %v1097_v31 = vshll.u32 %v790_v13, 16  ;;  %v1731_v19 = vrot.slane %v1730_v59, 4  ;;  %v8582_v27 = vrot.slane %v2076_v25, 9 }
 0x12a   : > { %v10639_v55 = vpop.f32.mrf.mxu1  ;;  %v2214_v12 = vrot.slane %v10616_v46, 5  ;;  %v1741_v58 = vrot.slane %v1740_v43, 4  ;;  %v2213_v48 = vrot.slane %v2211_v54, 4  ;;  %v2609_v13 = vrot.slane %v10594_v30, 5 }
 0x12b   : > { %v2436_v29 = vadd.f32 %v2359_v8, %v2035_v56  ;;  %v1096_v50 = vrot.slane %v1094_v7, 4  ;;  %v1099_v56 = vrot.slane %v1097_v31, 5  ;;  %v1748_v53 = vshrl.u32 %v1447_v24, 16  ;;  %v10672_v31 = vld [vmem:[%s9804_s13 + $0x98] sm:$0x1] }
 0x12c   : > { %v1751_v26 = vshll.u32 %v1447_v24, 16  ;;  %v1092_v38 = vsel %vm9914_vm6, %v1087_v3, %v1091_v5  ;;  %v10660_v37 = vunpack.c.l.b16 %v1082_v52  ;;  %v10662_v46 = vrot.slane %v1103_v23, 5  ;;  %v10675_v5 = vld [vmem:[%s9799_s10 + $0x94] sm:$0xf] }
 0x12d   : > { %v1109_v59 = vrot.slane %v1107_v20, 4  ;;  %v1736_v30 = vsel %vm9914_vm6, %v1731_v19, %v10631_v41  ;;  %v8615_v7 = vrot.slane %v2477_v57, 9  ;;  %v1746_v3 = vsel %vm9914_vm6, %v1741_v58, %v1745_v9 }
 0x12e   : > { %v1306_v42 = vpop.f32.mrf.mxu2  ;;  %v1960_v8 = vpop.f32.mrf.mxu3  ;;  %v2215_v23 = vsel %vm9920_vm7, %v2213_v48, %v2214_v12  ;;  %v2611_v20 = vrot.slane %v2609_v13, 4  ;;  %v2612_v24 = vrot.slane %v10619_v49, 5  ;;  %v1100_v41 = vor.u32 %v1099_v56, %v1096_v50  ;;  %v10705_v48 = vld [vmem:[%s9799_s10 + $0x98] sm:$0x1] }
 0x12f   : > { %v1382_v4 = vadd.f32 %v1306_v42, %v10089_v40  ;;  %v2212_v40 = vsel %vm9920_vm7, %v8582_v27, %v2211_v54  ;;  %v1750_v54 = vrot.slane %v1748_v53, 4  ;;  %v1753_v19 = vrot.slane %v1751_v26, 5 }
 0x130   : > { %v1110_v9 = vor.u32 %v1109_v59, %v10662_v46  ;;  %v1113_v27 = vshll.u32 %v10672_v31, 16  ;;  %v1757_v12 = vshll.u32 %v10675_v5, 16  ;;  %v1761_v49 = vshrl.u32 %v10675_v5, 16 }
 0x131   : > { %v2036_v43 = vadd.f32 %v1960_v8, %v1382_v4  ;;  %v2364_v25 = vpop.f32.mrf.mxu0  ;;  %v2269_v42 = vunpack.c.l.b16 %v2215_v23  ;;  %v2610_v8 = vsel %vm9920_vm7, %v8615_v7, %v2609_v13  ;;  %v2613_v58 = vsel %vm9920_vm7, %v2611_v20, %v2612_v24  ;;  %v2077_v23 = vld [vmem:[%s9804_s13 + $0x90] sm:$0xe] }
 0x132   : > { %v10664_v15 = vpop.f32.mrf.mxu1  ;;  %v1101_v57 = vrot.slane %v1100_v41, 4  ;;  %v1111_v50 = vrot.slane %v1110_v9, 4  ;;  %v1115_v4 = vrot.slane %v1113_v27, 5  ;;  %v10708_v56 = vrot.slane %v1757_v12, 5 }
 0x133   : > { %v2437_v52 = vadd.f32 %v2361_v17, %v2036_v43  ;;  %8548 = vmatmul.msk.bf16.gmra.mxu2 %vm392_vm1, %v1233_v60  ;;  %8565 = vmatmul.msk.bf16.gmra.mxu3 %vm392_vm1, %v1887_v62  ;;  %v10690_v17 = vunpack.c.l.b16 %v1092_v38  ;;  %v2268_v60 = vunpack.c.l.b16 %v2212_v40  ;;  %v10693_v62 = vadd.f32 %v10598_v34, %v2436_v29 }
 0x134   : > { %8598 = vmatmul.msk.bf16.gmra.mxu0 %vm392_vm1, %v2288_v45  ;;  %v1868_v29 = vunpack.c.l.b16 %v1746_v3  ;;  %v1763_v38 = vrot.slane %v1761_v49, 4  ;;  %v2667_v40 = vunpack.c.l.b16 %v2613_v58  ;;  %v1767_v7 = vshll.u32 %v10705_v48, 16 }
 0x135   : > { %8631 = vmatmul.msk.bf16.gmra.mxu1 %vm392_vm1, %v2686_v35  ;;  %v10696_v26 = vadd.f32 %v10639_v55, %v2437_v52  ;;  %v10698_v35 = vunpack.c.l.b16 %v1736_v30  ;;  %v1754_v55 = vor.u32 %v1753_v19, %v1750_v54  ;;  %v2666_v30 = vunpack.c.l.b16 %v2610_v8  ;;  %v793_v52 = vld [vmem:[%s9804_s13 + $0x9c] sm:$0xf] }
 0x136   : > { %v1309_v53 = vpop.f32.mrf.mxu2  ;;  %v1963_v45 = vpop.f32.mrf.mxu3  ;;  %v1106_v3 = vsel %vm9914_vm6, %v1101_v57, %v10662_v46  ;;  %v2218_v24 = vrot.slane %v10642_v0, 5  ;;  %v1234_v41 = vpack.c.b16 %v10690_v17, %v10660_v37  ;;  %v2289_v54 = vpack.c.b16 %v2269_v42, %v2268_v60  ;;  %v2478_v46 = vld [vmem:[%s9799_s10 + $0x90] sm:$0xe]  ;;  %v1450_v42 = vld [vmem:[%s9799_s10 + $0x9c] sm:$0xf] }
 0x137   : > { %v1383_v34 = vadd.f32 %v1309_v53, %v10112_v16  ;;  %v1755_v20 = vrot.slane %v1754_v55, 4  ;;  %v1116_v19 = vsel %vm9914_vm6, %v1111_v50, %v1115_v4  ;;  %v1764_v9 = vor.u32 %v1763_v38, %v10708_v56  ;;  %v10725_v53 = vld [vmem:[%s9804_s13 + $0xa0] sm:$0xf] }
 0x138   : > { %v2687_v27 = vpack.c.b16 %v2667_v40, %v2666_v30  ;;  %v1769_v12 = vrot.slane %v1767_v7, 5  ;;  %v8583_v49 = vrot.slane %v2077_v23, 9  ;;  %v10727_v8 = vunpack.c.l.b16 %v1106_v3 }
 0x139   : > { %v2037_v59 = vadd.f32 %v1963_v45, %v1383_v34  ;;  %v2366_v43 = vpop.f32.mrf.mxu0  ;;  %v2616_v37 = vrot.slane %v10675_v5, 5  ;;  %v1118_v17 = vshrl.u32 %v793_v52, 16  ;;  %v1121_v60 = vshll.u32 %v793_v52, 16  ;;  %v10741_v5 = vld [vmem:[%s9799_s10 + $0xa0] sm:$0xf] }
 0x13a   : > { %v2764_v13 = vpop.f32.mrf.mxu1  ;;  %v10732_v34 = vunpack.c.l.b16 %v1116_v19  ;;  %v1765_v57 = vrot.slane %v1764_v9, 4  ;;  %v2221_v55 = vrot.slane %v10672_v31, 5  ;;  %v1127_v50 = vshll.u32 %v10725_v53, 16 }
 0x13b   : > { %v2438_v16 = vadd.f32 %v2364_v25, %v2037_v59  ;;  %v1888_v25 = vpack.c.b16 %v1868_v29, %v10698_v35  ;;  %v1760_v35 = vsel %vm9914_vm6, %v1755_v20, %v10708_v56  ;;  %v2220_v29 = vrot.slane %v2218_v24, 4 }
 0x13c   : > { %v1131_v4 = vshrl.u32 %v10725_v53, 16  ;;  %v1772_v40 = vshrl.u32 %v1450_v42, 16  ;;  %v1775_v7 = vshll.u32 %v1450_v42, 16  ;;  %v2618_v23 = vrot.slane %v2616_v37, 4 }
 0x13d   : > { %v2619_v56 = vrot.slane %v10705_v48, 5  ;;  %v1120_v3 = vrot.slane %v1118_v17, 4  ;;  %v1123_v20 = vrot.slane %v1121_v60, 5  ;;  %v2219_v52 = vsel %vm9920_vm7, %v8583_v49, %v2218_v24 }
 0x13e   : > { %v1311_v0 = vpop.f32.mrf.mxu2  ;;  %v1965_v45 = vpop.f32.mrf.mxu3  ;;  %v1781_v19 = vshll.u32 %v10741_v5, 16  ;;  %v1785_v9 = vshrl.u32 %v10741_v5, 16  ;;  %v1770_v48 = vsel %vm9914_vm6, %v1765_v57, %v1769_v12  ;;  %v1777_v24 = vrot.slane %v1775_v7, 5 }
 0x13f   : > { %v1384_v58 = vadd.f32 %v1311_v0, %v10155_v1  ;;  %v8616_v1 = vrot.slane %v2478_v46, 9  ;;  %v1133_v46 = vrot.slane %v1131_v4, 4  ;;  %v1774_v0 = vrot.slane %v1772_v40, 4 }
 0x140   : > { %v10762_v49 = vadd.f32 %v10664_v15, %v2438_v16  ;;  %v10766_v17 = vunpack.c.l.b16 %v1760_v35  ;;  %v2620_v60 = vsel %vm9920_vm7, %v2618_v23, %v2619_v56  ;;  %v1124_v42 = vor.u32 %v1123_v20, %v1120_v3  ;;  %v2078_v20 = vld [vmem:[%s9804_s13 + $0x9c] sm:$0xe] }
 0x141   : > { %v2038_v38 = vadd.f32 %v1965_v45, %v1384_v58  ;;  %v2369_v59 = vpop.f32.mrf.mxu0  ;;  %v2617_v12 = vsel %vm9920_vm7, %v8616_v1, %v2616_v37  ;;  %v10773_v57 = vrot.slane %v1781_v19, 5  ;;  %v1787_v15 = vrot.slane %v1785_v9, 4 }
 0x142   : > { %v10743_v30 = vpop.f32.mrf.mxu1  ;;  %v2668_v1 = vunpack.c.l.b16 %v2617_v12  ;;  %v2669_v40 = vunpack.c.l.b16 %v2620_v60  ;;  %v1125_v7 = vrot.slane %v1124_v42, 4  ;;  %v8584_v60 = vrot.slane %v2078_v20, 9  ;;  %v10791_v42 = vld [vmem:[%s9804_s13 + $0xac] sm:$0xf] }
 0x143   : > { %v2439_v31 = vadd.f32 %v2366_v43, %v2038_v38  ;;  %8549 = vmatmul.msk.bf16.gmra.mxu2 %vm392_vm1, %v1234_v41  ;;  %8566 = vmatmul.msk.bf16.gmra.mxu3 %vm392_vm1, %v1888_v25  ;;  %v2222_v43 = vsel %vm9920_vm7, %v2220_v29, %v2221_v55  ;;  %v1129_v41 = vrot.slane %v1127_v50, 5  ;;  %v10759_v25 = vld [vmem:[%s9804_s13 + $0xa4] sm:$0x1]  ;;  %v2270_v29 = vunpack.c.l.b16 %v2219_v52 }
 0x144   : > { %8599 = vmatmul.msk.bf16.gmra.mxu0 %vm392_vm1, %v2289_v54  ;;  %v2271_v16 = vunpack.c.l.b16 %v2222_v43  ;;  %v1137_v35 = vshll.u32 %v10759_v25, 16  ;;  %v10777_v50 = vld [vmem:[%s9799_s10 + $0xa4] sm:$0x1]  ;;  %v1788_v56 = vor.u32 %v1787_v15, %v10773_v57  ;;  %v1235_v52 = vpack.c.b16 %v10732_v34, %v10727_v8 }
 0x145   : > { %8632 = vmatmul.msk.bf16.gmra.mxu1 %vm392_vm1, %v2687_v27  ;;  %v10764_v45 = vadd.f32 %v2764_v13, %v2439_v31  ;;  %v1870_v13 = vunpack.c.l.b16 %v1770_v48  ;;  %v1134_v55 = vor.u32 %v1133_v46, %v1129_v41  ;;  %v1791_v3 = vshll.u32 %v10777_v50, 16  ;;  %v796_v31 = vld [vmem:[%s9804_s13 + $0xa8] sm:$0xf] }
 0x146   : > { %v1314_v54 = vpop.f32.mrf.mxu2  ;;  %v1968_v27 = vpop.f32.mrf.mxu3  ;;  %v1139_v9 = vrot.slane %v1137_v35, 5  ;;  %v2225_v48 = vrot.slane %v10725_v53, 5  ;;  %v2290_v46 = vpack.c.b16 %v2271_v16, %v2270_v29  ;;  %v1130_v12 = vsel %vm9914_vm6, %v1125_v7, %v1129_v41 }
 0x147   : > { %v1385_v58 = vadd.f32 %v1314_v54, %v10180_v51  ;;  %v1778_v51 = vor.u32 %v1777_v24, %v1774_v0  ;;  %v1135_v19 = vrot.slane %v1134_v55, 4  ;;  %v1889_v43 = vpack.c.b16 %v1870_v13, %v10766_v17 }
 0x148   : > { %v2688_v0 = vpack.c.b16 %v2669_v40, %v2668_v1  ;;  %v1145_v8 = vshll.u32 %v796_v31, 16  ;;  %v1789_v53 = vrot.slane %v1788_v56, 4  ;;  %v1793_v15 = vrot.slane %v1791_v3, 5 }
 0x149   : > { %v2039_v37 = vadd.f32 %v1968_v27, %v1385_v58  ;;  %v2371_v4 = vpop.f32.mrf.mxu0  ;;  %v1779_v24 = vrot.slane %v1778_v51, 4  ;;  %v1142_v58 = vshrl.u32 %v796_v31, 16  ;;  %v2623_v17 = vrot.slane %v10741_v5, 5  ;;  %v1453_v51 = vld [vmem:[%s9799_s10 + $0xa8] sm:$0xf] }
 0x14a   : > { %v2769_v38 = vpop.f32.mrf.mxu1  ;;  %v1140_v29 = vsel %vm9914_vm6, %v1135_v19, %v1139_v9  ;;  %v2227_v13 = vrot.slane %v2225_v48, 4  ;;  %v2228_v16 = vrot.slane %v10759_v25, 5  ;;  %v10800_v1 = vunpack.c.l.b16 %v1130_v12  ;;  %v10816_v9 = vld [vmem:[%s9799_s10 + $0xac] sm:$0xf] }
 0x14b   : > { %v2440_v23 = vadd.f32 %v2369_v59, %v2039_v37  ;;  %v2479_v59 = vld [vmem:[%s9799_s10 + $0x9c] sm:$0xe]  ;;  %v1155_v40 = vshrl.u32 %v10791_v42, 16  ;;  %v1784_v5 = vsel %vm9914_vm6, %v1779_v24, %v10773_v57  ;;  %v2226_v25 = vsel %vm9920_vm7, %v8584_v60, %v2225_v48 }
 0x14c   : > { %v8617_v55 = vrot.slane %v2479_v59, 9  ;;  %v1144_v7 = vrot.slane %v1142_v58, 4  ;;  %v1147_v56 = vrot.slane %v1145_v8, 5  ;;  %v1794_v20 = vsel %vm9914_vm6, %v1789_v53, %v1793_v15 }
 0x14d   : > { %v2625_v31 = vrot.slane %v2623_v17, 4  ;;  %v2626_v19 = vrot.slane %v10777_v50, 5  ;;  %v2229_v57 = vsel %vm9920_vm7, %v2227_v13, %v2228_v16  ;;  %v10825_v48 = vadd.f32 %v10743_v30, %v2440_v23  ;;  %v10841_v13 = vld [vmem:[%s9799_s10 + $0xb0] sm:$0x1] }
 0x14e   : > { %v1316_v54 = vpop.f32.mrf.mxu2  ;;  %v1970_v27 = vpop.f32.mrf.mxu3  ;;  %v1157_v50 = vrot.slane %v1155_v40, 4  ;;  %v1799_v59 = vshll.u32 %v1453_v51, 16  ;;  %v1148_v12 = vor.u32 %v1147_v56, %v1144_v7  ;;  %v1805_v60 = vshll.u32 %v10816_v9, 16 }
 0x14f   : > { %v1386_v34 = vadd.f32 %v1316_v54, %v10218_v32  ;;  %v1151_v32 = vshll.u32 %v10791_v42, 16  ;;  %v1809_v58 = vshrl.u32 %v10816_v9, 16  ;;  %v1871_v23 = vunpack.c.l.b16 %v1784_v5 }
 0x150   : > { %v2272_v8 = vunpack.c.l.b16 %v2226_v25  ;;  %v1872_v53 = vunpack.c.l.b16 %v1794_v20  ;;  %v2273_v15 = vunpack.c.l.b16 %v2229_v57  ;;  %v10846_v5 = vrot.slane %v1805_v60, 5 }
 0x151   : > { %v2040_v41 = vadd.f32 %v1970_v27, %v1386_v34  ;;  %v2374_v35 = vpop.f32.mrf.mxu0  ;;  %v10830_v24 = vrot.slane %v1151_v32, 5  ;;  %v1218_v27 = vunpack.c.l.b16 %v1140_v29  ;;  %v2627_v34 = vsel %vm9920_vm7, %v2625_v31, %v2626_v19  ;;  %v799_v31 = vld [vmem:[%s9804_s13 + $0xb4] sm:$0xf] }
 0x152   : > { %v10798_v37 = vpop.f32.mrf.mxu1  ;;  %v1801_v32 = vrot.slane %v1799_v59, 5  ;;  %v2671_v40 = vunpack.c.l.b16 %v2627_v34  ;;  %v1811_v25 = vrot.slane %v1809_v58, 4  ;;  %v1815_v56 = vshll.u32 %v10841_v13, 16  ;;  %v10858_v59 = vld [vmem:[%s9804_s13 + $0xb8] sm:$0xf] }
 0x153   : > { %v2441_v3 = vadd.f32 %v2371_v4, %v2040_v41  ;;  %8550 = vmatmul.msk.bf16.gmra.mxu2 %vm392_vm1, %v1235_v52  ;;  %8567 = vmatmul.msk.bf16.gmra.mxu3 %vm392_vm1, %v1889_v43  ;;  %v2624_v4 = vsel %vm9920_vm7, %v8617_v55, %v2623_v17  ;;  %v1796_v52 = vshrl.u32 %v1453_v51, 16  ;;  %v10828_v43 = vld [vmem:[%s9804_s13 + $0xb0] sm:$0x1]  ;;  %v1158_v41 = vor.u32 %v1157_v50, %v10830_v24 }
 0x154   : > { %8600 = vmatmul.msk.bf16.gmra.mxu0 %vm392_vm1, %v2290_v46  ;;  %v2670_v17 = vunpack.c.l.b16 %v2624_v4  ;;  %v10844_v51 = vrot.slane %v1148_v12, 4  ;;  %v1890_v19 = vpack.c.b16 %v1872_v53, %v1871_v23  ;;  %v2232_v50 = vrot.slane %v10791_v42, 5 }
 0x155   : > { %8633 = vmatmul.msk.bf16.gmra.mxu1 %vm392_vm1, %v2688_v0  ;;  %v10832_v46 = vadd.f32 %v2769_v38, %v2441_v3  ;;  %v1161_v38 = vshll.u32 %v10828_v43, 16  ;;  %v1236_v3 = vpack.c.b16 %v1218_v27, %v10800_v1  ;;  %v10853_v57 = vrot.slane %v1158_v41, 4 }
 0x156   : > { %v1319_v0 = vpop.f32.mrf.mxu2  ;;  %v1973_v54 = vpop.f32.mrf.mxu3  ;;  %v2689_v12 = vpack.c.b16 %v2671_v40, %v2670_v17  ;;  %v1154_v1 = vsel %vm9914_vm6, %v10844_v51, %v10830_v24  ;;  %v1812_v27 = vor.u32 %v1811_v25, %v10846_v5  ;;  %v10866_v58 = vrot.slane %v1815_v56, 5  ;;  %v1456_v17 = vld [vmem:[%s9799_s10 + $0xb4] sm:$0xf] }
 0x157   : > { %v1387_v30 = vadd.f32 %v1319_v0, %v10241_v18  ;;  %v1798_v18 = vrot.slane %v1796_v52, 4  ;;  %v10850_v20 = vrot.slane %v1161_v38, 5  ;;  %v2079_v52 = vld [vmem:[%s9804_s13 + $0xa8] sm:$0xe]  ;;  %v2630_v42 = vrot.slane %v10816_v9, 5 }
 0x158   : > { %v1166_v23 = vshrl.u32 %v799_v31, 16  ;;  %v8585_v34 = vrot.slane %v2079_v52, 9  ;;  %v1169_v53 = vshll.u32 %v799_v31, 16  ;;  %v2234_v9 = vrot.slane %v2232_v50, 4  ;;  %v10882_v52 = vld [vmem:[%s9799_s10 + $0xb8] sm:$0xf] }
 0x159   : > { %v2041_v29 = vadd.f32 %v1973_v54, %v1387_v30  ;;  %v2376_v16 = vpop.f32.mrf.mxu0  ;;  %v1802_v4 = vor.u32 %v1801_v32, %v1798_v18  ;;  %v2291_v54 = vpack.c.b16 %v2273_v15, %v2272_v8  ;;  %v2480_v30 = vld [vmem:[%s9799_s10 + $0xa8] sm:$0xe]  ;;  %v1175_v8 = vshll.u32 %v10858_v59, 16 }
 0x15a   : > { %v2774_v55 = vpop.f32.mrf.mxu1  ;;  %v1179_v15 = vshrl.u32 %v10858_v59, 16  ;;  %v1813_v18 = vrot.slane %v1812_v27, 4  ;;  %v2235_v32 = vrot.slane %v10828_v43, 5  ;;  %v8618_v40 = vrot.slane %v2480_v30, 9 }
 0x15b   : > { %v2442_v7 = vadd.f32 %v2374_v35, %v2041_v29  ;;  %v1803_v41 = vrot.slane %v1802_v4, 4  ;;  %v2633_v51 = vrot.slane %v10841_v13, 5  ;;  %v2632_v56 = vrot.slane %v2630_v42, 4 }
 0x15c   : > { %v1168_v31 = vrot.slane %v1166_v23, 4  ;;  %v1171_v43 = vrot.slane %v1169_v53, 5  ;;  %v1181_v13 = vrot.slane %v1179_v15, 4  ;;  %v1818_v27 = vsel %vm9914_vm6, %v1813_v18, %v10866_v58  ;;  %v10918_v18 = vld [vmem:[%s9799_s10 + $0xbc] sm:$0x1] }
 0x15d   : > { %v10897_v4 = vadd.f32 %v10798_v37, %v2442_v7  ;;  %v1829_v30 = vshll.u32 %v10882_v52, 16  ;;  %v2631_v37 = vsel %vm9920_vm7, %v8618_v40, %v2630_v42 }
 0x15e   : > { %v1321_v0 = vpop.f32.mrf.mxu2  ;;  %v1975_v35 = vpop.f32.mrf.mxu3  ;;  %v1172_v23 = vor.u32 %v1171_v43, %v1168_v31 }
 0x15f   : > { %v1388_v60 = vadd.f32 %v1321_v0, %v10282_v10  ;;  %v1164_v10 = vsel %vm9914_vm6, %v10853_v57, %v10850_v20  ;;  %v1820_v0 = vshrl.u32 %v1456_v17, 16  ;;  %v10887_v20 = vld [vmem:[%s9804_s13 + $0xbc] sm:$0x1]  ;;  %v10889_v57 = vrot.slane %v1175_v8, 5 }
 0x160   : > { %v1185_v7 = vshll.u32 %v10887_v20, 16 }
 0x161   : > { %v2042_v38 = vadd.f32 %v1975_v35, %v1388_v60  ;;  %v2379_v24 = vpop.f32.mrf.mxu0  ;;  %v2236_v60 = vsel %vm9920_vm7, %v2234_v9, %v2235_v32  ;;  %v1182_v58 = vor.u32 %v1181_v13, %v10889_v57  ;;  %v10920_v32 = vrot.slane %v1829_v30, 5 }
 0x162   : > { %v2777_v29 = vpop.f32.mrf.mxu1  ;;  %v2275_v42 = vunpack.c.l.b16 %v2236_v60  ;;  %v1187_v13 = vrot.slane %v1185_v7, 5 }
 0x163   : > { %v2443_v25 = vadd.f32 %v2376_v16, %v2042_v38  ;;  %8551 = vmatmul.msk.bf16.gmra.mxu2 %vm392_vm1, %v1236_v3  ;;  %8568 = vmatmul.msk.bf16.gmra.mxu3 %vm392_vm1, %v1890_v19  ;;  %v1823_v16 = vshll.u32 %v1456_v17, 16  ;;  %v1808_v3 = vsel %vm9914_vm6, %v1803_v41, %v10846_v5  ;;  %v2233_v19 = vsel %vm9920_vm7, %v8585_v34, %v2232_v50 }
 0x164   : > { %8601 = vmatmul.msk.bf16.gmra.mxu0 %vm392_vm1, %v2291_v54  ;;  %v1833_v5 = vshrl.u32 %v10882_v52, 16  ;;  %v1822_v34 = vrot.slane %v1820_v0, 4  ;;  %v1219_v38 = vunpack.c.l.b16 %v1154_v1  ;;  %v1873_v41 = vunpack.c.l.b16 %v1808_v3  ;;  %v2080_v1 = vld [vmem:[%s9804_s13 + $0xb4] sm:$0xe] }
 0x165   : > { %8634 = vmatmul.msk.bf16.gmra.mxu1 %vm392_vm1, %v2689_v12  ;;  %v10899_v35 = vadd.f32 %v2774_v55, %v2443_v25  ;;  %v2634_v55 = vsel %vm9920_vm7, %v2632_v56, %v2633_v51  ;;  %v1825_v53 = vrot.slane %v1823_v16, 5  ;;  %v2274_v9 = vunpack.c.l.b16 %v2233_v19 }
 0x166   : > { %v1324_v54 = vpop.f32.mrf.mxu2  ;;  %v1978_v12 = vpop.f32.mrf.mxu3  ;;  %v1835_v40 = vrot.slane %v1833_v5, 4  ;;  %v1874_v25 = vunpack.c.l.b16 %v1818_v27  ;;  %v2672_v56 = vunpack.c.l.b16 %v2631_v37  ;;  %v2673_v31 = vunpack.c.l.b16 %v2634_v55  ;;  %v2481_v55 = vld [vmem:[%s9799_s10 + $0xb4] sm:$0xe] }
 0x167   : > { %v1389_v50 = vadd.f32 %v1324_v54, %v10308_v6  ;;  %v1220_v6 = vunpack.c.l.b16 %v1164_v10  ;;  %v1173_v0 = vrot.slane %v1172_v23, 4  ;;  %v1183_v43 = vrot.slane %v1182_v58, 4 }
 0x168   : > { %v1826_v16 = vor.u32 %v1825_v53, %v1822_v34  ;;  %v1839_v10 = vshll.u32 %v10918_v18, 16  ;;  %v2239_v3 = vrot.slane %v10858_v59, 5  ;;  %v2292_v30 = vpack.c.b16 %v2275_v42, %v2274_v9  ;;  %v8863_v9 = vld [vmem:[%s9804_s13 + $0xc] sm:$0xf] }
 0x169   : > { %v2043_v8 = vadd.f32 %v1978_v12, %v1389_v50  ;;  %v2381_v15 = vpop.f32.mrf.mxu0  ;;  %v1237_v60 = vpack.c.b16 %v1220_v6, %v1219_v38  ;;  %v1891_v5 = vpack.c.b16 %v1874_v25, %v1873_v41  ;;  %v2690_v50 = vpack.c.b16 %v2673_v31, %v2672_v56  ;;  %v8864_v25 = vld [vmem:[%s9804_s13 + $0x10] sm:$0xf] }
 0x16a   : > { %v10915_v17 = vpop.f32.mrf.mxu1  ;;  %v8586_v37 = vrot.slane %v2080_v1, 9  ;;  %v1178_v7 = vsel %vm9914_vm6, %v1173_v0, %v10889_v57  ;;  %v1188_v59 = vsel %vm9914_vm6, %v1183_v43, %v1187_v13  ;;  %v2637_v23 = vrot.slane %v10882_v52, 5  ;;  %v9074_v0 = vld [vmem:[%s13095_s3 + $0xa] sm:$0x3]  ;;  %v8929_v43 = vld [vmem:[%s9799_s10 + $0x10] sm:$0xf] }
 0x16b   : > { %v2444_v51 = vadd.f32 %v2379_v24, %v2043_v8  ;;  %v1836_v24 = vor.u32 %v1835_v40, %v10920_v32  ;;  %v1841_v53 = vrot.slane %v1839_v10, 5  ;;  %v2241_v8 = vrot.slane %v2239_v3, 4 }
 0x16c   : > { %v2242_v6 = vrot.slane %v10887_v20, 5  ;;  %v8619_v41 = vrot.slane %v2481_v55, 9  ;;  %v2640_v57 = vrot.slane %v10918_v18, 5  ;;  %v10943_v52 = vunpack.c.l.b16 %v1178_v7  ;;  %v8928_v20 = vld [vmem:[%s9799_s10 + $0xc] sm:$0xf] }
 0x16d   : > { %v10925_v19 = vadd.f32 %v2777_v29, %v2444_v51  ;;  %v1827_v29 = vrot.slane %v1826_v16, 4  ;;  %v1837_v38 = vrot.slane %v1836_v24, 4  ;;  %v10945_v40 = vunpack.c.l.b16 %v1188_v59  ;;  %v9025_v51 = vld [vmem:[%s13094_s2 + $0xa] sm:$0x3] }
 0x16e   : > { %v1326_v54 = vpop.f32.mrf.mxu2  ;;  %v1980_v12 = vpop.f32.mrf.mxu3  ;;  %v2240_v18 = vsel %vm9920_vm7, %v8586_v37, %v2239_v3  ;;  %v2639_v56 = vrot.slane %v2637_v23, 4  ;;  %v5021_v31 = vsel %vm441_vm0, %v9025_v51, 0  ;;  %v3487_v13 = vshrl.u32 %v8863_v9, 16 }
 0x16f   : > { %v1390_v27 = vadd.f32 %v1326_v54, %v10351_v63  ;;  %5030 = vmatpush.bf16.msrb.mxu2 %v5021_v31  ;;  %v3490_v16 = vshll.u32 %v8863_v9, 16  ;;  %v5419_v1 = vsel %vm441_vm0, %v9074_v0, 0  ;;  %v3500_v3 = vshrl.u32 %v8864_v25, 16  ;;  %v8930_v31 = vld [vmem:[%s9799_s10 + $0x14] sm:$0x1] }
 0x170   : > { %5428 = vmatpush.bf16.msrb.mxu3 %v5419_v1  ;;  %v1842_v37 = vsel %vm9914_vm6, %v1837_v38, %v1841_v53  ;;  %v2638_v7 = vsel %vm9920_vm7, %v8619_v41, %v2637_v23  ;;  %v3489_v9 = vrot.slane %v3487_v13, 4  ;;  %v9123_v41 = vld [vmem:[%s13094_s2 + $0xc] sm:$0x3] }
 0x171   : > { %v2044_v58 = vadd.f32 %v1980_v12, %v1390_v27  ;;  %v2384_v34 = vpop.f32.mrf.mxu0  ;;  %v3496_v12 = vshll.u32 %v8864_v25, 16  ;;  %v2276_v27 = vunpack.c.l.b16 %v2240_v18  ;;  %v3502_v53 = vrot.slane %v3500_v3, 4 }
 0x172   : > { %v10936_v63 = vpop.f32.mrf.mxu1  ;;  %v5706_v0 = vsel %vm441_vm0, %v9123_v41, 0 }
 0x173   : > { %v2445_v42 = vadd.f32 %v2381_v15, %v2044_v58  ;;  %8552 = vmatmul.msk.bf16.gmra.mxu2 %vm392_vm1, %v1237_v60  ;;  %8569 = vmatmul.msk.bf16.gmra.mxu3 %vm392_vm1, %v1891_v5  ;;  %v1832_v15 = vsel %vm9914_vm6, %v1827_v29, %v10920_v32  ;;  %v4141_v60 = vshrl.u32 %v8928_v20, 16  ;;  %v4150_v5 = vshll.u32 %v8929_v43, 16 }
 0x174   : > { %8602 = vmatmul.msk.bf16.gmra.mxu0 %vm392_vm1, %v2292_v30  ;;  %v4144_v30 = vshll.u32 %v8928_v20, 16  ;;  %v1875_v55 = vunpack.c.l.b16 %v1832_v15  ;;  %v10977_v51 = vrot.slane %v3496_v12, 5  ;;  %v1876_v15 = vunpack.c.l.b16 %v1842_v37 }
 0x175   : > { %8635 = vmatmul.msk.bf16.gmra.mxu1 %vm392_vm1, %v2690_v50  ;;  %v10966_v10 = vadd.f32 %v10915_v17, %v2445_v42  ;;  %v4154_v50 = vshrl.u32 %v8929_v43, 16  ;;  %v2243_v17 = vsel %vm9920_vm7, %v2241_v8, %v2242_v6  ;;  %v3492_v42 = vrot.slane %v3490_v16, 5  ;;  %v8865_v8 = vld [vmem:[%s9804_s13 + $0x14] sm:$0x1]  ;;  %5715 = vmatpush.bf16.msrb.mxu0 %v5706_v0 }
 0x176   : > { %v1329_v32 = vpop.f32.mrf.mxu2  ;;  %v1983_v54 = vpop.f32.mrf.mxu3  ;;  %v4143_v38 = vrot.slane %v4141_v60, 4  ;;  %v4146_v25 = vrot.slane %v4144_v30, 5  ;;  %v10980_v6 = vrot.slane %v4150_v5, 5  ;;  %v2277_v18 = vunpack.c.l.b16 %v2243_v17 }
 0x177   : > { %v1391_v24 = vadd.f32 %v1329_v32, %v10381_v14  ;;  %v2641_v14 = vsel %vm9920_vm7, %v2639_v56, %v2640_v57  ;;  %v4156_v23 = vrot.slane %v4154_v50, 4  ;;  %v2674_v57 = vunpack.c.l.b16 %v2638_v7 }
 0x178   : > { %v2675_v56 = vunpack.c.l.b16 %v2641_v14  ;;  %v3493_v43 = vor.u32 %v3492_v42, %v3489_v9  ;;  %v3503_v1 = vor.u32 %v3502_v53, %v10977_v51  ;;  %v3506_v32 = vshll.u32 %v8865_v8, 16  ;;  %v8866_v9 = vld [vmem:[%s9804_s13 + $0x18] sm:$0xf]  ;;  %v8867_v53 = vld [vmem:[%s9804_s13 + $0x1c] sm:$0xf] }
 0x179   : > { %v2045_v59 = vadd.f32 %v1983_v54, %v1391_v24  ;;  %v2386_v29 = vpop.f32.mrf.mxu0  ;;  %v4147_v54 = vor.u32 %v4146_v25, %v4143_v38  ;;  %v1892_v3 = vpack.c.b16 %v1876_v15, %v1875_v55  ;;  %v4157_v60 = vor.u32 %v4156_v23, %v10980_v6  ;;  %v8931_v38 = vld [vmem:[%s9799_s10 + $0x18] sm:$0xf]  ;;  %v8932_v25 = vld [vmem:[%s9799_s10 + $0x1c] sm:$0xf] }
 0x17a   : > { %v2784_v58 = vpop.f32.mrf.mxu1  ;;  %v4160_v30 = vshll.u32 %v8930_v31, 16  ;;  %v2293_v24 = vpack.c.b16 %v2277_v18, %v2276_v27  ;;  %v2691_v5 = vpack.c.b16 %v2675_v56, %v2674_v57  ;;  %v3504_v7 = vrot.slane %v3503_v1, 4 }
 0x17b   : > { %v2446_v20 = vadd.f32 %v2384_v34, %v2045_v59  ;;  %v1238_v34 = vpack.c.b16 %v10945_v40, %v10943_v52  ;;  %v3494_v40 = vrot.slane %v3493_v43, 4  ;;  %v3508_v59 = vrot.slane %v3506_v32, 5 }
 0x17c   : > { %v4158_v27 = vrot.slane %v4157_v60, 4  ;;  %v4162_v14 = vrot.slane %v4160_v30, 5  ;;  %v3511_v18 = vshrl.u32 %v8866_v9, 16  ;;  %v3514_v57 = vshll.u32 %v8866_v9, 16 }
 0x17d   : > { %v10993_v50 = vadd.f32 %v10936_v63, %v2446_v20  ;;  %v9236_v63 = vld [vmem:[%s13095_s3 + $0xc] sm:$0x3]  ;;  %v3509_v23 = vsel %vm9914_vm6, %v3504_v7, %v3508_v59  ;;  %v3520_v31 = vshll.u32 %v8867_v53, 16  ;;  %v3524_v0 = vshrl.u32 %v8867_v53, 16 }
 0x17e   : > { %v1331_v13 = vpop.f32.mrf.mxu2  ;;  %v1985_v16 = vpop.f32.mrf.mxu3  ;;  %v5993_v42 = vsel %vm441_vm0, %v9236_v63, 0  ;;  %v4168_v43 = vshll.u32 %v8931_v38, 16  ;;  %v3516_v60 = vrot.slane %v3514_v57, 5  ;;  %v9596_v53 = vld [vmem:[%s9799_s10 + $0xc] sm:$0xff] }
 0x17f   : > { %v1392_v12 = vadd.f32 %v1331_v13, %v10419_v39  ;;  %v4148_v39 = vrot.slane %v4147_v54, 4  ;;  %6002 = vmatpush.bf16.msrb.mxu1 %v5993_v42  ;;  %v4174_v13 = vshll.u32 %v8932_v25, 16  ;;  %v9580_v42 = vld [vmem:[%s9804_s13 + $0xc] sm:$0xff] }
 0x180   : > { %v4170_v7 = vrot.slane %v4168_v43, 5  ;;  %v8934_v43 = vld [vmem:[%s9799_s10 + $0x24] sm:$0xf] }
 0x181   : > { %v2046_v37 = vadd.f32 %v1985_v16, %v1392_v12  ;;  %v2389_v17 = vpop.f32.mrf.mxu0  ;;  %v4153_v41 = vsel %vm9914_vm6, %v4148_v39, %v10980_v6  ;;  %v4178_v16 = vshrl.u32 %v8932_v25, 16  ;;  %v3873_v6 = vunpack.c.l.b16 %v3509_v23 }
 0x182   : > { %v2787_v52 = vpop.f32.mrf.mxu1  ;;  %v4526_v12 = vunpack.c.l.b16 %v4153_v41  ;;  %v11023_v59 = vrot.slane %v4174_v13, 5  ;;  %v8935_v13 = vld [vmem:[%s9799_s10 + $0x28] sm:$0xf] }
 0x183   : > { %v2447_v55 = vadd.f32 %v2386_v29, %v2046_v37  ;;  %8553 = vmatmul.msk.bf16.gmra.mxu2 %vm392_vm1, %v1238_v34  ;;  %8570 = vmatmul.msk.bf16.gmra.mxu3 %vm392_vm1, %v1892_v3  ;;  %v3499_v29 = vsel %vm9914_vm6, %v3494_v40, %v10977_v51  ;;  %v4163_v51 = vsel %vm9914_vm6, %v4158_v27, %v4162_v14  ;;  %v3513_v3 = vrot.slane %v3511_v18, 4  ;;  %v8868_v37 = vld [vmem:[%s9804_s13 + $0x20] sm:$0x1] }
 0x184   : > { %8603 = vmatmul.msk.bf16.gmra.mxu0 %vm392_vm1, %v2293_v24  ;;  %v3872_v54 = vunpack.c.l.b16 %v3499_v29  ;;  %v4527_v30 = vunpack.c.l.b16 %v4163_v51  ;;  %v11020_v24 = vrot.slane %v3520_v31, 5  ;;  %v4180_v39 = vrot.slane %v4178_v16, 4  ;;  %v8870_v31 = vld [vmem:[%s9804_s13 + $0x28] sm:$0xf] }
 0x185   : > { %8636 = vmatmul.msk.bf16.gmra.mxu1 %vm392_vm1, %v2691_v5  ;;  %v11010_v20 = vadd.f32 %v2784_v58, %v2447_v55  ;;  %v4165_v58 = vshrl.u32 %v8931_v38, 16  ;;  %v3526_v5 = vrot.slane %v3524_v0, 4  ;;  %v8933_v55 = vld [vmem:[%s9799_s10 + $0x20] sm:$0x1]  ;;  %v3517_v9 = vor.u32 %v3516_v60, %v3513_v3 }
 0x186   : > { %v1334_v15 = vpop.f32.mrf.mxu2  ;;  %v1988_v8 = vpop.f32.mrf.mxu3  ;;  %v3904_v29 = vpack.c.b16 %v3873_v6, %v3872_v54  ;;  %v3530_v25 = vshll.u32 %v8868_v37, 16  ;;  %v4184_v23 = vshll.u32 %v8933_v55, 16  ;;  %v3544_v3 = vshll.u32 %v8870_v31, 16 }
 0x187   : > { %v1393_v56 = vadd.f32 %v1334_v15, %v10444_v22  ;;  %v4167_v40 = vrot.slane %v4165_v58, 4  ;;  %v3527_v38 = vor.u32 %v3526_v5, %v11020_v24  ;;  %v4558_v15 = vpack.c.b16 %v4527_v30, %v4526_v12 }
 0x188   : > { %v3518_v51 = vrot.slane %v3517_v9, 4  ;;  %v3532_v58 = vrot.slane %v3530_v25, 5  ;;  %v4186_v54 = vrot.slane %v4184_v23, 5  ;;  %v3548_v60 = vshrl.u32 %v8870_v31, 16  ;;  %v8871_v23 = vld [vmem:[%s9804_s13 + $0x2c] sm:$0x1] }
 0x189   : > { %v2047_v34 = vadd.f32 %v1988_v8, %v1393_v56  ;;  %v2391_v1 = vpop.f32.mrf.mxu0  ;;  %v4171_v8 = vor.u32 %v4170_v7, %v4167_v40  ;;  %v8869_v56 = vld [vmem:[%s9804_s13 + $0x24] sm:$0xf]  ;;  %v3528_v0 = vrot.slane %v3527_v38, 4  ;;  %v4189_v5 = vshrl.u32 %v8934_v43, 16 }
 0x18a   : > { %v2789_v32 = vpop.f32.mrf.mxu1  ;;  %v3535_v6 = vshrl.u32 %v8869_v56, 16  ;;  %v3538_v12 = vshll.u32 %v8869_v56, 16  ;;  %v4192_v37 = vshll.u32 %v8934_v43, 16  ;;  %v4198_v40 = vshll.u32 %v8935_v13, 16 }
 0x18b   : > { %v2448_v22 = vadd.f32 %v2389_v17, %v2047_v34  ;;  %v4172_v16 = vrot.slane %v4171_v8, 4  ;;  %v4202_v7 = vshrl.u32 %v8935_v13, 16  ;;  %v3523_v55 = vsel %vm9914_vm6, %v3518_v51, %v11020_v24 }
 0x18c   : > { %v3537_v9 = vrot.slane %v3535_v6, 4  ;;  %v3550_v24 = vrot.slane %v3548_v60, 4  ;;  %v4191_v38 = vrot.slane %v4189_v5, 4  ;;  %v4194_v25 = vrot.slane %v4192_v37, 5 }
 0x18d   : > { %v11026_v27 = vadd.f32 %v2787_v52, %v2448_v22  ;;  %v4181_v52 = vor.u32 %v4180_v39, %v11023_v59  ;;  %v4204_v8 = vrot.slane %v4202_v7, 4 }
 0x18e   : > { %v1336_v14 = vpop.f32.mrf.mxu2  ;;  %v1990_v63 = vpop.f32.mrf.mxu3 }
 0x18f   : > { %v1394_v17 = vadd.f32 %v1336_v14, %v10496_v61  ;;  %v4182_v34 = vrot.slane %v4181_v52, 4  ;;  %v3533_v14 = vsel %vm9914_vm6, %v3528_v0, %v3532_v58 }
 0x190   : > { %v3875_v56 = vunpack.c.l.b16 %v3533_v14 }
 0x191   : > { %v2048_v41 = vadd.f32 %v1990_v63, %v1394_v17  ;;  %v2394_v18 = vpop.f32.mrf.mxu0  ;;  %v4187_v63 = vsel %vm9914_vm6, %v4182_v34, %v4186_v54  ;;  %v4195_v34 = vor.u32 %v4194_v25, %v4191_v38 }
 0x192   : > { %v2792_v57 = vpop.f32.mrf.mxu1  ;;  %v4529_v31 = vunpack.c.l.b16 %v4187_v63  ;;  %v8873_v63 = vld [vmem:[%s9804_s13 + $0x34] sm:$0xf] }
 0x193   : > { %v2449_v61 = vadd.f32 %v2391_v1, %v2048_v41  ;;  %8734 = vmatmul.msk.bf16.vlgmr.msra.gmra.mxu2 %vm392_vm1, %v9580_v42  ;;  %8847 = vmatmul.msk.bf16.vlgmr.msra.gmra.mxu3 %vm392_vm1, %v9596_v53  ;;  %v3540_v53 = vrot.slane %v3538_v12, 5  ;;  %v8936_v41 = vld [vmem:[%s9799_s10 + $0x2c] sm:$0x1]  ;;  %v9581_v12 = vld [vmem:[%s9804_s13 + $0x18] sm:$0xff] }
 0x194   : > { %8912 = vmatmul.msk.bf16.vlgmr.msra.gmra.mxu0 %vm392_vm1, %v3904_v29  ;;  %v11054_v29 = vrot.slane %v3544_v3, 5  ;;  %v4208_v6 = vshll.u32 %v8936_v41, 16  ;;  %v9597_v3 = vld [vmem:[%s9799_s10 + $0x18] sm:$0xff] }
 0x195   : > { %8977 = vmatmul.msk.bf16.vlgmr.msra.gmra.mxu1 %vm392_vm1, %v4558_v15  ;;  %v11041_v1 = vadd.f32 %v2789_v32, %v2449_v61  ;;  %v4177_v32 = vsel %vm9914_vm6, %v4172_v16, %v11023_v59  ;;  %v4200_v15 = vrot.slane %v4198_v40, 5  ;;  %v3874_v59 = vunpack.c.l.b16 %v3523_v55 }
 0x196   : > { %v1339_v22 = vpop.f32.mrf.mxu2  ;;  %v1993_v30 = vpop.f32.mrf.mxu3  ;;  %v4528_v51 = vunpack.c.l.b16 %v4177_v32  ;;  %v3541_v61 = vor.u32 %v3540_v53, %v3537_v9  ;;  %v3551_v0 = vor.u32 %v3550_v24, %v11054_v29  ;;  %v3554_v16 = vshll.u32 %v8871_v23, 16  ;;  %v8938_v53 = vld [vmem:[%s9799_s10 + $0x34] sm:$0xf] }
 0x197   : > { %v1395_v39 = vadd.f32 %v1339_v22, %v10007_v2  ;;  %v4205_v54 = vor.u32 %v4204_v8, %v4200_v15  ;;  %v3905_v60 = vpack.c.b16 %v3875_v56, %v3874_v59  ;;  %v4210_v14 = vrot.slane %v4208_v6, 5 }
 0x198   : > { %v4559_v22 = vpack.c.b16 %v4529_v31, %v4528_v51  ;;  %v3552_v40 = vrot.slane %v3551_v0, 4  ;;  %v3556_v7 = vrot.slane %v3554_v16, 5  ;;  %v3572_v56 = vshrl.u32 %v8873_v63, 16 }
 0x199   : > { %v2049_v17 = vadd.f32 %v1993_v30, %v1395_v39  ;;  %v2396_v42 = vpop.f32.mrf.mxu0  ;;  %v4196_v39 = vrot.slane %v4195_v34, 4  ;;  %v4206_v55 = vrot.slane %v4205_v54, 4  ;;  %v4222_v31 = vshll.u32 %v8938_v53, 16 }
 0x19a   : > { %v2794_v2 = vpop.f32.mrf.mxu1  ;;  %v3557_v25 = vsel %vm9914_vm6, %v3552_v40, %v3556_v7  ;;  %v8874_v40 = vld [vmem:[%s9804_s13 + $0x38] sm:$0x1] }
 0x19b   : > { %v2450_v52 = vadd.f32 %v2394_v18, %v2049_v17  ;;  %v8937_v17 = vld [vmem:[%s9799_s10 + $0x30] sm:$0xf]  ;;  %v4201_v8 = vsel %vm9914_vm6, %v4196_v39, %v4200_v15  ;;  %v3877_v34 = vunpack.c.l.b16 %v3557_v25 }
 0x19c   : > { %v4213_v51 = vshrl.u32 %v8937_v17, 16  ;;  %v4530_v15 = vunpack.c.l.b16 %v4201_v8 }
 0x19d   : > { %v11059_v58 = vadd.f32 %v2792_v57, %v2450_v52  ;;  %v3542_v57 = vrot.slane %v3541_v61, 4  ;;  %v4211_v52 = vsel %vm9914_vm6, %v4206_v55, %v4210_v14  ;;  %v4226_v61 = vshrl.u32 %v8938_v53, 16  ;;  %v8939_v14 = vld [vmem:[%s9799_s10 + $0x38] sm:$0x1] }
 0x19e   : > { %v1341_v43 = vpop.f32.mrf.mxu2  ;;  %v1995_v13 = vpop.f32.mrf.mxu3  ;;  %v4531_v54 = vunpack.c.l.b16 %v4211_v52 }
 0x19f   : > { %v1396_v18 = vadd.f32 %v1341_v43, %v10033_v44  ;;  %v8872_v44 = vld [vmem:[%s9804_s13 + $0x30] sm:$0xf]  ;;  %v3547_v9 = vsel %vm9914_vm6, %v3542_v57, %v11054_v29  ;;  %v3568_v29 = vshll.u32 %v8873_v63, 16  ;;  %v4228_v57 = vrot.slane %v4226_v61, 4 }
 0x1a0   : > { %v3559_v23 = vshrl.u32 %v8872_v44, 16  ;;  %v3562_v59 = vshll.u32 %v8872_v44, 16  ;;  %v3876_v16 = vunpack.c.l.b16 %v3547_v9  ;;  %v9582_v44 = vld [vmem:[%s9804_s13 + $0x24] sm:$0xff]  ;;  %v4560_v9 = vpack.c.b16 %v4531_v54, %v4530_v15 }
 0x1a1   : > { %v2050_v30 = vadd.f32 %v1995_v13, %v1396_v18  ;;  %v2399_v5 = vpop.f32.mrf.mxu0 }
 0x1a2   : > { %v2797_v37 = vpop.f32.mrf.mxu1  ;;  %v3561_v6 = vrot.slane %v3559_v23, 4  ;;  %v3564_v18 = vrot.slane %v3562_v59, 5  ;;  %v3906_v63 = vpack.c.b16 %v3877_v34, %v3876_v16  ;;  %v4232_v23 = vshll.u32 %v8939_v14, 16 }
 0x1a3   : > { %v2451_v32 = vadd.f32 %v2396_v42, %v2050_v30  ;;  %8735 = vmatmul.msk.bf16.gmra.mxu2 %vm392_vm1, %v9581_v12  ;;  %8848 = vmatmul.msk.bf16.gmra.mxu3 %vm392_vm1, %v9597_v3  ;;  %v11084_v12 = vrot.slane %v3568_v29, 5  ;;  %v3574_v3 = vrot.slane %v3572_v56, 4  ;;  %v11086_v30 = vrot.slane %v4222_v31, 5  ;;  %v8876_v29 = vld [vmem:[%s9804_s13 + $0x40] sm:$0xf] }
 0x1a4   : > { %8913 = vmatmul.msk.bf16.gmra.mxu0 %vm392_vm1, %v3905_v60  ;;  %v4215_v60 = vrot.slane %v4213_v51, 4  ;;  %v8940_v56 = vld [vmem:[%s9799_s10 + $0x3c] sm:$0xf]  ;;  %v4234_v16 = vrot.slane %v4232_v23, 5 }
 0x1a5   : > { %8978 = vmatmul.msk.bf16.gmra.mxu1 %vm392_vm1, %v4559_v22  ;;  %v11075_v24 = vadd.f32 %v2794_v2, %v2451_v32  ;;  %v4216_v2 = vshll.u32 %v8937_v17, 16  ;;  %v3565_v17 = vor.u32 %v3564_v18, %v3561_v6  ;;  %v3575_v53 = vor.u32 %v3574_v3, %v11084_v12 }
 0x1a6   : > { %v1344_v38 = vpop.f32.mrf.mxu2  ;;  %v1998_v42 = vpop.f32.mrf.mxu3  ;;  %v3596_v18 = vshrl.u32 %v8876_v29, 16  ;;  %v4237_v3 = vshrl.u32 %v8940_v56, 16 }
 0x1a7   : > { %v1397_v41 = vadd.f32 %v1344_v38, %v10076_v21  ;;  %v4218_v22 = vrot.slane %v4216_v2, 5  ;;  %v3578_v38 = vshll.u32 %v8874_v40, 16  ;;  %v3566_v59 = vrot.slane %v3565_v17, 4 }
 0x1a8   : > { %v3576_v51 = vrot.slane %v3575_v53, 4  ;;  %v3598_v17 = vrot.slane %v3596_v18, 4 }
 0x1a9   : > { %v2051_v0 = vadd.f32 %v1998_v42, %v1397_v41  ;;  %v2401_v43 = vpop.f32.mrf.mxu0  ;;  %v4219_v42 = vor.u32 %v4218_v22, %v4215_v60  ;;  %v8875_v41 = vld [vmem:[%s9804_s13 + $0x3c] sm:$0xf]  ;;  %v3580_v2 = vrot.slane %v3578_v38, 5  ;;  %v4240_v60 = vshll.u32 %v8940_v56, 16 }
 0x1aa   : > { %v2799_v13 = vpop.f32.mrf.mxu1  ;;  %v3583_v34 = vshrl.u32 %v8875_v41, 16  ;;  %v3586_v15 = vshll.u32 %v8875_v41, 16 }
 0x1ab   : > { %v2452_v21 = vadd.f32 %v2399_v5, %v2051_v0  ;;  %v9598_v5 = vld [vmem:[%s9799_s10 + $0x24] sm:$0xff]  ;;  %v4220_v31 = vrot.slane %v4219_v42, 4  ;;  %v8941_v0 = vld [vmem:[%s9799_s10 + $0x40] sm:$0xf]  ;;  %v4242_v53 = vrot.slane %v4240_v60, 5 }
 0x1ac   : > { %v4250_v40 = vshrl.u32 %v8941_v0, 16  ;;  %v8877_v42 = vld [vmem:[%s9804_s13 + $0x44] sm:$0x1] }
 0x1ad   : > { %v11089_v7 = vadd.f32 %v2797_v37, %v2452_v21  ;;  %v4229_v37 = vor.u32 %v4228_v57, %v11086_v30  ;;  %v3592_v21 = vshll.u32 %v8876_v29, 16  ;;  %v4246_v57 = vshll.u32 %v8941_v0, 16 }
 0x1ae   : > { %v1346_v39 = vpop.f32.mrf.mxu2  ;;  %v2000_v55 = vpop.f32.mrf.mxu3 }
 0x1af   : > { %v1398_v32 = vadd.f32 %v1346_v39, %v10103_v36  ;;  %v4230_v61 = vrot.slane %v4229_v37, 4  ;;  %v3571_v39 = vsel %vm9914_vm6, %v3566_v59, %v11084_v12  ;;  %v4239_v12 = vrot.slane %v4237_v3, 4  ;;  %v8942_v59 = vld [vmem:[%s9799_s10 + $0x44] sm:$0x1] }
 0x1b0   : > { %v4248_v37 = vrot.slane %v4246_v57, 5 }
 0x1b1   : > { %v2052_v25 = vadd.f32 %v2000_v55, %v1398_v32  ;;  %v2404_v8 = vpop.f32.mrf.mxu0  ;;  %v3581_v55 = vsel %vm9914_vm6, %v3576_v51, %v3580_v2  ;;  %v4243_v0 = vor.u32 %v4242_v53, %v4239_v12 }
 0x1b2   : > { %v2802_v52 = vpop.f32.mrf.mxu1  ;;  %v3879_v23 = vunpack.c.l.b16 %v3581_v55 }
 0x1b3   : > { %v2453_v36 = vadd.f32 %v2401_v43, %v2052_v25  ;;  %8736 = vmatmul.msk.bf16.gmra.mxu2 %vm392_vm1, %v9582_v44  ;;  %8849 = vmatmul.msk.bf16.gmra.mxu3 %vm392_vm1, %v9598_v5  ;;  %v3585_v5 = vrot.slane %v3583_v34, 4  ;;  %v3878_v25 = vunpack.c.l.b16 %v3571_v39  ;;  %v9599_v34 = vld [vmem:[%s9799_s10 + $0x30] sm:$0xff] }
 0x1b4   : > { %8914 = vmatmul.msk.bf16.gmra.mxu0 %vm392_vm1, %v3906_v63  ;;  %v3588_v63 = vrot.slane %v3586_v15, 5 }
 0x1b5   : > { %8979 = vmatmul.msk.bf16.gmra.mxu1 %vm392_vm1, %v4560_v9  ;;  %v11105_v43 = vadd.f32 %v2799_v13, %v2453_v36  ;;  %v4225_v13 = vsel %vm9914_vm6, %v4220_v31, %v11086_v30  ;;  %v11118_v9 = vrot.slane %v3592_v21, 5  ;;  %v4252_v30 = vrot.slane %v4250_v40, 4 }
 0x1b6   : > { %v1349_v54 = vpop.f32.mrf.mxu2  ;;  %v2003_v6 = vpop.f32.mrf.mxu3  ;;  %v4532_v41 = vunpack.c.l.b16 %v4225_v13  ;;  %v3589_v29 = vor.u32 %v3588_v63, %v3585_v5  ;;  %v4244_v40 = vrot.slane %v4243_v0, 4  ;;  %v8878_v13 = vld [vmem:[%s9804_s13 + $0x48] sm:$0xf]  ;;  %v8944_v63 = vld [vmem:[%s9799_s10 + $0x4c] sm:$0xf] }
 0x1b7   : > { %v1399_v22 = vadd.f32 %v1349_v54, %v10145_v47  ;;  %v4235_v47 = vsel %vm9914_vm6, %v4230_v61, %v4234_v16  ;;  %v3599_v31 = vor.u32 %v3598_v17, %v11118_v9  ;;  %v3602_v61 = vshll.u32 %v8877_v42, 16  ;;  %v9583_v16 = vld [vmem:[%s9804_s13 + $0x30] sm:$0xff]  ;;  %v8943_v5 = vld [vmem:[%s9799_s10 + $0x48] sm:$0xf] }
 0x1b8   : > { %v4533_v36 = vunpack.c.l.b16 %v4235_v47  ;;  %v4253_v15 = vor.u32 %v4252_v30, %v4248_v37  ;;  %v4256_v54 = vshll.u32 %v8942_v59, 16  ;;  %v3590_v60 = vrot.slane %v3589_v29, 4 }
 0x1b9   : > { %v2053_v14 = vadd.f32 %v2003_v6, %v1399_v22  ;;  %v2406_v32 = vpop.f32.mrf.mxu0  ;;  %v3907_v6 = vpack.c.b16 %v3879_v23, %v3878_v25  ;;  %v3600_v22 = vrot.slane %v3599_v31, 4  ;;  %v3604_v57 = vrot.slane %v3602_v61, 5  ;;  %v13115_v25 = vld [vmem:[#allocation2_spill] sm:$0xff] }
 0x1ba   : > { %v2804_v44 = vpop.f32.mrf.mxu1  ;;  %v4561_v21 = vpack.c.b16 %v4533_v36, %v4532_v41  ;;  %v4258_v55 = vrot.slane %v4256_v54, 5  ;;  %v3595_v47 = vsel %vm9914_vm6, %v3590_v60, %v11118_v9  ;;  %v3607_v42 = vshrl.u32 %v8878_v13, 16 }
 0x1bb   : > { %v2454_v38 = vadd.f32 %v2404_v8, %v2053_v14  ;;  %v8879_v14 = vld [vmem:[%s9804_s13 + $0x4c] sm:$0xf]  ;;  %v3605_v53 = vsel %vm9914_vm6, %v3600_v22, %v3604_v57  ;;  %v3610_v30 = vshll.u32 %v8878_v13, 16  ;;  %v4261_v59 = vshrl.u32 %v8943_v5, 16 }
 0x1bc   : > { %v3616_v9 = vshll.u32 %v8879_v14, 16  ;;  %v3620_v36 = vshrl.u32 %v8879_v14, 16  ;;  %v4270_v29 = vshll.u32 %v8944_v63, 16  ;;  %v3880_v0 = vunpack.c.l.b16 %v3595_v47  ;;  %v13116_v47 = vld [vmem:[#allocation3_spill] sm:$0xff] }
 0x1bd   : > { %v11122_v56 = vadd.f32 %v2802_v52, %v2454_v38  ;;  %v4249_v38 = vsel %vm9914_vm6, %v4244_v40, %v4248_v37  ;;  %v3881_v37 = vunpack.c.l.b16 %v3605_v53  ;;  %v4263_v60 = vrot.slane %v4261_v59, 4  ;;  %v8882_v59 = vld [vmem:[%s9804_s13 + $0x58] sm:$0xf] }
 0x1be   : > { %v1351_v51 = vpop.f32.mrf.mxu2  ;;  %v2005_v2 = vpop.f32.mrf.mxu3  ;;  %v11151_v57 = vrot.slane %v4270_v29, 5 }
 0x1bf   : > { %v1400_v8 = vadd.f32 %v1351_v51, %v10171_v11  ;;  %v4254_v11 = vrot.slane %v4253_v15, 4  ;;  %v4274_v51 = vshrl.u32 %v8944_v63, 16  ;;  %v9600_v63 = vld [vmem:[%s9799_s10 + $0x3c] sm:$0xff] }
 0x1c1   : > { %v2054_v18 = vadd.f32 %v2005_v2, %v1400_v8  ;;  %v2409_v3 = vpop.f32.mrf.mxu0  ;;  %v4259_v41 = vsel %vm9914_vm6, %v4254_v11, %v4258_v55  ;;  %v4534_v8 = vunpack.c.l.b16 %v4249_v38  ;;  %v4276_v40 = vrot.slane %v4274_v51, 4 }
 0x1c2   : > { %v2807_v52 = vpop.f32.mrf.mxu1  ;;  %v4535_v54 = vunpack.c.l.b16 %v4259_v41 }
 0x1c3   : > { %v2455_v39 = vadd.f32 %v2406_v32, %v2054_v18  ;;  %8737 = vmatmul.msk.bf16.gmra.mxu2 %vm392_vm1, %v9583_v16  ;;  %8850 = vmatmul.msk.bf16.gmra.mxu3 %vm392_vm1, %v9599_v34  ;;  %v3609_v16 = vrot.slane %v3607_v42, 4  ;;  %v3612_v34 = vrot.slane %v3610_v30, 5  ;;  %v8880_v18 = vld [vmem:[%s9804_s13 + $0x50] sm:$0x1] }
 0x1c4   : > { %8915 = vmatmul.msk.bf16.gmra.mxu0 %vm392_vm1, %v3907_v6  ;;  %v11148_v6 = vrot.slane %v3616_v9, 5  ;;  %v3626_v53 = vshll.u32 %v8880_v18, 16  ;;  %v4562_v38 = vpack.c.b16 %v4535_v54, %v4534_v8  ;;  %v8881_v9 = vld [vmem:[%s9804_s13 + $0x54] sm:$0xf]  ;;  %v3640_v54 = vshll.u32 %v8882_v59, 16 }
 0x1c5   : > { %8980 = vmatmul.msk.bf16.gmra.mxu1 %vm392_vm1, %v4561_v21  ;;  %v11139_v17 = vadd.f32 %v2804_v44, %v2455_v39  ;;  %v4264_v44 = vshll.u32 %v8943_v5, 16  ;;  %v3622_v21 = vrot.slane %v3620_v36, 4  ;;  %v8945_v39 = vld [vmem:[%s9799_s10 + $0x50] sm:$0x1]  ;;  %v3613_v14 = vor.u32 %v3612_v34, %v3609_v16  ;;  %v9584_v5 = vld [vmem:[%s9804_s13 + $0x3c] sm:$0xff] }
 0x1c6   : > { %v1354_v32 = vpop.f32.mrf.mxu2  ;;  %v2008_v12 = vpop.f32.mrf.mxu3  ;;  %v4280_v30 = vshll.u32 %v8945_v39, 16  ;;  %v3628_v51 = vrot.slane %v3626_v53, 5  ;;  %v3631_v34 = vshrl.u32 %v8881_v9, 16 }
 0x1c7   : > { %v1401_v23 = vadd.f32 %v1354_v32, %v13115_v25  ;;  %v4266_v22 = vrot.slane %v4264_v44, 5  ;;  %v3908_v32 = vpack.c.b16 %v3881_v37, %v3880_v0  ;;  %v3614_v36 = vrot.slane %v3613_v14, 4  ;;  %v8947_v0 = vld [vmem:[%s9799_s10 + $0x58] sm:$0xf] }
 0x1c8   : > { %v4282_v16 = vrot.slane %v4280_v30, 5  ;;  %v4294_v39 = vshll.u32 %v8947_v0, 16 }
 0x1c9   : > { %v2055_v2 = vadd.f32 %v2008_v12, %v1401_v23  ;;  %v2411_v31 = vpop.f32.mrf.mxu0  ;;  %v3623_v12 = vor.u32 %v3622_v21, %v11148_v6  ;;  %v4267_v42 = vor.u32 %v4266_v22, %v4263_v60  ;;  %v3644_v21 = vshrl.u32 %v8882_v59, 16  ;;  %v8883_v59 = vld [vmem:[%s9804_s13 + $0x5c] sm:$0x1] }
 0x1ca   : > { %v2809_v61 = vpop.f32.mrf.mxu1 }
 0x1cb   : > { %v2456_v15 = vadd.f32 %v2409_v3, %v2055_v2  ;;  %v3624_v29 = vrot.slane %v3623_v12, 4  ;;  %v8946_v2 = vld [vmem:[%s9799_s10 + $0x54] sm:$0xf]  ;;  %v4268_v37 = vrot.slane %v4267_v42, 4  ;;  %v11182_v42 = vrot.slane %v3640_v54, 5 }
 0x1cc   : > { %v4285_v22 = vshrl.u32 %v8946_v2, 16 }
 0x1cd   : > { %v11154_v11 = vadd.f32 %v2807_v52, %v2456_v15  ;;  %v4277_v52 = vor.u32 %v4276_v40, %v11151_v57  ;;  %v3634_v15 = vshll.u32 %v8881_v9, 16  ;;  %v4288_v40 = vshll.u32 %v8946_v2, 16 }
 0x1ce   : > { %v1356_v55 = vpop.f32.mrf.mxu2  ;;  %v2010_v13 = vpop.f32.mrf.mxu3 }
 0x1cf   : > { %v1402_v3 = vadd.f32 %v1356_v55, %v13116_v47  ;;  %v4278_v8 = vrot.slane %v4277_v52, 4  ;;  %v4298_v55 = vshrl.u32 %v8947_v0, 16  ;;  %v3619_v47 = vsel %vm9914_vm6, %v3614_v36, %v11148_v6 }
 0x1d0   : > { %v3646_v6 = vrot.slane %v3644_v21, 4  ;;  %v4287_v52 = vrot.slane %v4285_v22, 4  ;;  %v4290_v30 = vrot.slane %v4288_v40, 5  ;;  %v9585_v22 = vld [vmem:[%s9804_s13 + $0x48] sm:$0xff] }
 0x1d1   : > { %v2056_v25 = vadd.f32 %v2010_v13, %v1402_v3  ;;  %v2414_v23 = vpop.f32.mrf.mxu0  ;;  %v13117_v13 = vld [vmem:[#allocation4_spill] sm:$0xff]  ;;  %v3629_v3 = vsel %vm9914_vm6, %v3624_v29, %v3628_v51  ;;  %v4300_v9 = vrot.slane %v4298_v55, 4  ;;  %v9601_v40 = vld [vmem:[%s9799_s10 + $0x48] sm:$0xff] }
 0x1d2   : > { %v2812_v41 = vpop.f32.mrf.mxu1  ;;  %v3883_v29 = vunpack.c.l.b16 %v3629_v3  ;;  %v4291_v54 = vor.u32 %v4290_v30, %v4287_v52  ;;  %v8885_v52 = vld [vmem:[%s9804_s13 + $0x64] sm:$0xf] }
 0x1d3   : > { %v2457_v44 = vadd.f32 %v2411_v31, %v2056_v25  ;;  %8738 = vmatmul.msk.bf16.gmra.mxu2 %vm392_vm1, %v9584_v5  ;;  %8851 = vmatmul.msk.bf16.gmra.mxu3 %vm392_vm1, %v9600_v63  ;;  %v4283_v5 = vsel %vm9914_vm6, %v4278_v8, %v4282_v16  ;;  %v3633_v63 = vrot.slane %v3631_v34, 4  ;;  %v4296_v25 = vrot.slane %v4294_v39, 5 }
 0x1d4   : > { %8916 = vmatmul.msk.bf16.gmra.mxu0 %vm392_vm1, %v3908_v32  ;;  %v4537_v2 = vunpack.c.l.b16 %v4283_v5  ;;  %v4292_v5 = vrot.slane %v4291_v54, 4 }
 0x1d5   : > { %8981 = vmatmul.msk.bf16.gmra.mxu1 %vm392_vm1, %v4562_v38  ;;  %v11169_v31 = vadd.f32 %v2809_v61, %v2457_v44  ;;  %v4273_v61 = vsel %vm9914_vm6, %v4268_v37, %v11151_v57  ;;  %v3636_v38 = vrot.slane %v3634_v15, 5  ;;  %v8948_v44 = vld [vmem:[%s9799_s10 + $0x5c] sm:$0x1]  ;;  %v3882_v57 = vunpack.c.l.b16 %v3619_v47 }
 0x1d6   : > { %v1359_v18 = vpop.f32.mrf.mxu2  ;;  %v2013_v60 = vpop.f32.mrf.mxu3  ;;  %v4536_v51 = vunpack.c.l.b16 %v4273_v61  ;;  %v3647_v37 = vor.u32 %v3646_v6, %v11182_v42  ;;  %v3650_v15 = vshll.u32 %v8883_v59, 16  ;;  %v4301_v21 = vor.u32 %v4300_v9, %v4296_v25  ;;  %v8884_v6 = vld [vmem:[%s9804_s13 + $0x60] sm:$0xf] }
 0x1d7   : > { %v1403_v14 = vadd.f32 %v1359_v18, %v13117_v13  ;;  %v3637_v0 = vor.u32 %v3636_v38, %v3633_v63  ;;  %v4304_v18 = vshll.u32 %v8948_v44, 16  ;;  %v3909_v39 = vpack.c.b16 %v3883_v29, %v3882_v57  ;;  %v8949_v9 = vld [vmem:[%s9799_s10 + $0x60] sm:$0xf] }
 0x1d8   : > { %v4563_v55 = vpack.c.b16 %v4537_v2, %v4536_v51  ;;  %v3648_v3 = vrot.slane %v3647_v37, 4  ;;  %v3652_v61 = vrot.slane %v3650_v15, 5  ;;  %v4302_v63 = vrot.slane %v4301_v21, 4 }
 0x1d9   : > { %v2057_v32 = vadd.f32 %v2013_v60, %v1403_v14  ;;  %v2416_v12 = vpop.f32.mrf.mxu0  ;;  %v4297_v29 = vsel %vm9914_vm6, %v4292_v5, %v4296_v25  ;;  %v3655_v2 = vshrl.u32 %v8884_v6, 16  ;;  %v4309_v15 = vshrl.u32 %v8949_v9, 16 }
 0x1da   : > { %v2814_v53 = vpop.f32.mrf.mxu1  ;;  %v3653_v57 = vsel %vm9914_vm6, %v3648_v3, %v3652_v61  ;;  %v4538_v25 = vunpack.c.l.b16 %v4297_v29 }
 0x1db   : > { %v2458_v36 = vadd.f32 %v2414_v23, %v2057_v32  ;;  %v13118_v23 = vld [vmem:[#allocation5_spill] sm:$0xff]  ;;  %v4306_v32 = vrot.slane %v4304_v18, 5  ;;  %v4311_v5 = vrot.slane %v4309_v15, 4 }
 0x1dd   : > { %v11187_v8 = vadd.f32 %v2812_v41, %v2458_v36  ;;  %v3638_v41 = vrot.slane %v3637_v0, 4  ;;  %v8950_v36 = vld [vmem:[%s9799_s10 + $0x64] sm:$0xf]  ;;  %v4307_v51 = vsel %vm9914_vm6, %v4302_v63, %v4306_v32 }
 0x1de   : > { %v1361_v16 = vpop.f32.mrf.mxu2  ;;  %v2015_v34 = vpop.f32.mrf.mxu3  ;;  %v13119_v0 = vld [vmem:[#allocation6_spill] sm:$0xff]  ;;  %v4318_v54 = vshll.u32 %v8950_v36, 16  ;;  %v4322_v21 = vshrl.u32 %v8950_v36, 16  ;;  %v8951_v36 = vld [vmem:[%s9799_s10 + $0x68] sm:$0x1] }
 0x1df   : > { %v1404_v60 = vadd.f32 %v1361_v16, %v13118_v23  ;;  %v3643_v30 = vsel %vm9914_vm6, %v3638_v41, %v11182_v42  ;;  %v3658_v16 = vshll.u32 %v8884_v6, 16  ;;  %v3664_v42 = vshll.u32 %v8885_v52, 16  ;;  %v8886_v6 = vld [vmem:[%s9804_s13 + $0x68] sm:$0x1] }
 0x1e0   : > { %v11214_v32 = vrot.slane %v4318_v54, 5  ;;  %v8887_v54 = vld [vmem:[%s9804_s13 + $0x6c] sm:$0xf] }
 0x1e1   : > { %v2058_v13 = vadd.f32 %v2015_v34, %v1404_v60  ;;  %v2419_v14 = vpop.f32.mrf.mxu0  ;;  %v3668_v34 = vshrl.u32 %v8885_v52, 16  ;;  %v3660_v41 = vrot.slane %v3658_v16, 5  ;;  %v11212_v3 = vrot.slane %v3664_v42, 5 }
 0x1e2   : > { %v2817_v47 = vpop.f32.mrf.mxu1 }
 0x1e3   : > { %v2459_v38 = vadd.f32 %v2416_v12, %v2058_v13  ;;  %8739 = vmatmul.msk.bf16.gmra.mxu2 %vm392_vm1, %v9585_v22  ;;  %8852 = vmatmul.msk.bf16.gmra.mxu3 %vm392_vm1, %v9601_v40  ;;  %v3884_v22 = vunpack.c.l.b16 %v3643_v30  ;;  %v3885_v40 = vunpack.c.l.b16 %v3653_v57  ;;  %v3670_v61 = vrot.slane %v3668_v34, 4  ;;  %v9586_v57 = vld [vmem:[%s9804_s13 + $0x54] sm:$0xff] }
 0x1e4   : > { %8917 = vmatmul.msk.bf16.gmra.mxu0 %vm392_vm1, %v3909_v39  ;;  %v4539_v39 = vunpack.c.l.b16 %v4307_v51 }
 0x1e5   : > { %8982 = vmatmul.msk.bf16.gmra.mxu1 %vm392_vm1, %v4563_v55  ;;  %v11203_v59 = vadd.f32 %v2814_v53, %v2459_v38  ;;  %v4312_v53 = vshll.u32 %v8949_v9, 16  ;;  %v3657_v55 = vrot.slane %v3655_v2, 4  ;;  %v4324_v38 = vrot.slane %v4322_v21, 4 }
 0x1e6   : > { %v1364_v44 = vpop.f32.mrf.mxu2  ;;  %v2018_v12 = vpop.f32.mrf.mxu3  ;;  %v3910_v29 = vpack.c.b16 %v3885_v40, %v3884_v22  ;;  %v4564_v51 = vpack.c.b16 %v4539_v39, %v4538_v25  ;;  %v8888_v22 = vld [vmem:[%s9804_s13 + $0x70] sm:$0xf]  ;;  %v8952_v40 = vld [vmem:[%s9799_s10 + $0x6c] sm:$0xf] }
 0x1e7   : > { %v1405_v37 = vadd.f32 %v1364_v44, %v13119_v0  ;;  %v4314_v63 = vrot.slane %v4312_v53, 5  ;;  %v13120_v44 = vld [vmem:[#allocation7_spill] sm:$0xff]  ;;  %v3661_v2 = vor.u32 %v3660_v41, %v3657_v55  ;;  %v3671_v0 = vor.u32 %v3670_v61, %v11212_v3  ;;  %v8953_v41 = vld [vmem:[%s9799_s10 + $0x70] sm:$0xf] }
 0x1e8   : > { %v4328_v53 = vshll.u32 %v8951_v36, 16  ;;  %v4333_v36 = vshrl.u32 %v8952_v40, 16 }
 0x1e9   : > { %v2059_v18 = vadd.f32 %v2018_v12, %v1405_v37  ;;  %v2421_v23 = vpop.f32.mrf.mxu0  ;;  %v3674_v37 = vshll.u32 %v8886_v6, 16  ;;  %v4315_v16 = vor.u32 %v4314_v63, %v4311_v5  ;;  %v3672_v25 = vrot.slane %v3671_v0, 4 }
 0x1ea   : > { %v2819_v60 = vpop.f32.mrf.mxu1  ;;  %v4330_v61 = vrot.slane %v4328_v53, 5  ;;  %v3679_v5 = vshrl.u32 %v8887_v54, 16  ;;  %v3682_v63 = vshll.u32 %v8887_v54, 16 }
 0x1eb   : > { %v2460_v13 = vadd.f32 %v2419_v14, %v2059_v18  ;;  %v9602_v14 = vld [vmem:[%s9799_s10 + $0x54] sm:$0xff]  ;;  %v3662_v18 = vrot.slane %v3661_v2, 4  ;;  %v3676_v39 = vrot.slane %v3674_v37, 5  ;;  %v4316_v55 = vrot.slane %v4315_v16, 4 }
 0x1ec   : > { %v3684_v53 = vrot.slane %v3682_v63, 5 }
 0x1ed   : > { %v11217_v52 = vadd.f32 %v2817_v47, %v2460_v13  ;;  %v4325_v47 = vor.u32 %v4324_v38, %v11214_v32  ;;  %v3677_v2 = vsel %vm9914_vm6, %v3672_v25, %v3676_v39 }
 0x1ee   : > { %v1366_v30 = vpop.f32.mrf.mxu2  ;;  %v2020_v9 = vpop.f32.mrf.mxu3 }
 0x1ef   : > { %v1406_v12 = vadd.f32 %v1366_v30, %v13120_v44  ;;  %v4326_v13 = vrot.slane %v4325_v47, 4  ;;  %v3688_v30 = vshll.u32 %v8888_v22, 16  ;;  %v4336_v44 = vshll.u32 %v8952_v40, 16  ;;  %v8889_v40 = vld [vmem:[%s9804_s13 + $0x74] sm:$0x1] }
 0x1f1   : > { %v2060_v42 = vadd.f32 %v2020_v9, %v1406_v12  ;;  %v2424_v34 = vpop.f32.mrf.mxu0  ;;  %v3692_v9 = vshrl.u32 %v8888_v22, 16  ;;  %v13121_v12 = vld [vmem:[#allocation8_spill] sm:$0xff]  ;;  %v4331_v47 = vsel %vm9914_vm6, %v4326_v13, %v4330_v61  ;;  %v11246_v54 = vrot.slane %v3688_v30, 5 }
 0x1f2   : > { %v2822_v15 = vpop.f32.mrf.mxu1  ;;  %v3698_v30 = vshll.u32 %v8889_v40, 16  ;;  %v8890_v40 = vld [vmem:[%s9804_s13 + $0x78] sm:$0xf] }
 0x1f3   : > { %v2461_v21 = vadd.f32 %v2421_v23, %v2060_v42  ;;  %8740 = vmatmul.msk.bf16.gmra.mxu2 %vm392_vm1, %v9586_v57  ;;  %8853 = vmatmul.msk.bf16.gmra.mxu3 %vm392_vm1, %v9602_v14  ;;  %v4342_v14 = vshll.u32 %v8953_v41, 16  ;;  %v3681_v42 = vrot.slane %v3679_v5, 4 }
 0x1f4   : > { %8918 = vmatmul.msk.bf16.gmra.mxu0 %vm392_vm1, %v3910_v29  ;;  %v4346_v29 = vshrl.u32 %v8953_v41, 16 }
 0x1f5   : > { %8983 = vmatmul.msk.bf16.gmra.mxu1 %vm392_vm1, %v4564_v51  ;;  %v11233_v23 = vadd.f32 %v2819_v60, %v2461_v21  ;;  %v3667_v51 = vsel %vm9914_vm6, %v3662_v18, %v11212_v3  ;;  %v4321_v60 = vsel %vm9914_vm6, %v4316_v55, %v11214_v32  ;;  %v3694_v21 = vrot.slane %v3692_v9, 4 }
 0x1f6   : > { %v1369_v38 = vpop.f32.mrf.mxu2  ;;  %v2023_v6 = vpop.f32.mrf.mxu3  ;;  %v4335_v3 = vrot.slane %v4333_v36, 4  ;;  %v4338_v18 = vrot.slane %v4336_v44, 5  ;;  %v4344_v25 = vrot.slane %v4342_v14, 5  ;;  %v4348_v32 = vrot.slane %v4346_v29, 4  ;;  %v9587_v44 = vld [vmem:[%s9804_s13 + $0x60] sm:$0xff] }
 0x1f7   : > { %v1407_v57 = vadd.f32 %v1369_v38, %v13121_v12  ;;  %v3886_v39 = vunpack.c.l.b16 %v3667_v51  ;;  %v3887_v55 = vunpack.c.l.b16 %v3677_v2  ;;  %v4540_v41 = vunpack.c.l.b16 %v4321_v60 }
 0x1f8   : > { %v4541_v38 = vunpack.c.l.b16 %v4331_v47  ;;  %v3685_v5 = vor.u32 %v3684_v53, %v3681_v42  ;;  %v3695_v63 = vor.u32 %v3694_v21, %v11246_v54  ;;  %v4339_v9 = vor.u32 %v4338_v18, %v4335_v3 }
 0x1f9   : > { %v2061_v0 = vadd.f32 %v2023_v6, %v1407_v57  ;;  %v2426_v37 = vpop.f32.mrf.mxu0  ;;  %v8954_v6 = vld [vmem:[%s9799_s10 + $0x74] sm:$0x1]  ;;  %v9603_v57 = vld [vmem:[%s9799_s10 + $0x60] sm:$0xff]  ;;  %v4349_v14 = vor.u32 %v4348_v32, %v4344_v25  ;;  %v3911_v51 = vpack.c.b16 %v3887_v55, %v3886_v39  ;;  %v3700_v53 = vrot.slane %v3698_v30, 5  ;;  %v8891_v32 = vld [vmem:[%s9804_s13 + $0x7c] sm:$0xf] }
 0x1fa   : > { %v2824_v16 = vpop.f32.mrf.mxu1  ;;  %v4352_v29 = vshll.u32 %v8954_v6, 16  ;;  %v4565_v2 = vpack.c.b16 %v4541_v38, %v4540_v41  ;;  %v3686_v47 = vrot.slane %v3685_v5, 4  ;;  %v3696_v42 = vrot.slane %v3695_v63, 4  ;;  %v8955_v39 = vld [vmem:[%s9799_s10 + $0x78] sm:$0xf]  ;;  %v13124_v5 = vld [vmem:[#allocation10_spill] sm:$0xff] }
 0x1fb   : > { %v2462_v22 = vadd.f32 %v2424_v34, %v2061_v0  ;;  %v13122_v34 = vld [vmem:[#allocation9_spill] sm:$0xff]  ;;  %v4340_v21 = vrot.slane %v4339_v9, 4  ;;  %v4350_v3 = vrot.slane %v4349_v14, 4  ;;  %v3706_v9 = vshll.u32 %v8890_v40, 16 }
 0x1fc   : > { %v4354_v18 = vrot.slane %v4352_v29, 5  ;;  %v3701_v6 = vsel %vm9914_vm6, %v3696_v42, %v3700_v53 }
 0x1fd   : > { %v11250_v12 = vadd.f32 %v2822_v15, %v2462_v22 }
 0x1fe   : > { %v1371_v13 = vpop.f32.mrf.mxu2  ;;  %v2025_v61 = vpop.f32.mrf.mxu3  ;;  %v4355_v30 = vsel %vm9914_vm6, %v4350_v3, %v4354_v18 }
 0x1ff   : > { %v1408_v36 = vadd.f32 %v1371_v13, %v13122_v34  ;;  %v4345_v13 = vsel %vm9914_vm6, %v4340_v21, %v4344_v25  ;;  %v3712_v34 = vshll.u32 %v8891_v32, 16  ;;  %v4543_v53 = vunpack.c.l.b16 %v4355_v30  ;;  %v9604_v30 = vld [vmem:[%s9799_s10 + $0x6c] sm:$0xff] }
 0x201   : > { %v2062_v60 = vadd.f32 %v2025_v61, %v1408_v36  ;;  %v2429_v15 = vpop.f32.mrf.mxu0  ;;  %v8956_v61 = vld [vmem:[%s9799_s10 + $0x7c] sm:$0xf]  ;;  %v3716_v36 = vshrl.u32 %v8891_v32, 16  ;;  %v11276_v3 = vrot.slane %v3712_v34, 5 }
 0x202   : > { %v2827_v0 = vpop.f32.mrf.mxu1 }
 0x203   : > { %v2463_v22 = vadd.f32 %v2426_v37, %v2062_v60  ;;  %8741 = vmatmul.msk.bf16.gmra.mxu2 %vm392_vm1, %v9587_v44  ;;  %8854 = vmatmul.msk.bf16.gmra.mxu3 %vm392_vm1, %v9603_v57  ;;  %v3691_v37 = vsel %vm9914_vm6, %v3686_v47, %v11246_v54  ;;  %v4357_v44 = vshrl.u32 %v8955_v39, 16  ;;  %v4360_v57 = vshll.u32 %v8955_v39, 16  ;;  %v8892_v39 = vld [vmem:[%s9804_s13 + $0x80] sm:$0x1] }
 0x204   : > { %8919 = vmatmul.msk.bf16.gmra.mxu0 %vm392_vm1, %v3911_v51  ;;  %v4366_v51 = vshll.u32 %v8956_v61, 16  ;;  %v3888_v25 = vunpack.c.l.b16 %v3691_v37  ;;  %v3889_v60 = vunpack.c.l.b16 %v3701_v6  ;;  %v4542_v47 = vunpack.c.l.b16 %v4345_v13  ;;  %v13126_v6 = vld [vmem:[#allocation11_spill] sm:$0xff] }
 0x205   : > { %8984 = vmatmul.msk.bf16.gmra.mxu1 %vm392_vm1, %v4565_v2  ;;  %v11263_v55 = vadd.f32 %v2824_v16, %v2463_v22  ;;  %v3703_v16 = vshrl.u32 %v8890_v40, 16  ;;  %v4370_v2 = vshrl.u32 %v8956_v61, 16  ;;  %v3708_v22 = vrot.slane %v3706_v9, 5 }
 0x206   : > { %v1374_v41 = vpop.f32.mrf.mxu2  ;;  %v2028_v38 = vpop.f32.mrf.mxu3  ;;  %v3718_v18 = vrot.slane %v3716_v36, 4  ;;  %v4359_v40 = vrot.slane %v4357_v44, 4  ;;  %v4362_v32 = vrot.slane %v4360_v57, 5  ;;  %v4566_v9 = vpack.c.b16 %v4543_v53, %v4542_v47  ;;  %v8958_v47 = vld [vmem:[%s9799_s10 + $0x84] sm:$0xf] }
 0x207   : > { %13123 = vst [vmem:[#allocation2_spill] sm:$0xff] %v11263_v55  ;;  %v1409_v63 = vadd.f32 %v1374_v41, %v13124_v5  ;;  %v3705_v21 = vrot.slane %v3703_v16, 4  ;;  %v8957_v41 = vld [vmem:[%s9799_s10 + $0x80] sm:$0x1]  ;;  %v4372_v5 = vrot.slane %v4370_v2, 4  ;;  %v3912_v16 = vpack.c.b16 %v3889_v60, %v3888_v25 }
 0x208   : > { %v3719_v36 = vor.u32 %v3718_v18, %v11276_v3  ;;  %v3722_v44 = vshll.u32 %v8892_v39, 16  ;;  %v4363_v57 = vor.u32 %v4362_v32, %v4359_v40  ;;  %v8894_v60 = vld [vmem:[%s9804_s13 + $0x88] sm:$0xf] }
 0x209   : > { %v2063_v14 = vadd.f32 %v2028_v38, %v1409_v63  ;;  %v2431_v54 = vpop.f32.mrf.mxu0  ;;  %v11280_v38 = vrot.slane %v4366_v51, 5  ;;  %v9588_v63 = vld [vmem:[%s9804_s13 + $0x6c] sm:$0xff]  ;;  %v3709_v34 = vor.u32 %v3708_v22, %v3705_v21  ;;  %v8959_v40 = vld [vmem:[%s9799_s10 + $0x88] sm:$0xf] }
 0x20a   : > { %v2829_v29 = vpop.f32.mrf.mxu1  ;;  %v3720_v53 = vrot.slane %v3719_v36, 4  ;;  %v3724_v21 = vrot.slane %v3722_v44, 5  ;;  %v4364_v22 = vrot.slane %v4363_v57, 4 }
 0x20b   : > { %v2464_v42 = vadd.f32 %v2429_v15, %v2063_v14  ;;  %v4376_v14 = vshll.u32 %v8957_v41, 16  ;;  %v3710_v25 = vrot.slane %v3709_v34, 4  ;;  %v13128_v34 = vld [vmem:[#allocation12_spill] sm:$0xff] }
 0x20d   : > { %v11282_v61 = vadd.f32 %v2827_v0, %v2464_v42  ;;  %v4373_v42 = vor.u32 %v4372_v5, %v11280_v38  ;;  %v4378_v18 = vrot.slane %v4376_v14, 5  ;;  %v3715_v36 = vsel %vm9914_vm6, %v3710_v25, %v11276_v3 }
 0x20e   : > { %v1376_v37 = vpop.f32.mrf.mxu2  ;;  %v2030_v15 = vpop.f32.mrf.mxu3 }
 0x20f   : > { %13125 = vst [vmem:[#allocation3_spill] sm:$0xff] %v11282_v61  ;;  %v1410_v13 = vadd.f32 %v1376_v37, %v13126_v6  ;;  %v8893_v61 = vld [vmem:[%s9804_s13 + $0x84] sm:$0xf]  ;;  %v4374_v32 = vrot.slane %v4373_v42, 4  ;;  %v3736_v6 = vshll.u32 %v8894_v60, 16 }
 0x210   : > { %v3727_v39 = vshrl.u32 %v8893_v61, 16  ;;  %v3730_v41 = vshll.u32 %v8893_v61, 16  ;;  %v3725_v61 = vsel %vm9914_vm6, %v3720_v53, %v3724_v21  ;;  %v8895_v53 = vld [vmem:[%s9804_s13 + $0x8c] sm:$0x1] }
 0x211   : > { %v2064_v51 = vadd.f32 %v2030_v15, %v1410_v13  ;;  %v3980_v0 = vpop.f32.mrf.mxu0  ;;  %v3740_v13 = vshrl.u32 %v8894_v60, 16  ;;  %v4379_v42 = vsel %vm9914_vm6, %v4374_v32, %v4378_v18 }
 0x212   : > { %v4634_v2 = vpop.f32.mrf.mxu1  ;;  %v3732_v60 = vrot.slane %v3730_v41, 5 }
 0x213   : > { %v2465_v37 = vadd.f32 %v2431_v54, %v2064_v51  ;;  %8742 = vmatmul.msk.bf16.gmra.mxu2 %vm392_vm1, %v9588_v63  ;;  %8855 = vmatmul.msk.bf16.gmra.mxu3 %vm392_vm1, %v9604_v30  ;;  %v4381_v63 = vshrl.u32 %v8958_v47, 16  ;;  %v4384_v30 = vshll.u32 %v8958_v47, 16  ;;  %v4390_v51 = vshll.u32 %v8959_v40, 16 }
 0x214   : > { %8920 = vmatmul.msk.bf16.gmra.mxu0 %vm392_vm1, %v3912_v16  ;;  %v11310_v47 = vrot.slane %v3736_v6, 5  ;;  %v3746_v6 = vshll.u32 %v8895_v53, 16 }
 0x215   : > { %8985 = vmatmul.msk.bf16.gmra.mxu1 %vm392_vm1, %v4566_v9  ;;  %v11297_v54 = vadd.f32 %v2829_v29, %v2465_v37  ;;  %v4394_v9 = vshrl.u32 %v8959_v40, 16  ;;  %v4369_v29 = vsel %vm9914_vm6, %v4364_v22, %v11280_v38  ;;  %v3729_v37 = vrot.slane %v3727_v39, 4 }
 0x216   : > { %v3039_v5 = vpop.f32.mrf.mxu2  ;;  %v3326_v15 = vpop.f32.mrf.mxu3  ;;  %v3742_v40 = vrot.slane %v3740_v13, 4  ;;  %v4383_v3 = vrot.slane %v4381_v63, 4  ;;  %v4386_v25 = vrot.slane %v4384_v30, 5  ;;  %v4392_v21 = vrot.slane %v4390_v51, 5  ;;  %v9589_v30 = vld [vmem:[%s9804_s13 + $0x78] sm:$0xff] }
 0x217   : > { %13127 = vst [vmem:[#allocation4_spill] sm:$0xff] %v11297_v54  ;;  %v3119_v16 = vadd.f32 %v3039_v5, %v13128_v34  ;;  %v4396_v38 = vrot.slane %v4394_v9, 4  ;;  %v3890_v22 = vunpack.c.l.b16 %v3715_v36  ;;  %v4544_v34 = vunpack.c.l.b16 %v4369_v29  ;;  %v8960_v54 = vld [vmem:[%s9799_s10 + $0x8c] sm:$0x1]  ;;  %v9605_v51 = vld [vmem:[%s9799_s10 + $0x78] sm:$0xff] }
 0x218   : > { %v3733_v39 = vor.u32 %v3732_v60, %v3729_v37  ;;  %v3743_v41 = vor.u32 %v3742_v40, %v11310_v47  ;;  %v4387_v13 = vor.u32 %v4386_v25, %v4383_v3  ;;  %v4400_v9 = vshll.u32 %v8960_v54, 16  ;;  %v8896_v25 = vld [vmem:[%s9804_s13 + $0x90] sm:$0xf] }
 0x219   : > { %v3406_v44 = vadd.f32 %v3326_v15, %v3119_v16  ;;  %v3982_v57 = vpop.f32.mrf.mxu0  ;;  %v3891_v15 = vunpack.c.l.b16 %v3725_v61  ;;  %v4545_v16 = vunpack.c.l.b16 %v4379_v42  ;;  %v3748_v60 = vrot.slane %v3746_v6, 5 }
 0x21a   : > { %v4636_v14 = vpop.f32.mrf.mxu1  ;;  %v3744_v37 = vrot.slane %v3743_v41, 4  ;;  %v4388_v40 = vrot.slane %v4387_v13, 4  ;;  %v4402_v54 = vrot.slane %v4400_v9, 5  ;;  %v3754_v13 = vshll.u32 %v8896_v25, 16 }
 0x21b   : > { %v4060_v5 = vadd.f32 %v3980_v0, %v3406_v44  ;;  %v13129_v0 = vld [vmem:[#allocation13_spill] sm:$0xff]  ;;  %v4397_v44 = vor.u32 %v4396_v38, %v4392_v21  ;;  %v3913_v36 = vpack.c.b16 %v3891_v15, %v3890_v22  ;;  %v4567_v61 = vpack.c.b16 %v4545_v16, %v4544_v34  ;;  %v8897_v38 = vld [vmem:[%s9804_s13 + $0x94] sm:$0xf]  ;;  %v8961_v22 = vld [vmem:[%s9799_s10 + $0x90] sm:$0xf] }
 0x21d   : > { %v11314_v55 = vadd.f32 %v4634_v2, %v4060_v5  ;;  %v3734_v5 = vrot.slane %v3733_v39, 4  ;;  %v4398_v3 = vrot.slane %v4397_v44, 4  ;;  %v8962_v39 = vld [vmem:[%s9799_s10 + $0x94] sm:$0xf] }
 0x21e   : > { %v3041_v18 = vpop.f32.mrf.mxu2  ;;  %v3328_v32 = vpop.f32.mrf.mxu3 }
 0x21f   : > { %v3120_v63 = vadd.f32 %v3041_v18, %v13129_v0  ;;  %v3749_v18 = vsel %vm9914_vm6, %v3744_v37, %v3748_v60  ;;  %v4403_v6 = vsel %vm9914_vm6, %v4398_v3, %v4402_v54  ;;  %v3760_v0 = vshll.u32 %v8897_v38, 16 }
 0x220   : > { %v4547_v37 = vunpack.c.l.b16 %v4403_v6 }
 0x221   : > { %v3407_v29 = vadd.f32 %v3328_v32, %v3120_v63  ;;  %v3985_v2 = vpop.f32.mrf.mxu0  ;;  %v4393_v32 = vsel %vm9914_vm6, %v4388_v40, %v4392_v21  ;;  %v3764_v63 = vshrl.u32 %v8897_v38, 16  ;;  %v3756_v40 = vrot.slane %v3754_v13, 5  ;;  %v8898_v38 = vld [vmem:[%s9804_s13 + $0x98] sm:$0x1] }
 0x222   : > { %v4639_v42 = vpop.f32.mrf.mxu1 }
 0x223   : > { %v4061_v53 = vadd.f32 %v3982_v57, %v3407_v29  ;;  %8743 = vmatmul.msk.bf16.gmra.mxu2 %vm392_vm1, %v9589_v30  ;;  %8856 = vmatmul.msk.bf16.gmra.mxu3 %vm392_vm1, %v9605_v51  ;;  %v3739_v57 = vsel %vm9914_vm6, %v3734_v5, %v11310_v47  ;;  %v4405_v30 = vshrl.u32 %v8961_v22, 16  ;;  %v4408_v51 = vshll.u32 %v8961_v22, 16  ;;  %v8963_v22 = vld [vmem:[%s9799_s10 + $0x98] sm:$0x1] }
 0x224   : > { %8921 = vmatmul.msk.bf16.gmra.mxu0 %vm392_vm1, %v3913_v36  ;;  %v4414_v36 = vshll.u32 %v8962_v39, 16  ;;  %v3892_v21 = vunpack.c.l.b16 %v3739_v57  ;;  %v3893_v29 = vunpack.c.l.b16 %v3749_v18  ;;  %v4546_v5 = vunpack.c.l.b16 %v4393_v32  ;;  %v9590_v32 = vld [vmem:[%s9804_s13 + $0x84] sm:$0xff] }
 0x225   : > { %8986 = vmatmul.msk.bf16.gmra.mxu1 %vm392_vm1, %v4567_v61  ;;  %v11327_v15 = vadd.f32 %v4636_v14, %v4061_v53  ;;  %v3751_v14 = vshrl.u32 %v8896_v25, 16  ;;  %v4418_v61 = vshrl.u32 %v8962_v39, 16  ;;  %v11340_v53 = vrot.slane %v3760_v0, 5 }
 0x226   : > { %v3044_v34 = vpop.f32.mrf.mxu2  ;;  %v3331_v16 = vpop.f32.mrf.mxu3  ;;  %v3766_v3 = vrot.slane %v3764_v63, 4  ;;  %v4407_v54 = vrot.slane %v4405_v30, 4  ;;  %v4410_v25 = vrot.slane %v4408_v51, 5  ;;  %v3914_v6 = vpack.c.b16 %v3893_v29, %v3892_v21  ;;  %v8900_v29 = vld [vmem:[%s9804_s13 + $0xa0] sm:$0xf] }
 0x227   : > { %v3121_v41 = vadd.f32 %v3044_v34, %v10693_v62  ;;  %v3753_v60 = vrot.slane %v3751_v14, 4  ;;  %v11344_v34 = vrot.slane %v4414_v36, 5  ;;  %v4568_v14 = vpack.c.b16 %v4547_v37, %v4546_v5  ;;  %v8964_v5 = vld [vmem:[%s9799_s10 + $0x9c] sm:$0xf] }
 0x228   : > { %v3767_v0 = vor.u32 %v3766_v3, %v11340_v53  ;;  %v3770_v63 = vshll.u32 %v8898_v38, 16  ;;  %v4411_v30 = vor.u32 %v4410_v25, %v4407_v54  ;;  %v4424_v51 = vshll.u32 %v8963_v22, 16  ;;  %v8965_v54 = vld [vmem:[%s9799_s10 + $0xa0] sm:$0xf] }
 0x229   : > { %v3408_v44 = vadd.f32 %v3331_v16, %v3121_v41  ;;  %v3987_v47 = vpop.f32.mrf.mxu0  ;;  %v4420_v16 = vrot.slane %v4418_v61, 4  ;;  %v9606_v41 = vld [vmem:[%s9799_s10 + $0x84] sm:$0xff]  ;;  %v3757_v13 = vor.u32 %v3756_v40, %v3753_v60 }
 0x22a   : > { %v4641_v9 = vpop.f32.mrf.mxu1  ;;  %v3768_v37 = vrot.slane %v3767_v0, 4  ;;  %v3772_v60 = vrot.slane %v3770_v63, 5  ;;  %v4412_v40 = vrot.slane %v4411_v30, 4  ;;  %v4426_v3 = vrot.slane %v4424_v51, 5 }
 0x22b   : > { %v4062_v62 = vadd.f32 %v3985_v2, %v3408_v44  ;;  %v4421_v61 = vor.u32 %v4420_v16, %v11344_v34  ;;  %v3758_v21 = vrot.slane %v3757_v13, 4  ;;  %v4438_v13 = vshll.u32 %v8965_v54, 16 }
 0x22c   : > { %v3773_v63 = vsel %vm9914_vm6, %v3768_v37, %v3772_v60  ;;  %v8901_v37 = vld [vmem:[%s9804_s13 + $0xa4] sm:$0x1] }
 0x22d   : > { %v11346_v39 = vadd.f32 %v4639_v42, %v4062_v62  ;;  %v8899_v62 = vld [vmem:[%s9804_s13 + $0x9c] sm:$0xf]  ;;  %v4422_v25 = vrot.slane %v4421_v61, 4  ;;  %v3763_v0 = vsel %vm9914_vm6, %v3758_v21, %v11340_v53  ;;  %v4440_v60 = vrot.slane %v4438_v13, 5 }
 0x22e   : > { %v3046_v57 = vpop.f32.mrf.mxu2  ;;  %v3333_v2 = vpop.f32.mrf.mxu3  ;;  %v3775_v38 = vshrl.u32 %v8899_v62, 16  ;;  %v3778_v22 = vshll.u32 %v8899_v62, 16 }
 0x22f   : > { %v3122_v18 = vadd.f32 %v3046_v57, %v10696_v26 }
 0x230   : > { %v3777_v61 = vrot.slane %v3775_v38, 4  ;;  %v3780_v62 = vrot.slane %v3778_v22, 5 }
 0x231   : > { %v3409_v44 = vadd.f32 %v3333_v2, %v3122_v18  ;;  %v3990_v42 = vpop.f32.mrf.mxu0  ;;  %v3784_v2 = vshll.u32 %v8900_v29, 16  ;;  %v3788_v18 = vshrl.u32 %v8900_v29, 16 }
 0x232   : > { %v4644_v36 = vpop.f32.mrf.mxu1  ;;  %v3781_v38 = vor.u32 %v3780_v62, %v3777_v61 }
 0x233   : > { %v4063_v26 = vadd.f32 %v3987_v47, %v3409_v44  ;;  %8744 = vmatmul.msk.bf16.gmra.mxu2 %vm392_vm1, %v9590_v32  ;;  %8857 = vmatmul.msk.bf16.gmra.mxu3 %vm392_vm1, %v9606_v41  ;;  %v4429_v32 = vshrl.u32 %v8964_v5, 16  ;;  %v4432_v41 = vshll.u32 %v8964_v5, 16  ;;  %v3790_v29 = vrot.slane %v3788_v18, 4 }
 0x234   : > { %8922 = vmatmul.msk.bf16.gmra.mxu0 %vm392_vm1, %v3914_v6 }
 0x235   : > { %8987 = vmatmul.msk.bf16.gmra.mxu1 %vm392_vm1, %v4568_v14  ;;  %v11361_v47 = vadd.f32 %v4641_v9, %v4063_v26  ;;  %v4442_v14 = vshrl.u32 %v8965_v54, 16  ;;  %v4417_v9 = vsel %vm9914_vm6, %v4412_v40, %v11344_v34  ;;  %v11374_v26 = vrot.slane %v3784_v2, 5 }
 0x236   : > { %v3049_v16 = vpop.f32.mrf.mxu2  ;;  %v3336_v57 = vpop.f32.mrf.mxu3  ;;  %v4431_v53 = vrot.slane %v4429_v32, 4  ;;  %v4434_v21 = vrot.slane %v4432_v41, 5  ;;  %v3894_v40 = vunpack.c.l.b16 %v3763_v0  ;;  %v3895_v54 = vunpack.c.l.b16 %v3773_v63  ;;  %v9591_v32 = vld [vmem:[%s9804_s13 + $0x90] sm:$0xff] }
 0x237   : > { %13130 = vst [vmem:[#allocation5_spill] sm:$0xff] %v11361_v47  ;;  %v3123_v6 = vadd.f32 %v3049_v16, %v10762_v49  ;;  %v4427_v49 = vsel %vm9914_vm6, %v4422_v25, %v4426_v3  ;;  %v4444_v34 = vrot.slane %v4442_v14, 4  ;;  %v4548_v16 = vunpack.c.l.b16 %v4417_v9  ;;  %v9607_v41 = vld [vmem:[%s9799_s10 + $0x90] sm:$0xff] }
 0x238   : > { %v3791_v22 = vor.u32 %v3790_v29, %v11374_v26  ;;  %v3794_v2 = vshll.u32 %v8901_v37, 16  ;;  %v4435_v18 = vor.u32 %v4434_v21, %v4431_v53  ;;  %v3915_v0 = vpack.c.b16 %v3895_v54, %v3894_v40  ;;  %v8902_v21 = vld [vmem:[%s9804_s13 + $0xa8] sm:$0xf]  ;;  %v8903_v37 = vld [vmem:[%s9804_s13 + $0xac] sm:$0xf] }
 0x239   : > { %v3410_v30 = vadd.f32 %v3336_v57, %v3123_v6  ;;  %v3992_v51 = vpop.f32.mrf.mxu0  ;;  %v4549_v57 = vunpack.c.l.b16 %v4427_v49  ;;  %v8966_v6 = vld [vmem:[%s9799_s10 + $0xa4] sm:$0x1]  ;;  %v4445_v13 = vor.u32 %v4444_v34, %v4440_v60  ;;  %v3782_v49 = vrot.slane %v3781_v38, 4  ;;  %v8967_v34 = vld [vmem:[%s9799_s10 + $0xa8] sm:$0xf] }
 0x23a   : > { %v4646_v44 = vpop.f32.mrf.mxu1  ;;  %v4448_v14 = vshll.u32 %v8966_v6, 16  ;;  %v3792_v61 = vrot.slane %v3791_v22, 4  ;;  %v3796_v62 = vrot.slane %v3794_v2, 5  ;;  %v4436_v29 = vrot.slane %v4435_v18, 4 }
 0x23b   : > { %v4064_v5 = vadd.f32 %v3990_v42, %v3410_v30  ;;  %v4569_v63 = vpack.c.b16 %v4549_v57, %v4548_v16  ;;  %v3802_v22 = vshll.u32 %v8902_v21, 16  ;;  %v3808_v2 = vshll.u32 %v8903_v37, 16 }
 0x23c   : > { %v4450_v53 = vrot.slane %v4448_v14, 5  ;;  %v3797_v57 = vsel %vm9914_vm6, %v3792_v61, %v3796_v62  ;;  %v4441_v6 = vsel %vm9914_vm6, %v4436_v29, %v4440_v60  ;;  %v3812_v18 = vshrl.u32 %v8903_v37, 16  ;;  %v8969_v37 = vld [vmem:[%s9799_s10 + $0xb0] sm:$0x1] }
 0x23d   : > { %v11378_v47 = vadd.f32 %v4644_v36, %v4064_v5  ;;  %v3804_v62 = vrot.slane %v3802_v22, 5  ;;  %v11404_v29 = vrot.slane %v3808_v2, 5 }
 0x23e   : > { %v3051_v3 = vpop.f32.mrf.mxu2  ;;  %v3338_v25 = vpop.f32.mrf.mxu3 }
 0x23f   : > { %v3124_v42 = vadd.f32 %v3051_v3, %v10764_v45  ;;  %v4446_v45 = vrot.slane %v4445_v13, 4  ;;  %v8968_v3 = vld [vmem:[%s9799_s10 + $0xac] sm:$0xf] }
 0x240   : > { %v4462_v14 = vshll.u32 %v8968_v3, 16 }
 0x241   : > { %v3411_v9 = vadd.f32 %v3338_v25, %v3124_v42  ;;  %v3995_v36 = vpop.f32.mrf.mxu0  ;;  %v4451_v38 = vsel %vm9914_vm6, %v4446_v45, %v4450_v53  ;;  %v4453_v42 = vshrl.u32 %v8967_v34, 16 }
 0x242   : > { %v4649_v30 = vpop.f32.mrf.mxu1 }
 0x243   : > { %v4065_v5 = vadd.f32 %v3992_v51, %v3411_v9  ;;  %8745 = vmatmul.msk.bf16.gmra.mxu2 %vm392_vm1, %v9591_v32  ;;  %8858 = vmatmul.msk.bf16.gmra.mxu3 %vm392_vm1, %v9607_v41  ;;  %v3787_v51 = vsel %vm9914_vm6, %v3782_v49, %v11374_v26  ;;  %v4456_v32 = vshll.u32 %v8967_v34, 16  ;;  %v4550_v9 = vunpack.c.l.b16 %v4441_v6  ;;  %v9592_v6 = vld [vmem:[%s9804_s13 + $0x9c] sm:$0xff] }
 0x244   : > { %8923 = vmatmul.msk.bf16.gmra.mxu0 %vm392_vm1, %v3915_v0  ;;  %v4466_v0 = vshrl.u32 %v8968_v3, 16  ;;  %v3896_v60 = vunpack.c.l.b16 %v3787_v51  ;;  %v4551_v49 = vunpack.c.l.b16 %v4451_v38  ;;  %v4455_v45 = vrot.slane %v4453_v42, 4  ;;  %v9608_v3 = vld [vmem:[%s9799_s10 + $0x9c] sm:$0xff] }
 0x245   : > { %8988 = vmatmul.msk.bf16.gmra.mxu1 %vm392_vm1, %v4569_v63  ;;  %v11391_v40 = vadd.f32 %v4646_v44, %v4065_v5  ;;  %v3799_v44 = vshrl.u32 %v8902_v21, 16  ;;  %v3897_v63 = vunpack.c.l.b16 %v3797_v57  ;;  %v3814_v5 = vrot.slane %v3812_v18, 4  ;;  %v8904_v21 = vld [vmem:[%s9804_s13 + $0xb0] sm:$0x1] }
 0x246   : > { %v3054_v54 = vpop.f32.mrf.mxu2  ;;  %v3341_v16 = vpop.f32.mrf.mxu3  ;;  %v4458_v53 = vrot.slane %v4456_v32, 5  ;;  %v11408_v34 = vrot.slane %v4462_v14, 5  ;;  %v4570_v38 = vpack.c.b16 %v4551_v49, %v4550_v9  ;;  %v3818_v2 = vshll.u32 %v8904_v21, 16  ;;  %v8970_v9 = vld [vmem:[%s9799_s10 + $0xb4] sm:$0xf] }
 0x247   : > { %v3125_v25 = vadd.f32 %v3054_v54, %v10825_v48  ;;  %v3801_v61 = vrot.slane %v3799_v44, 4  ;;  %v4468_v54 = vrot.slane %v4466_v0, 4  ;;  %v3815_v22 = vor.u32 %v3814_v5, %v11404_v29  ;;  %v8905_v0 = vld [vmem:[%s9804_s13 + $0xb4] sm:$0xf]  ;;  %v8971_v5 = vld [vmem:[%s9799_s10 + $0xb8] sm:$0xf] }
 0x248   : > { %v4459_v18 = vor.u32 %v4458_v53, %v4455_v45  ;;  %v4472_v42 = vshll.u32 %v8969_v37, 16  ;;  %v3820_v49 = vrot.slane %v3818_v2, 5  ;;  %v3823_v53 = vshrl.u32 %v8905_v0, 16 }
 0x249   : > { %v3412_v41 = vadd.f32 %v3341_v16, %v3125_v25  ;;  %v3997_v26 = vpop.f32.mrf.mxu0  ;;  %v3916_v25 = vpack.c.b16 %v3897_v63, %v3896_v60  ;;  %v3805_v44 = vor.u32 %v3804_v62, %v3801_v61  ;;  %v4469_v14 = vor.u32 %v4468_v54, %v11408_v34  ;;  %v8906_v63 = vld [vmem:[%s9804_s13 + $0xb8] sm:$0xf] }
 0x24a   : > { %v4651_v13 = vpop.f32.mrf.mxu1  ;;  %v4460_v61 = vrot.slane %v4459_v18, 4  ;;  %v4474_v62 = vrot.slane %v4472_v42, 5  ;;  %v3826_v21 = vshll.u32 %v8905_v0, 16 }
 0x24b   : > { %v4066_v48 = vadd.f32 %v3995_v36, %v3412_v41  ;;  %v3806_v60 = vrot.slane %v3805_v44, 4  ;;  %v4470_v45 = vrot.slane %v4469_v14, 4 }
 0x24c   : > { %v3828_v14 = vrot.slane %v3826_v21, 5 }
 0x24d   : > { %v11410_v16 = vadd.f32 %v4649_v30, %v4066_v48  ;;  %v3816_v48 = vrot.slane %v3815_v22, 4  ;;  %v3811_v44 = vsel %vm9914_vm6, %v3806_v60, %v11404_v29 }
 0x24e   : > { %v3056_v51 = vpop.f32.mrf.mxu2  ;;  %v3343_v36 = vpop.f32.mrf.mxu3 }
 0x24f   : > { %v3126_v57 = vadd.f32 %v3056_v51, %v10832_v46  ;;  %v3832_v51 = vshll.u32 %v8906_v63, 16  ;;  %v3821_v22 = vsel %vm9914_vm6, %v3816_v48, %v3820_v49  ;;  %v3898_v49 = vunpack.c.l.b16 %v3811_v44 }
 0x251   : > { %v3413_v32 = vadd.f32 %v3343_v36, %v3126_v57  ;;  %v4000_v30 = vpop.f32.mrf.mxu0  ;;  %v3836_v36 = vshrl.u32 %v8906_v63, 16  ;;  %v4477_v57 = vshrl.u32 %v8970_v9, 16  ;;  %v11438_v0 = vrot.slane %v3832_v51, 5 }
 0x252   : > { %v4654_v41 = vpop.f32.mrf.mxu1 }
 0x253   : > { %v4067_v46 = vadd.f32 %v3997_v26, %v3413_v32  ;;  %8746 = vmatmul.msk.bf16.gmra.mxu2 %vm392_vm1, %v9592_v6  ;;  %8859 = vmatmul.msk.bf16.gmra.mxu3 %vm392_vm1, %v9608_v3  ;;  %v4480_v6 = vshll.u32 %v8970_v9, 16  ;;  %v3825_v32 = vrot.slane %v3823_v53, 4  ;;  %v4479_v29 = vrot.slane %v4477_v57, 4  ;;  %v8907_v9 = vld [vmem:[%s9804_s13 + $0xbc] sm:$0x1]  ;;  %v9593_v57 = vld [vmem:[%s9804_s13 + $0xa8] sm:$0xff] }
 0x254   : > { %8924 = vmatmul.msk.bf16.gmra.mxu0 %vm392_vm1, %v3916_v25  ;;  %v4486_v25 = vshll.u32 %v8971_v5, 16  ;;  %v3842_v51 = vshll.u32 %v8907_v9, 16  ;;  %v8909_v9 = vld [vmem:[%s9804_s13 + $0xc4] sm:$0xf] }
 0x255   : > { %8989 = vmatmul.msk.bf16.gmra.mxu1 %vm392_vm1, %v4570_v38  ;;  %v11425_v26 = vadd.f32 %v4651_v13, %v4067_v46  ;;  %v4490_v38 = vshrl.u32 %v8971_v5, 16  ;;  %v4465_v13 = vsel %vm9914_vm6, %v4460_v61, %v11408_v34  ;;  %v3838_v46 = vrot.slane %v3836_v36, 4 }
 0x256   : > { %v3059_v37 = vpop.f32.mrf.mxu2  ;;  %v3346_v54 = vpop.f32.mrf.mxu3  ;;  %v4482_v60 = vrot.slane %v4480_v6, 5  ;;  %v4488_v48 = vrot.slane %v4486_v25, 5  ;;  %v3899_v61 = vunpack.c.l.b16 %v3821_v22  ;;  %v4552_v5 = vunpack.c.l.b16 %v4465_v13  ;;  %v9609_v6 = vld [vmem:[%s9799_s10 + $0xa8] sm:$0xff] }
 0x257   : > { %v3127_v3 = vadd.f32 %v3059_v37, %v10897_v4  ;;  %v4475_v4 = vsel %vm9914_vm6, %v4470_v45, %v4474_v62  ;;  %v4492_v34 = vrot.slane %v4490_v38, 4  ;;  %v3829_v53 = vor.u32 %v3828_v14, %v3825_v32 }
 0x258   : > { %v4553_v37 = vunpack.c.l.b16 %v4475_v4  ;;  %v3839_v21 = vor.u32 %v3838_v46, %v11438_v0  ;;  %v4483_v36 = vor.u32 %v4482_v60, %v4479_v29  ;;  %v3917_v44 = vpack.c.b16 %v3899_v61, %v3898_v49  ;;  %v8908_v60 = vld [vmem:[%s9804_s13 + $0xc0] sm:$0xf] }
 0x259   : > { %v3414_v2 = vadd.f32 %v3346_v54, %v3127_v3  ;;  %v4002_v18 = vpop.f32.mrf.mxu0  ;;  %v8972_v54 = vld [vmem:[%s9799_s10 + $0xbc] sm:$0x1]  ;;  %v4493_v25 = vor.u32 %v4492_v34, %v4488_v48  ;;  %v3830_v4 = vrot.slane %v3829_v53, 4  ;;  %v3844_v14 = vrot.slane %v3842_v51, 5  ;;  %v8973_v34 = vld [vmem:[%s9799_s10 + $0xc0] sm:$0xf] }
 0x25a   : > { %v4656_v42 = vpop.f32.mrf.mxu1  ;;  %v4496_v38 = vshll.u32 %v8972_v54, 16  ;;  %v4571_v22 = vpack.c.b16 %v4553_v37, %v4552_v5  ;;  %v3840_v32 = vrot.slane %v3839_v21, 4  ;;  %v4484_v46 = vrot.slane %v4483_v36, 4 }
 0x25b   : > { %v4068_v63 = vadd.f32 %v4000_v30, %v3414_v2  ;;  %v3850_v21 = vshll.u32 %v8908_v60, 16  ;;  %v3856_v51 = vshll.u32 %v8909_v9, 16  ;;  %v3860_v36 = vshrl.u32 %v8909_v9, 16 }
 0x25c   : > { %v4498_v29 = vrot.slane %v4496_v38, 5  ;;  %v3845_v37 = vsel %vm9914_vm6, %v3840_v32, %v3844_v14  ;;  %v4489_v54 = vsel %vm9914_vm6, %v4484_v46, %v4488_v48 }
 0x25d   : > { %v11442_v3 = vadd.f32 %v4654_v41, %v4068_v63  ;;  %v3901_v48 = vunpack.c.l.b16 %v3845_v37  ;;  %v3852_v14 = vrot.slane %v3850_v21, 5  ;;  %v3858_v46 = vrot.slane %v3856_v51, 5  ;;  %v8975_v37 = vld [vmem:[%s9799_s10 + $0xc8] sm:$0x1] }
 0x25e   : > { %v3061_v62 = vpop.f32.mrf.mxu2  ;;  %v3348_v45 = vpop.f32.mrf.mxu3 }
 0x25f   : > { %v3128_v30 = vadd.f32 %v3061_v62, %v10899_v35  ;;  %v4494_v35 = vrot.slane %v4493_v25, 4  ;;  %v8974_v62 = vld [vmem:[%s9799_s10 + $0xc4] sm:$0xf] }
 0x260   : > { %v4510_v38 = vshll.u32 %v8974_v62, 16 }
 0x261   : > { %v3415_v13 = vadd.f32 %v3348_v45, %v3128_v30  ;;  %v4005_v41 = vpop.f32.mrf.mxu0  ;;  %v4499_v53 = vsel %vm9914_vm6, %v4494_v35, %v4498_v29  ;;  %v4501_v30 = vshrl.u32 %v8973_v34, 16 }
 0x262   : > { %v4659_v2 = vpop.f32.mrf.mxu1  ;;  %v4512_v9 = vrot.slane %v4510_v38, 5 }
 0x263   : > { %v4069_v63 = vadd.f32 %v4002_v18, %v3415_v13  ;;  %8747 = vmatmul.msk.bf16.gmra.mxu2 %vm392_vm1, %v9593_v57  ;;  %8860 = vmatmul.msk.bf16.gmra.mxu3 %vm392_vm1, %v9609_v6  ;;  %v3835_v18 = vsel %vm9914_vm6, %v3830_v4, %v11438_v0  ;;  %v4504_v57 = vshll.u32 %v8973_v34, 16  ;;  %v4554_v13 = vunpack.c.l.b16 %v4489_v54 }
 0x264   : > { %8925 = vmatmul.msk.bf16.gmra.mxu0 %vm392_vm1, %v3917_v44  ;;  %v4514_v44 = vshrl.u32 %v8974_v62, 16  ;;  %v4555_v4 = vunpack.c.l.b16 %v4499_v53  ;;  %v4503_v35 = vrot.slane %v4501_v30, 4  ;;  %v9610_v62 = vld [vmem:[%s9799_s10 + $0xb4] sm:$0xff] }
 0x265   : > { %8990 = vmatmul.msk.bf16.gmra.mxu1 %vm392_vm1, %v4571_v22  ;;  %v11455_v49 = vadd.f32 %v4656_v42, %v4069_v63  ;;  %v3847_v42 = vshrl.u32 %v8908_v60, 16  ;;  %v3900_v22 = vunpack.c.l.b16 %v3835_v18  ;;  %v3862_v63 = vrot.slane %v3860_v36, 4  ;;  %v8910_v60 = vld [vmem:[%s9804_s13 + $0xc8] sm:$0x1] }
 0x266   : > { %v3064_v61 = vpop.f32.mrf.mxu2  ;;  %v3351_v5 = vpop.f32.mrf.mxu3  ;;  %v4506_v29 = vrot.slane %v4504_v57, 5  ;;  %v4516_v34 = vrot.slane %v4514_v44, 4  ;;  %v4572_v53 = vpack.c.b16 %v4555_v4, %v4554_v13  ;;  %v3866_v51 = vshll.u32 %v8910_v60, 16 }
 0x267   : > { %v3129_v45 = vadd.f32 %v3064_v61, %v10925_v19  ;;  %v3849_v32 = vrot.slane %v3847_v42, 4  ;;  %v3863_v21 = vor.u32 %v3862_v63, %v3858_v46  ;;  %v4520_v44 = vshll.u32 %v8975_v37, 16 }
 0x268   : > { %v4507_v36 = vor.u32 %v4506_v29, %v4503_v35  ;;  %v4517_v38 = vor.u32 %v4516_v34, %v4512_v9 }
 0x269   : > { %v3416_v6 = vadd.f32 %v3351_v5, %v3129_v45  ;;  %v4007_v0 = vpop.f32.mrf.mxu0  ;;  %v3918_v45 = vpack.c.b16 %v3901_v48, %v3900_v22  ;;  %v3853_v42 = vor.u32 %v3852_v14, %v3849_v32  ;;  %v3864_v22 = vrot.slane %v3863_v21, 4  ;;  %v9430_v14 = vld [vmem:[%s13095_s3 + $0xe] sm:$0x3] }
 0x26a   : > { %v4661_v25 = vpop.f32.mrf.mxu1  ;;  %v3868_v48 = vrot.slane %v3866_v51, 5  ;;  %v4508_v13 = vrot.slane %v4507_v36, 4  ;;  %v4518_v4 = vrot.slane %v4517_v38, 4  ;;  %v4522_v32 = vrot.slane %v4520_v44, 5  ;;  %v9595_v38 = vld [vmem:[%s9804_s13 + $0xc0] sm:$0xff] }
 0x26b   : > { %v4070_v19 = vadd.f32 %v4005_v41, %v3416_v6  ;;  %v9594_v41 = vld [vmem:[%s9804_s13 + $0xb4] sm:$0xff]  ;;  %v9611_v44 = vld [vmem:[%s9799_s10 + $0xc0] sm:$0xff] }
 0x26d   : > { %v11469_v61 = vadd.f32 %v4659_v2, %v4070_v19  ;;  %v9365_v19 = vld [vmem:[%s13094_s2 + $0xe] sm:$0x3] }
 0x26e   : > { %v3066_v5 = vpop.f32.mrf.mxu2  ;;  %v3353_v18 = vpop.f32.mrf.mxu3 }
 0x26f   : > { %v3130_v54 = vadd.f32 %v3066_v5, %v10966_v10  ;;  %v3854_v10 = vrot.slane %v3853_v42, 4  ;;  %v7301_v5 = vsel %vm441_vm0, %v9430_v14, 0  ;;  %v9042_v14 = vld [vmem:[%s9799_s10 + $0xc] sm:$0xe] }
 0x270   : > { %7310 = vmatpush.bf16.msra.mxu3 %v7301_v5 }
 0x271   : > { %v3417_v30 = vadd.f32 %v3353_v18, %v3130_v54  ;;  %v4010_v57 = vpop.f32.mrf.mxu0  ;;  %v3859_v34 = vsel %vm9914_vm6, %v3854_v10, %v3858_v46 }
 0x272   : > { %v4664_v6 = vpop.f32.mrf.mxu1  ;;  %v3902_v46 = vunpack.c.l.b16 %v3859_v34  ;;  %v9661_v34 = vld [vmem:[%s9799_s10 + $0x14] sm:$0x1] }
 0x273   : > { %v4071_v2 = vadd.f32 %v4007_v0, %v3417_v30  ;;  %8748 = vmatmul.msk.bf16.gmra.mxu2 %vm392_vm1, %v9594_v41  ;;  %8861 = vmatmul.msk.bf16.gmra.mxu3 %vm392_vm1, %v9610_v62  ;;  %v6647_v0 = vsel %vm441_vm0, %v9365_v19, 0  ;;  %v3869_v41 = vsel %vm9914_vm6, %v3864_v22, %v3868_v48  ;;  %v4523_v62 = vsel %vm9914_vm6, %v4518_v4, %v4522_v32  ;;  %v8993_v22 = vld [vmem:[%s9804_s13 + $0xc] sm:$0xe]  ;;  %v9658_v48 = vld [vmem:[%s9804_s13 + $0x10] sm:$0xf] }
 0x274   : > { %8926 = vmatmul.msk.bf16.gmra.mxu0 %vm392_vm1, %v3918_v45  ;;  %6656 = vmatpush.bf16.msra.mxu2 %v6647_v0  ;;  %v9479_v45 = vld [vmem:[%s13094_s2 + $0x10] sm:$0x3]  ;;  %v4557_v21 = vunpack.c.l.b16 %v4523_v62  ;;  %v5213_v5 = vrot.slane %v9661_v34, 5  ;;  %v9663_v34 = vld [vmem:[%s9799_s10 + $0x1c] sm:$0xf] }
 0x275   : > { %8991 = vmatmul.msk.bf16.gmra.mxu1 %vm392_vm1, %v4572_v53  ;;  %v11486_v63 = vadd.f32 %v4661_v25, %v4071_v2  ;;  %v4513_v25 = vsel %vm9914_vm6, %v4508_v13, %v4512_v9  ;;  %v3903_v53 = vunpack.c.l.b16 %v3869_v41  ;;  %v7699_v51 = vsel %vm441_vm0, %v9479_v45, 0  ;;  %v9659_v19 = vld [vmem:[%s9799_s10 + $0x10] sm:$0xf] }
 0x276   : > { %v3069_v35 = vpop.f32.mrf.mxu2  ;;  %v3356_v29 = vpop.f32.mrf.mxu3  ;;  %v4556_v42 = vunpack.c.l.b16 %v4513_v25  ;;  %7708 = vmatpush.bf16.msra.mxu0 %v7699_v51  ;;  %v4812_v13 = vrot.slane %v9658_v48, 5  ;;  %v5210_v4 = vrot.slane %v9659_v19, 5  ;;  %v9058_v25 = vrot.slane %v9042_v14, 9  ;;  %v9612_v14 = vld [vmem:[%s9804_s13 + $0x18] sm:$0xff] }
 0x277   : > { %v3131_v60 = vadd.f32 %v3069_v35, %v10993_v50  ;;  %v3919_v2 = vpack.c.b16 %v3903_v53, %v3902_v46 }
 0x278   : > { %v4573_v10 = vpack.c.b16 %v4557_v21, %v4556_v42  ;;  %v4814_v41 = vrot.slane %v4812_v13, 4  ;;  %v5211_v51 = vsel %vm9920_vm7, %v9058_v25, %v5210_v4 }
 0x279   : > { %v3418_v18 = vadd.f32 %v3356_v29, %v3131_v60  ;;  %v4012_v37 = vpop.f32.mrf.mxu0  ;;  %v9660_v29 = vld [vmem:[%s9804_s13 + $0x14] sm:$0x1] }
 0x27a   : > { %v4666_v54 = vpop.f32.mrf.mxu1  ;;  %v4815_v60 = vrot.slane %v9660_v29, 5  ;;  %v9662_v29 = vld [vmem:[%s9804_s13 + $0x1c] sm:$0xf] }
 0x27b   : > { %v4072_v50 = vadd.f32 %v4010_v57, %v3418_v18  ;;  %v9528_v18 = vld [vmem:[%s13095_s3 + $0x10] sm:$0x3] }
 0x27c   : > { %v8097_v62 = vsel %vm441_vm0, %v9528_v18, 0  ;;  %v4816_v21 = vsel %vm9920_vm7, %v4814_v41, %v4815_v60  ;;  %v4819_v60 = vrot.slane %v9662_v29, 5  ;;  %v9043_v41 = vld [vmem:[%s9799_s10 + $0x18] sm:$0xe] }
 0x27d   : > { %v11502_v9 = vadd.f32 %v4664_v6, %v4072_v50  ;;  %8106 = vmatpush.bf16.msra.mxu1 %v8097_v62 }
 0x27e   : > { %v3071_v36 = vpop.f32.mrf.mxu2  ;;  %v3358_v30 = vpop.f32.mrf.mxu3 }
 0x27f   : > { %v3132_v57 = vadd.f32 %v3071_v36, %v11010_v20  ;;  %v9009_v20 = vrot.slane %v8993_v22, 9 }
 0x281   : > { %v3419_v32 = vadd.f32 %v3358_v30, %v3132_v57  ;;  %v4015_v0 = vpop.f32.mrf.mxu0  ;;  %v4813_v42 = vsel %vm9920_vm7, %v9009_v20, %v4812_v13  ;;  %v8994_v20 = vld [vmem:[%s9804_s13 + $0x18] sm:$0xe] }
 0x282   : > { %v4669_v6 = vpop.f32.mrf.mxu1 }
 0x283   : > { %v4073_v35 = vadd.f32 %v4012_v37, %v3419_v32  ;;  %8749 = vmatmul.msk.bf16.gmra.mxu2 %vm392_vm1, %v9595_v38  ;;  %8862 = vmatmul.msk.bf16.gmra.mxu3 %vm392_vm1, %v9611_v44  ;;  %v5212_v37 = vrot.slane %v5210_v4, 4  ;;  %v4925_v44 = vunpack.c.l.b16 %v4816_v21 }
 0x284   : > { %8927 = vmatmul.msk.bf16.gmra.mxu0 %vm392_vm1, %v3919_v2  ;;  %v5322_v2 = vunpack.c.l.b16 %v5211_v51 }
 0x285   : > { %8992 = vmatmul.msk.bf16.gmra.mxu1 %vm392_vm1, %v4573_v10  ;;  %v11521_v50 = vadd.f32 %v4666_v54, %v4073_v35  ;;  %v5214_v36 = vsel %vm9920_vm7, %v5212_v37, %v5213_v5  ;;  %v9628_v35 = vld [vmem:[%s9799_s10 + $0x18] sm:$0xff]  ;;  %v9664_v37 = vld [vmem:[%s9804_s13 + $0x20] sm:$0x1] }
 0x286   : > { %v3074_v46 = vpop.f32.mrf.mxu2  ;;  %v3361_v45 = vpop.f32.mrf.mxu3  ;;  %v5323_v10 = vunpack.c.l.b16 %v5214_v36  ;;  %v4822_v62 = vrot.slane %v9664_v37, 5  ;;  %v9667_v37 = vld [vmem:[%s9799_s10 + $0x28] sm:$0xf] }
 0x287   : > { %v3133_v53 = vadd.f32 %v3074_v46, %v11026_v27  ;;  %v4924_v27 = vunpack.c.l.b16 %v4813_v42  ;;  %v4821_v46 = vrot.slane %v4819_v60, 4  ;;  %v9665_v42 = vld [vmem:[%s9799_s10 + $0x20] sm:$0x1] }
 0x288   : > { %v5354_v32 = vpack.c.b16 %v5323_v10, %v5322_v2  ;;  %v5220_v21 = vrot.slane %v9665_v42, 5  ;;  %v9668_v42 = vld [vmem:[%s9804_s13 + $0x2c] sm:$0x1] }
 0x289   : > { %v3420_v54 = vadd.f32 %v3361_v45, %v3133_v53  ;;  %v4017_v30 = vpop.f32.mrf.mxu0  ;;  %v4956_v4 = vpack.c.b16 %v4925_v44, %v4924_v27  ;;  %v9059_v45 = vrot.slane %v9043_v41, 9  ;;  %v8995_v41 = vld [vmem:[%s9804_s13 + $0x24] sm:$0xe] }
 0x28a   : > { %v4671_v57 = vpop.f32.mrf.mxu1 }
 0x28b   : > { %v4074_v38 = vadd.f32 %v4015_v0, %v3420_v54  ;;  %v5217_v0 = vrot.slane %v9663_v34, 5 }
 0x28d   : > { %v11532_v22 = vadd.f32 %v4669_v6, %v4074_v38  ;;  %v5219_v53 = vrot.slane %v5217_v0, 4  ;;  %v4823_v38 = vsel %vm9920_vm7, %v4821_v46, %v4822_v62  ;;  %v5218_v44 = vsel %vm9920_vm7, %v9059_v45, %v5217_v0  ;;  %v9613_v0 = vld [vmem:[%s9804_s13 + $0x24] sm:$0xff] }
 0x28e   : > { %v3076_v48 = vpop.f32.mrf.mxu2  ;;  %v3363_v13 = vpop.f32.mrf.mxu3  ;;  %v9044_v45 = vld [vmem:[%s9799_s10 + $0x24] sm:$0xe] }
 0x28f   : > { %v3134_v19 = vadd.f32 %v3076_v48, %v11041_v1  ;;  %v9010_v1 = vrot.slane %v8994_v20, 9  ;;  %v5221_v2 = vsel %vm9920_vm7, %v5219_v53, %v5220_v21  ;;  %v4829_v21 = vrot.slane %v9668_v42, 5  ;;  %v9671_v42 = vld [vmem:[%s9799_s10 + $0x34] sm:$0xf] }
 0x291   : > { %v3421_v5 = vadd.f32 %v3363_v13, %v3134_v19  ;;  %v4020_v18 = vpop.f32.mrf.mxu0  ;;  %v4820_v27 = vsel %vm9920_vm7, %v9010_v1, %v4819_v60  ;;  %v4927_v19 = vunpack.c.l.b16 %v4823_v38 }
 0x292   : > { %v4674_v6 = vpop.f32.mrf.mxu1 }
 0x293   : > { %v4075_v25 = vadd.f32 %v4017_v30, %v3421_v5  ;;  %9026 = vmatmul.msk.bf16.vlgmr.msrb.gmra.mxu2 %vm392_vm1, %v4956_v4  ;;  %9075 = vmatmul.msk.bf16.vlgmr.msrb.gmra.mxu3 %vm392_vm1, %v5354_v32  ;;  %v5324_v4 = vunpack.c.l.b16 %v5218_v44  ;;  %v5325_v32 = vunpack.c.l.b16 %v5221_v2  ;;  %v9629_v5 = vld [vmem:[%s9799_s10 + $0x24] sm:$0xff] }
 0x294   : > { %9188 = vmatmul.msk.bf16.vlgmr.msrb.gmra.mxu0 %vm392_vm1, %v9612_v14 }
 0x295   : > { %9301 = vmatmul.msk.bf16.vlgmr.msrb.gmra.mxu1 %vm392_vm1, %v9628_v35  ;;  %v11547_v51 = vadd.f32 %v4671_v57, %v4075_v25  ;;  %v5355_v34 = vpack.c.b16 %v5325_v32, %v5324_v4  ;;  %v9666_v25 = vld [vmem:[%s9804_s13 + $0x28] sm:$0xf] }
 0x296   : > { %v3079_v36 = vpop.f32.mrf.mxu2  ;;  %v3366_v54 = vpop.f32.mrf.mxu3  ;;  %v4826_v1 = vrot.slane %v9666_v25, 5 }
 0x297   : > { %v3135_v30 = vadd.f32 %v3079_v36, %v11059_v58  ;;  %v4926_v58 = vunpack.c.l.b16 %v4820_v27  ;;  %v9669_v27 = vld [vmem:[%s9799_s10 + $0x2c] sm:$0x1] }
 0x298   : > { %v4828_v36 = vrot.slane %v4826_v1, 4  ;;  %v5227_v38 = vrot.slane %v9669_v27, 5  ;;  %v9672_v27 = vld [vmem:[%s9804_s13 + $0x38] sm:$0x1] }
 0x299   : > { %v3422_v57 = vadd.f32 %v3366_v54, %v3135_v30  ;;  %v4022_v10 = vpop.f32.mrf.mxu0  ;;  %v4957_v60 = vpack.c.b16 %v4927_v19, %v4926_v58  ;;  %v9060_v54 = vrot.slane %v9044_v45, 9  ;;  %v8996_v45 = vld [vmem:[%s9804_s13 + $0x30] sm:$0xe] }
 0x29a   : > { %v4676_v48 = vpop.f32.mrf.mxu1 }
 0x29b   : > { %v4076_v13 = vadd.f32 %v4020_v18, %v3422_v57  ;;  %v5224_v18 = vrot.slane %v9667_v37, 5 }
 0x29d   : > { %v11558_v14 = vadd.f32 %v4674_v6, %v4076_v13  ;;  %v5226_v30 = vrot.slane %v5224_v18, 4  ;;  %v4830_v13 = vsel %vm9920_vm7, %v4828_v36, %v4829_v21  ;;  %v5225_v19 = vsel %vm9920_vm7, %v9060_v54, %v5224_v18  ;;  %v9614_v18 = vld [vmem:[%s9804_s13 + $0x30] sm:$0xff] }
 0x29e   : > { %v3081_v35 = vpop.f32.mrf.mxu2  ;;  %v3368_v20 = vpop.f32.mrf.mxu3  ;;  %v9045_v54 = vld [vmem:[%s9799_s10 + $0x30] sm:$0xe] }
 0x29f   : > { %v3136_v29 = vadd.f32 %v3081_v35, %v11075_v24  ;;  %v9011_v24 = vrot.slane %v8995_v41, 9  ;;  %v5228_v4 = vsel %vm9920_vm7, %v5226_v30, %v5227_v38  ;;  %v4836_v38 = vrot.slane %v9672_v27, 5  ;;  %v9675_v27 = vld [vmem:[%s9799_s10 + $0x40] sm:$0xf] }
 0x2a1   : > { %v3423_v62 = vadd.f32 %v3368_v20, %v3136_v29  ;;  %v4025_v46 = vpop.f32.mrf.mxu0  ;;  %v4827_v58 = vsel %vm9920_vm7, %v9011_v24, %v4826_v1  ;;  %v4929_v29 = vunpack.c.l.b16 %v4830_v13 }
 0x2a2   : > { %v4679_v6 = vpop.f32.mrf.mxu1 }
 0x2a3   : > { %v4077_v53 = vadd.f32 %v4022_v10, %v3423_v62  ;;  %9027 = vmatmul.msk.bf16.gmra.mxu2 %vm392_vm1, %v4957_v60  ;;  %9076 = vmatmul.msk.bf16.gmra.mxu3 %vm392_vm1, %v5355_v34  ;;  %v5326_v60 = vunpack.c.l.b16 %v5225_v19  ;;  %v5327_v34 = vunpack.c.l.b16 %v5228_v4  ;;  %v9630_v62 = vld [vmem:[%s9799_s10 + $0x30] sm:$0xff] }
 0x2a4   : > { %9189 = vmatmul.msk.bf16.gmra.mxu0 %vm392_vm1, %v9613_v0 }
 0x2a5   : > { %9302 = vmatmul.msk.bf16.gmra.mxu1 %vm392_vm1, %v9629_v5  ;;  %v11573_v44 = vadd.f32 %v4676_v48, %v4077_v53  ;;  %v5356_v37 = vpack.c.b16 %v5327_v34, %v5326_v60  ;;  %v9670_v53 = vld [vmem:[%s9804_s13 + $0x34] sm:$0xf] }
 0x2a6   : > { %v3084_v2 = vpop.f32.mrf.mxu2  ;;  %v3371_v57 = vpop.f32.mrf.mxu3  ;;  %v4833_v24 = vrot.slane %v9670_v53, 5 }
 0x2a7   : > { %v3137_v10 = vadd.f32 %v3084_v2, %v11089_v7  ;;  %v4928_v7 = vunpack.c.l.b16 %v4827_v58  ;;  %v9673_v58 = vld [vmem:[%s9799_s10 + $0x38] sm:$0x1] }
 0x2a8   : > { %v4835_v2 = vrot.slane %v4833_v24, 4  ;;  %v5234_v13 = vrot.slane %v9673_v58, 5  ;;  %v9676_v58 = vld [vmem:[%s9804_s13 + $0x44] sm:$0x1] }
 0x2a9   : > { %v3424_v48 = vadd.f32 %v3371_v57, %v3137_v10  ;;  %v4027_v32 = vpop.f32.mrf.mxu0  ;;  %v4958_v1 = vpack.c.b16 %v4929_v29, %v4928_v7  ;;  %v9061_v57 = vrot.slane %v9045_v54, 9  ;;  %v8997_v54 = vld [vmem:[%s9804_s13 + $0x3c] sm:$0xe] }
 0x2aa   : > { %v4681_v35 = vpop.f32.mrf.mxu1 }
 0x2ab   : > { %v4078_v20 = vadd.f32 %v4025_v46, %v3424_v48  ;;  %v5231_v46 = vrot.slane %v9671_v42, 5 }
 0x2ad   : > { %v11584_v0 = vadd.f32 %v4679_v6, %v4078_v20  ;;  %v5233_v10 = vrot.slane %v5231_v46, 4  ;;  %v4837_v20 = vsel %vm9920_vm7, %v4835_v2, %v4836_v38  ;;  %v5232_v29 = vsel %vm9920_vm7, %v9061_v57, %v5231_v46  ;;  %v9615_v46 = vld [vmem:[%s9804_s13 + $0x3c] sm:$0xff] }
 0x2ae   : > { %v3086_v5 = vpop.f32.mrf.mxu2  ;;  %v3373_v41 = vpop.f32.mrf.mxu3  ;;  %v9046_v57 = vld [vmem:[%s9799_s10 + $0x3c] sm:$0xe] }
 0x2af   : > { %v3138_v25 = vadd.f32 %v3086_v5, %v11105_v43  ;;  %v9012_v43 = vrot.slane %v8996_v45, 9  ;;  %v5235_v60 = vsel %vm9920_vm7, %v5233_v10, %v5234_v13  ;;  %v4843_v13 = vrot.slane %v9676_v58, 5  ;;  %v9679_v58 = vld [vmem:[%s9799_s10 + $0x4c] sm:$0xf] }
 0x2b1   : > { %v3425_v21 = vadd.f32 %v3373_v41, %v3138_v25  ;;  %v4030_v36 = vpop.f32.mrf.mxu0  ;;  %v4834_v7 = vsel %vm9920_vm7, %v9012_v43, %v4833_v24  ;;  %v4931_v25 = vunpack.c.l.b16 %v4837_v20 }
 0x2b2   : > { %v4684_v6 = vpop.f32.mrf.mxu1 }
 0x2b3   : > { %v4079_v30 = vadd.f32 %v4027_v32, %v3425_v21  ;;  %9028 = vmatmul.msk.bf16.gmra.mxu2 %vm392_vm1, %v4958_v1  ;;  %9077 = vmatmul.msk.bf16.gmra.mxu3 %vm392_vm1, %v5356_v37  ;;  %v5328_v1 = vunpack.c.l.b16 %v5232_v29  ;;  %v5329_v37 = vunpack.c.l.b16 %v5235_v60  ;;  %v9631_v21 = vld [vmem:[%s9799_s10 + $0x3c] sm:$0xff] }
 0x2b4   : > { %9190 = vmatmul.msk.bf16.gmra.mxu0 %vm392_vm1, %v9614_v18 }
 0x2b5   : > { %9303 = vmatmul.msk.bf16.gmra.mxu1 %vm392_vm1, %v9630_v62  ;;  %v11599_v19 = vadd.f32 %v4681_v35, %v4079_v30  ;;  %v5357_v42 = vpack.c.b16 %v5329_v37, %v5328_v1  ;;  %v9674_v30 = vld [vmem:[%s9804_s13 + $0x40] sm:$0xf] }
 0x2b6   : > { %v3089_v4 = vpop.f32.mrf.mxu2  ;;  %v3376_v48 = vpop.f32.mrf.mxu3  ;;  %v4840_v43 = vrot.slane %v9674_v30, 5 }
 0x2b7   : > { %v3139_v32 = vadd.f32 %v3089_v4, %v11122_v56  ;;  %v4930_v56 = vunpack.c.l.b16 %v4834_v7  ;;  %v9677_v7 = vld [vmem:[%s9799_s10 + $0x44] sm:$0x1] }
 0x2b8   : > { %v4842_v4 = vrot.slane %v4840_v43, 4  ;;  %v5241_v20 = vrot.slane %v9677_v7, 5  ;;  %v9680_v7 = vld [vmem:[%s9804_s13 + $0x50] sm:$0x1] }
 0x2b9   : > { %v3426_v35 = vadd.f32 %v3376_v48, %v3139_v32  ;;  %v4032_v34 = vpop.f32.mrf.mxu0  ;;  %v4959_v24 = vpack.c.b16 %v4931_v25, %v4930_v56  ;;  %v9062_v48 = vrot.slane %v9046_v57, 9  ;;  %v8998_v57 = vld [vmem:[%s9804_s13 + $0x48] sm:$0xe] }
 0x2ba   : > { %v4686_v5 = vpop.f32.mrf.mxu1 }
 0x2bb   : > { %v4080_v41 = vadd.f32 %v4030_v36, %v3426_v35  ;;  %v5238_v36 = vrot.slane %v9675_v27, 5 }
 0x2bd   : > { %v11610_v18 = vadd.f32 %v4684_v6, %v4080_v41  ;;  %v5240_v32 = vrot.slane %v5238_v36, 4  ;;  %v4844_v41 = vsel %vm9920_vm7, %v4842_v4, %v4843_v13  ;;  %v5239_v25 = vsel %vm9920_vm7, %v9062_v48, %v5238_v36  ;;  %v9616_v36 = vld [vmem:[%s9804_s13 + $0x48] sm:$0xff] }
 0x2be   : > { %v3091_v62 = vpop.f32.mrf.mxu2  ;;  %v3378_v45 = vpop.f32.mrf.mxu3  ;;  %v9047_v48 = vld [vmem:[%s9799_s10 + $0x48] sm:$0xe] }
 0x2bf   : > { %v3140_v53 = vadd.f32 %v3091_v62, %v11139_v17  ;;  %v9013_v17 = vrot.slane %v8997_v54, 9  ;;  %v5242_v1 = vsel %vm9920_vm7, %v5240_v32, %v5241_v20  ;;  %v4850_v20 = vrot.slane %v9680_v7, 5  ;;  %v9683_v7 = vld [vmem:[%s9799_s10 + $0x58] sm:$0xf] }
 0x2c1   : > { %v3427_v38 = vadd.f32 %v3378_v45, %v3140_v53  ;;  %v4035_v2 = vpop.f32.mrf.mxu0  ;;  %v4841_v56 = vsel %vm9920_vm7, %v9013_v17, %v4840_v43  ;;  %v4933_v53 = vunpack.c.l.b16 %v4844_v41 }
 0x2c2   : > { %v4689_v6 = vpop.f32.mrf.mxu1 }
 0x2c3   : > { %v4081_v10 = vadd.f32 %v4032_v34, %v3427_v38  ;;  %9029 = vmatmul.msk.bf16.gmra.mxu2 %vm392_vm1, %v4959_v24  ;;  %9078 = vmatmul.msk.bf16.gmra.mxu3 %vm392_vm1, %v5357_v42  ;;  %v5330_v24 = vunpack.c.l.b16 %v5239_v25  ;;  %v5331_v42 = vunpack.c.l.b16 %v5242_v1  ;;  %v9632_v38 = vld [vmem:[%s9799_s10 + $0x48] sm:$0xff] }
 0x2c4   : > { %9191 = vmatmul.msk.bf16.gmra.mxu0 %vm392_vm1, %v9615_v46 }
 0x2c5   : > { %9304 = vmatmul.msk.bf16.gmra.mxu1 %vm392_vm1, %v9631_v21  ;;  %v11625_v29 = vadd.f32 %v4686_v5, %v4081_v10  ;;  %v5358_v27 = vpack.c.b16 %v5331_v42, %v5330_v24  ;;  %v9678_v10 = vld [vmem:[%s9804_s13 + $0x4c] sm:$0xf] }
 0x2c6   : > { %v3094_v60 = vpop.f32.mrf.mxu2  ;;  %v3381_v35 = vpop.f32.mrf.mxu3  ;;  %v4847_v17 = vrot.slane %v9678_v10, 5 }
 0x2c7   : > { %v3141_v34 = vadd.f32 %v3094_v60, %v11154_v11  ;;  %v4932_v11 = vunpack.c.l.b16 %v4841_v56  ;;  %v9681_v56 = vld [vmem:[%s9799_s10 + $0x50] sm:$0x1] }
 0x2c8   : > { %v4849_v60 = vrot.slane %v4847_v17, 4  ;;  %v5248_v41 = vrot.slane %v9681_v56, 5  ;;  %v9684_v56 = vld [vmem:[%s9804_s13 + $0x5c] sm:$0x1] }
 0x2c9   : > { %v3428_v5 = vadd.f32 %v3381_v35, %v3141_v34  ;;  %v4037_v37 = vpop.f32.mrf.mxu0  ;;  %v4960_v43 = vpack.c.b16 %v4933_v53, %v4932_v11  ;;  %v9063_v35 = vrot.slane %v9047_v48, 9  ;;  %v8999_v48 = vld [vmem:[%s9804_s13 + $0x54] sm:$0xe] }
 0x2ca   : > { %v4691_v62 = vpop.f32.mrf.mxu1 }
 0x2cb   : > { %v4082_v45 = vadd.f32 %v4035_v2, %v3428_v5  ;;  %v5245_v2 = vrot.slane %v9679_v58, 5 }
 0x2cd   : > { %v11636_v46 = vadd.f32 %v4689_v6, %v4082_v45  ;;  %v5247_v34 = vrot.slane %v5245_v2, 4  ;;  %v4851_v45 = vsel %vm9920_vm7, %v4849_v60, %v4850_v20  ;;  %v5246_v53 = vsel %vm9920_vm7, %v9063_v35, %v5245_v2  ;;  %v9617_v2 = vld [vmem:[%s9804_s13 + $0x54] sm:$0xff] }
 0x2ce   : > { %v3096_v21 = vpop.f32.mrf.mxu2  ;;  %v3383_v54 = vpop.f32.mrf.mxu3  ;;  %v9048_v35 = vld [vmem:[%s9799_s10 + $0x54] sm:$0xe] }
 0x2cf   : > { %v3142_v30 = vadd.f32 %v3096_v21, %v11169_v31  ;;  %v9014_v31 = vrot.slane %v8998_v57, 9  ;;  %v5249_v24 = vsel %vm9920_vm7, %v5247_v34, %v5248_v41  ;;  %v4857_v41 = vrot.slane %v9684_v56, 5  ;;  %v9687_v56 = vld [vmem:[%s9799_s10 + $0x64] sm:$0xf] }
 0x2d1   : > { %v3429_v13 = vadd.f32 %v3383_v54, %v3142_v30  ;;  %v4040_v4 = vpop.f32.mrf.mxu0  ;;  %v4848_v11 = vsel %vm9920_vm7, %v9014_v31, %v4847_v17  ;;  %v4935_v30 = vunpack.c.l.b16 %v4851_v45 }
 0x2d2   : > { %v4694_v6 = vpop.f32.mrf.mxu1 }
 0x2d3   : > { %v4083_v32 = vadd.f32 %v4037_v37, %v3429_v13  ;;  %9030 = vmatmul.msk.bf16.gmra.mxu2 %vm392_vm1, %v4960_v43  ;;  %9079 = vmatmul.msk.bf16.gmra.mxu3 %vm392_vm1, %v5358_v27  ;;  %v5332_v43 = vunpack.c.l.b16 %v5246_v53  ;;  %v5333_v27 = vunpack.c.l.b16 %v5249_v24  ;;  %v9633_v13 = vld [vmem:[%s9799_s10 + $0x54] sm:$0xff] }
 0x2d4   : > { %9192 = vmatmul.msk.bf16.gmra.mxu0 %vm392_vm1, %v9616_v36 }
 0x2d5   : > { %9305 = vmatmul.msk.bf16.gmra.mxu1 %vm392_vm1, %v9632_v38  ;;  %v11651_v25 = vadd.f32 %v4691_v62, %v4083_v32  ;;  %v5359_v58 = vpack.c.b16 %v5333_v27, %v5332_v43  ;;  %v9682_v32 = vld [vmem:[%s9804_s13 + $0x58] sm:$0xf] }
 0x2d6   : > { %v3099_v1 = vpop.f32.mrf.mxu2  ;;  %v3386_v5 = vpop.f32.mrf.mxu3  ;;  %v4854_v31 = vrot.slane %v9682_v32, 5 }
 0x2d7   : > { %v3143_v37 = vadd.f32 %v3099_v1, %v11187_v8  ;;  %v4934_v8 = vunpack.c.l.b16 %v4848_v11  ;;  %v9685_v11 = vld [vmem:[%s9799_s10 + $0x5c] sm:$0x1] }
 0x2d8   : > { %v4856_v1 = vrot.slane %v4854_v31, 4  ;;  %v5255_v45 = vrot.slane %v9685_v11, 5  ;;  %v9688_v11 = vld [vmem:[%s9804_s13 + $0x68] sm:$0x1] }
 0x2d9   : > { %v3430_v62 = vadd.f32 %v3386_v5, %v3143_v37  ;;  %v4042_v42 = vpop.f32.mrf.mxu0  ;;  %v4961_v17 = vpack.c.b16 %v4935_v30, %v4934_v8  ;;  %v9064_v5 = vrot.slane %v9048_v35, 9  ;;  %v9000_v35 = vld [vmem:[%s9804_s13 + $0x60] sm:$0xe] }
 0x2da   : > { %v4696_v21 = vpop.f32.mrf.mxu1 }
 0x2db   : > { %v4084_v54 = vadd.f32 %v4040_v4, %v3430_v62  ;;  %v5252_v4 = vrot.slane %v9683_v7, 5 }
 0x2dd   : > { %v11662_v36 = vadd.f32 %v4694_v6, %v4084_v54  ;;  %v5254_v37 = vrot.slane %v5252_v4, 4  ;;  %v4858_v54 = vsel %vm9920_vm7, %v4856_v1, %v4857_v41  ;;  %v5253_v30 = vsel %vm9920_vm7, %v9064_v5, %v5252_v4  ;;  %v9618_v4 = vld [vmem:[%s9804_s13 + $0x60] sm:$0xff] }
 0x2de   : > { %v3101_v38 = vpop.f32.mrf.mxu2  ;;  %v3388_v57 = vpop.f32.mrf.mxu3  ;;  %v9049_v5 = vld [vmem:[%s9799_s10 + $0x60] sm:$0xe] }
 0x2df   : > { %v3144_v10 = vadd.f32 %v3101_v38, %v11203_v59  ;;  %v9015_v59 = vrot.slane %v8999_v48, 9  ;;  %v5256_v43 = vsel %vm9920_vm7, %v5254_v37, %v5255_v45  ;;  %v4864_v45 = vrot.slane %v9688_v11, 5 }
 0x2e1   : > { %v3431_v20 = vadd.f32 %v3388_v57, %v3144_v10  ;;  %v4045_v60 = vpop.f32.mrf.mxu0  ;;  %v4855_v8 = vsel %vm9920_vm7, %v9015_v59, %v4854_v31  ;;  %v4937_v10 = vunpack.c.l.b16 %v4858_v54 }
 0x2e2   : > { %v4699_v6 = vpop.f32.mrf.mxu1 }
 0x2e3   : > { %v4085_v34 = vadd.f32 %v4042_v42, %v3431_v20  ;;  %9031 = vmatmul.msk.bf16.gmra.mxu2 %vm392_vm1, %v4961_v17  ;;  %9080 = vmatmul.msk.bf16.gmra.mxu3 %vm392_vm1, %v5359_v58  ;;  %v5334_v17 = vunpack.c.l.b16 %v5253_v30  ;;  %v5335_v58 = vunpack.c.l.b16 %v5256_v43  ;;  %v9634_v20 = vld [vmem:[%s9799_s10 + $0x60] sm:$0xff] }
 0x2e4   : > { %9193 = vmatmul.msk.bf16.gmra.mxu0 %vm392_vm1, %v9617_v2 }
 0x2e5   : > { %9306 = vmatmul.msk.bf16.gmra.mxu1 %vm392_vm1, %v9633_v13  ;;  %v11677_v53 = vadd.f32 %v4696_v21, %v4085_v34  ;;  %v5360_v7 = vpack.c.b16 %v5335_v58, %v5334_v17  ;;  %v9686_v34 = vld [vmem:[%s9804_s13 + $0x64] sm:$0xf] }
 0x2e6   : > { %v3104_v24 = vpop.f32.mrf.mxu2  ;;  %v3391_v62 = vpop.f32.mrf.mxu3  ;;  %v4861_v59 = vrot.slane %v9686_v34, 5  ;;  %v13131_v34 = vld [vmem:[#allocation2_spill] sm:$0xff] }
 0x2e7   : > { %v3145_v42 = vadd.f32 %v3104_v24, %v11217_v52  ;;  %v4936_v52 = vunpack.c.l.b16 %v4855_v8  ;;  %v9689_v8 = vld [vmem:[%s9799_s10 + $0x68] sm:$0x1] }
 0x2e8   : > { %v4863_v24 = vrot.slane %v4861_v59, 4  ;;  %v5262_v54 = vrot.slane %v9689_v8, 5 }
 0x2e9   : > { %v3432_v21 = vadd.f32 %v3391_v62, %v3145_v42  ;;  %v4047_v27 = vpop.f32.mrf.mxu0  ;;  %v4962_v31 = vpack.c.b16 %v4937_v10, %v4936_v52  ;;  %v9065_v62 = vrot.slane %v9049_v5, 9  ;;  %v9635_v5 = vld [vmem:[%s9799_s10 + $0x6c] sm:$0xff] }
 0x2ea   : > { %v4701_v38 = vpop.f32.mrf.mxu1 }
 0x2eb   : > { %v4086_v57 = vadd.f32 %v4045_v60, %v3432_v21  ;;  %v5259_v60 = vrot.slane %v9687_v56, 5 }
 0x2ed   : > { %v11688_v2 = vadd.f32 %v4699_v6, %v4086_v57  ;;  %v5261_v42 = vrot.slane %v5259_v60, 4  ;;  %v4865_v57 = vsel %vm9920_vm7, %v4863_v24, %v4864_v45  ;;  %v5260_v10 = vsel %vm9920_vm7, %v9065_v62, %v5259_v60  ;;  %v9691_v45 = vld [vmem:[%s9799_s10 + $0x70] sm:$0xf] }
 0x2ee   : > { %v3106_v13 = vpop.f32.mrf.mxu2  ;;  %v3393_v48 = vpop.f32.mrf.mxu3 }
 0x2ef   : > { %v3146_v32 = vadd.f32 %v3106_v13, %v11233_v23  ;;  %v9016_v23 = vrot.slane %v9000_v35, 9  ;;  %v5263_v17 = vsel %vm9920_vm7, %v5261_v42, %v5262_v54  ;;  %v9050_v42 = vld [vmem:[%s9799_s10 + $0x6c] sm:$0xe] }
 0x2f1   : > { %v3433_v41 = vadd.f32 %v3393_v48, %v3146_v32  ;;  %v4050_v1 = vpop.f32.mrf.mxu0  ;;  %v4862_v52 = vsel %vm9920_vm7, %v9016_v23, %v4861_v59  ;;  %v4939_v32 = vunpack.c.l.b16 %v4865_v57  ;;  %v9690_v23 = vld [vmem:[%s9804_s13 + $0x70] sm:$0xf] }
 0x2f2   : > { %v4704_v6 = vpop.f32.mrf.mxu1  ;;  %v4868_v11 = vrot.slane %v9690_v23, 5 }
 0x2f3   : > { %v4087_v37 = vadd.f32 %v4047_v27, %v3433_v41  ;;  %9032 = vmatmul.msk.bf16.gmra.mxu2 %vm392_vm1, %v4962_v31  ;;  %9081 = vmatmul.msk.bf16.gmra.mxu3 %vm392_vm1, %v5360_v7  ;;  %v5336_v31 = vunpack.c.l.b16 %v5260_v10  ;;  %v5337_v7 = vunpack.c.l.b16 %v5263_v17  ;;  %v9619_v41 = vld [vmem:[%s9804_s13 + $0x6c] sm:$0xff]  ;;  %v9693_v10 = vld [vmem:[%s9799_s10 + $0x74] sm:$0x1] }
 0x2f4   : > { %9194 = vmatmul.msk.bf16.gmra.mxu0 %vm392_vm1, %v9618_v4  ;;  %v5269_v17 = vrot.slane %v9693_v10, 5 }
 0x2f5   : > { %9307 = vmatmul.msk.bf16.gmra.mxu1 %vm392_vm1, %v9634_v20  ;;  %v11703_v30 = vadd.f32 %v4701_v38, %v4087_v37  ;;  %v5361_v60 = vpack.c.b16 %v5337_v7, %v5336_v31  ;;  %v9001_v37 = vld [vmem:[%s9804_s13 + $0x6c] sm:$0xe] }
 0x2f6   : > { %v3109_v43 = vpop.f32.mrf.mxu2  ;;  %v3396_v21 = vpop.f32.mrf.mxu3  ;;  %v9017_v54 = vrot.slane %v9001_v37, 9 }
 0x2f7   : > { %v3147_v27 = vadd.f32 %v3109_v43, %v11250_v12  ;;  %v4938_v12 = vunpack.c.l.b16 %v4862_v52  ;;  %v9692_v43 = vld [vmem:[%s9804_s13 + $0x74] sm:$0x1]  ;;  %v9066_v52 = vrot.slane %v9050_v42, 9 }
 0x2f8   : > { %v4869_v31 = vsel %vm9920_vm7, %v9017_v54, %v4868_v11  ;;  %v9620_v54 = vld [vmem:[%s9804_s13 + $0x78] sm:$0xff] }
 0x2f9   : > { %v3434_v38 = vadd.f32 %v3396_v21, %v3147_v27  ;;  %v4052_v58 = vpop.f32.mrf.mxu0  ;;  %v4963_v56 = vpack.c.b16 %v4939_v32, %v4938_v12  ;;  %v4871_v21 = vrot.slane %v9692_v43, 5  ;;  %v4870_v27 = vrot.slane %v4868_v11, 4  ;;  %v9636_v43 = vld [vmem:[%s9799_s10 + $0x78] sm:$0xff] }
 0x2fa   : > { %v4706_v13 = vpop.f32.mrf.mxu1 }
 0x2fb   : > { %v4088_v48 = vadd.f32 %v4050_v1, %v3434_v38  ;;  %v5266_v1 = vrot.slane %v9691_v45, 5  ;;  %v4872_v7 = vsel %vm9920_vm7, %v4870_v27, %v4871_v21  ;;  %v9002_v21 = vld [vmem:[%s9804_s13 + $0x78] sm:$0xe]  ;;  %v9694_v27 = vld [vmem:[%s9804_s13 + $0x7c] sm:$0xf] }
 0x2fd   : > { %v11714_v4 = vadd.f32 %v4704_v6, %v4088_v48  ;;  %v5268_v57 = vrot.slane %v5266_v1, 4  ;;  %v13132_v48 = vld [vmem:[#allocation3_spill] sm:$0xff] }
 0x2fe   : > { %v3111_v20 = vpop.f32.mrf.mxu2  ;;  %v3398_v35 = vpop.f32.mrf.mxu3 }
 0x2ff   : > { %v3148_v59 = vadd.f32 %v3111_v20, %v13131_v34  ;;  %v5267_v20 = vsel %vm9920_vm7, %v9066_v52, %v5266_v1  ;;  %v13133_v1 = vld [vmem:[#allocation4_spill] sm:$0xff]  ;;  %v4875_v52 = vrot.slane %v9694_v27, 5 }
 0x301   : > { %v3435_v24 = vadd.f32 %v3398_v35, %v3148_v59  ;;  %v4055_v62 = vpop.f32.mrf.mxu0  ;;  %v5270_v35 = vsel %vm9920_vm7, %v5268_v57, %v5269_v17  ;;  %v9695_v57 = vld [vmem:[%s9799_s10 + $0x7c] sm:$0xf] }
 0x302   : > { %v4709_v6 = vpop.f32.mrf.mxu1  ;;  %v5339_v37 = vunpack.c.l.b16 %v5270_v35 }
 0x303   : > { %v4089_v8 = vadd.f32 %v4052_v58, %v3435_v24  ;;  %9033 = vmatmul.msk.bf16.gmra.mxu2 %vm392_vm1, %v4963_v56  ;;  %9082 = vmatmul.msk.bf16.gmra.mxu3 %vm392_vm1, %v5361_v60  ;;  %v4940_v56 = vunpack.c.l.b16 %v4869_v31 }
 0x304   : > { %9195 = vmatmul.msk.bf16.gmra.mxu0 %vm392_vm1, %v9619_v41  ;;  %v4941_v41 = vunpack.c.l.b16 %v4872_v7  ;;  %v4877_v7 = vrot.slane %v4875_v52, 4 }
 0x305   : > { %9308 = vmatmul.msk.bf16.gmra.mxu1 %vm392_vm1, %v9635_v5  ;;  %v11729_v38 = vadd.f32 %v4706_v13, %v4089_v8  ;;  %v5338_v5 = vunpack.c.l.b16 %v5267_v20 }
 0x306   : > { %v3114_v12 = vpop.f32.mrf.mxu2  ;;  %v3401_v58 = vpop.f32.mrf.mxu3  ;;  %v4964_v42 = vpack.c.b16 %v4941_v41, %v4940_v56 }
 0x307   : > { %v3149_v32 = vadd.f32 %v3114_v12, %v13132_v48  ;;  %v5362_v8 = vpack.c.b16 %v5339_v37, %v5338_v5  ;;  %v9051_v12 = vld [vmem:[%s9799_s10 + $0x78] sm:$0xe]  ;;  %v9018_v48 = vrot.slane %v9002_v21, 9 }
 0x308   : > { %v9067_v20 = vrot.slane %v9051_v12, 9 }
 0x309   : > { %v3436_v13 = vadd.f32 %v3401_v58, %v3149_v32  ;;  %v4057_v34 = vpop.f32.mrf.mxu0  ;;  %v9696_v32 = vld [vmem:[%s9804_s13 + $0x80] sm:$0x1]  ;;  %v4876_v37 = vsel %vm9920_vm7, %v9018_v48, %v4875_v52  ;;  %v9637_v48 = vld [vmem:[%s9799_s10 + $0x84] sm:$0xff] }
 0x30a   : > { %v4711_v59 = vpop.f32.mrf.mxu1  ;;  %v4878_v31 = vrot.slane %v9696_v32, 5  ;;  %v9003_v32 = vld [vmem:[%s9804_s13 + $0x84] sm:$0xe] }
 0x30b   : > { %v4090_v60 = vadd.f32 %v4055_v62, %v3436_v13  ;;  %v5273_v62 = vrot.slane %v9695_v57, 5  ;;  %v9697_v13 = vld [vmem:[%s9799_s10 + $0x80] sm:$0x1] }
 0x30c   : > { %v5276_v56 = vrot.slane %v9697_v13, 5 }
 0x30d   : > { %v11740_v23 = vadd.f32 %v4709_v6, %v4090_v60  ;;  %v5275_v35 = vrot.slane %v5273_v62, 4 }
 0x30e   : > { %v3116_v11 = vpop.f32.mrf.mxu2  ;;  %v3403_v45 = vpop.f32.mrf.mxu3 }
 0x30f   : > { %v3150_v24 = vadd.f32 %v3116_v11, %v13133_v1  ;;  %v4879_v11 = vsel %vm9920_vm7, %v4877_v7, %v4878_v31  ;;  %v5277_v1 = vsel %vm9920_vm7, %v5275_v35, %v5276_v56  ;;  %v9698_v31 = vld [vmem:[%s9804_s13 + $0x88] sm:$0xf]  ;;  %v9052_v56 = vld [vmem:[%s9799_s10 + $0x84] sm:$0xe] }
 0x310   : > { %v5341_v21 = vunpack.c.l.b16 %v5277_v1  ;;  %v4882_v7 = vrot.slane %v9698_v31, 5  ;;  %v9701_v1 = vld [vmem:[%s9799_s10 + $0x8c] sm:$0x1] }
 0x311   : > { %v3437_v10 = vadd.f32 %v3403_v45, %v3150_v24  ;;  %v5717_v17 = vpop.f32.mrf.mxu0  ;;  %v5274_v45 = vsel %vm9920_vm7, %v9067_v20, %v5273_v62  ;;  %v9699_v20 = vld [vmem:[%s9799_s10 + $0x88] sm:$0xf] }
 0x312   : > { %v6004_v6 = vpop.f32.mrf.mxu1 }
 0x313   : > { %v4091_v58 = vadd.f32 %v4057_v34, %v3437_v10  ;;  %9034 = vmatmul.msk.bf16.gmra.mxu2 %vm392_vm1, %v4964_v42  ;;  %9083 = vmatmul.msk.bf16.gmra.mxu3 %vm392_vm1, %v5362_v8 }
 0x314   : > { %9196 = vmatmul.msk.bf16.gmra.mxu0 %vm392_vm1, %v9620_v54  ;;  %v4943_v54 = vunpack.c.l.b16 %v4879_v11  ;;  %v9068_v11 = vrot.slane %v9052_v56, 9 }
 0x315   : > { %9309 = vmatmul.msk.bf16.gmra.mxu1 %vm392_vm1, %v9636_v43  ;;  %v11755_v60 = vadd.f32 %v4711_v59, %v4091_v58  ;;  %v5340_v43 = vunpack.c.l.b16 %v5274_v45  ;;  %v9621_v58 = vld [vmem:[%s9804_s13 + $0x84] sm:$0xff] }
 0x316   : > { %v5032_v41 = vpop.f32.mrf.mxu2  ;;  %v5430_v34 = vpop.f32.mrf.mxu3 }
 0x317   : > { %v5112_v5 = vadd.f32 %v5032_v41, %v11314_v55  ;;  %v4942_v55 = vunpack.c.l.b16 %v4876_v37  ;;  %v5363_v12 = vpack.c.b16 %v5341_v21, %v5340_v43  ;;  %v4884_v37 = vrot.slane %v4882_v7, 4 }
 0x319   : > { %v5510_v59 = vadd.f32 %v5430_v34, %v5112_v5  ;;  %v5719_v24 = vpop.f32.mrf.mxu0  ;;  %v4965_v10 = vpack.c.b16 %v4943_v54, %v4942_v55  ;;  %v9700_v34 = vld [vmem:[%s9804_s13 + $0x8c] sm:$0x1] }
 0x31a   : > { %v6006_v42 = vpop.f32.mrf.mxu1  ;;  %v4885_v5 = vrot.slane %v9700_v34, 5  ;;  %v9638_v34 = vld [vmem:[%s9799_s10 + $0x90] sm:$0xff] }
 0x31b   : > { %v5797_v8 = vadd.f32 %v5717_v17, %v5510_v59  ;;  %v5280_v17 = vrot.slane %v9699_v20, 5  ;;  %v5283_v59 = vrot.slane %v9701_v1, 5 }
 0x31c   : > { %v4886_v21 = vsel %vm9920_vm7, %v4884_v37, %v4885_v5  ;;  %v9004_v5 = vld [vmem:[%s9804_s13 + $0x90] sm:$0xe]  ;;  %v9702_v37 = vld [vmem:[%s9804_s13 + $0x94] sm:$0xf] }
 0x31d   : > { %v11766_v27 = vadd.f32 %v6004_v6, %v5797_v8  ;;  %v5282_v45 = vrot.slane %v5280_v17, 4 }
 0x31e   : > { %v5034_v52 = vpop.f32.mrf.mxu2  ;;  %v5432_v57 = vpop.f32.mrf.mxu3 }
 0x31f   : > { %v5113_v62 = vadd.f32 %v5034_v52, %v11327_v15  ;;  %v9019_v15 = vrot.slane %v9003_v32, 9  ;;  %v5281_v52 = vsel %vm9920_vm7, %v9068_v11, %v5280_v17  ;;  %v13134_v17 = vld [vmem:[#allocation5_spill] sm:$0xff]  ;;  %v4889_v11 = vrot.slane %v9702_v37, 5 }
 0x321   : > { %v5511_v35 = vadd.f32 %v5432_v57, %v5113_v62  ;;  %v5722_v13 = vpop.f32.mrf.mxu0  ;;  %v4883_v43 = vsel %vm9920_vm7, %v9019_v15, %v4882_v7  ;;  %v5284_v57 = vsel %vm9920_vm7, %v5282_v45, %v5283_v59  ;;  %v9622_v15 = vld [vmem:[%s9804_s13 + $0x90] sm:$0xff] }
 0x322   : > { %v6009_v6 = vpop.f32.mrf.mxu1  ;;  %v5343_v32 = vunpack.c.l.b16 %v5284_v57  ;;  %v9703_v45 = vld [vmem:[%s9799_s10 + $0x94] sm:$0xf] }
 0x323   : > { %v5798_v41 = vadd.f32 %v5719_v24, %v5511_v35  ;;  %9035 = vmatmul.msk.bf16.gmra.mxu2 %vm392_vm1, %v4965_v10  ;;  %9084 = vmatmul.msk.bf16.gmra.mxu3 %vm392_vm1, %v5363_v12 }
 0x324   : > { %9197 = vmatmul.msk.bf16.gmra.mxu0 %vm392_vm1, %v9621_v58  ;;  %v4945_v58 = vunpack.c.l.b16 %v4886_v21 }
 0x325   : > { %9310 = vmatmul.msk.bf16.gmra.mxu1 %vm392_vm1, %v9637_v48  ;;  %v11781_v55 = vadd.f32 %v6006_v42, %v5798_v41  ;;  %v5342_v48 = vunpack.c.l.b16 %v5281_v52  ;;  %v4891_v52 = vrot.slane %v4889_v11, 4 }
 0x326   : > { %v5037_v8 = vpop.f32.mrf.mxu2  ;;  %v5435_v24 = vpop.f32.mrf.mxu3 }
 0x327   : > { %v5114_v54 = vadd.f32 %v5037_v8, %v11346_v39  ;;  %v4944_v39 = vunpack.c.l.b16 %v4883_v43  ;;  %v5364_v41 = vpack.c.b16 %v5343_v32, %v5342_v48  ;;  %v9053_v8 = vld [vmem:[%s9799_s10 + $0x90] sm:$0xe]  ;;  %v9704_v43 = vld [vmem:[%s9804_s13 + $0x98] sm:$0x1] }
 0x328   : > { %v4892_v21 = vrot.slane %v9704_v43, 5  ;;  %v9069_v57 = vrot.slane %v9053_v8, 9  ;;  %v9639_v43 = vld [vmem:[%s9799_s10 + $0x9c] sm:$0xff] }
 0x329   : > { %v5512_v42 = vadd.f32 %v5435_v24, %v5114_v54  ;;  %v5724_v62 = vpop.f32.mrf.mxu0  ;;  %v4966_v56 = vpack.c.b16 %v4945_v58, %v4944_v39  ;;  %v9020_v54 = vrot.slane %v9004_v5, 9  ;;  %v9705_v39 = vld [vmem:[%s9799_s10 + $0x98] sm:$0x1] }
 0x32a   : > { %v6011_v10 = vpop.f32.mrf.mxu1 }
 0x32b   : > { %v5799_v12 = vadd.f32 %v5722_v13, %v5512_v42  ;;  %v5287_v13 = vrot.slane %v9703_v45, 5 }
 0x32d   : > { %v11792_v31 = vadd.f32 %v6009_v6, %v5799_v12  ;;  %v5289_v42 = vrot.slane %v5287_v13, 4  ;;  %v5290_v12 = vrot.slane %v9705_v39, 5 }
 0x32e   : > { %v5039_v7 = vpop.f32.mrf.mxu2  ;;  %v5437_v20 = vpop.f32.mrf.mxu3 }
 0x32f   : > { %v5115_v35 = vadd.f32 %v5039_v7, %v13134_v17  ;;  %v4890_v7 = vsel %vm9920_vm7, %v9020_v54, %v4889_v11  ;;  %v5288_v17 = vsel %vm9920_vm7, %v9069_v57, %v5287_v13  ;;  %v9623_v54 = vld [vmem:[%s9804_s13 + $0x9c] sm:$0xff] }
 0x330   : > { %v5344_v5 = vunpack.c.l.b16 %v5288_v17 }
 0x331   : > { %v5513_v1 = vadd.f32 %v5437_v20, %v5115_v35  ;;  %v5727_v59 = vpop.f32.mrf.mxu0  ;;  %v4893_v20 = vsel %vm9920_vm7, %v4891_v52, %v4892_v21  ;;  %v5291_v35 = vsel %vm9920_vm7, %v5289_v42, %v5290_v12  ;;  %v9005_v21 = vld [vmem:[%s9804_s13 + $0x9c] sm:$0xe]  ;;  %v9706_v52 = vld [vmem:[%s9804_s13 + $0xa0] sm:$0xf] }
 0x332   : > { %v6014_v6 = vpop.f32.mrf.mxu1  ;;  %v5345_v37 = vunpack.c.l.b16 %v5291_v35  ;;  %v4896_v57 = vrot.slane %v9706_v52, 5  ;;  %v9707_v42 = vld [vmem:[%s9799_s10 + $0xa0] sm:$0xf] }
 0x333   : > { %v5800_v24 = vadd.f32 %v5724_v62, %v5513_v1  ;;  %9036 = vmatmul.msk.bf16.gmra.mxu2 %vm392_vm1, %v4966_v56  ;;  %9085 = vmatmul.msk.bf16.gmra.mxu3 %vm392_vm1, %v5364_v41 }
 0x334   : > { %9198 = vmatmul.msk.bf16.gmra.mxu0 %vm392_vm1, %v9622_v15 }
 0x335   : > { %9311 = vmatmul.msk.bf16.gmra.mxu1 %vm392_vm1, %v9638_v34  ;;  %v11807_v58 = vadd.f32 %v6011_v10, %v5800_v24  ;;  %v4947_v34 = vunpack.c.l.b16 %v4893_v20  ;;  %v5365_v24 = vpack.c.b16 %v5345_v37, %v5344_v5  ;;  %v4898_v20 = vrot.slane %v4896_v57, 4 }
 0x336   : > { %v5042_v48 = vpop.f32.mrf.mxu2  ;;  %v5440_v62 = vpop.f32.mrf.mxu3 }
 0x337   : > { %13135 = vst [vmem:[#allocation6_spill] sm:$0xff] %v11807_v58  ;;  %v5116_v32 = vadd.f32 %v5042_v48, %v11378_v47  ;;  %v4946_v47 = vunpack.c.l.b16 %v4890_v7  ;;  %v9054_v48 = vld [vmem:[%s9799_s10 + $0x9c] sm:$0xe] }
 0x338   : > { %v9070_v17 = vrot.slane %v9054_v48, 9 }
 0x339   : > { %v5514_v10 = vadd.f32 %v5440_v62, %v5116_v32  ;;  %v5729_v56 = vpop.f32.mrf.mxu0  ;;  %v4967_v8 = vpack.c.b16 %v4947_v34, %v4946_v47  ;;  %v9708_v32 = vld [vmem:[%s9804_s13 + $0xa4] sm:$0x1] }
 0x33a   : > { %v6016_v41 = vpop.f32.mrf.mxu1  ;;  %v4899_v7 = vrot.slane %v9708_v32, 5  ;;  %v9640_v32 = vld [vmem:[%s9799_s10 + $0xa8] sm:$0xff] }
 0x33b   : > { %v5801_v15 = vadd.f32 %v5727_v59, %v5514_v10  ;;  %v5294_v59 = vrot.slane %v9707_v42, 5  ;;  %v9709_v10 = vld [vmem:[%s9799_s10 + $0xa4] sm:$0x1] }
 0x33c   : > { %v5297_v47 = vrot.slane %v9709_v10, 5 }
 0x33d   : > { %v11818_v11 = vadd.f32 %v6014_v6, %v5801_v15  ;;  %v5296_v35 = vrot.slane %v5294_v59, 4 }
 0x33e   : > { %v5044_v45 = vpop.f32.mrf.mxu2  ;;  %v5442_v13 = vpop.f32.mrf.mxu3 }
 0x33f   : > { %13136 = vst [vmem:[#allocation7_spill] sm:$0xff] %v11818_v11  ;;  %v5117_v1 = vadd.f32 %v5044_v45, %v11391_v40  ;;  %v9021_v40 = vrot.slane %v9005_v21, 9  ;;  %v4900_v45 = vsel %vm9920_vm7, %v4898_v20, %v4899_v7  ;;  %v9006_v7 = vld [vmem:[%s9804_s13 + $0xa8] sm:$0xe]  ;;  %v9710_v20 = vld [vmem:[%s9804_s13 + $0xac] sm:$0xf] }
 0x341   : > { %v5515_v39 = vadd.f32 %v5442_v13, %v5117_v1  ;;  %v5732_v12 = vpop.f32.mrf.mxu0  ;;  %v4897_v37 = vsel %vm9920_vm7, %v9021_v40, %v4896_v57  ;;  %v5295_v13 = vsel %vm9920_vm7, %v9070_v17, %v5294_v59  ;;  %v5298_v1 = vsel %vm9920_vm7, %v5296_v35, %v5297_v47  ;;  %v9624_v40 = vld [vmem:[%s9804_s13 + $0xa8] sm:$0xff] }
 0x342   : > { %v6019_v6 = vpop.f32.mrf.mxu1  ;;  %v5346_v21 = vunpack.c.l.b16 %v5295_v13  ;;  %v5347_v52 = vunpack.c.l.b16 %v5298_v1  ;;  %v4903_v17 = vrot.slane %v9710_v20, 5  ;;  %v9711_v35 = vld [vmem:[%s9799_s10 + $0xac] sm:$0xf] }
 0x343   : > { %v5802_v62 = vadd.f32 %v5729_v56, %v5515_v39  ;;  %9037 = vmatmul.msk.bf16.gmra.mxu2 %vm392_vm1, %v4967_v8  ;;  %9086 = vmatmul.msk.bf16.gmra.mxu3 %vm392_vm1, %v5365_v24 }
 0x344   : > { %9199 = vmatmul.msk.bf16.gmra.mxu0 %vm392_vm1, %v9623_v54 }
 0x345   : > { %9312 = vmatmul.msk.bf16.gmra.mxu1 %vm392_vm1, %v9639_v43  ;;  %v11833_v15 = vadd.f32 %v6016_v41, %v5802_v62  ;;  %v4949_v43 = vunpack.c.l.b16 %v4900_v45  ;;  %v5366_v62 = vpack.c.b16 %v5347_v52, %v5346_v21  ;;  %v4905_v45 = vrot.slane %v4903_v17, 4 }
 0x346   : > { %v5047_v34 = vpop.f32.mrf.mxu2  ;;  %v5445_v56 = vpop.f32.mrf.mxu3 }
 0x347   : > { %13137 = vst [vmem:[#allocation8_spill] sm:$0xff] %v11833_v15  ;;  %v5118_v5 = vadd.f32 %v5047_v34, %v11410_v16  ;;  %v4948_v16 = vunpack.c.l.b16 %v4897_v37  ;;  %v9055_v34 = vld [vmem:[%s9799_s10 + $0xa8] sm:$0xe] }
 0x348   : > { %v9071_v13 = vrot.slane %v9055_v34, 9  ;;  %v9715_v34 = vld [vmem:[%s9799_s10 + $0xb8] sm:$0xf] }
 0x349   : > { %v5516_v41 = vadd.f32 %v5445_v56, %v5118_v5  ;;  %v5734_v8 = vpop.f32.mrf.mxu0  ;;  %v4968_v48 = vpack.c.b16 %v4949_v43, %v4948_v16  ;;  %v9712_v5 = vld [vmem:[%s9804_s13 + $0xb0] sm:$0x1] }
 0x34a   : > { %v6021_v24 = vpop.f32.mrf.mxu1  ;;  %v4906_v37 = vrot.slane %v9712_v5, 5 }
 0x34b   : > { %v5803_v54 = vadd.f32 %v5732_v12, %v5516_v41  ;;  %v5301_v12 = vrot.slane %v9711_v35, 5  ;;  %v9713_v41 = vld [vmem:[%s9799_s10 + $0xb0] sm:$0x1] }
 0x34c   : > { %v5304_v16 = vrot.slane %v9713_v41, 5  ;;  %v9641_v41 = vld [vmem:[%s9799_s10 + $0xb4] sm:$0xff] }
 0x34d   : > { %v11844_v57 = vadd.f32 %v6019_v6, %v5803_v54  ;;  %v5303_v1 = vrot.slane %v5301_v12, 4 }
 0x34e   : > { %v5049_v42 = vpop.f32.mrf.mxu2  ;;  %v5447_v59 = vpop.f32.mrf.mxu3 }
 0x34f   : > { %13138 = vst [vmem:[#allocation9_spill] sm:$0xff] %v11844_v57  ;;  %v5119_v39 = vadd.f32 %v5049_v42, %v11425_v26  ;;  %v9022_v26 = vrot.slane %v9006_v7, 9  ;;  %v4907_v42 = vsel %vm9920_vm7, %v4905_v45, %v4906_v37  ;;  %v9056_v37 = vld [vmem:[%s9799_s10 + $0xb4] sm:$0xe] }
 0x351   : > { %v5517_v10 = vadd.f32 %v5447_v59, %v5119_v39  ;;  %v5737_v47 = vpop.f32.mrf.mxu0  ;;  %v4904_v52 = vsel %vm9920_vm7, %v9022_v26, %v4903_v17  ;;  %v5302_v59 = vsel %vm9920_vm7, %v9071_v13, %v5301_v12  ;;  %v9714_v17 = vld [vmem:[%s9804_s13 + $0xb8] sm:$0xf]  ;;  %v5308_v12 = vrot.slane %v9715_v34, 5 }
 0x352   : > { %v6024_v6 = vpop.f32.mrf.mxu1  ;;  %v5348_v7 = vunpack.c.l.b16 %v5302_v59  ;;  %v4910_v35 = vrot.slane %v9714_v17, 5 }
 0x353   : > { %v5804_v56 = vadd.f32 %v5734_v8, %v5517_v10  ;;  %9038 = vmatmul.msk.bf16.gmra.mxu2 %vm392_vm1, %v4968_v48  ;;  %9087 = vmatmul.msk.bf16.gmra.mxu3 %vm392_vm1, %v5366_v62  ;;  %v9007_v10 = vld [vmem:[%s9804_s13 + $0xb4] sm:$0xe] }
 0x354   : > { %9200 = vmatmul.msk.bf16.gmra.mxu0 %vm392_vm1, %v9624_v40  ;;  %v4950_v40 = vunpack.c.l.b16 %v4904_v52 }
 0x355   : > { %9313 = vmatmul.msk.bf16.gmra.mxu1 %vm392_vm1, %v9640_v32  ;;  %v11859_v54 = vadd.f32 %v6021_v24, %v5804_v56  ;;  %v5305_v24 = vsel %vm9920_vm7, %v5303_v1, %v5304_v16  ;;  %v9625_v1 = vld [vmem:[%s9804_s13 + $0xb4] sm:$0xff]  ;;  %v9023_v16 = vrot.slane %v9007_v10, 9 }
 0x356   : > { %v5052_v8 = vpop.f32.mrf.mxu2  ;;  %v5450_v43 = vpop.f32.mrf.mxu3  ;;  %v5349_v20 = vunpack.c.l.b16 %v5305_v24  ;;  %v5310_v24 = vrot.slane %v5308_v12, 4 }
 0x357   : > { %13139 = vst [vmem:[#allocation10_spill] sm:$0xff] %v11859_v54  ;;  %v5120_v21 = vadd.f32 %v5052_v8, %v11442_v3  ;;  %v4951_v3 = vunpack.c.l.b16 %v4907_v42  ;;  %v4912_v8 = vrot.slane %v4910_v35, 4 }
 0x358   : > { %v5367_v13 = vpack.c.b16 %v5349_v20, %v5348_v7  ;;  %v9718_v7 = vld [vmem:[%s9804_s13 + $0xc4] sm:$0xf] }
 0x359   : > { %v5518_v39 = vadd.f32 %v5450_v43, %v5120_v21  ;;  %v5739_v48 = vpop.f32.mrf.mxu0  ;;  %v9716_v43 = vld [vmem:[%s9804_s13 + $0xbc] sm:$0x1]  ;;  %v4917_v20 = vrot.slane %v9718_v7, 5  ;;  %v9317_v7 = vld [vmem:[%s9804_s13 + $0x18] sm:$0xf] }
 0x35a   : > { %v6026_v62 = vpop.f32.mrf.mxu1  ;;  %v4913_v21 = vrot.slane %v9716_v43, 5 }
 0x35b   : > { %v5805_v32 = vadd.f32 %v5737_v47, %v5518_v39  ;;  %v4969_v47 = vpack.c.b16 %v4951_v3, %v4950_v40  ;;  %v9717_v39 = vld [vmem:[%s9799_s10 + $0xbc] sm:$0x1]  ;;  %v4919_v43 = vrot.slane %v4917_v20, 4 }
 0x35c   : > { %v4914_v40 = vsel %vm9920_vm7, %v4912_v8, %v4913_v21  ;;  %v9720_v21 = vld [vmem:[%s9804_s13 + $0xc8] sm:$0x1] }
 0x35d   : > { %v11873_v56 = vadd.f32 %v6024_v6, %v5805_v32  ;;  %v9072_v6 = vrot.slane %v9056_v37, 9  ;;  %v5311_v32 = vrot.slane %v9717_v39, 5 }
 0x35e   : > { %v5054_v26 = vpop.f32.mrf.mxu2  ;;  %v5452_v5 = vpop.f32.mrf.mxu3 }
 0x35f   : > { %13140 = vst [vmem:[#allocation11_spill] sm:$0xff] %v11873_v56  ;;  %v5121_v45 = vadd.f32 %v5054_v26, %v11455_v49  ;;  %v4911_v49 = vsel %vm9920_vm7, %v9023_v16, %v4910_v35  ;;  %v5309_v3 = vsel %vm9920_vm7, %v9072_v6, %v5308_v12  ;;  %v9719_v12 = vld [vmem:[%s9799_s10 + $0xc4] sm:$0xf]  ;;  %v9057_v6 = vld [vmem:[%s9799_s10 + $0xc0] sm:$0xe] }
 0x360   : > { %v4952_v37 = vunpack.c.l.b16 %v4911_v49  ;;  %v9073_v39 = vrot.slane %v9057_v6, 9 }
 0x361   : > { %v5519_v52 = vadd.f32 %v5452_v5, %v5121_v45  ;;  %v5742_v42 = vpop.f32.mrf.mxu0  ;;  %v9008_v5 = vld [vmem:[%s9804_s13 + $0xc0] sm:$0xe]  ;;  %v4953_v45 = vunpack.c.l.b16 %v4914_v40 }
 0x362   : > { %v6029_v59 = vpop.f32.mrf.mxu1 }
 0x363   : > { %v5806_v17 = vadd.f32 %v5739_v48, %v5519_v52  ;;  %9039 = vmatmul.msk.bf16.gmra.mxu2 %vm392_vm1, %v4969_v47  ;;  %9088 = vmatmul.msk.bf16.gmra.mxu3 %vm392_vm1, %v5367_v13  ;;  %v5312_v48 = vsel %vm9920_vm7, %v5310_v24, %v5311_v32  ;;  %v5350_v47 = vunpack.c.l.b16 %v5309_v3  ;;  %v4920_v52 = vrot.slane %v9720_v21, 5  ;;  %v9626_v21 = vld [vmem:[%s9804_s13 + $0xc0] sm:$0xff] }
 0x364   : > { %9201 = vmatmul.msk.bf16.gmra.mxu0 %vm392_vm1, %v9625_v1  ;;  %v5351_v13 = vunpack.c.l.b16 %v5312_v48  ;;  %v5315_v1 = vrot.slane %v9719_v12, 5  ;;  %v4970_v24 = vpack.c.b16 %v4953_v45, %v4952_v37  ;;  %v6165_v37 = vshrl.u32 %v9317_v7, 16 }
 0x365   : > { %9314 = vmatmul.msk.bf16.gmra.mxu1 %vm392_vm1, %v9641_v41  ;;  %v11894_v10 = vadd.f32 %v6026_v62, %v5806_v17  ;;  %v9024_v62 = vrot.slane %v9008_v5, 9  ;;  %v9721_v17 = vld [vmem:[%s9799_s10 + $0xc8] sm:$0x1]  ;;  %v11910_v48 = vsel %vm9920_vm7, %v4919_v43, %v4920_v52  ;;  %v6168_v45 = vshll.u32 %v9317_v7, 16 }
 0x366   : > { %v5057_v34 = vpop.f32.mrf.mxu2  ;;  %v5455_v26 = vpop.f32.mrf.mxu3  ;;  %v5317_v32 = vrot.slane %v5315_v1, 4  ;;  %v5318_v49 = vrot.slane %v9721_v17, 5  ;;  %v5368_v40 = vpack.c.b16 %v5351_v13, %v5350_v47  ;;  %v11922_v13 = vld [vmem:[%s9799_s10 + $0x1c] sm:$0xf]  ;;  %v6167_v52 = vrot.slane %v6165_v37, 4 }
 0x367   : > { %13141 = vst [vmem:[#allocation12_spill] sm:$0xff] %v11894_v10  ;;  %v5122_v35 = vadd.f32 %v5057_v34, %v11469_v61  ;;  %v11906_v3 = vsel %vm9920_vm7, %v9024_v62, %v4917_v20  ;;  %v11914_v34 = vld [vmem:[%s9804_s13 + $0x1c] sm:$0xf]  ;;  %v6828_v43 = vshll.u32 %v11922_v13, 16  ;;  %v6170_v6 = vrot.slane %v6168_v45, 5 }
 0x368   : > { %v6174_v47 = vshll.u32 %v11914_v34, 16  ;;  %v6178_v20 = vshrl.u32 %v11914_v34, 16  ;;  %v5316_v56 = vsel %vm9920_vm7, %v9073_v39, %v5315_v1  ;;  %v5319_v54 = vsel %vm9920_vm7, %v5317_v32, %v5318_v49  ;;  %v11936_v45 = vld [vmem:[%s9799_s10 + $0x20] sm:$0x1]  ;;  %v9447_v39 = vld [vmem:[%s9804_s13 + $0x18] sm:$0xe] }
 0x369   : > { %v5520_v41 = vadd.f32 %v5455_v26, %v5122_v35  ;;  %v5744_v16 = vpop.f32.mrf.mxu0  ;;  %v6171_v57 = vor.u32 %v6170_v6, %v6167_v52  ;;  %v6832_v1 = vshrl.u32 %v11922_v13, 16  ;;  %v4955_v32 = vunpack.c.l.b16 %v11910_v48 }
 0x36a   : > { %v11899_v8 = vpop.f32.mrf.mxu1  ;;  %v6180_v17 = vrot.slane %v6178_v20, 4  ;;  %v5352_v49 = vunpack.c.l.b16 %v5316_v56 }
 0x36b   : > { %v5807_v61 = vadd.f32 %v5742_v42, %v5520_v41  ;;  %v9382_v42 = vld [vmem:[%s9799_s10 + $0x18] sm:$0xf] }
 0x36c   : > { %v6819_v41 = vshrl.u32 %v9382_v42, 16  ;;  %v6822_v62 = vshll.u32 %v9382_v42, 16 }
 0x36d   : > { %v11917_v26 = vadd.f32 %v6029_v59, %v5807_v61  ;;  %v9642_v59 = vld [vmem:[%s9799_s10 + $0xc0] sm:$0xff]  ;;  %v6176_v61 = vrot.slane %v6174_v47, 5 }
 0x36e   : > { %v5059_v5 = vpop.f32.mrf.mxu2  ;;  %v5457_v35 = vpop.f32.mrf.mxu3  ;;  %v6824_v42 = vrot.slane %v6822_v62, 5 }
 0x36f   : > { %13142 = vst [vmem:[#allocation13_spill] sm:$0xff] %v11917_v26  ;;  %v5123_v12 = vadd.f32 %v5059_v5, %v11486_v63  ;;  %v9319_v63 = vld [vmem:[%s9804_s13 + $0x20] sm:$0x1]  ;;  %v6821_v5 = vrot.slane %v6819_v41, 4  ;;  %v6181_v15 = vor.u32 %v6180_v17, %v6176_v61  ;;  %v6830_v41 = vrot.slane %v6828_v43, 5 }
 0x370   : > { %v6184_v37 = vshll.u32 %v9319_v63, 16  ;;  %v7493_v43 = vrot.slane %v9319_v63, 5 }
 0x371   : > { %v5521_v7 = vadd.f32 %v5457_v35, %v5123_v12  ;;  %v5747_v26 = vpop.f32.mrf.mxu0  ;;  %v4954_v35 = vunpack.c.l.b16 %v11906_v3  ;;  %v6825_v20 = vor.u32 %v6824_v42, %v6821_v5  ;;  %v6172_v12 = vrot.slane %v6171_v57, 4 }
 0x372   : > { %v11928_v10 = vpop.f32.mrf.mxu1  ;;  %v7490_v3 = vrot.slane %v11914_v34, 5  ;;  %v6182_v6 = vrot.slane %v6181_v15, 4  ;;  %v6186_v17 = vrot.slane %v6184_v37, 5  ;;  %v7888_v5 = vrot.slane %v11922_v13, 5 }
 0x373   : > { %v5808_v47 = vadd.f32 %v5744_v16, %v5521_v7  ;;  %9040 = vmatmul.msk.bf16.gmra.mxu2 %vm392_vm1, %v4970_v24  ;;  %9089 = vmatmul.msk.bf16.gmra.mxu3 %vm392_vm1, %v5368_v40  ;;  %v5353_v16 = vunpack.c.l.b16 %v5319_v54  ;;  %v6834_v24 = vrot.slane %v6832_v1, 4  ;;  %v6838_v40 = vshll.u32 %v11936_v45, 16  ;;  %v9496_v54 = vld [vmem:[%s9799_s10 + $0x18] sm:$0xe] }
 0x374   : > { %9202 = vmatmul.msk.bf16.gmra.mxu0 %vm392_vm1, %v9626_v21  ;;  %v6826_v7 = vrot.slane %v6825_v20, 4  ;;  %v9463_v21 = vrot.slane %v9447_v39, 9  ;;  %v6177_v56 = vsel %vm9914_vm6, %v6172_v12, %v6176_v61  ;;  %v7492_v48 = vrot.slane %v7490_v3, 4 }
 0x375   : > { %9315 = vmatmul.msk.bf16.gmra.mxu1 %vm392_vm1, %v9642_v59  ;;  %v6835_v57 = vor.u32 %v6834_v24, %v6830_v41  ;;  %v4971_v11 = vpack.c.b16 %v4955_v32, %v4954_v35  ;;  %v5369_v15 = vpack.c.b16 %v5353_v16, %v5352_v49  ;;  %v6187_v37 = vsel %vm9914_vm6, %v6182_v6, %v6186_v17 }
 0x376   : > { %v5062_v62 = vpop.f32.mrf.mxu2  ;;  %v5460_v52 = vpop.f32.mrf.mxu3  ;;  %v6840_v61 = vrot.slane %v6838_v40, 5  ;;  %v11961_v63 = vsel %vm9920_vm7, %v9463_v21, %v7490_v3  ;;  %v11963_v20 = vunpack.c.l.b16 %v6177_v56  ;;  %v9512_v39 = vrot.slane %v9496_v54, 9  ;;  %v9320_v40 = vld [vmem:[%s9804_s13 + $0x24] sm:$0xf] }
 0x377   : > { %v5124_v59 = vadd.f32 %v5062_v62, %v11502_v9  ;;  %v6831_v9 = vsel %vm9914_vm6, %v6826_v7, %v6830_v41  ;;  %v11966_v35 = vadd.f32 %v11899_v8, %v5808_v47  ;;  %v6836_v32 = vrot.slane %v6835_v57, 4  ;;  %v11980_v8 = vld [vmem:[%s9804_s13 + $0x28] sm:$0xf]  ;;  %v9385_v47 = vld [vmem:[%s9799_s10 + $0x24] sm:$0xf] }
 0x378   : > { %v11970_v49 = vsel %vm9920_vm7, %v7492_v48, %v7493_v43  ;;  %v7890_v12 = vrot.slane %v7888_v5, 4  ;;  %v7891_v41 = vrot.slane %v11936_v45, 5  ;;  %v11973_v16 = vunpack.c.l.b16 %v6187_v37  ;;  %v9627_v48 = vld [vmem:[%s9804_s13 + $0xcc] sm:$0xff] }
 0x379   : > { %v5522_v42 = vadd.f32 %v5460_v52, %v5124_v59  ;;  %v5749_v1 = vpop.f32.mrf.mxu0  ;;  %13143 = vst [vmem:[#allocation2_spill] sm:$0xff] %v11966_v35  ;;  %v11975_v24 = vunpack.c.l.b16 %v6831_v9  ;;  %v6189_v6 = vshrl.u32 %v9320_v40, 16  ;;  %v6192_v45 = vshll.u32 %v9320_v40, 16  ;;  %v9643_v43 = vld [vmem:[%s9799_s10 + $0xcc] sm:$0xff] }
 0x37a   : > { %v11953_v34 = vpop.f32.mrf.mxu1  ;;  %v6198_v17 = vshll.u32 %v11980_v8, 16  ;;  %v6202_v7 = vshrl.u32 %v11980_v8, 16  ;;  %v7603_v59 = vunpack.c.l.b16 %v11970_v49  ;;  %v11992_v56 = vsel %vm9920_vm7, %v9512_v39, %v7888_v5  ;;  %v12004_v49 = vld [vmem:[%s9804_s13 + $0x2c] sm:$0x1] }
 0x37b   : > { %v5809_v13 = vadd.f32 %v5747_v26, %v5522_v42  ;;  %v7602_v26 = vunpack.c.l.b16 %v11961_v63  ;;  %v6843_v57 = vshrl.u32 %v9385_v47, 16  ;;  %v6191_v54 = vrot.slane %v6189_v6, 4  ;;  %v12007_v5 = vld [vmem:[%s9799_s10 + $0x2c] sm:$0x1] }
 0x37c   : > { %v6194_v42 = vrot.slane %v6192_v45, 5  ;;  %v6200_v37 = vrot.slane %v6198_v17, 5  ;;  %v6204_v9 = vrot.slane %v6202_v7, 4  ;;  %v6208_v6 = vshll.u32 %v12004_v49, 16  ;;  %v9448_v7 = vld [vmem:[%s9804_s13 + $0x24] sm:$0xe] }
 0x37d   : > { %v11984_v3 = vadd.f32 %v11928_v10, %v5809_v13  ;;  %v11995_v10 = vld [vmem:[%s9799_s10 + $0x28] sm:$0xf]  ;;  %v6845_v39 = vrot.slane %v6843_v57, 4 }
 0x37e   : > { %v5064_v62 = vpop.f32.mrf.mxu2  ;;  %v5462_v52 = vpop.f32.mrf.mxu3  ;;  %v6205_v35 = vor.u32 %v6204_v9, %v6200_v37  ;;  %v6852_v45 = vshll.u32 %v11995_v10, 16  ;;  %v6856_v17 = vshrl.u32 %v11995_v10, 16 }
 0x37f   : > { %13144 = vst [vmem:[#allocation3_spill] sm:$0xff] %v11984_v3  ;;  %v5125_v21 = vadd.f32 %v5064_v62, %v11521_v50  ;;  %v6841_v50 = vsel %vm9914_vm6, %v6836_v32, %v6840_v61  ;;  %v6846_v62 = vshll.u32 %v9385_v47, 16  ;;  %v6195_v3 = vor.u32 %v6194_v42, %v6191_v54 }
 0x380   : > { %v7892_v61 = vsel %vm9920_vm7, %v7890_v12, %v7891_v41  ;;  %v12019_v47 = vunpack.c.l.b16 %v6841_v50  ;;  %v6854_v57 = vrot.slane %v6852_v45, 5  ;;  %v6210_v54 = vrot.slane %v6208_v6, 5 }
 0x381   : > { %v5523_v63 = vadd.f32 %v5462_v52, %v5125_v21  ;;  %v5752_v13 = vpop.f32.mrf.mxu0  ;;  %v6848_v32 = vrot.slane %v6846_v62, 5  ;;  %v6196_v21 = vrot.slane %v6195_v3, 4  ;;  %v6858_v42 = vrot.slane %v6856_v17, 4 }
 0x382   : > { %v11999_v40 = vpop.f32.mrf.mxu1  ;;  %v12026_v50 = vpack.c.b16 %v7603_v59, %v7602_v26  ;;  %v8000_v3 = vunpack.c.l.b16 %v11992_v56  ;;  %v7500_v26 = vrot.slane %v12004_v49, 5 }
 0x383   : > { %v5810_v52 = vadd.f32 %v5749_v1, %v5523_v63  ;;  %9041 = vmatmul.msk.bf16.gmra.mxu2 %vm392_vm1, %v4971_v11  ;;  %9090 = vmatmul.msk.bf16.gmra.mxu3 %vm392_vm1, %v5369_v15  ;;  %v6862_v1 = vshll.u32 %v12007_v5, 16  ;;  %v6206_v11 = vrot.slane %v6205_v35, 4  ;;  %v6849_v15 = vor.u32 %v6848_v32, %v6845_v39  ;;  %v9497_v32 = vld [vmem:[%s9799_s10 + $0x24] sm:$0xe] }
 0x384   : > { %9203 = vmatmul.msk.bf16.gmra.mxu0 %vm392_vm1, %v9627_v48  ;;  %v9464_v63 = vrot.slane %v9448_v7, 9  ;;  %v7497_v48 = vrot.slane %v11980_v8, 5  ;;  %v7236_v35 = vpack.c.b16 %v12019_v47, %v11975_v24  ;;  %v8001_v39 = vunpack.c.l.b16 %v7892_v61 }
 0x385   : > { %9316 = vmatmul.msk.bf16.gmra.mxu1 %vm392_vm1, %v9643_v43  ;;  %v6850_v62 = vrot.slane %v6849_v15, 4  ;;  %v6859_v6 = vor.u32 %v6858_v42, %v6854_v57  ;;  %v6864_v45 = vrot.slane %v6862_v1, 5  ;;  %v6201_v8 = vsel %vm9914_vm6, %v6196_v21, %v6200_v37 }
 0x386   : > { %v5067_v12 = vpop.f32.mrf.mxu2  ;;  %v5465_v41 = vpop.f32.mrf.mxu3  ;;  %v12043_v59 = vsel %vm9920_vm7, %v9464_v63, %v7497_v48  ;;  %v7499_v56 = vrot.slane %v7497_v48, 4  ;;  %v7895_v61 = vrot.slane %v11995_v10, 5  ;;  %v9513_v47 = vrot.slane %v9497_v32, 9  ;;  %v9323_v10 = vld [vmem:[%s9804_s13 + $0x30] sm:$0xf] }
 0x387   : > { %v5126_v43 = vadd.f32 %v5067_v12, %v11532_v22  ;;  %v6211_v22 = vsel %vm9914_vm6, %v6206_v11, %v6210_v54  ;;  %v6855_v24 = vsel %vm9914_vm6, %v6850_v62, %v6854_v57  ;;  %v6860_v37 = vrot.slane %v6859_v6, 4  ;;  %v9388_v12 = vld [vmem:[%s9799_s10 + $0x30] sm:$0xf]  ;;  %v12075_v6 = vld [vmem:[%s9799_s10 + $0x34] sm:$0xf] }
 0x388   : > { %v12047_v21 = vadd.f32 %v11953_v34, %v5810_v52  ;;  %v8032_v49 = vpack.c.b16 %v8001_v39, %v8000_v3  ;;  %v12049_v1 = vunpack.c.l.b16 %v6201_v8  ;;  %v7897_v11 = vrot.slane %v7895_v61, 4 }
 0x389   : > { %v5524_v17 = vadd.f32 %v5465_v41, %v5126_v43  ;;  %v5754_v58 = vpop.f32.mrf.mxu0  ;;  %v7898_v57 = vrot.slane %v12007_v5, 5  ;;  %v12052_v54 = vunpack.c.l.b16 %v6211_v22  ;;  %v12054_v15 = vunpack.c.l.b16 %v6855_v24 }
 0x38a   : > { %v12032_v9 = vpop.f32.mrf.mxu1  ;;  %v7604_v42 = vunpack.c.l.b16 %v12043_v59  ;;  %v7501_v63 = vsel %vm9920_vm7, %v7499_v56, %v7500_v26  ;;  %v6213_v5 = vshrl.u32 %v9323_v10, 16  ;;  %v6216_v48 = vshll.u32 %v9323_v10, 16 }
 0x38b   : > { %v5811_v7 = vadd.f32 %v5752_v13, %v5524_v17  ;;  %v12059_v13 = vld [vmem:[%s9804_s13 + $0x34] sm:$0xf]  ;;  %v6865_v62 = vsel %vm9914_vm6, %v6860_v37, %v6864_v45  ;;  %v7896_v39 = vsel %vm9920_vm7, %v9513_v47, %v7895_v61  ;;  %v6867_v22 = vshrl.u32 %v9388_v12, 16  ;;  %v9325_v45 = vld [vmem:[%s9804_s13 + $0x38] sm:$0x1] }
 0x38c   : > { %v6222_v43 = vshll.u32 %v12059_v13, 16  ;;  %v6215_v32 = vrot.slane %v6213_v5, 4  ;;  %v6218_v17 = vrot.slane %v6216_v48, 5  ;;  %v6870_v37 = vshll.u32 %v9388_v12, 16 }
 0x38d   : > { %v12063_v34 = vadd.f32 %v11999_v40, %v5811_v7  ;;  %v6226_v40 = vshrl.u32 %v12059_v13, 16  ;;  %v6232_v47 = vshll.u32 %v9325_v45, 16  ;;  %v6869_v10 = vrot.slane %v6867_v22, 4 }
 0x38e   : > { %v5069_v52 = vpop.f32.mrf.mxu2  ;;  %v5467_v41 = vpop.f32.mrf.mxu3  ;;  %v6224_v8 = vrot.slane %v6222_v43, 5  ;;  %v6219_v61 = vor.u32 %v6218_v17, %v6215_v32  ;;  %v6872_v43 = vrot.slane %v6870_v37, 5  ;;  %v12093_v12 = vunpack.c.l.b16 %v6865_v62 }
 0x38f   : > { %v5127_v3 = vadd.f32 %v5069_v52, %v11547_v51  ;;  %v7899_v51 = vsel %vm9920_vm7, %v7897_v11, %v7898_v57  ;;  %v6228_v7 = vrot.slane %v6226_v40, 4  ;;  %v6876_v52 = vshll.u32 %v12075_v6, 16  ;;  %v9449_v57 = vld [vmem:[%s9804_s13 + $0x30] sm:$0xe]  ;;  %v12096_v40 = vld [vmem:[%s9799_s10 + $0x38] sm:$0x1] }
 0x390   : > { %v6880_v11 = vshrl.u32 %v12075_v6, 16  ;;  %v6220_v32 = vrot.slane %v6219_v61, 4  ;;  %v6234_v37 = vrot.slane %v6232_v47, 5  ;;  %v7237_v47 = vpack.c.b16 %v12093_v12, %v12054_v15 }
 0x391   : > { %v5525_v26 = vadd.f32 %v5467_v41, %v5127_v3  ;;  %v5757_v24 = vpop.f32.mrf.mxu0  ;;  %v13145_v41 = vpack.c.b16 %v11973_v16, %v11963_v20  ;;  %v6229_v48 = vor.u32 %v6228_v7, %v6224_v8  ;;  %v8002_v3 = vunpack.c.l.b16 %v7896_v39 }
 0x392   : > { %v12077_v56 = vpop.f32.mrf.mxu1  ;;  %v6878_v20 = vrot.slane %v6876_v52, 5  ;;  %v8003_v16 = vunpack.c.l.b16 %v7899_v51  ;;  %v6882_v17 = vrot.slane %v6880_v11, 4  ;;  %v6583_v39 = vpack.c.b16 %v12052_v54, %v12049_v1 }
 0x393   : > { %v5812_v5 = vadd.f32 %v5754_v58, %v5525_v26  ;;  %9366 = vmatmul.msk.bf16.vlgmr.msra.gmra.mxu2 %vm392_vm1, %v13145_v41  ;;  %9431 = vmatmul.msk.bf16.vlgmr.msra.gmra.mxu3 %vm392_vm1, %v7236_v35  ;;  %v7605_v58 = vunpack.c.l.b16 %v7501_v63  ;;  %v6873_v35 = vor.u32 %v6872_v43, %v6869_v10  ;;  %v6230_v7 = vrot.slane %v6229_v48, 4  ;;  %v9498_v48 = vld [vmem:[%s9799_s10 + $0x30] sm:$0xe] }
 0x394   : > { %9480 = vmatmul.msk.bf16.vlgmr.msra.gmra.mxu0 %vm392_vm1, %v12026_v50  ;;  %v9465_v41 = vrot.slane %v9449_v57, 9  ;;  %v7504_v50 = vrot.slane %v12059_v13, 5  ;;  %v6886_v63 = vshll.u32 %v12096_v40, 16  ;;  %v6883_v51 = vor.u32 %v6882_v17, %v6878_v20  ;;  %v12138_v17 = vld [vmem:[%s9804_s13 + $0x40] sm:$0xf] }
 0x395   : > { %9529 = vmatmul.msk.bf16.vlgmr.msra.gmra.mxu1 %vm392_vm1, %v8032_v49  ;;  %v6874_v62 = vrot.slane %v6873_v35, 4  ;;  %v7507_v10 = vrot.slane %v9325_v45, 5  ;;  %v7635_v13 = vpack.c.b16 %v7605_v58, %v7604_v42  ;;  %v8033_v57 = vpack.c.b16 %v8003_v16, %v8002_v3 }
 0x396   : > { %v5072_v22 = vpop.f32.mrf.mxu2  ;;  %v5470_v26 = vpop.f32.mrf.mxu3  ;;  %v7506_v61 = vrot.slane %v7504_v50, 4  ;;  %v6235_v1 = vsel %vm9914_vm6, %v6230_v7, %v6234_v37  ;;  %v12118_v45 = vsel %vm9920_vm7, %v9465_v41, %v7504_v50  ;;  %v6884_v59 = vrot.slane %v6883_v51, 4 }
 0x397   : > { %v5128_v49 = vadd.f32 %v5072_v22, %v11558_v14  ;;  %v6225_v14 = vsel %vm9914_vm6, %v6220_v32, %v6224_v8  ;;  %v6879_v54 = vsel %vm9914_vm6, %v6874_v62, %v6878_v20  ;;  %v6888_v42 = vrot.slane %v6886_v63, 5 }
 0x398   : > { %v7902_v12 = vrot.slane %v12075_v6, 5  ;;  %v12121_v8 = vunpack.c.l.b16 %v6225_v14  ;;  %v12125_v58 = vsel %vm9920_vm7, %v7506_v61, %v7507_v10  ;;  %v9514_v3 = vrot.slane %v9498_v48, 9  ;;  %v9326_v6 = vld [vmem:[%s9804_s13 + $0x3c] sm:$0xf] }
 0x399   : > { %v5526_v52 = vadd.f32 %v5470_v26, %v5128_v49  ;;  %v5759_v43 = vpop.f32.mrf.mxu0  ;;  %v12128_v16 = vadd.f32 %v12032_v9, %v5812_v5  ;;  %v12130_v20 = vunpack.c.l.b16 %v6235_v1  ;;  %v12132_v32 = vunpack.c.l.b16 %v6879_v54  ;;  %v9391_v5 = vld [vmem:[%s9799_s10 + $0x3c] sm:$0xf] }
 0x39a   : > { %v12103_v11 = vpop.f32.mrf.mxu1  ;;  %v7905_v35 = vrot.slane %v12096_v40, 5  ;;  %v7904_v7 = vrot.slane %v7902_v12, 4  ;;  %v6237_v37 = vshrl.u32 %v9326_v6, 16  ;;  %v6240_v41 = vshll.u32 %v9326_v6, 16 }
 0x39b   : > { %v5813_v15 = vadd.f32 %v5757_v24, %v5526_v52  ;;  %v7606_v24 = vunpack.c.l.b16 %v12118_v45  ;;  %v6246_v9 = vshll.u32 %v12138_v17, 16  ;;  %v6889_v49 = vsel %vm9914_vm6, %v6884_v59, %v6888_v42  ;;  %v12150_v52 = vld [vmem:[%s9799_s10 + $0x40] sm:$0xf] }
 0x39c   : > { %v7607_v40 = vunpack.c.l.b16 %v12125_v58  ;;  %v6250_v62 = vshrl.u32 %v12138_v17, 16  ;;  %v7903_v63 = vsel %vm9920_vm7, %v9514_v3, %v7902_v12  ;;  %v6239_v51 = vrot.slane %v6237_v37, 4 }
 0x39d   : > { %v6242_v61 = vrot.slane %v6240_v41, 5  ;;  %v6248_v10 = vrot.slane %v6246_v9, 5  ;;  %v6891_v59 = vshrl.u32 %v9391_v5, 16  ;;  %v12156_v42 = vadd.f32 %v12077_v56, %v5813_v15  ;;  %v9450_v9 = vld [vmem:[%s9804_s13 + $0x3c] sm:$0xe] }
 0x39e   : > { %v5074_v22 = vpop.f32.mrf.mxu2  ;;  %v5472_v26 = vpop.f32.mrf.mxu3  ;;  %v6252_v54 = vrot.slane %v6250_v62, 4  ;;  %v7906_v58 = vsel %vm9920_vm7, %v7904_v7, %v7905_v35  ;;  %v6894_v6 = vshll.u32 %v9391_v5, 16  ;;  %v6900_v41 = vshll.u32 %v12150_v52, 16 }
 0x39f   : > { %v5129_v50 = vadd.f32 %v5074_v22, %v11573_v44  ;;  %v12153_v44 = vld [vmem:[%s9804_s13 + $0x44] sm:$0x1]  ;;  %v6243_v12 = vor.u32 %v6242_v61, %v6239_v51  ;;  %v6893_v37 = vrot.slane %v6891_v59, 4  ;;  %v12167_v56 = vunpack.c.l.b16 %v6889_v49 }
 0x3a0   : > { %v6256_v3 = vshll.u32 %v12153_v44, 16  ;;  %v8004_v15 = vunpack.c.l.b16 %v7903_v63  ;;  %v6896_v35 = vrot.slane %v6894_v6, 5  ;;  %v8005_v7 = vunpack.c.l.b16 %v7906_v58 }
 0x3a1   : > { %v5527_v14 = vadd.f32 %v5472_v26, %v5129_v50  ;;  %v5762_v48 = vpop.f32.mrf.mxu0  ;;  %v6253_v26 = vor.u32 %v6252_v54, %v6248_v10  ;;  %v6244_v5 = vrot.slane %v6243_v12, 4  ;;  %v12171_v50 = vld [vmem:[%s9799_s10 + $0x44] sm:$0x1]  ;;  %v7511_v49 = vrot.slane %v12138_v17, 5 }
 0x3a2   : > { %v6049_v1 = vpop.f32.mrf.mxu1  ;;  %v6584_v63 = vpack.c.b16 %v12130_v20, %v12121_v8  ;;  %v6910_v58 = vshll.u32 %v12171_v50, 16  ;;  %v7238_v17 = vpack.c.b16 %v12167_v56, %v12132_v32  ;;  %v8034_v8 = vpack.c.b16 %v8005_v7, %v8004_v15 }
 0x3a3   : > { %v5814_v22 = vadd.f32 %v5759_v43, %v5527_v14  ;;  %9367 = vmatmul.msk.bf16.gmra.mxu2 %vm392_vm1, %v6583_v39  ;;  %9432 = vmatmul.msk.bf16.gmra.mxu3 %vm392_vm1, %v7237_v47  ;;  %v6904_v43 = vshrl.u32 %v12150_v52, 16  ;;  %v6258_v39 = vrot.slane %v6256_v3, 5  ;;  %v6902_v47 = vrot.slane %v6900_v41, 5 }
 0x3a4   : > { %9481 = vmatmul.msk.bf16.gmra.mxu0 %vm392_vm1, %v7635_v13  ;;  %v6254_v61 = vrot.slane %v6253_v26, 4  ;;  %v6897_v14 = vor.u32 %v6896_v35, %v6893_v37  ;;  %v9466_v13 = vrot.slane %v9450_v9, 9  ;;  %v7636_v26 = vpack.c.b16 %v7607_v40, %v7606_v24 }
 0x3a5   : > { %9530 = vmatmul.msk.bf16.gmra.mxu1 %vm392_vm1, %v8033_v57  ;;  %v6906_v54 = vrot.slane %v6904_v43, 4  ;;  %v6249_v37 = vsel %vm9914_vm6, %v6244_v5, %v6248_v10  ;;  %v7513_v24 = vrot.slane %v7511_v49, 4  ;;  %v7514_v40 = vrot.slane %v12153_v44, 5  ;;  %v9499_v10 = vld [vmem:[%s9799_s10 + $0x3c] sm:$0xe] }
 0x3a6   : > { %v5077_v62 = vpop.f32.mrf.mxu2  ;;  %v5475_v51 = vpop.f32.mrf.mxu3  ;;  %v6898_v59 = vrot.slane %v6897_v14, 4  ;;  %v6259_v20 = vsel %vm9914_vm6, %v6254_v61, %v6258_v39  ;;  %v12190_v41 = vsel %vm9920_vm7, %v9466_v13, %v7511_v49  ;;  %v12196_v35 = vunpack.c.l.b16 %v6249_v37  ;;  %v9329_v5 = vld [vmem:[%s9804_s13 + $0x48] sm:$0xf]  ;;  %v12207_v39 = vld [vmem:[%s9804_s13 + $0x4c] sm:$0xf] }
 0x3a7   : > { %v5130_v57 = vadd.f32 %v5077_v62, %v11584_v0  ;;  %v6907_v0 = vor.u32 %v6906_v54, %v6902_v47  ;;  %v6912_v32 = vrot.slane %v6910_v58, 5  ;;  %v7909_v56 = vrot.slane %v12150_v52, 5 }
 0x3a8   : > { %v6903_v45 = vsel %vm9914_vm6, %v6898_v59, %v6902_v47  ;;  %v12200_v15 = vadd.f32 %v12103_v11, %v5814_v22  ;;  %v12202_v43 = vunpack.c.l.b16 %v6259_v20  ;;  %v9515_v61 = vrot.slane %v9499_v10, 9  ;;  %v9394_v22 = vld [vmem:[%s9799_s10 + $0x48] sm:$0xf] }
 0x3a9   : > { %v5528_v12 = vadd.f32 %v5475_v51, %v5130_v57  ;;  %v5764_v3 = vpop.f32.mrf.mxu0  ;;  %v6908_v7 = vrot.slane %v6907_v0, 4  ;;  %v12211_v51 = vunpack.c.l.b16 %v6903_v45  ;;  %v6261_v52 = vshrl.u32 %v9329_v5, 16 }
 0x3aa   : > { %v12178_v6 = vpop.f32.mrf.mxu1  ;;  %v6264_v11 = vshll.u32 %v9329_v5, 16  ;;  %v12217_v54 = vsel %vm9920_vm7, %v7513_v24, %v7514_v40  ;;  %v7912_v13 = vrot.slane %v12171_v50, 5  ;;  %v7911_v57 = vrot.slane %v7909_v56, 4 }
 0x3ab   : > { %v5815_v9 = vadd.f32 %v5762_v48, %v5528_v12  ;;  %v6263_v49 = vrot.slane %v6261_v52, 4  ;;  %v6274_v58 = vshrl.u32 %v12207_v39, 16  ;;  %v12223_v12 = vld [vmem:[%s9799_s10 + $0x4c] sm:$0xf]  ;;  %v6915_v45 = vshrl.u32 %v9394_v22, 16 }
 0x3ac   : > { %v6266_v59 = vrot.slane %v6264_v11, 5  ;;  %v7910_v24 = vsel %vm9920_vm7, %v9515_v61, %v7909_v56  ;;  %v6918_v11 = vshll.u32 %v9394_v22, 16  ;;  %v7913_v56 = vsel %vm9920_vm7, %v7911_v57, %v7912_v13 }
 0x3ad   : > { %v12209_v47 = vadd.f32 %v6049_v1, %v5815_v9  ;;  %v6270_v1 = vshll.u32 %v12207_v39, 16  ;;  %v9331_v9 = vld [vmem:[%s9804_s13 + $0x50] sm:$0x1]  ;;  %v6276_v10 = vrot.slane %v6274_v58, 4  ;;  %v7609_v13 = vunpack.c.l.b16 %v12217_v54 }
 0x3ae   : > { %v5079_v44 = vpop.f32.mrf.mxu2  ;;  %v5477_v62 = vpop.f32.mrf.mxu3  ;;  %v6267_v40 = vor.u32 %v6266_v59, %v6263_v49  ;;  %v6280_v5 = vshll.u32 %v9331_v9, 16 }
 0x3af   : > { %13146 = vst [vmem:[#allocation4_spill] sm:$0xff] %v12209_v47  ;;  %v5131_v14 = vadd.f32 %v5079_v44, %v11599_v19  ;;  %v6913_v19 = vsel %vm9914_vm6, %v6908_v7, %v6912_v32  ;;  %v6272_v50 = vrot.slane %v6270_v1, 5  ;;  %v12233_v44 = vld [vmem:[%s9799_s10 + $0x50] sm:$0x1]  ;;  %v6924_v32 = vshll.u32 %v12223_v12, 16 }
 0x3b0   : > { %v9451_v7 = vld [vmem:[%s9804_s13 + $0x48] sm:$0xe]  ;;  %v6268_v61 = vrot.slane %v6267_v40, 4  ;;  %v6282_v1 = vrot.slane %v6280_v5, 5  ;;  %v7211_v48 = vunpack.c.l.b16 %v6913_v19  ;;  %v8006_v40 = vunpack.c.l.b16 %v7910_v24 }
 0x3b1   : > { %v5529_v37 = vadd.f32 %v5477_v62, %v5131_v14  ;;  %v5767_v0 = vpop.f32.mrf.mxu0  ;;  %v6917_v62 = vrot.slane %v6915_v45, 4  ;;  %v6277_v14 = vor.u32 %v6276_v10, %v6272_v50  ;;  %v6926_v49 = vrot.slane %v6924_v32, 5 }
 0x3b2   : > { %v12225_v20 = vpop.f32.mrf.mxu1  ;;  %v9467_v45 = vrot.slane %v9451_v7, 9  ;;  %v8007_v10 = vunpack.c.l.b16 %v7913_v56  ;;  %v6273_v5 = vsel %vm9914_vm6, %v6268_v61, %v6272_v50  ;;  %v9500_v50 = vld [vmem:[%s9799_s10 + $0x48] sm:$0xe]  ;;  %v6585_v56 = vpack.c.b16 %v12202_v43, %v12196_v35  ;;  %v9332_v43 = vld [vmem:[%s9804_s13 + $0x54] sm:$0xf] }
 0x3b3   : > { %v12235_v52 = vadd.f32 %v5764_v3, %v5529_v37  ;;  %9368 = vmatmul.msk.bf16.gmra.mxu2 %vm392_vm1, %v6584_v63  ;;  %9433 = vmatmul.msk.bf16.gmra.mxu3 %vm392_vm1, %v7238_v17  ;;  %v6928_v3 = vshrl.u32 %v12223_v12, 16  ;;  %v6920_v63 = vrot.slane %v6918_v11, 5  ;;  %v6934_v17 = vshll.u32 %v12233_v44, 16 }
 0x3b4   : > { %9482 = vmatmul.msk.bf16.gmra.mxu0 %vm392_vm1, %v7636_v26  ;;  %v6278_v58 = vrot.slane %v6277_v14, 4  ;;  %v7518_v26 = vrot.slane %v12207_v39, 5  ;;  %v7521_v39 = vrot.slane %v9331_v9, 5  ;;  %v13147_v61 = vunpack.c.l.b16 %v12190_v41 }
 0x3b5   : > { %9531 = vmatmul.msk.bf16.gmra.mxu1 %vm392_vm1, %v8034_v8  ;;  %v6930_v37 = vrot.slane %v6928_v3, 4  ;;  %v6921_v57 = vor.u32 %v6920_v63, %v6917_v62  ;;  %v6936_v54 = vrot.slane %v6934_v17, 5  ;;  %v7916_v63 = vrot.slane %v12223_v12, 5  ;;  %v12282_v12 = vld [vmem:[%s9804_s13 + $0x58] sm:$0xf] }
 0x3b6   : > { %v5082_v22 = vpop.f32.mrf.mxu2  ;;  %v5480_v59 = vpop.f32.mrf.mxu3  ;;  %v7520_v3 = vrot.slane %v7518_v26, 4  ;;  %v12258_v24 = vsel %vm9920_vm7, %v9467_v45, %v7518_v26  ;;  %v7637_v9 = vpack.c.b16 %v7609_v13, %v13147_v61  ;;  %v8035_v17 = vpack.c.b16 %v8007_v10, %v8006_v40 }
 0x3b7   : > { %v5132_v8 = vadd.f32 %v5082_v22, %v11610_v18  ;;  %v6931_v11 = vor.u32 %v6930_v37, %v6926_v49  ;;  %v6922_v7 = vrot.slane %v6921_v57, 4  ;;  %v6283_v18 = vsel %vm9914_vm6, %v6278_v58, %v6282_v1 }
 0x3b8   : > { %v7239_v1 = vpack.c.b16 %v7211_v48, %v12211_v51  ;;  %v12269_v22 = vunpack.c.l.b16 %v6273_v5  ;;  %v12273_v58 = vunpack.c.l.b16 %v6283_v18  ;;  %v7610_v41 = vunpack.c.l.b16 %v12258_v24 }
 0x3b9   : > { %v5530_v32 = vadd.f32 %v5480_v59, %v5132_v8  ;;  %v5769_v47 = vpop.f32.mrf.mxu0  ;;  %v6932_v19 = vrot.slane %v6931_v11, 4  ;;  %v6927_v59 = vsel %vm9914_vm6, %v6922_v7, %v6926_v49  ;;  %v9516_v35 = vrot.slane %v9500_v50, 9  ;;  %v9397_v8 = vld [vmem:[%s9799_s10 + $0x54] sm:$0xf] }
 0x3ba   : > { %v12252_v14 = vpop.f32.mrf.mxu1  ;;  %v6285_v45 = vshrl.u32 %v9332_v43, 16  ;;  %v6288_v49 = vshll.u32 %v9332_v43, 16  ;;  %v6294_v26 = vshll.u32 %v12282_v12, 16  ;;  %v12289_v57 = vunpack.c.l.b16 %v6927_v59 }
 0x3bb   : > { %v12261_v62 = vadd.f32 %v5767_v0, %v5530_v32  ;;  %v12277_v0 = vsel %vm9920_vm7, %v7520_v3, %v7521_v39  ;;  %v6937_v37 = vsel %vm9914_vm6, %v6932_v19, %v6936_v54  ;;  %v7918_v40 = vrot.slane %v7916_v63, 4  ;;  %v12294_v3 = vld [vmem:[%s9799_s10 + $0x58] sm:$0xf]  ;;  %v12299_v54 = vld [vmem:[%s9804_s13 + $0x5c] sm:$0x1] }
 0x3bc   : > { %v6298_v10 = vshrl.u32 %v12282_v12, 16  ;;  %v7919_v5 = vrot.slane %v12233_v44, 5  ;;  %v6287_v11 = vrot.slane %v6285_v45, 4  ;;  %v6290_v32 = vrot.slane %v6288_v49, 5 }
 0x3bd   : > { %v6296_v7 = vrot.slane %v6294_v26, 5  ;;  %v6939_v50 = vshrl.u32 %v9397_v8, 16  ;;  %v12303_v61 = vadd.f32 %v12178_v6, %v12235_v52  ;;  %v7611_v44 = vunpack.c.l.b16 %v12277_v0 }
 0x3be   : > { %v5084_v48 = vpop.f32.mrf.mxu2  ;;  %v5482_v51 = vpop.f32.mrf.mxu3  ;;  %v6291_v59 = vor.u32 %v6290_v32, %v6287_v11  ;;  %v6304_v43 = vshll.u32 %v12299_v54, 16  ;;  %v6948_v26 = vshll.u32 %v12294_v3, 16  ;;  %v7917_v6 = vsel %vm9920_vm7, %v9516_v35, %v7916_v63  ;;  %v12321_v11 = vld [vmem:[%s9799_s10 + $0x5c] sm:$0x1] }
 0x3bf   : > { %v5133_v13 = vadd.f32 %v5084_v48, %v11625_v29  ;;  %v6300_v29 = vrot.slane %v6298_v10, 4  ;;  %v6942_v48 = vshll.u32 %v9397_v8, 16  ;;  %v6941_v49 = vrot.slane %v6939_v50, 4 }
 0x3c0   : > { %v12318_v0 = vunpack.c.l.b16 %v6937_v37  ;;  %v6306_v10 = vrot.slane %v6304_v43, 5  ;;  %v7525_v50 = vrot.slane %v12282_v12, 5  ;;  %v6586_v37 = vpack.c.b16 %v12273_v58, %v12269_v22 }
 0x3c1   : > { %v5531_v39 = vadd.f32 %v5482_v51, %v5133_v13  ;;  %v5772_v18 = vpop.f32.mrf.mxu0  ;;  %v6301_v51 = vor.u32 %v6300_v29, %v6296_v7  ;;  %v9452_v13 = vld [vmem:[%s9804_s13 + $0x54] sm:$0xe]  ;;  %v6944_v52 = vrot.slane %v6942_v48, 5 }
 0x3c2   : > { %v12296_v19 = vpop.f32.mrf.mxu1  ;;  %v9468_v63 = vrot.slane %v9452_v13, 9  ;;  %v7240_v12 = vpack.c.b16 %v12318_v0, %v12289_v57 }
 0x3c3   : > { %v5818_v45 = vadd.f32 %v5769_v47, %v5531_v39  ;;  %9369 = vmatmul.msk.bf16.gmra.mxu2 %vm392_vm1, %v6585_v56  ;;  %9434 = vmatmul.msk.bf16.gmra.mxu3 %vm392_vm1, %v7239_v1  ;;  %v7920_v47 = vsel %vm9920_vm7, %v7918_v40, %v7919_v5  ;;  %v6952_v56 = vshrl.u32 %v12294_v3, 16  ;;  %v6292_v1 = vrot.slane %v6291_v59, 4 }
 0x3c4   : > { %9483 = vmatmul.msk.bf16.gmra.mxu0 %vm392_vm1, %v7637_v9  ;;  %v6302_v8 = vrot.slane %v6301_v51, 4  ;;  %v6945_v39 = vor.u32 %v6944_v52, %v6941_v49  ;;  %v8008_v40 = vunpack.c.l.b16 %v7917_v6  ;;  %v8009_v5 = vunpack.c.l.b16 %v7920_v47  ;;  %v9501_v6 = vld [vmem:[%s9799_s10 + $0x54] sm:$0xe] }
 0x3c5   : > { %9532 = vmatmul.msk.bf16.gmra.mxu1 %vm392_vm1, %v8035_v17  ;;  %v12323_v17 = vrot.slane %v6948_v26, 5  ;;  %v6954_v29 = vrot.slane %v6952_v56, 4  ;;  %v6958_v59 = vshll.u32 %v12321_v11, 16  ;;  %v7638_v49 = vpack.c.b16 %v7611_v44, %v7610_v41 }
 0x3c6   : > { %v5087_v32 = vpop.f32.mrf.mxu2  ;;  %v5485_v9 = vpop.f32.mrf.mxu3  ;;  %v12336_v26 = vrot.slane %v6945_v39, 4  ;;  %v6307_v22 = vsel %vm9914_vm6, %v6302_v8, %v6306_v10  ;;  %v12345_v13 = vsel %vm9920_vm7, %v9468_v63, %v7525_v50  ;;  %v8036_v41 = vpack.c.b16 %v8009_v5, %v8008_v40  ;;  %v12365_v8 = vld [vmem:[%s9804_s13 + $0x64] sm:$0xf] }
 0x3c7   : > { %v5134_v35 = vadd.f32 %v5087_v32, %v11636_v46  ;;  %v6297_v46 = vsel %vm9914_vm6, %v6292_v1, %v6296_v7  ;;  %v6955_v58 = vor.u32 %v6954_v29, %v12323_v17  ;;  %v7527_v44 = vrot.slane %v7525_v50, 4  ;;  %v9335_v1 = vld [vmem:[%s9804_s13 + $0x60] sm:$0xf] }
 0x3c8   : > { %v7528_v7 = vrot.slane %v12299_v54, 5  ;;  %v12349_v47 = vunpack.c.l.b16 %v6297_v46  ;;  %v6960_v57 = vrot.slane %v6958_v59, 5  ;;  %v7923_v52 = vrot.slane %v12294_v3, 5  ;;  %v9400_v29 = vld [vmem:[%s9799_s10 + $0x60] sm:$0xf] }
 0x3c9   : > { %v5532_v43 = vadd.f32 %v5485_v9, %v5134_v35  ;;  %v5774_v48 = vpop.f32.mrf.mxu0  ;;  %v12354_v56 = vadd.f32 %v12225_v20, %v12261_v62  ;;  %v12356_v0 = vunpack.c.l.b16 %v6307_v22  ;;  %v12368_v10 = vadd.f32 %v12252_v14, %v5818_v45  ;;  %v12378_v59 = vld [vmem:[%s9799_s10 + $0x64] sm:$0xf] }
 0x3ca   : > { %v12330_v51 = vpop.f32.mrf.mxu1  ;;  %v6956_v20 = vrot.slane %v6955_v58, 4  ;;  %v9517_v62 = vrot.slane %v9501_v6, 9  ;;  %v6309_v9 = vshrl.u32 %v9335_v1, 16  ;;  %v6312_v39 = vshll.u32 %v9335_v1, 16 }
 0x3cb   : > { %v5819_v24 = vadd.f32 %v5772_v18, %v5532_v43  ;;  %v6951_v18 = vsel %vm9914_vm6, %v12336_v26, %v12323_v17  ;;  %v7529_v17 = vsel %vm9920_vm7, %v7527_v44, %v7528_v7  ;;  %v7926_v35 = vrot.slane %v12321_v11, 5 }
 0x3cc   : > { %v6318_v40 = vshll.u32 %v12365_v8, 16  ;;  %v7925_v14 = vrot.slane %v7923_v52, 4  ;;  %v6311_v45 = vrot.slane %v6309_v9, 4  ;;  %v6314_v5 = vrot.slane %v6312_v39, 5 }
 0x3cd   : > { %v6322_v50 = vshrl.u32 %v12365_v8, 16  ;;  %v6963_v58 = vshrl.u32 %v9400_v29, 16  ;;  %v12386_v11 = vadd.f32 %v12296_v19, %v5819_v24  ;;  %v6961_v44 = vsel %vm9914_vm6, %v6956_v20, %v6960_v57  ;;  %v9453_v19 = vld [vmem:[%s9804_s13 + $0x60] sm:$0xe] }
 0x3ce   : > { %v5089_v3 = vpop.f32.mrf.mxu2  ;;  %v5487_v32 = vpop.f32.mrf.mxu3  ;;  %v6320_v22 = vrot.slane %v6318_v40, 5  ;;  %v6315_v7 = vor.u32 %v6314_v5, %v6311_v45  ;;  %v6966_v9 = vshll.u32 %v9400_v29, 16  ;;  %v6972_v39 = vshll.u32 %v12378_v59, 16 }
 0x3cf   : > { %v5135_v63 = vadd.f32 %v5089_v3, %v11651_v25  ;;  %v12383_v25 = vld [vmem:[%s9804_s13 + $0x68] sm:$0x1]  ;;  %v6324_v6 = vrot.slane %v6322_v50, 4  ;;  %v7613_v24 = vunpack.c.l.b16 %v7529_v17  ;;  %v7924_v57 = vsel %vm9920_vm7, %v9517_v62, %v7923_v52 }
 0x3d0   : > { %v6328_v1 = vshll.u32 %v12383_v25, 16  ;;  %v6968_v29 = vrot.slane %v6966_v9, 5  ;;  %v12407_v40 = vrot.slane %v6972_v39, 5  ;;  %v9469_v50 = vrot.slane %v9453_v19, 9 }
 0x3d1   : > { %v5533_v43 = vadd.f32 %v5487_v32, %v5135_v63  ;;  %v5777_v46 = vpop.f32.mrf.mxu0  ;;  %v6965_v32 = vrot.slane %v6963_v58, 4  ;;  %v6325_v20 = vor.u32 %v6324_v6, %v6320_v22  ;;  %v12405_v63 = vld [vmem:[%s9799_s10 + $0x68] sm:$0x1]  ;;  %v7214_v62 = vunpack.c.l.b16 %v6951_v18 }
 0x3d2   : > { %v12380_v26 = vpop.f32.mrf.mxu1  ;;  %v8010_v6 = vunpack.c.l.b16 %v7924_v57  ;;  %v13148_v18 = vunpack.c.l.b16 %v12345_v13 }
 0x3d3   : > { %v12391_v3 = vadd.f32 %v5774_v48, %v5533_v43  ;;  %9370 = vmatmul.msk.bf16.gmra.mxu2 %vm392_vm1, %v6586_v37  ;;  %9435 = vmatmul.msk.bf16.gmra.mxu3 %vm392_vm1, %v7240_v12  ;;  %v6976_v48 = vshrl.u32 %v12378_v59, 16  ;;  %v7927_v37 = vsel %vm9920_vm7, %v7925_v14, %v7926_v35  ;;  %v6316_v12 = vrot.slane %v6315_v7, 4 }
 0x3d4   : > { %9484 = vmatmul.msk.bf16.gmra.mxu0 %vm392_vm1, %v7638_v49  ;;  %v6326_v5 = vrot.slane %v6325_v20, 4  ;;  %v7215_v43 = vunpack.c.l.b16 %v6961_v44  ;;  %v6969_v58 = vor.u32 %v6968_v29, %v6965_v32  ;;  %v8011_v35 = vunpack.c.l.b16 %v7927_v37 }
 0x3d5   : > { %9533 = vmatmul.msk.bf16.gmra.mxu1 %vm392_vm1, %v8036_v41  ;;  %v6330_v41 = vrot.slane %v6328_v1, 5  ;;  %v6978_v17 = vrot.slane %v6976_v48, 4  ;;  %v6982_v14 = vshll.u32 %v12405_v63, 16  ;;  %v7532_v7 = vrot.slane %v12365_v8, 5  ;;  %v9502_v48 = vld [vmem:[%s9799_s10 + $0x60] sm:$0xe] }
 0x3d6   : > { %v5092_v45 = vpop.f32.mrf.mxu2  ;;  %v5490_v49 = vpop.f32.mrf.mxu3  ;;  %v6321_v1 = vsel %vm9914_vm6, %v6316_v12, %v6320_v22  ;;  %v7639_v44 = vpack.c.b16 %v7613_v24, %v13148_v18  ;;  %v7241_v22 = vpack.c.b16 %v7215_v43, %v7214_v62  ;;  %v6970_v20 = vrot.slane %v6969_v58, 4  ;;  %v9403_v43 = vld [vmem:[%s9799_s10 + $0x6c] sm:$0xf] }
 0x3d7   : > { %v5136_v52 = vadd.f32 %v5092_v45, %v11662_v36  ;;  %v6979_v19 = vor.u32 %v6978_v17, %v12407_v40  ;;  %v6587_v36 = vpack.c.b16 %v12356_v0, %v12349_v47  ;;  %v6331_v32 = vsel %vm9914_vm6, %v6326_v5, %v6330_v41  ;;  %v12439_v5 = vld [vmem:[%s9804_s13 + $0x70] sm:$0xf] }
 0x3d8   : > { %v12425_v8 = vsel %vm9920_vm7, %v9469_v50, %v7532_v7  ;;  %v7930_v37 = vrot.slane %v12378_v59, 5  ;;  %v8037_v47 = vpack.c.b16 %v8011_v35, %v8010_v6  ;;  %v12431_v13 = vunpack.c.l.b16 %v6321_v1 }
 0x3d9   : > { %v5534_v9 = vadd.f32 %v5490_v49, %v5136_v52  ;;  %v5779_v39 = vpop.f32.mrf.mxu0  ;;  %v6984_v0 = vrot.slane %v6982_v14, 5  ;;  %v7534_v24 = vrot.slane %v7532_v7, 4  ;;  %v12433_v12 = vunpack.c.l.b16 %v6331_v32 }
 0x3da   : > { %v12412_v54 = vpop.f32.mrf.mxu1  ;;  %v6980_v29 = vrot.slane %v6979_v19, 4  ;;  %v7535_v45 = vrot.slane %v12383_v25, 5  ;;  %v7614_v49 = vunpack.c.l.b16 %v12425_v8  ;;  %v9518_v59 = vrot.slane %v9502_v48, 9  ;;  %v12450_v19 = vld [vmem:[%s9799_s10 + $0x70] sm:$0xf] }
 0x3db   : > { %v12427_v57 = vadd.f32 %v5777_v46, %v5534_v9  ;;  %v9338_v46 = vld [vmem:[%s9804_s13 + $0x6c] sm:$0xf]  ;;  %v6342_v62 = vshll.u32 %v12439_v5, 16  ;;  %v6975_v25 = vsel %vm9914_vm6, %v6970_v20, %v12407_v40  ;;  %v7932_v6 = vrot.slane %v7930_v37, 4 }
 0x3dc   : > { %v6333_v50 = vshrl.u32 %v9338_v46, 16  ;;  %v6336_v52 = vshll.u32 %v9338_v46, 16  ;;  %v6346_v35 = vshrl.u32 %v12439_v5, 16  ;;  %v7933_v14 = vrot.slane %v12405_v63, 5  ;;  %v12455_v46 = vld [vmem:[%s9804_s13 + $0x74] sm:$0x1] }
 0x3dd   : > { %v6344_v1 = vrot.slane %v6342_v62, 5  ;;  %v12459_v40 = vadd.f32 %v12330_v51, %v12391_v3  ;;  %v7536_v63 = vsel %vm9920_vm7, %v7534_v24, %v7535_v45  ;;  %v6985_v62 = vsel %vm9914_vm6, %v6980_v29, %v6984_v0  ;;  %v12479_v29 = vld [vmem:[%s9799_s10 + $0x74] sm:$0x1] }
 0x3de   : > { %v5094_v41 = vpop.f32.mrf.mxu2  ;;  %v5492_v17 = vpop.f32.mrf.mxu3  ;;  %v6335_v7 = vrot.slane %v6333_v50, 4  ;;  %v6338_v9 = vrot.slane %v6336_v52, 5  ;;  %v6352_v50 = vshll.u32 %v12455_v46, 16  ;;  %v6990_v52 = vshll.u32 %v9403_v43, 16 }
 0x3df   : > { %v5137_v58 = vadd.f32 %v5094_v41, %v11677_v53  ;;  %v6348_v53 = vrot.slane %v6346_v35, 4  ;;  %v6987_v41 = vshrl.u32 %v9403_v43, 16  ;;  %v6996_v51 = vshll.u32 %v12450_v19, 16 }
 0x3e0   : > { %v6339_v20 = vor.u32 %v6338_v9, %v6335_v7  ;;  %v12471_v3 = vunpack.c.l.b16 %v6975_v25  ;;  %v7931_v24 = vsel %vm9920_vm7, %v9518_v59, %v7930_v37  ;;  %v6992_v43 = vrot.slane %v6990_v52, 5 }
 0x3e1   : > { %v5535_v18 = vadd.f32 %v5492_v17, %v5137_v58  ;;  %v5782_v32 = vpop.f32.mrf.mxu0  ;;  %v6349_v58 = vor.u32 %v6348_v53, %v6344_v1  ;;  %v6989_v45 = vrot.slane %v6987_v41, 4  ;;  %v6354_v25 = vrot.slane %v6352_v50, 5  ;;  %v9454_v53 = vld [vmem:[%s9804_s13 + $0x6c] sm:$0xe] }
 0x3e2   : > { %v12452_v48 = vpop.f32.mrf.mxu1  ;;  %v6340_v0 = vrot.slane %v6339_v20, 4  ;;  %v12481_v7 = vrot.slane %v6996_v51, 5  ;;  %v7217_v59 = vunpack.c.l.b16 %v6985_v62  ;;  %v7937_v8 = vrot.slane %v12450_v19, 5 }
 0x3e3   : > { %v5822_v17 = vadd.f32 %v5779_v39, %v5535_v18  ;;  %9371 = vmatmul.msk.bf16.gmra.mxu2 %vm392_vm1, %v6587_v36  ;;  %9436 = vmatmul.msk.bf16.gmra.mxu3 %vm392_vm1, %v7241_v22  ;;  %v7934_v39 = vsel %vm9920_vm7, %v7932_v6, %v7933_v14  ;;  %v7000_v36 = vshrl.u32 %v12450_v19, 16  ;;  %v7615_v22 = vunpack.c.l.b16 %v7536_v63 }
 0x3e4   : > { %9485 = vmatmul.msk.bf16.gmra.mxu0 %vm392_vm1, %v7639_v44  ;;  %v8012_v6 = vunpack.c.l.b16 %v7931_v24  ;;  %v8013_v14 = vunpack.c.l.b16 %v7934_v39  ;;  %v7006_v18 = vshll.u32 %v12479_v29, 16  ;;  %v6345_v52 = vsel %vm9914_vm6, %v6340_v0, %v6344_v1 }
 0x3e5   : > { %9534 = vmatmul.msk.bf16.gmra.mxu1 %vm392_vm1, %v8037_v47  ;;  %v6350_v47 = vrot.slane %v6349_v58, 4  ;;  %v7002_v9 = vrot.slane %v7000_v36, 4  ;;  %v6993_v50 = vor.u32 %v6992_v43, %v6989_v45  ;;  %v7539_v58 = vrot.slane %v12439_v5, 5 }
 0x3e6   : > { %v5097_v44 = vpop.f32.mrf.mxu2  ;;  %v5495_v35 = vpop.f32.mrf.mxu3  ;;  %v7640_v62 = vpack.c.b16 %v7615_v22, %v7614_v49  ;;  %v7242_v36 = vpack.c.b16 %v7217_v59, %v12471_v3  ;;  %v8038_v1 = vpack.c.b16 %v8013_v14, %v8012_v6  ;;  %v9470_v0 = vrot.slane %v9454_v53, 9 }
 0x3e7   : > { %v5138_v37 = vadd.f32 %v5097_v44, %v11688_v2  ;;  %v6588_v2 = vpack.c.b16 %v12433_v12, %v12431_v13  ;;  %v6355_v51 = vsel %vm9914_vm6, %v6350_v47, %v6354_v25  ;;  %v7003_v24 = vor.u32 %v7002_v9, %v12481_v7  ;;  %v9503_v13 = vld [vmem:[%s9799_s10 + $0x6c] sm:$0xe]  ;;  %v12511_v44 = vld [vmem:[%s9804_s13 + $0x7c] sm:$0xf] }
 0x3e8   : > { %v12499_v45 = vunpack.c.l.b16 %v6345_v52  ;;  %v7008_v5 = vrot.slane %v7006_v18, 5  ;;  %v12505_v12 = vadd.f32 %v12380_v26, %v12427_v57  ;;  %v12507_v49 = vunpack.c.l.b16 %v6355_v51  ;;  %v9406_v26 = vld [vmem:[%s9799_s10 + $0x78] sm:$0xf] }
 0x3e9   : > { %v5536_v63 = vadd.f32 %v5495_v35, %v5138_v37  ;;  %v5784_v20 = vpop.f32.mrf.mxu0  ;;  %v6994_v22 = vrot.slane %v6993_v50, 4  ;;  %v7541_v43 = vrot.slane %v7539_v58, 4  ;;  %v12514_v3 = vadd.f32 %v12412_v54, %v5822_v17 }
 0x3ea   : > { %v12486_v41 = vpop.f32.mrf.mxu1  ;;  %v7004_v25 = vrot.slane %v7003_v24, 4  ;;  %v7542_v19 = vrot.slane %v12455_v46, 5  ;;  %v9519_v59 = vrot.slane %v9503_v13, 9  ;;  %v7940_v6 = vrot.slane %v12479_v29, 5 }
 0x3eb   : > { %v5823_v39 = vadd.f32 %v5782_v32, %v5536_v63  ;;  %v9341_v32 = vld [vmem:[%s9804_s13 + $0x78] sm:$0xf]  ;;  %v6366_v14 = vshll.u32 %v12511_v44, 16  ;;  %v7939_v18 = vrot.slane %v7937_v8, 4  ;;  %v6370_v53 = vshrl.u32 %v12511_v44, 16 }
 0x3ec   : > { %v6357_v9 = vshrl.u32 %v9341_v32, 16  ;;  %v6360_v37 = vshll.u32 %v9341_v32, 16  ;;  %v12523_v63 = vld [vmem:[%s9799_s10 + $0x7c] sm:$0xf]  ;;  %v7011_v24 = vshrl.u32 %v9406_v26, 16  ;;  %v6999_v29 = vsel %vm9914_vm6, %v6994_v22, %v12481_v7 }
 0x3ed   : > { %v6368_v51 = vrot.slane %v6366_v14, 5  ;;  %v7540_v13 = vsel %vm9920_vm7, %v9470_v0, %v7539_v58  ;;  %v12536_v32 = vld [vmem:[%s9804_s13 + $0x80] sm:$0x1]  ;;  %v7020_v7 = vshll.u32 %v12523_v63, 16  ;;  %v7009_v58 = vsel %vm9914_vm6, %v7004_v25, %v7008_v5 }
 0x3ee   : > { %v5099_v35 = vpop.f32.mrf.mxu2  ;;  %v5497_v47 = vpop.f32.mrf.mxu3  ;;  %v6359_v54 = vrot.slane %v6357_v9, 4  ;;  %v6362_v17 = vrot.slane %v6360_v37, 5  ;;  %v6376_v22 = vshll.u32 %v12536_v32, 16 }
 0x3ef   : > { %v5139_v57 = vadd.f32 %v5099_v35, %v11703_v30  ;;  %v12528_v30 = vadd.f32 %v12452_v48, %v5823_v39  ;;  %v7543_v48 = vsel %vm9920_vm7, %v7541_v43, %v7542_v19  ;;  %v7014_v39 = vshll.u32 %v9406_v26, 16  ;;  %v12556_v43 = vld [vmem:[%s9799_s10 + $0x80] sm:$0x1] }
 0x3f0   : > { %v6363_v35 = vor.u32 %v6362_v17, %v6359_v54  ;;  %v7013_v19 = vrot.slane %v7011_v24, 4  ;;  %v7616_v26 = vunpack.c.l.b16 %v7540_v13  ;;  %v12558_v5 = vrot.slane %v7020_v7, 5  ;;  %v9455_v7 = vld [vmem:[%s9804_s13 + $0x78] sm:$0xe] }
 0x3f1   : > { %v5537_v52 = vadd.f32 %v5497_v47, %v5139_v57  ;;  %v5787_v46 = vpop.f32.mrf.mxu0  ;;  %13149 = vst [vmem:[#allocation5_spill] sm:$0xff] %v12528_v30  ;;  %v6372_v47 = vrot.slane %v6370_v53, 4  ;;  %v7617_v14 = vunpack.c.l.b16 %v7543_v48  ;;  %v7030_v17 = vshll.u32 %v12556_v43, 16 }
 0x3f2   : > { %v12525_v50 = vpop.f32.mrf.mxu1  ;;  %v6364_v57 = vrot.slane %v6363_v35, 4  ;;  %v7546_v53 = vrot.slane %v12511_v44, 5  ;;  %v6378_v35 = vrot.slane %v6376_v22, 5  ;;  %v9471_v22 = vrot.slane %v9455_v7, 9 }
 0x3f3   : > { %v12538_v9 = vadd.f32 %v5784_v20, %v5537_v52  ;;  %9372 = vmatmul.msk.bf16.gmra.mxu2 %vm392_vm1, %v6588_v2  ;;  %9437 = vmatmul.msk.bf16.gmra.mxu3 %vm392_vm1, %v7242_v36  ;;  %v7938_v20 = vsel %vm9920_vm7, %v9519_v59, %v7937_v8  ;;  %v7941_v2 = vsel %vm9920_vm7, %v7939_v18, %v7940_v6  ;;  %v7024_v36 = vshrl.u32 %v12523_v63, 16 }
 0x3f4   : > { %9486 = vmatmul.msk.bf16.gmra.mxu0 %vm392_vm1, %v7640_v62  ;;  %v6373_v0 = vor.u32 %v6372_v47, %v6368_v51  ;;  %v7016_v62 = vrot.slane %v7014_v39, 5  ;;  %v7218_v59 = vunpack.c.l.b16 %v6999_v29  ;;  %v7219_v6 = vunpack.c.l.b16 %v7009_v58 }
 0x3f5   : > { %9535 = vmatmul.msk.bf16.gmra.mxu1 %vm392_vm1, %v8038_v1  ;;  %v7026_v8 = vrot.slane %v7024_v36, 4  ;;  %v8014_v18 = vunpack.c.l.b16 %v7938_v20  ;;  %v8015_v54 = vunpack.c.l.b16 %v7941_v2  ;;  %v6369_v29 = vsel %vm9914_vm6, %v6364_v57, %v6368_v51 }
 0x3f6   : > { %v5102_v37 = vpop.f32.mrf.mxu2  ;;  %v5500_v1 = vpop.f32.mrf.mxu3  ;;  %v6374_v13 = vrot.slane %v6373_v0, 4  ;;  %v7017_v39 = vor.u32 %v7016_v62, %v7013_v19  ;;  %v7243_v58 = vpack.c.b16 %v7219_v6, %v7218_v59  ;;  %v7641_v20 = vpack.c.b16 %v7617_v14, %v7616_v26  ;;  %v9504_v62 = vld [vmem:[%s9799_s10 + $0x78] sm:$0xe]  ;;  %v9409_v6 = vld [vmem:[%s9799_s10 + $0x84] sm:$0xf] }
 0x3f7   : > { %v5140_v25 = vadd.f32 %v5102_v37, %v11714_v4  ;;  %v6589_v4 = vpack.c.b16 %v12507_v49, %v12499_v45  ;;  %v7027_v48 = vor.u32 %v7026_v8, %v12558_v5  ;;  %v7944_v2 = vrot.slane %v12523_v63, 5 }
 0x3f8   : > { %v8039_v36 = vpack.c.b16 %v8015_v54, %v8014_v18  ;;  %v7032_v0 = vrot.slane %v7030_v17, 5  ;;  %v7548_v19 = vrot.slane %v7546_v53, 4  ;;  %v6379_v45 = vsel %vm9914_vm6, %v6374_v13, %v6378_v35 }
 0x3f9   : > { %v5538_v52 = vadd.f32 %v5500_v1, %v5140_v25  ;;  %v5789_v24 = vpop.f32.mrf.mxu0  ;;  %v12577_v49 = vunpack.c.l.b16 %v6369_v29  ;;  %v7018_v51 = vrot.slane %v7017_v39, 4  ;;  %v7549_v37 = vrot.slane %v12536_v32, 5  ;;  %v12582_v1 = vld [vmem:[%s9804_s13 + $0x88] sm:$0xf] }
 0x3fa   : > { %v12563_v47 = vpop.f32.mrf.mxu1  ;;  %v7028_v57 = vrot.slane %v7027_v48, 4  ;;  %v6390_v59 = vshll.u32 %v12582_v1, 16  ;;  %v9520_v18 = vrot.slane %v9504_v62, 9  ;;  %v7946_v54 = vrot.slane %v7944_v2, 4  ;;  %v12592_v39 = vld [vmem:[%s9799_s10 + $0x88] sm:$0xf] }
 0x3fb   : > { %v12571_v44 = vadd.f32 %v5787_v46, %v5538_v52  ;;  %v9344_v46 = vld [vmem:[%s9804_s13 + $0x84] sm:$0xf]  ;;  %v6394_v17 = vshrl.u32 %v12582_v1, 16  ;;  %v7947_v32 = vrot.slane %v12556_v43, 5  ;;  %v12601_v62 = vadd.f32 %v12486_v41, %v12538_v9 }
 0x3fc   : > { %v6381_v8 = vshrl.u32 %v9344_v46, 16  ;;  %v6384_v25 = vshll.u32 %v9344_v46, 16  ;;  %v12589_v35 = vrot.slane %v6390_v59, 5  ;;  %v12597_v46 = vld [vmem:[%s9804_s13 + $0x8c] sm:$0x1]  ;;  %v7023_v43 = vsel %vm9914_vm6, %v7018_v51, %v12558_v5 }
 0x3fd   : > { %v6396_v30 = vrot.slane %v6394_v17, 4  ;;  %v7033_v41 = vsel %vm9914_vm6, %v7028_v57, %v7032_v0  ;;  %v7044_v59 = vshll.u32 %v12592_v39, 16  ;;  %v7948_v0 = vsel %vm9920_vm7, %v7946_v54, %v7947_v32 }
 0x3fe   : > { %v5104_v26 = vpop.f32.mrf.mxu2  ;;  %v5502_v63 = vpop.f32.mrf.mxu3  ;;  %v6383_v52 = vrot.slane %v6381_v8, 4  ;;  %v6386_v13 = vrot.slane %v6384_v25, 5  ;;  %v7038_v8 = vshll.u32 %v9409_v6, 16  ;;  %v8017_v32 = vunpack.c.l.b16 %v7948_v0  ;;  %v9505_v0 = vld [vmem:[%s9799_s10 + $0x84] sm:$0xe] }
 0x3ff   : > { %v5141_v14 = vadd.f32 %v5104_v26, %v11729_v38  ;;  %v7035_v38 = vshrl.u32 %v9409_v6, 16  ;;  %v7547_v26 = vsel %vm9920_vm7, %v9471_v22, %v7546_v53  ;;  %v6400_v53 = vshll.u32 %v12597_v46, 16 }
 0x400   : > { %v6387_v5 = vor.u32 %v6386_v13, %v6383_v52  ;;  %v12619_v22 = vunpack.c.l.b16 %v6379_v45  ;;  %v7618_v57 = vunpack.c.l.b16 %v7547_v26  ;;  %v9456_v45 = vld [vmem:[%s9804_s13 + $0x84] sm:$0xe] }
 0x401   : > { %v5539_v7 = vadd.f32 %v5502_v63, %v5141_v14  ;;  %v5792_v29 = vpop.f32.mrf.mxu0  ;;  %v7550_v63 = vsel %vm9920_vm7, %v7548_v19, %v7549_v37  ;;  %v7037_v9 = vrot.slane %v7035_v38, 4  ;;  %v12628_v37 = vunpack.c.l.b16 %v7033_v41  ;;  %v12631_v14 = vld [vmem:[%s9799_s10 + $0x8c] sm:$0x1] }
 0x402   : > { %v12594_v48 = vpop.f32.mrf.mxu1  ;;  %v7619_v6 = vunpack.c.l.b16 %v7550_v63  ;;  %v6402_v13 = vrot.slane %v6400_v53, 5  ;;  %v7054_v63 = vshll.u32 %v12631_v14, 16 }
 0x403   : > { %v5826_v25 = vadd.f32 %v5789_v24, %v5539_v7  ;;  %9373 = vmatmul.msk.bf16.gmra.mxu2 %vm392_vm1, %v6589_v4  ;;  %9438 = vmatmul.msk.bf16.gmra.mxu3 %vm392_vm1, %v7243_v58  ;;  %v7040_v24 = vrot.slane %v7038_v8, 5  ;;  %v7048_v4 = vshrl.u32 %v12592_v39, 16  ;;  %v7945_v58 = vsel %vm9920_vm7, %v9520_v18, %v7944_v2 }
 0x404   : > { %9487 = vmatmul.msk.bf16.gmra.mxu0 %vm392_vm1, %v7641_v20  ;;  %v6397_v20 = vor.u32 %v6396_v30, %v12589_v35  ;;  %v12635_v2 = vrot.slane %v7044_v59, 5  ;;  %v8016_v54 = vunpack.c.l.b16 %v7945_v58  ;;  %v6388_v30 = vrot.slane %v6387_v5, 4 }
 0x405   : > { %9536 = vmatmul.msk.bf16.gmra.mxu1 %vm392_vm1, %v8039_v36  ;;  %v12626_v36 = vunpack.c.l.b16 %v7023_v43  ;;  %v7041_v52 = vor.u32 %v7040_v24, %v7037_v9  ;;  %v7050_v18 = vrot.slane %v7048_v4, 4  ;;  %v9472_v8 = vrot.slane %v9456_v45, 9 }
 0x406   : > { %v5107_v19 = vpop.f32.mrf.mxu2  ;;  %v5505_v51 = vpop.f32.mrf.mxu3  ;;  %v6398_v26 = vrot.slane %v6397_v20, 4  ;;  %v7642_v41 = vpack.c.b16 %v7619_v6, %v7618_v57  ;;  %v7553_v9 = vrot.slane %v12582_v1, 5  ;;  %v8040_v4 = vpack.c.b16 %v8017_v32, %v8016_v54 }
 0x407   : > { %v5142_v17 = vadd.f32 %v5107_v19, %v11740_v23  ;;  %v6590_v23 = vpack.c.b16 %v12619_v22, %v12577_v49  ;;  %v7244_v5 = vpack.c.b16 %v12628_v37, %v12626_v36  ;;  %v7042_v53 = vrot.slane %v7041_v52, 4  ;;  %v9347_v19 = vld [vmem:[%s9804_s13 + $0x90] sm:$0xf] }
 0x408   : > { %v7051_v24 = vor.u32 %v7050_v18, %v12635_v2  ;;  %v6393_v58 = vsel %vm9914_vm6, %v6388_v30, %v12589_v35  ;;  %v7951_v20 = vrot.slane %v12592_v39, 5  ;;  %v12653_v49 = vadd.f32 %v12525_v50, %v12571_v44  ;;  %v12667_v44 = vld [vmem:[%s9804_s13 + $0x94] sm:$0xf] }
 0x409   : > { %v5540_v7 = vadd.f32 %v5505_v51, %v5142_v17  ;;  %v5794_v38 = vpop.f32.mrf.mxu0  ;;  %v6403_v1 = vsel %vm9914_vm6, %v6398_v26, %v6402_v13  ;;  %v12659_v22 = vsel %vm9920_vm7, %v9472_v8, %v7553_v9  ;;  %v12663_v51 = vadd.f32 %v12563_v47, %v5826_v25  ;;  %v9412_v47 = vld [vmem:[%s9799_s10 + $0x90] sm:$0xf]  ;;  %v12676_v30 = vld [vmem:[%s9799_s10 + $0x94] sm:$0xf] }
 0x40a   : > { %v12637_v43 = vpop.f32.mrf.mxu1  ;;  %v7555_v36 = vrot.slane %v7553_v9, 4  ;;  %v7556_v50 = vrot.slane %v12597_v46, 5  ;;  %v6405_v37 = vshrl.u32 %v9347_v19, 16  ;;  %v6408_v57 = vshll.u32 %v9347_v19, 16  ;;  %v12707_v19 = vld [vmem:[%s9804_s13 + $0x98] sm:$0x1] }
 0x40b   : > { %v5827_v59 = vadd.f32 %v5792_v29, %v5540_v7  ;;  %v7056_v29 = vrot.slane %v7054_v63, 5  ;;  %v7047_v45 = vsel %vm9914_vm6, %v7042_v53, %v12635_v2  ;;  %v7052_v17 = vrot.slane %v7051_v24, 4 }
 0x40c   : > { %v9521_v52 = vrot.slane %v9505_v0, 9  ;;  %v7953_v25 = vrot.slane %v7951_v20, 4  ;;  %v7954_v18 = vrot.slane %v12631_v14, 5  ;;  %v6407_v54 = vrot.slane %v6405_v37, 4 }
 0x40d   : > { %v6410_v32 = vrot.slane %v6408_v57, 5  ;;  %v6414_v26 = vshll.u32 %v12667_v44, 16  ;;  %v12681_v63 = vadd.f32 %v12594_v48, %v5827_v59  ;;  %v12683_v2 = vunpack.c.l.b16 %v6393_v58 }
 0x40e   : > { %v5109_v35 = vpop.f32.mrf.mxu2  ;;  %v5507_v39 = vpop.f32.mrf.mxu3  ;;  %v12685_v8 = vunpack.c.l.b16 %v6403_v1  ;;  %v7059_v14 = vshrl.u32 %v9412_v47, 16  ;;  %v7557_v24 = vsel %vm9920_vm7, %v7555_v36, %v7556_v50  ;;  %v7062_v0 = vshll.u32 %v9412_v47, 16  ;;  %v12714_v47 = vld [vmem:[%s9799_s10 + $0x98] sm:$0x1] }
 0x40f   : > { %v5143_v6 = vadd.f32 %v5109_v35, %v11755_v60  ;;  %v6418_v60 = vshrl.u32 %v12667_v44, 16  ;;  %v6411_v9 = vor.u32 %v6410_v32, %v6407_v54  ;;  %v7068_v48 = vshll.u32 %v12676_v30, 16 }
 0x410   : > { %v7057_v59 = vsel %vm9914_vm6, %v7052_v17, %v7056_v29  ;;  %v12698_v58 = vunpack.c.l.b16 %v7047_v45  ;;  %v7955_v1 = vsel %vm9920_vm7, %v7953_v25, %v7954_v18  ;;  %v7621_v29 = vunpack.c.l.b16 %v7557_v24 }
 0x411   : > { %v5541_v46 = vadd.f32 %v5507_v39, %v5143_v6  ;;  %v7710_v13 = vpop.f32.mrf.mxu0  ;;  %v6412_v36 = vrot.slane %v6411_v9, 4  ;;  %v7061_v50 = vrot.slane %v7059_v14, 4  ;;  %v7223_v57 = vunpack.c.l.b16 %v7057_v59 }
 0x412   : > { %v8108_v7 = vpop.f32.mrf.mxu1  ;;  %v12710_v6 = vrot.slane %v7068_v48, 5  ;;  %v8019_v17 = vunpack.c.l.b16 %v7955_v1  ;;  %v7078_v59 = vshll.u32 %v12714_v47, 16  ;;  %v9506_v1 = vld [vmem:[%s9799_s10 + $0x90] sm:$0xe] }
 0x413   : > { %v12687_v53 = vadd.f32 %v5794_v38, %v5541_v46  ;;  %9374 = vmatmul.msk.bf16.gmra.mxu2 %vm392_vm1, %v6590_v23  ;;  %9439 = vmatmul.msk.bf16.gmra.mxu3 %vm392_vm1, %v7244_v5  ;;  %v7620_v38 = vunpack.c.l.b16 %v12659_v22  ;;  %v7072_v23 = vshrl.u32 %v12676_v30, 16  ;;  %v7952_v5 = vsel %vm9920_vm7, %v9521_v52, %v7951_v20  ;;  %v9457_v46 = vld [vmem:[%s9804_s13 + $0x90] sm:$0xe] }
 0x414   : > { %9488 = vmatmul.msk.bf16.gmra.mxu0 %vm392_vm1, %v7642_v41  ;;  %v6416_v41 = vrot.slane %v6414_v26, 5  ;;  %v7064_v22 = vrot.slane %v7062_v0, 5  ;;  %v8018_v45 = vunpack.c.l.b16 %v7952_v5  ;;  %v6424_v52 = vshll.u32 %v12707_v19, 16 }
 0x415   : > { %9537 = vmatmul.msk.bf16.gmra.mxu1 %vm392_vm1, %v8040_v4  ;;  %v6420_v4 = vrot.slane %v6418_v60, 4  ;;  %v7074_v20 = vrot.slane %v7072_v23, 4  ;;  %v7560_v26 = vrot.slane %v12667_v44, 5  ;;  %v7643_v60 = vpack.c.b16 %v7621_v29, %v7620_v38 }
 0x416   : > { %v6658_v35 = vpop.f32.mrf.mxu2  ;;  %v7312_v39 = vpop.f32.mrf.mxu3  ;;  %v6417_v9 = vsel %vm9914_vm6, %v6412_v36, %v6416_v41  ;;  %v7065_v14 = vor.u32 %v7064_v22, %v7061_v50  ;;  %v7245_v0 = vpack.c.b16 %v7223_v57, %v12698_v58  ;;  %v8041_v23 = vpack.c.b16 %v8019_v17, %v8018_v45 }
 0x417   : > { %v6738_v37 = vadd.f32 %v6658_v35, %v11766_v27  ;;  %v6421_v32 = vor.u32 %v6420_v4, %v6416_v41  ;;  %v6591_v27 = vpack.c.b16 %v12685_v8, %v12683_v2  ;;  %v7075_v48 = vor.u32 %v7074_v20, %v12710_v6  ;;  %v9350_v35 = vld [vmem:[%s9804_s13 + $0x9c] sm:$0xf] }
 0x418   : > { %v6426_v5 = vrot.slane %v6424_v52, 5  ;;  %v9473_v44 = vrot.slane %v9457_v46, 9  ;;  %v7958_v2 = vrot.slane %v12676_v30, 5  ;;  %v12727_v4 = vunpack.c.l.b16 %v6417_v9 }
 0x419   : > { %v7392_v25 = vadd.f32 %v7312_v39, %v6738_v37  ;;  %v7712_v18 = vpop.f32.mrf.mxu0  ;;  %v6422_v38 = vrot.slane %v6421_v32, 4  ;;  %v7562_v41 = vrot.slane %v7560_v26, 4  ;;  %v12731_v39 = vld [vmem:[%s9804_s13 + $0xa0] sm:$0xf]  ;;  %v7066_v29 = vrot.slane %v7065_v14, 4 }
 0x41a   : > { %v8110_v54 = vpop.f32.mrf.mxu1  ;;  %v7563_v36 = vrot.slane %v12707_v19, 5  ;;  %v6429_v50 = vshrl.u32 %v9350_v35, 16  ;;  %v6432_v22 = vshll.u32 %v9350_v35, 16  ;;  %v7076_v30 = vrot.slane %v7075_v48, 4 }
 0x41b   : > { %v7790_v24 = vadd.f32 %v7710_v13, %v7392_v25  ;;  %v9522_v57 = vrot.slane %v9506_v1, 9  ;;  %v7960_v20 = vrot.slane %v7958_v2, 4  ;;  %v7961_v45 = vrot.slane %v12714_v47, 5  ;;  %v9415_v25 = vld [vmem:[%s9799_s10 + $0x9c] sm:$0xf] }
 0x41c   : > { %v6431_v17 = vrot.slane %v6429_v50, 4  ;;  %v6438_v52 = vshll.u32 %v12731_v39, 16  ;;  %v6434_v19 = vrot.slane %v6432_v22, 5  ;;  %v6442_v14 = vshrl.u32 %v12731_v39, 16  ;;  %v12778_v22 = vld [vmem:[%s9799_s10 + $0xa4] sm:$0x1] }
 0x41d   : > { %v8188_v8 = vadd.f32 %v8108_v7, %v7790_v24  ;;  %v7080_v7 = vrot.slane %v7078_v59, 5  ;;  %v12740_v24 = vld [vmem:[%s9799_s10 + $0xa0] sm:$0xf]  ;;  %v6427_v48 = vsel %vm9914_vm6, %v6422_v38, %v6426_v5  ;;  %v7071_v47 = vsel %vm9914_vm6, %v7066_v29, %v12710_v6  ;;  %v12774_v29 = vld [vmem:[%s9804_s13 + $0xa4] sm:$0x1] }
 0x41e   : > { %v6660_v13 = vpop.f32.mrf.mxu2  ;;  %v7314_v58 = vpop.f32.mrf.mxu3  ;;  %v7561_v59 = vsel %vm9920_vm7, %v9473_v44, %v7560_v26  ;;  %v7564_v1 = vsel %vm9920_vm7, %v7562_v41, %v7563_v36  ;;  %v7086_v5 = vshll.u32 %v9415_v25, 16  ;;  %v7959_v6 = vsel %vm9920_vm7, %v9522_v57, %v7958_v2 }
 0x41f   : > { %v6739_v37 = vadd.f32 %v6660_v13, %v11781_v55  ;;  %8220 = vxpose.xlu0.b32.start [1/16] (narrow) %v8188_v8, 8  ;;  %v12744_v55 = vadd.f32 %v12637_v43, %v12687_v53  ;;  %v7081_v43 = vsel %vm9914_vm6, %v7076_v30, %v7080_v7  ;;  %v7083_v53 = vshrl.u32 %v9415_v25, 16 }
 0x420   : > { %v7962_v26 = vsel %vm9920_vm7, %v7960_v20, %v7961_v45  ;;  %v6435_v44 = vor.u32 %v6434_v19, %v6431_v17  ;;  %v12767_v38 = vrot.slane %v6438_v52, 5  ;;  %v6444_v41 = vrot.slane %v6442_v14, 4 }
 0x421   : > { %v7393_v32 = vadd.f32 %v7314_v58, %v6739_v37  ;;  %v7715_v46 = vpop.f32.mrf.mxu0  ;;  %v12769_v13 = vunpack.c.l.b16 %v6427_v48  ;;  %v7622_v2 = vunpack.c.l.b16 %v7561_v59  ;;  %v7623_v58 = vunpack.c.l.b16 %v7564_v1  ;;  %v9458_v1 = vld [vmem:[%s9804_s13 + $0x9c] sm:$0xe] }
 0x422   : > { %v8113_v9 = vpop.f32.mrf.mxu1  ;;  %v7225_v50 = vunpack.c.l.b16 %v7081_v43  ;;  %v7088_v37 = vrot.slane %v7086_v5, 5  ;;  %v8020_v30 = vunpack.c.l.b16 %v7959_v6  ;;  %v8021_v7 = vunpack.c.l.b16 %v7962_v26 }
 0x423   : > { %9375 = vmatmul.msk.bf16.gmra.mxu2 %vm392_vm1, %v6591_v27  ;;  %9440 = vmatmul.msk.bf16.gmra.mxu3 %vm392_vm1, %v7245_v0  ;;  %v7791_v8 = vadd.f32 %v7712_v18, %v7393_v32  ;;  %v7092_v27 = vshll.u32 %v12740_v24, 16  ;;  %v7096_v18 = vshrl.u32 %v12740_v24, 16  ;;  %v6436_v25 = vrot.slane %v6435_v44, 4 }
 0x424   : > { %9489 = vmatmul.msk.bf16.gmra.mxu0 %vm392_vm1, %v7643_v60  ;;  %v6445_v32 = vor.u32 %v6444_v41, %v12767_v38  ;;  %v7102_v19 = vshll.u32 %v12778_v22, 16  ;;  %v6592_v48 = vpack.c.b16 %v12769_v13, %v12727_v4  ;;  %v8042_v43 = vpack.c.b16 %v8021_v7, %v8020_v30  ;;  %v9353_v4 = vld [vmem:[%s9804_s13 + $0xa8] sm:$0xf] }
 0x425   : > { %9538 = vmatmul.msk.bf16.gmra.mxu1 %vm392_vm1, %v8041_v23  ;;  %v8189_v0 = vadd.f32 %v8110_v54, %v7791_v8  ;;  %v12771_v23 = vunpack.c.l.b16 %v7071_v47  ;;  %v7085_v54 = vrot.slane %v7083_v53, 4  ;;  %v12780_v57 = vrot.slane %v7092_v27, 5 }
 0x426   : > { %v6663_v60 = vpop.f32.mrf.mxu2  ;;  %v7317_v35 = vpop.f32.mrf.mxu3  ;;  %v7098_v20 = vrot.slane %v7096_v18, 4  ;;  %v7644_v47 = vpack.c.b16 %v7623_v58, %v7622_v2  ;;  %v7567_v5 = vrot.slane %v12731_v39, 5  ;;  %v6441_v26 = vsel %vm9914_vm6, %v6436_v25, %v12767_v38  ;;  %v12796_v18 = vld [vmem:[%s9804_s13 + $0xac] sm:$0xf]  ;;  %v13150_v2 = vld [vmem:[#allocation6_spill] sm:$0xff] }
 0x427   : > { %v6740_v36 = vadd.f32 %v6663_v60, %v11792_v31  ;;  %8221 = vxpose.xlu0.b32.cont [2/16] (narrow) %v8189_v0, 8  ;;  %v6448_v31 = vshll.u32 %v12774_v29, 16  ;;  %v7089_v59 = vor.u32 %v7088_v37, %v7085_v54  ;;  %v7246_v8 = vpack.c.b16 %v7225_v50, %v12771_v23 }
 0x428   : > { %v7099_v53 = vor.u32 %v7098_v20, %v12780_v57  ;;  %v7104_v41 = vrot.slane %v7102_v19, 5  ;;  %v9474_v60 = vrot.slane %v9458_v1, 9  ;;  %v6453_v13 = vshrl.u32 %v9353_v4, 16 }
 0x429   : > { %v7394_v45 = vadd.f32 %v7317_v35, %v6740_v36  ;;  %v7717_v17 = vpop.f32.mrf.mxu0  ;;  %v6450_v27 = vrot.slane %v6448_v31, 5  ;;  %v9507_v35 = vld [vmem:[%s9799_s10 + $0x9c] sm:$0xe]  ;;  %v6456_v23 = vshll.u32 %v9353_v4, 16  ;;  %v7570_v38 = vrot.slane %v12774_v29, 5 }
 0x42a   : > { %v8115_v52 = vpop.f32.mrf.mxu1  ;;  %v6462_v58 = vshll.u32 %v12796_v18, 16  ;;  %v9418_v36 = vld [vmem:[%s9799_s10 + $0xa8] sm:$0xf]  ;;  %v7100_v50 = vrot.slane %v7099_v53, 4  ;;  %v7569_v54 = vrot.slane %v7567_v5, 4  ;;  %v7965_v37 = vrot.slane %v12740_v24, 5 }
 0x42b   : > { %v7792_v14 = vadd.f32 %v7715_v46, %v7394_v45  ;;  %v6446_v46 = vrot.slane %v6445_v32, 4  ;;  %v6466_v30 = vshrl.u32 %v12796_v18, 16  ;;  %v12807_v32 = vunpack.c.l.b16 %v6441_v26 }
 0x42c   : > { %v9523_v31 = vrot.slane %v9507_v35, 9  ;;  %v6455_v19 = vrot.slane %v6453_v13, 4  ;;  %v6458_v29 = vrot.slane %v6456_v23, 5  ;;  %v7110_v1 = vshll.u32 %v9418_v36, 16  ;;  %v13151_v13 = vld [vmem:[#allocation7_spill] sm:$0xff] }
 0x42d   : > { %v8190_v6 = vadd.f32 %v8113_v9, %v7792_v14  ;;  %v7090_v9 = vrot.slane %v7089_v59, 4  ;;  %v6451_v25 = vsel %vm9914_vm6, %v6446_v46, %v6450_v27  ;;  %v12810_v14 = vld [vmem:[%s9799_s10 + $0xac] sm:$0xf]  ;;  %v7107_v59 = vshrl.u32 %v9418_v36, 16  ;;  %v12828_v27 = vld [vmem:[%s9804_s13 + $0xb0] sm:$0x1] }
 0x42e   : > { %v6665_v0 = vpop.f32.mrf.mxu2  ;;  %v7319_v44 = vpop.f32.mrf.mxu3  ;;  %v7568_v53 = vsel %vm9920_vm7, %v9474_v60, %v7567_v5  ;;  %v6468_v26 = vrot.slane %v6466_v30, 4  ;;  %v7968_v4 = vrot.slane %v12778_v22, 5  ;;  %v12833_v60 = vunpack.c.l.b16 %v6451_v25 }
 0x42f   : > { %v6741_v39 = vadd.f32 %v6665_v0, %v13150_v2  ;;  %8222 = vxpose.xlu0.b32.cont [3/16] (narrow) %v8190_v6, 8  ;;  %v12816_v6 = vrot.slane %v6462_v58, 5  ;;  %v7095_v46 = vsel %vm9914_vm6, %v7090_v9, %v12780_v57  ;;  %v6459_v57 = vor.u32 %v6458_v29, %v6455_v19  ;;  %v12845_v29 = vld [vmem:[%s9799_s10 + $0xb0] sm:$0x1] }
 0x430   : > { %v7109_v35 = vrot.slane %v7107_v59, 4  ;;  %v7624_v2 = vunpack.c.l.b16 %v7568_v53  ;;  %v6472_v22 = vshll.u32 %v12828_v27, 16  ;;  %v7966_v58 = vsel %vm9920_vm7, %v9523_v31, %v7965_v37  ;;  %v9459_v53 = vld [vmem:[%s9804_s13 + $0xa8] sm:$0xe] }
 0x431   : > { %v7395_v7 = vadd.f32 %v7319_v44, %v6741_v39  ;;  %v7720_v20 = vpop.f32.mrf.mxu0  ;;  %v7226_v39 = vunpack.c.l.b16 %v7095_v46  ;;  %v6460_v19 = vrot.slane %v6459_v57, 4  ;;  %v8022_v46 = vunpack.c.l.b16 %v7966_v58 }
 0x432   : > { %v8118_v45 = vpop.f32.mrf.mxu1  ;;  %v6474_v31 = vrot.slane %v6472_v22, 5  ;;  %v9475_v57 = vrot.slane %v9459_v53, 9  ;;  %v7577_v22 = vrot.slane %v12828_v27, 5  ;;  %v7975_v27 = vrot.slane %v12845_v29, 5 }
 0x433   : > { %9376 = vmatmul.msk.bf16.gmra.mxu2 %vm392_vm1, %v6592_v48  ;;  %9441 = vmatmul.msk.bf16.gmra.mxu3 %vm392_vm1, %v7246_v8  ;;  %v7793_v24 = vadd.f32 %v7717_v17, %v7395_v7  ;;  %v7105_v48 = vsel %vm9914_vm6, %v7100_v50, %v7104_v41  ;;  %v7571_v17 = vsel %vm9920_vm7, %v7569_v54, %v7570_v38  ;;  %v7967_v8 = vrot.slane %v7965_v37, 4 }
 0x434   : > { %9490 = vmatmul.msk.bf16.gmra.mxu0 %vm392_vm1, %v7644_v47  ;;  %v7116_v47 = vshll.u32 %v12810_v14, 16  ;;  %v7112_v41 = vrot.slane %v7110_v1, 5  ;;  %v7227_v9 = vunpack.c.l.b16 %v7105_v48  ;;  %v7625_v38 = vunpack.c.l.b16 %v7571_v17 }
 0x435   : > { %9539 = vmatmul.msk.bf16.gmra.mxu1 %vm392_vm1, %v8042_v43  ;;  %v8191_v5 = vadd.f32 %v8115_v52, %v7793_v24  ;;  %v7120_v43 = vshrl.u32 %v12810_v14, 16  ;;  %v6469_v52 = vor.u32 %v6468_v26, %v12816_v6  ;;  %v7969_v30 = vsel %vm9920_vm7, %v7967_v8, %v7968_v4 }
 0x436   : > { %v6668_v0 = vpop.f32.mrf.mxu2  ;;  %v7322_v44 = vpop.f32.mrf.mxu3  ;;  %v12842_v7 = vrot.slane %v7116_v47, 5  ;;  %v7113_v59 = vor.u32 %v7112_v41, %v7109_v35  ;;  %v6593_v24 = vpack.c.b16 %v12833_v60, %v12807_v32  ;;  %v7247_v26 = vpack.c.b16 %v7227_v9, %v7226_v39  ;;  %v13152_v41 = vld [vmem:[#allocation8_spill] sm:$0xff] }
 0x437   : > { %v6742_v23 = vadd.f32 %v6668_v0, %v13151_v13  ;;  %8223 = vxpose.xlu0.b32.cont [4/16] (narrow) %v8191_v5, 8  ;;  %v7122_v25 = vrot.slane %v7120_v43, 4  ;;  %v6470_v37 = vrot.slane %v6469_v52, 4  ;;  %v8023_v48 = vunpack.c.l.b16 %v7969_v30  ;;  %v9508_v43 = vld [vmem:[%s9799_s10 + $0xa8] sm:$0xe] }
 0x438   : > { %v7574_v17 = vrot.slane %v12796_v18, 5  ;;  %v7645_v5 = vpack.c.b16 %v7625_v38, %v7624_v2  ;;  %v7126_v47 = vshll.u32 %v12845_v29, 16  ;;  %v9356_v0 = vld [vmem:[%s9804_s13 + $0xb4] sm:$0xf]  ;;  %v6465_v32 = vsel %vm9914_vm6, %v6460_v19, %v12816_v6  ;;  %v12866_v30 = vld [vmem:[%s9804_s13 + $0xb8] sm:$0xf] }
 0x439   : > { %v7396_v36 = vadd.f32 %v7322_v44, %v6742_v23  ;;  %v7722_v50 = vpop.f32.mrf.mxu0  ;;  %v7123_v4 = vor.u32 %v7122_v25, %v12842_v7  ;;  %v7114_v60 = vrot.slane %v7113_v59, 4  ;;  %v7972_v35 = vrot.slane %v12810_v14, 5 }
 0x43a   : > { %v8120_v54 = vpop.f32.mrf.mxu1  ;;  %v6477_v13 = vshrl.u32 %v9356_v0, 16  ;;  %v6480_v23 = vshll.u32 %v9356_v0, 16  ;;  %v8043_v2 = vpack.c.b16 %v8023_v48, %v8022_v46  ;;  %v7576_v52 = vrot.slane %v7574_v17, 4  ;;  %v12880_v48 = vld [vmem:[%s9799_s10 + $0xb8] sm:$0xf] }
 0x43b   : > { %v7794_v1 = vadd.f32 %v7720_v20, %v7396_v36  ;;  %v9524_v39 = vrot.slane %v9508_v43, 9  ;;  %v12863_v14 = vunpack.c.l.b16 %v6465_v32  ;;  %v7124_v58 = vrot.slane %v7123_v4, 4  ;;  %v13153_v32 = vld [vmem:[#allocation9_spill] sm:$0xff] }
 0x43c   : > { %v7128_v36 = vrot.slane %v7126_v47, 5  ;;  %v7119_v19 = vsel %vm9914_vm6, %v7114_v60, %v12842_v7  ;;  %v7974_v59 = vrot.slane %v7972_v35, 4  ;;  %v6479_v53 = vrot.slane %v6477_v13, 4 }
 0x43d   : > { %v8192_v8 = vadd.f32 %v8118_v45, %v7794_v1  ;;  %v6475_v45 = vsel %vm9914_vm6, %v6470_v37, %v6474_v31  ;;  %v9421_v1 = vld [vmem:[%s9799_s10 + $0xb4] sm:$0xf]  ;;  %v7575_v31 = vsel %vm9920_vm7, %v9475_v57, %v7574_v17  ;;  %v6482_v46 = vrot.slane %v6480_v23, 5 }
 0x43e   : > { %v6670_v20 = vpop.f32.mrf.mxu2  ;;  %v7324_v44 = vpop.f32.mrf.mxu3  ;;  %v12868_v25 = vunpack.c.l.b16 %v6475_v45  ;;  %v7578_v7 = vsel %vm9920_vm7, %v7576_v52, %v7577_v22  ;;  %v7973_v29 = vsel %vm9920_vm7, %v9524_v39, %v7972_v35  ;;  %v7129_v17 = vsel %vm9914_vm6, %v7124_v58, %v7128_v36  ;;  %v12900_v35 = vld [vmem:[%s9804_s13 + $0xbc] sm:$0x1] }
 0x43f   : > { %v6743_v18 = vadd.f32 %v6670_v20, %v13152_v41  ;;  %8224 = vxpose.xlu0.b32.cont [5/16] (narrow) %v8192_v8, 8  ;;  %v7131_v8 = vshrl.u32 %v9421_v1, 16  ;;  %v7134_v4 = vshll.u32 %v9421_v1, 16  ;;  %v12892_v43 = vunpack.c.l.b16 %v7119_v19  ;;  %v12906_v19 = vld [vmem:[%s9799_s10 + $0xbc] sm:$0x1] }
 0x440   : > { %v7976_v0 = vsel %vm9920_vm7, %v7974_v59, %v7975_v27  ;;  %v7140_v20 = vshll.u32 %v12880_v48, 16  ;;  %v7627_v57 = vunpack.c.l.b16 %v7578_v7  ;;  %v6483_v41 = vor.u32 %v6482_v46, %v6479_v53 }
 0x441   : > { %v7397_v6 = vadd.f32 %v7324_v44, %v6743_v18  ;;  %v7725_v9 = vpop.f32.mrf.mxu0  ;;  %v7144_v44 = vshrl.u32 %v12880_v48, 16  ;;  %v7229_v18 = vunpack.c.l.b16 %v7129_v17  ;;  %v8024_v45 = vunpack.c.l.b16 %v7973_v29  ;;  %v9460_v29 = vld [vmem:[%s9804_s13 + $0xb4] sm:$0xe] }
 0x442   : > { %v8123_v38 = vpop.f32.mrf.mxu1  ;;  %v8025_v39 = vunpack.c.l.b16 %v7976_v0  ;;  %v7136_v58 = vrot.slane %v7134_v4, 5  ;;  %v6496_v36 = vshll.u32 %v12900_v35, 16  ;;  %v12908_v59 = vrot.slane %v7140_v20, 5  ;;  %v12920_v4 = vld [vmem:[%s9804_s13 + $0xc4] sm:$0xf] }
 0x443   : > { %9377 = vmatmul.msk.bf16.gmra.mxu2 %vm392_vm1, %v6593_v24  ;;  %9442 = vmatmul.msk.bf16.gmra.mxu3 %vm392_vm1, %v7247_v26  ;;  %v7795_v37 = vadd.f32 %v7722_v50, %v7397_v6  ;;  %v6486_v24 = vshll.u32 %v12866_v30, 16  ;;  %v6490_v50 = vshrl.u32 %v12866_v30, 16  ;;  %v7133_v6 = vrot.slane %v7131_v8, 4  ;;  %v9359_v8 = vld [vmem:[%s9804_s13 + $0xc0] sm:$0xf] }
 0x444   : > { %9491 = vmatmul.msk.bf16.gmra.mxu0 %vm392_vm1, %v7645_v5  ;;  %v7146_v27 = vrot.slane %v7144_v44, 4  ;;  %v7248_v53 = vpack.c.b16 %v7229_v18, %v12892_v43  ;;  %v7150_v17 = vshll.u32 %v12906_v19, 16  ;;  %v7979_v43 = vrot.slane %v12880_v48, 5  ;;  %v13154_v0 = vld [vmem:[#allocation10_spill] sm:$0xff]  ;;  %v9509_v44 = vld [vmem:[%s9799_s10 + $0xb4] sm:$0xe] }
 0x445   : > { %9540 = vmatmul.msk.bf16.gmra.mxu1 %vm392_vm1, %v8043_v2  ;;  %v8193_v26 = vadd.f32 %v8120_v54, %v7795_v37  ;;  %v7626_v54 = vunpack.c.l.b16 %v7575_v31  ;;  %v12902_v13 = vrot.slane %v6486_v24, 5  ;;  %v6492_v23 = vrot.slane %v6490_v50, 4 }
 0x446   : > { %v6673_v5 = vpop.f32.mrf.mxu2  ;;  %v7327_v47 = vpop.f32.mrf.mxu3  ;;  %v12910_v37 = vrot.slane %v6483_v41, 4  ;;  %v6594_v31 = vpack.c.b16 %v12868_v25, %v12863_v14  ;;  %v8044_v50 = vpack.c.b16 %v8025_v39, %v8024_v45  ;;  %v7147_v14 = vor.u32 %v7146_v27, %v12908_v59 }
 0x447   : > { %v6744_v60 = vadd.f32 %v6673_v5, %v13153_v32  ;;  %8225 = vxpose.xlu0.b32.cont [6/16] (narrow) %v8193_v26, 8  ;;  %v7646_v46 = vpack.c.b16 %v7627_v57, %v7626_v54  ;;  %v6493_v7 = vor.u32 %v6492_v23, %v12902_v13  ;;  %v7137_v26 = vor.u32 %v7136_v58, %v7133_v6  ;;  %v9424_v6 = vld [vmem:[%s9799_s10 + $0xc0] sm:$0xf] }
 0x448   : > { %v7581_v25 = vrot.slane %v12866_v30, 5  ;;  %v6501_v32 = vshrl.u32 %v9359_v8, 16  ;;  %v9476_v57 = vrot.slane %v9460_v29, 9  ;;  %v6510_v41 = vshll.u32 %v12920_v4, 16 }
 0x449   : > { %v7398_v2 = vadd.f32 %v7327_v47, %v6744_v60  ;;  %v7727_v52 = vpop.f32.mrf.mxu0  ;;  %v6498_v47 = vrot.slane %v6496_v36, 5  ;;  %v6504_v60 = vshll.u32 %v9359_v8, 16  ;;  %v6494_v54 = vrot.slane %v6493_v7, 4 }
 0x44a   : > { %v8125_v22 = vpop.f32.mrf.mxu1  ;;  %v6514_v30 = vshrl.u32 %v12920_v4, 16  ;;  %v7138_v23 = vrot.slane %v7137_v26, 4  ;;  %v7584_v39 = vrot.slane %v12900_v35, 5  ;;  %v7583_v58 = vrot.slane %v7581_v25, 4  ;;  %v12944_v35 = vld [vmem:[%s9804_s13 + $0xc8] sm:$0x1] }
 0x44b   : > { %v7796_v1 = vadd.f32 %v7725_v9, %v7398_v2  ;;  %v7152_v2 = vrot.slane %v7150_v17, 5  ;;  %v9525_v36 = vrot.slane %v9509_v44, 9  ;;  %v7981_v27 = vrot.slane %v7979_v43, 4 }
 0x44c   : > { %v6503_v7 = vrot.slane %v6501_v32, 4  ;;  %v6506_v29 = vrot.slane %v6504_v60, 5  ;;  %v12946_v26 = vrot.slane %v6510_v41, 5  ;;  %v6516_v17 = vrot.slane %v6514_v30, 4 }
 0x44d   : > { %v8194_v24 = vadd.f32 %v8123_v38, %v7796_v1  ;;  %v6489_v38 = vsel %vm9914_vm6, %v12910_v37, %v12902_v13  ;;  %v7148_v13 = vrot.slane %v7147_v14, 4  ;;  %v7982_v37 = vrot.slane %v12906_v19, 5 }
 0x44e   : > { %v6675_v9 = vpop.f32.mrf.mxu2  ;;  %v7329_v5 = vpop.f32.mrf.mxu3  ;;  %v7155_v8 = vshrl.u32 %v9424_v6, 16  ;;  %v7143_v19 = vsel %vm9914_vm6, %v7138_v23, %v12908_v59  ;;  %v7585_v14 = vsel %vm9920_vm7, %v7583_v58, %v7584_v39  ;;  %v7980_v59 = vsel %vm9920_vm7, %v9525_v36, %v7979_v43 }
 0x44f   : > { %v6745_v20 = vadd.f32 %v6675_v9, %v13154_v0  ;;  %8226 = vxpose.xlu0.b32.cont [7/16] (narrow) %v8194_v24, 8  ;;  %v12939_v24 = vld [vmem:[%s9799_s10 + $0xc4] sm:$0xf]  ;;  %v6520_v44 = vshll.u32 %v12944_v35, 16  ;;  %v6507_v32 = vor.u32 %v6506_v29, %v6503_v7  ;;  %v6517_v60 = vor.u32 %v6516_v17, %v12946_v26  ;;  %v12971_v7 = vld [vmem:[%s9799_s10 + $0xc8] sm:$0x1] }
 0x450   : > { %v7168_v0 = vshrl.u32 %v12939_v24, 16  ;;  %v6576_v23 = vunpack.c.l.b16 %v6489_v38  ;;  %v9461_v38 = vld [vmem:[%s9804_s13 + $0xc0] sm:$0xe] }
 0x451   : > { %v7399_v18 = vadd.f32 %v7329_v5, %v6745_v20  ;;  %v7730_v48 = vpop.f32.mrf.mxu0  ;;  %v7153_v5 = vsel %vm9914_vm6, %v7148_v13, %v7152_v2  ;;  %v6508_v29 = vrot.slane %v6507_v32, 4  ;;  %v6518_v17 = vrot.slane %v6517_v60, 4 }
 0x452   : > { %v8128_v45 = vpop.f32.mrf.mxu1  ;;  %v7231_v43 = vunpack.c.l.b16 %v7153_v5  ;;  %v7170_v58 = vrot.slane %v7168_v0, 4  ;;  %v13156_v5 = vld [vmem:[#allocation12_spill] sm:$0xff] }
 0x453   : > { %9378 = vmatmul.msk.bf16.gmra.mxu2 %vm392_vm1, %v6594_v31  ;;  %9443 = vmatmul.msk.bf16.gmra.mxu3 %vm392_vm1, %v7248_v53  ;;  %v7797_v1 = vadd.f32 %v7727_v52, %v7399_v18  ;;  %v7158_v31 = vshll.u32 %v9424_v6, 16  ;;  %v6499_v52 = vsel %vm9914_vm6, %v6494_v54, %v6498_v47  ;;  %v7582_v53 = vsel %vm9920_vm7, %v9476_v57, %v7581_v25  ;;  %v13155_v47 = vld [vmem:[#allocation11_spill] sm:$0xff] }
 0x454   : > { %9492 = vmatmul.msk.bf16.gmra.mxu0 %vm392_vm1, %v7646_v46  ;;  %v7983_v25 = vsel %vm9920_vm7, %v7981_v27, %v7982_v37  ;;  %v7157_v54 = vrot.slane %v7155_v8, 4  ;;  %v6577_v2 = vunpack.c.l.b16 %v6499_v52  ;;  %v7628_v39 = vunpack.c.l.b16 %v7582_v53 }
 0x455   : > { %9541 = vmatmul.msk.bf16.gmra.mxu1 %vm392_vm1, %v8044_v50  ;;  %v8195_v9 = vadd.f32 %v8125_v22, %v7797_v1  ;;  %v7164_v22 = vshll.u32 %v12939_v24, 16  ;;  %v7160_v57 = vrot.slane %v7158_v31, 5  ;;  %v7230_v6 = vunpack.c.l.b16 %v7143_v19 }
 0x456   : > { %v6678_v46 = vpop.f32.mrf.mxu2  ;;  %v7332_v50 = vpop.f32.mrf.mxu3  ;;  %v7629_v27 = vunpack.c.l.b16 %v7585_v14  ;;  %v8026_v1 = vunpack.c.l.b16 %v7980_v59  ;;  %v8027_v37 = vunpack.c.l.b16 %v7983_v25  ;;  %v6522_v8 = vrot.slane %v6520_v44, 5 }
 0x457   : > { %v6746_v20 = vadd.f32 %v6678_v46, %v13155_v47  ;;  %8227 = vxpose.xlu0.b32.cont [8/16] (narrow) %v8195_v9, 8  ;;  %v12968_v13 = vrot.slane %v7164_v22, 5  ;;  %v7161_v31 = vor.u32 %v7160_v57, %v7157_v54  ;;  %v7588_v52 = vrot.slane %v12920_v4, 5  ;;  %v9510_v57 = vld [vmem:[%s9799_s10 + $0xc0] sm:$0xe] }
 0x458   : > { %v6595_v46 = vpack.c.b16 %v6577_v2, %v6576_v23  ;;  %v7249_v22 = vpack.c.b16 %v7231_v43, %v7230_v6  ;;  %v7647_v0 = vpack.c.b16 %v7629_v27, %v7628_v39  ;;  %v8045_v47 = vpack.c.b16 %v8027_v37, %v8026_v1  ;;  %v9362_v6 = vld [vmem:[%s9804_s13 + $0xcc] sm:$0xf]  ;;  %v12992_v43 = vld [vmem:[%s9804_s13 + $0xd0] sm:$0xf] }
 0x459   : > { %v7400_v41 = vadd.f32 %v7332_v50, %v6746_v20  ;;  %v7732_v30 = vpop.f32.mrf.mxu0  ;;  %v7171_v50 = vor.u32 %v7170_v58, %v12968_v13  ;;  %v6523_v4 = vsel %vm9914_vm6, %v6518_v17, %v6522_v8  ;;  %v7162_v20 = vrot.slane %v7161_v31, 4  ;;  %v13008_v17 = vld [vmem:[%s9799_s10 + $0xd0] sm:$0xf] }
 0x45a   : > { %v8130_v18 = vpop.f32.mrf.mxu1  ;;  %v9477_v59 = vrot.slane %v9461_v38, 9  ;;  %v7590_v60 = vrot.slane %v7588_v52, 4  ;;  %v7591_v54 = vrot.slane %v12944_v35, 5  ;;  %v12996_v35 = vunpack.c.l.b16 %v6523_v4 }
 0x45b   : > { %v7798_v36 = vadd.f32 %v7730_v48, %v7400_v41  ;;  %v7174_v48 = vshll.u32 %v12971_v7, 16  ;;  %v7986_v41 = vrot.slane %v12939_v24, 5  ;;  %v7172_v23 = vrot.slane %v7171_v50, 4 }
 0x45c   : > { %v7167_v24 = vsel %vm9914_vm6, %v7162_v20, %v12968_v13  ;;  %v9526_v58 = vrot.slane %v9510_v57, 9  ;;  %v7592_v1 = vsel %vm9920_vm7, %v7590_v60, %v7591_v54  ;;  %v6525_v13 = vshrl.u32 %v9362_v6, 16 }
 0x45d   : > { %v8196_v9 = vadd.f32 %v8128_v45, %v7798_v36  ;;  %v6513_v45 = vsel %vm9914_vm6, %v6508_v29, %v12946_v26  ;;  %v7176_v2 = vrot.slane %v7174_v48, 5  ;;  %v9427_v36 = vld [vmem:[%s9799_s10 + $0xcc] sm:$0xf]  ;;  %v7988_v37 = vrot.slane %v7986_v41, 4 }
 0x45e   : > { %v6680_v53 = vpop.f32.mrf.mxu2  ;;  %v7334_v19 = vpop.f32.mrf.mxu3  ;;  %v12988_v39 = vunpack.c.l.b16 %v6513_v45  ;;  %v7989_v29 = vrot.slane %v12971_v7, 5  ;;  %v6528_v38 = vshll.u32 %v9362_v6, 16  ;;  %v7182_v50 = vshll.u32 %v9427_v36, 16 }
 0x45f   : > { %v6747_v14 = vadd.f32 %v6680_v53, %v13156_v5  ;;  %8228 = vxpose.xlu0.b32.cont [9/16] (narrow) %v8196_v9, 8  ;;  %v7177_v9 = vsel %vm9914_vm6, %v7172_v23, %v7176_v2  ;;  %v13157_v53 = vld [vmem:[#allocation13_spill] sm:$0xff]  ;;  %v7232_v7 = vunpack.c.l.b16 %v7167_v24  ;;  %v7188_v5 = vshll.u32 %v13008_v17, 16  ;;  %v13024_v23 = vld [vmem:[%s9804_s13 + $0xd4] sm:$0x1] }
 0x460   : > { %v7631_v45 = vunpack.c.l.b16 %v7592_v1  ;;  %v7987_v4 = vsel %vm9920_vm7, %v9526_v58, %v7986_v41  ;;  %v7990_v20 = vsel %vm9920_vm7, %v7988_v37, %v7989_v29  ;;  %v6530_v60 = vrot.slane %v6528_v38, 5  ;;  %v9429_v58 = vld [vmem:[%s9799_s10 + $0xd4] sm:$0x1] }
 0x461   : > { %v7401_v25 = vadd.f32 %v7334_v19, %v6747_v14  ;;  %v7735_v44 = vpop.f32.mrf.mxu0  ;;  %v7192_v14 = vshrl.u32 %v13008_v17, 16  ;;  %v7184_v6 = vrot.slane %v7182_v50, 5  ;;  %v8028_v24 = vunpack.c.l.b16 %v7987_v4 }
 0x462   : > { %v8133_v32 = vpop.f32.mrf.mxu1  ;;  %v6596_v29 = vpack.c.b16 %v12996_v35, %v12988_v39  ;;  %v7595_v50 = vrot.slane %v12992_v43, 5 }
 0x463   : > { %v7799_v26 = vadd.f32 %v7732_v30, %v7401_v25  ;;  %9379 = vmatmul.msk.bf16.gmra.mxu2 %vm392_vm1, %v6595_v46  ;;  %9444 = vmatmul.msk.bf16.gmra.mxu3 %vm392_vm1, %v7249_v22  ;;  %v7589_v30 = vsel %vm9920_vm7, %v9477_v59, %v7588_v52  ;;  %v6534_v52 = vshll.u32 %v12992_v43, 16  ;;  %v7179_v46 = vshrl.u32 %v9427_v36, 16 }
 0x464   : > { %9493 = vmatmul.msk.bf16.gmra.mxu0 %vm392_vm1, %v7647_v0  ;;  %v7630_v48 = vunpack.c.l.b16 %v7589_v30  ;;  %v7233_v59 = vunpack.c.l.b16 %v7177_v9  ;;  %v6527_v25 = vrot.slane %v6525_v13, 4  ;;  %v8029_v30 = vunpack.c.l.b16 %v7990_v20  ;;  %v13158_v9 = vld [vmem:[#allocation2_spill] sm:$0xff] }
 0x465   : > { %9542 = vmatmul.msk.bf16.gmra.mxu1 %vm392_vm1, %v8045_v47  ;;  %v8197_v27 = vadd.f32 %v8130_v18, %v7799_v26  ;;  %v6538_v18 = vshrl.u32 %v12992_v43, 16  ;;  %v13021_v54 = vrot.slane %v6534_v52, 5  ;;  %v7181_v26 = vrot.slane %v7179_v46, 4  ;;  %v9462_v46 = vld [vmem:[%s9804_s13 + $0xcc] sm:$0xe] }
 0x466   : > { %v6683_v8 = vpop.f32.mrf.mxu2  ;;  %v7337_v31 = vpop.f32.mrf.mxu3  ;;  %v7190_v36 = vrot.slane %v7188_v5, 5  ;;  %v7250_v38 = vpack.c.b16 %v7233_v59, %v7232_v7  ;;  %v9478_v59 = vrot.slane %v9462_v46, 9 }
 0x467   : > { %v6748_v19 = vadd.f32 %v6683_v8, %v13157_v53  ;;  %8229 = vxpose.xlu0.b32.cont [10/16] (narrow) %v8197_v27, 8  ;;  %v6540_v2 = vrot.slane %v6538_v18, 4  ;;  %v7194_v27 = vrot.slane %v7192_v14, 4  ;;  %v7648_v8 = vpack.c.b16 %v7631_v45, %v7630_v48  ;;  %v9511_v45 = vld [vmem:[%s9799_s10 + $0xcc] sm:$0xe] }
 0x468   : > { %v7185_v53 = vor.u32 %v7184_v6, %v7181_v26  ;;  %v7198_v18 = vshll.u32 %v9429_v58, 16  ;;  %v7993_v48 = vrot.slane %v13008_v17, 5  ;;  %v7598_v17 = vrot.slane %v13024_v23, 5 }
 0x469   : > { %v7402_v22 = vadd.f32 %v7337_v31, %v6748_v19  ;;  %v7737_v0 = vpop.f32.mrf.mxu0  ;;  %v6531_v31 = vor.u32 %v6530_v60, %v6527_v25  ;;  %v6541_v52 = vor.u32 %v6540_v2, %v13021_v54  ;;  %v7195_v19 = vor.u32 %v7194_v27, %v7190_v36 }
 0x46a   : > { %v8135_v47 = vpop.f32.mrf.mxu1  ;;  %v7186_v20 = vrot.slane %v7185_v53, 4  ;;  %v7200_v25 = vrot.slane %v7198_v18, 5  ;;  %v7597_v60 = vrot.slane %v7595_v50, 4  ;;  %v9527_v2 = vrot.slane %v9511_v45, 9 }
 0x46b   : > { %v7800_v57 = vadd.f32 %v7735_v44, %v7402_v22  ;;  %v6544_v44 = vshll.u32 %v13024_v23, 16  ;;  %v6532_v14 = vrot.slane %v6531_v31, 4  ;;  %v6542_v7 = vrot.slane %v6541_v52, 4 }
 0x46c   : > { %v7196_v43 = vrot.slane %v7195_v19, 4  ;;  %v7995_v26 = vrot.slane %v7993_v48, 4  ;;  %v7596_v23 = vsel %vm9920_vm7, %v9478_v59, %v7595_v50  ;;  %v7599_v31 = vsel %vm9920_vm7, %v7597_v60, %v7598_v17 }
 0x46d   : > { %v8198_v41 = vadd.f32 %v8133_v32, %v7800_v57  ;;  %v8046_v32 = vpack.c.b16 %v8029_v30, %v8028_v24  ;;  %v6546_v22 = vrot.slane %v6544_v44, 5  ;;  %v13159_v30 = vld [vmem:[#allocation3_spill] sm:$0xff]  ;;  %v7632_v52 = vunpack.c.l.b16 %v7596_v23 }
 0x46e   : > { %v6685_v1 = vpop.f32.mrf.mxu2  ;;  %v7339_v37 = vpop.f32.mrf.mxu3  ;;  %v7633_v53 = vunpack.c.l.b16 %v7599_v31 }
 0x46f   : > { %v6749_v13 = vadd.f32 %v6685_v1, %v13158_v9  ;;  %8230 = vxpose.xlu0.b32.cont [11/16] (narrow) %v8198_v41, 8  ;;  %v6537_v41 = vsel %vm9914_vm6, %v6532_v14, %v13021_v54  ;;  %v6547_v1 = vsel %vm9914_vm6, %v6542_v7, %v6546_v22  ;;  %v7994_v54 = vsel %vm9920_vm7, %v9527_v2, %v7993_v48 }
 0x470   : > { %v6580_v9 = vunpack.c.l.b16 %v6537_v41  ;;  %v7649_v22 = vpack.c.b16 %v7633_v53, %v7632_v52  ;;  %v13160_v53 = vld [vmem:[#allocation4_spill] sm:$0xff] }
 0x471   : > { %v7403_v5 = vadd.f32 %v7339_v37, %v6749_v13  ;;  %v7740_v39 = vpop.f32.mrf.mxu0  ;;  %v7191_v37 = vsel %vm9914_vm6, %v7186_v20, %v7190_v36  ;;  %v6581_v13 = vunpack.c.l.b16 %v6547_v1 }
 0x472   : > { %v8138_v35 = vpop.f32.mrf.mxu1  ;;  %v7234_v28 = vunpack.c.l.b16 %v7191_v37 }
 0x473   : > { %v7801_v4 = vadd.f32 %v7737_v0, %v7403_v5  ;;  %9380 = vmatmul.msk.bf16.gmra.mxu2 %vm392_vm1, %v6596_v29  ;;  %9445 = vmatmul.msk.bf16.gmra.mxu3 %vm392_vm1, %v7250_v38  ;;  %v7996_v0 = vrot.slane %v9429_v58, 5  ;;  %v6597_v14 = vpack.c.b16 %v6581_v13, %v6580_v9 }
 0x474   : > { %9494 = vmatmul.msk.bf16.gmra.mxu0 %vm392_vm1, %v7648_v8 }
 0x475   : > { %9543 = vmatmul.msk.bf16.gmra.mxu1 %vm392_vm1, %v8046_v32  ;;  %v8199_v57 = vadd.f32 %v8135_v47, %v7801_v4  ;;  %v7201_v47 = vsel %vm9914_vm6, %v7196_v43, %v7200_v25  ;;  %v7997_v44 = vsel %vm9920_vm7, %v7995_v26, %v7996_v0  ;;  %v8030_v32 = vunpack.c.l.b16 %v7994_v54 }
 0x476   : > { %v6688_v6 = vpop.f32.mrf.mxu2  ;;  %v7342_v24 = vpop.f32.mrf.mxu3  ;;  %v7235_v38 = vunpack.c.l.b16 %v7201_v47  ;;  %v8031_v19 = vunpack.c.l.b16 %v7997_v44 }
 0x477   : > { %v6750_v27 = vadd.f32 %v6688_v6, %v13159_v30  ;;  %8231 = vxpose.xlu0.b32.cont [12/16] (narrow) %v8199_v57, 8 }
 0x478   : > { %v7251_v48 = vpack.c.b16 %v7235_v38, %v7234_v28  ;;  %v8047_v33 = vpack.c.b16 %v8031_v19, %v8030_v32 }
 0x479   : > { %v7404_v58 = vadd.f32 %v7342_v24, %v6750_v27  ;;  %v7742_v29 = vpop.f32.mrf.mxu0 }
 0x47a   : > { %v8140_v8 = vpop.f32.mrf.mxu1 }
 0x47b   : > { %v7802_v36 = vadd.f32 %v7740_v39, %v7404_v58 }
 0x47d   : > { %v8200_v18 = vadd.f32 %v8138_v35, %v7802_v36 }
 0x47e   : > { %v6690_v46 = vpop.f32.mrf.mxu2  ;;  %v7344_v50 = vpop.f32.mrf.mxu3 }
 0x47f   : > { %v6751_v5 = vadd.f32 %v6690_v46, %v12047_v21  ;;  %8232 = vxpose.xlu0.b32.cont [13/16] (narrow) %v8200_v18, 8 }
 0x481   : > { %v7405_v45 = vadd.f32 %v7344_v50, %v6751_v5  ;;  %v7745_v4 = vpop.f32.mrf.mxu0 }
 0x482   : > { %v8143_v39 = vpop.f32.mrf.mxu1 }
 0x483   : > { %v7803_v7 = vadd.f32 %v7742_v29, %v7405_v45  ;;  %9381 = vmatmul.msk.bf16.gmra.mxu2 %vm392_vm1, %v6597_v14  ;;  %9446 = vmatmul.msk.bf16.gmra.mxu3 %vm392_vm1, %v7251_v48 }
 0x484   : > { %9495 = vmatmul.msk.bf16.gmra.mxu0 %vm392_vm1, %v7649_v22 }
 0x485   : > { %9544 = vmatmul.msk.bf16.gmra.mxu1 %vm392_vm1, %v8047_v33  ;;  %v8201_v35 = vadd.f32 %v8140_v8, %v7803_v7 }
 0x486   : > { %v6693_v20 = vpop.f32.mrf.mxu2  ;;  %v7347_v21 = vpop.f32.mrf.mxu3 }
 0x487   : > { %v6752_v59 = vadd.f32 %v6693_v20, %v12063_v34  ;;  %8233 = vxpose.xlu0.b32.cont [14/16] (narrow) %v8201_v35, 8 }
 0x489   : > { %v7406_v43 = vadd.f32 %v7347_v21, %v6752_v59  ;;  %v7747_v25 = vpop.f32.mrf.mxu0 }
 0x48a   : > { %v8145_v60 = vpop.f32.mrf.mxu1 }
 0x48b   : > { %v7804_v17 = vadd.f32 %v7745_v4, %v7406_v43 }
 0x48d   : > { %v8202_v57 = vadd.f32 %v8143_v39, %v7804_v17 }
 0x48e   : > { %v6695_v2 = vpop.f32.mrf.mxu2  ;;  %v7349_v26 = vpop.f32.mrf.mxu3 }
 0x48f   : > { %v6753_v0 = vadd.f32 %v6695_v2, %v12128_v16  ;;  %8234 = vxpose.xlu0.b32.cont [15/16] (narrow) %v8202_v57, 8 }
 0x491   : > { %v7407_v6 = vadd.f32 %v7349_v26, %v6753_v0  ;;  %v7750_v24 = vpop.f32.mrf.mxu0 }
 0x492   : > { %v8148_v30 = vpop.f32.mrf.mxu1 }
 0x493   : > { %v7805_v27 = vadd.f32 %v7747_v25, %v7407_v6 }
 0x495   : > { %v8203_v41 = vadd.f32 %v8145_v60, %v7805_v27 }
 0x496   : > { %v6698_v1 = vpop.f32.mrf.mxu2  ;;  %v7352_v37 = vpop.f32.mrf.mxu3 }
 0x497   : > { %v6754_v34 = vadd.f32 %v6698_v1, %v12156_v42  ;;  %8235 = vxpose.xlu0.b32.end [16/16] (narrow) %v8203_v41, 8 }
 0x499   : > { %v7408_v47 = vadd.f32 %v7352_v37, %v6754_v34  ;;  %v7752_v23 = vpop.f32.mrf.mxu0  ;;  %v8284_v34 = vld [vmem:[%s13096_s4] sm:$0xf] }
 0x49a   : > { %v8150_v58 = vpop.f32.mrf.mxu1 }
 0x49b   : > { %v7806_v29 = vadd.f32 %v7750_v24, %v7408_v47 }
 0x49d   : > { %v8204_v8 = vadd.f32 %v8148_v30, %v7806_v29 }
 0x49e   : > { %v6700_v31 = vpop.f32.mrf.mxu2  ;;  %v7354_v54 = vpop.f32.mrf.mxu3 }
 0x49f   : > { %v6755_v16 = vadd.f32 %v6700_v31, %v12200_v15  ;;  %8252 = vxpose.xlu1.b32.start [1/16] (narrow) %v8204_v8, 8 }
 0x4a1   : > { %v7409_v44 = vadd.f32 %v7354_v54, %v6755_v16  ;;  %v7755_v9 = vpop.f32.mrf.mxu0 }
 0x4a2   : > { %v8153_v36 = vpop.f32.mrf.mxu1 }
 0x4a3   : > { %v7807_v13 = vadd.f32 %v7752_v23, %v7409_v44 }
 0x4a5   : > { %v8205_v28 = vadd.f32 %v8150_v58, %v7807_v13 }
 0x4a6   : > { %v6703_v38 = vpop.f32.mrf.mxu2  ;;  %v7357_v52 = vpop.f32.mrf.mxu3 }
 0x4a7   : > { %v6756_v42 = vadd.f32 %v6703_v38, %v13160_v53  ;;  %8253 = vxpose.xlu1.b32.cont [2/16] (narrow) %v8205_v28, 8 }
 0x4a9   : > { %v7410_v32 = vadd.f32 %v7357_v52, %v6756_v42  ;;  %v7757_v19 = vpop.f32.mrf.mxu0 }
 0x4aa   : > { %v8155_v18 = vpop.f32.mrf.mxu1 }
 0x4ab   : > { %v7808_v46 = vadd.f32 %v7755_v9, %v7410_v32 }
 0x4ad   : > { %v8206_v50 = vadd.f32 %v8153_v36, %v7808_v46 }
 0x4ae   : > { %v6705_v5 = vpop.f32.mrf.mxu2  ;;  %v7359_v14 = vpop.f32.mrf.mxu3 }
 0x4af   : > { %v6757_v15 = vadd.f32 %v6705_v5, %v12303_v61  ;;  %8254 = vxpose.xlu1.b32.cont [3/16] (narrow) %v8206_v50, 8 }
 0x4b1   : > { %v7411_v48 = vadd.f32 %v7359_v14, %v6757_v15  ;;  %v7760_v22 = vpop.f32.mrf.mxu0 }
 0x4b2   : > { %v8158_v33 = vpop.f32.mrf.mxu1 }
 0x4b3   : > { %v7809_v45 = vadd.f32 %v7757_v19, %v7411_v48  ;;  %v13161_v48 = vld [vmem:[#allocation5_spill] sm:$0xff] }
 0x4b5   : > { %v8207_v4 = vadd.f32 %v8155_v18, %v7809_v45 }
 0x4b6   : > { %v6708_v39 = vpop.f32.mrf.mxu2  ;;  %v7362_v7 = vpop.f32.mrf.mxu3 }
 0x4b7   : > { %v6758_v35 = vadd.f32 %v6708_v39, %v12354_v56  ;;  %8255 = vxpose.xlu1.b32.cont [4/16] (narrow) %v8207_v4, 8 }
 0x4b9   : > { %v7412_v20 = vadd.f32 %v7362_v7, %v6758_v35  ;;  %v7762_v21 = vpop.f32.mrf.mxu0 }
 0x4ba   : > { %v8160_v59 = vpop.f32.mrf.mxu1 }
 0x4bb   : > { %v7810_v43 = vadd.f32 %v7760_v22, %v7412_v20 }
 0x4bd   : > { %v8208_v25 = vadd.f32 %v8158_v33, %v7810_v43 }
 0x4be   : > { %v6710_v60 = vpop.f32.mrf.mxu2  ;;  %v7364_v17 = vpop.f32.mrf.mxu3 }
 0x4bf   : > { %v6759_v61 = vadd.f32 %v6710_v60, %v12368_v10  ;;  %8256 = vxpose.xlu1.b32.cont [5/16] (narrow) %v8208_v25, 8  ;;  %v9730_v10 = vmov 0  }
 0x4c0   : > { %9656 = vset.pattern.permute.xlu2 %v9730_v10 }
 0x4c1   : > { %v7413_v57 = vadd.f32 %v7364_v17, %v6759_v61  ;;  %v7765_v2 = vpop.f32.mrf.mxu0  ;;  %8287 = vperm.xlu2 %9656, %v8284_v34  }
 0x4c2   : > { %v8163_v26 = vpop.f32.mrf.mxu1 }
 0x4c3   : > { %v7811_v0 = vadd.f32 %v7762_v21, %v7413_v57 }
 0x4c5   : > { %v8209_v6 = vadd.f32 %v8160_v59, %v7811_v0 }
 0x4c6   : > { %v6713_v24 = vpop.f32.mrf.mxu2  ;;  %v7367_v30 = vpop.f32.mrf.mxu3 }
 0x4c7   : > { %v6760_v56 = vadd.f32 %v6713_v24, %v12386_v11  ;;  %8257 = vxpose.xlu1.b32.cont [6/16] (narrow) %v8209_v6, 8 }
 0x4c9   : > { %v7414_v27 = vadd.f32 %v7367_v30, %v6760_v56  ;;  %v7767_v41 = vpop.f32.mrf.mxu0 }
 0x4ca   : > { %v8165_v1 = vpop.f32.mrf.mxu1 }
 0x4cb   : > { %v7812_v37 = vadd.f32 %v7765_v2, %v7414_v27 }
 0x4cd   : > { %v8210_v47 = vadd.f32 %v8163_v26, %v7812_v37 }
 0x4ce   : > { %v6715_v23 = vpop.f32.mrf.mxu2  ;;  %v7369_v58 = vpop.f32.mrf.mxu3 }
 0x4cf   : > { %v6761_v29 = vadd.f32 %v6715_v23, %v12459_v40  ;;  %8258 = vxpose.xlu1.b32.cont [7/16] (narrow) %v8210_v47, 8 }
 0x4d1   : > { %v7415_v8 = vadd.f32 %v7369_v58, %v6761_v29  ;;  %v7770_v11 = vpop.f32.mrf.mxu0 }
 0x4d2   : > { %v8168_v31 = vpop.f32.mrf.mxu1 }
 0x4d3   : > { %v7813_v54 = vadd.f32 %v7767_v41, %v7415_v8 }
 0x4d5   : > { %v8211_v16 = vadd.f32 %v8165_v1, %v7813_v54 }
 0x4d6   : > { %v6718_v44 = vpop.f32.mrf.mxu2  ;;  %v7372_v9 = vpop.f32.mrf.mxu3 }
 0x4d7   : > { %v6762_v36 = vadd.f32 %v6718_v44, %v12505_v12  ;;  %8259 = vxpose.xlu1.b32.cont [8/16] (narrow) %v8211_v16, 8 }
 0x4d9   : > { %v7416_v13 = vadd.f32 %v7372_v9, %v6762_v36  ;;  %v7772_v28 = vpop.f32.mrf.mxu0 }
 0x4da   : > { %v8170_v38 = vpop.f32.mrf.mxu1 }
 0x4db   : > { %v7814_v52 = vadd.f32 %v7770_v11, %v7416_v13 }
 0x4dd   : > { %v8212_v53 = vadd.f32 %v8168_v31, %v7814_v52 }
 0x4de   : > { %v6720_v42 = vpop.f32.mrf.mxu2  ;;  %v7374_v32 = vpop.f32.mrf.mxu3 }
 0x4df   : > { %v6763_v40 = vadd.f32 %v6720_v42, %v12514_v3  ;;  %8260 = vxpose.xlu1.b32.cont [9/16] (narrow) %v8212_v53, 8 }
 0x4e1   : > { %v7417_v19 = vadd.f32 %v7374_v32, %v6763_v40  ;;  %v7775_v18 = vpop.f32.mrf.mxu0 }
 0x4e2   : > { %v8173_v46 = vpop.f32.mrf.mxu1 }
 0x4e3   : > { %v7815_v50 = vadd.f32 %v7772_v28, %v7417_v19 }
 0x4e5   : > { %v8213_v5 = vadd.f32 %v8170_v38, %v7815_v50 }
 0x4e6   : > { %v6723_v14 = vpop.f32.mrf.mxu2  ;;  %v7377_v15 = vpop.f32.mrf.mxu3 }
 0x4e7   : > { %v6764_v12 = vadd.f32 %v6723_v14, %v13161_v48  ;;  %8261 = vxpose.xlu1.b32.cont [10/16] (narrow) %v8213_v5, 8 }
 0x4e9   : > { %v7418_v22 = vadd.f32 %v7377_v15, %v6764_v12  ;;  %v7777_v33 = vpop.f32.mrf.mxu0 }
 0x4ea   : > { %v8175_v4 = vpop.f32.mrf.mxu1 }
 0x4eb   : > { %v7816_v45 = vadd.f32 %v7775_v18, %v7418_v22 }
 0x4ed   : > { %v8214_v39 = vadd.f32 %v8173_v46, %v7816_v45 }
 0x4ee   : > { %v6725_v7 = vpop.f32.mrf.mxu2  ;;  %v7379_v35 = vpop.f32.mrf.mxu3 }
 0x4ef   : > { %v6765_v3 = vadd.f32 %v6725_v7, %v12601_v62  ;;  %8262 = vxpose.xlu1.b32.cont [11/16] (narrow) %v8214_v39, 8 }
 0x4f1   : > { %v7419_v20 = vadd.f32 %v7379_v35, %v6765_v3  ;;  %v7780_v59 = vpop.f32.mrf.mxu0 }
 0x4f2   : > { %v8178_v43 = vpop.f32.mrf.mxu1 }
 0x4f3   : > { %v7817_v21 = vadd.f32 %v7777_v33, %v7419_v20 }
 0x4f5   : > { %v8215_v25 = vadd.f32 %v8175_v4, %v7817_v21 }
 0x4f6   : > { %v6728_v60 = vpop.f32.mrf.mxu2  ;;  %v7382_v17 = vpop.f32.mrf.mxu3 }
 0x4f7   : > { %v6766_v61 = vadd.f32 %v6728_v60, %v12653_v49  ;;  %8263 = vxpose.xlu1.b32.cont [12/16] (narrow) %v8215_v25, 8 }
 0x4f9   : > { %v7420_v57 = vadd.f32 %v7382_v17, %v6766_v61  ;;  %v7782_v26 = vpop.f32.mrf.mxu0 }
 0x4fa   : > { %v8180_v30 = vpop.f32.mrf.mxu1 }
 0x4fb   : > { %v7818_v2 = vadd.f32 %v7780_v59, %v7420_v57 }
 0x4fd   : > { %v8216_v0 = vadd.f32 %v8178_v43, %v7818_v2 }
 0x4fe   : > { %v6730_v6 = vpop.f32.mrf.mxu2  ;;  %v7384_v24 = vpop.f32.mrf.mxu3  ;;  %9657 = vset.pattern.permute.xlu0 %v9730_v10 }
 0x4ff   : > { %v6767_v62 = vadd.f32 %v6730_v6, %v12663_v51  ;;  %8264 = vxpose.xlu1.b32.cont [13/16] (narrow) %v8216_v0, 8 }
 0x501   : > { %v7421_v56 = vadd.f32 %v7384_v24, %v6767_v62  ;;  %v7785_v49 = vpop.f32.mrf.mxu0 }
 0x502   : > { %v8183_v23 = vpop.f32.mrf.mxu1 }
 0x503   : > { %v7819_v27 = vadd.f32 %v7782_v26, %v7421_v56 }
 0x505   : > { %v8217_v41 = vadd.f32 %v8180_v30, %v7819_v27 }
 0x506   : > { %v6733_v1 = vpop.f32.mrf.mxu2  ;;  %v7387_v37 = vpop.f32.mrf.mxu3 }
 0x507   : > { %v6768_v34 = vadd.f32 %v6733_v1, %v12681_v63  ;;  %8265 = vxpose.xlu1.b32.cont [14/16] (narrow) %v8217_v41, 8  ;;  %v8236_v63 = vpop.trf.xlu0 }
 0x509   : > { %v7422_v47 = vadd.f32 %v7387_v37, %v6768_v34  ;;  %v7787_v31 = vpop.f32.mrf.mxu0 }
 0x50a   : > { %v8185_v16 = vpop.f32.mrf.mxu1 }
 0x50b   : > { %v7820_v58 = vadd.f32 %v7785_v49, %v7422_v47 }
 0x50d   : > { %v8218_v29 = vadd.f32 %v8183_v23, %v7820_v58 }
 0x50e   : > { %v6735_v8 = vpop.f32.mrf.mxu2  ;;  %v7389_v51 = vpop.f32.mrf.mxu3 }
 0x50f   : > { %v6769_v10 = vadd.f32 %v6735_v8, %v12744_v55  ;;  %8266 = vxpose.xlu1.b32.cont [15/16] (narrow) %v8218_v29, 8 }
 0x511   : > { %v7423_v11 = vadd.f32 %v7389_v51, %v6769_v10 }
 0x513   : > { %v7821_v54 = vadd.f32 %v7787_v31, %v7423_v11 }
 0x515   : > { %v8219_v44 = vadd.f32 %v8185_v16, %v7821_v54 }
 0x517   : > { %8267 = vxpose.xlu1.b32.end [16/16] (narrow) %v8219_v44, 8 }
 0x51b   : > { %v8288_v9 = vpop.permute.xlu2 %8287 }
 0x51c   : > { %v8290_v28 = vadd.f32 %v8288_v9, %v8236_v63 }
 0x51e   : > { %v8292_v55 = vmax.f32 %v8290_v28, 0.0 }
 0x543   : > { %v8268_v36 = vpop.trf.xlu1 }
 0x544   : > { %v8291_v13 = vadd.f32 %v8288_v9, %v8268_v36 }
 0x546   : > { %v8293_v38 = vmax.f32 %v8291_v13, 0.0 }
 0x548   : > { %v8296_v52 = vrot.slane %v8293_v38, 4 }
 0x54a   : > { %v8298_v53 = vsel %vm8297_vm8, %v8292_v55, %v8296_v52 }
 0x54b   : > { %8300 = vst [vmem:[%s244_s22] sm:$0xff] %v8298_v53 }
 0x54c PF: > { %s15_s18 = sadd.s32 1, %s9728_s18  }
 0x54d   : > { %p12_p4 = scmp.ge.s32.totalorder %s15_s18, 4  }
 0x54f   :  { %14 = sbr.rel (!%p12_p4) target bundleno = 1 (0x1), region = 93 }

</bundles_post_ra>
